<compile_context>
chip_gen: v7x
topology: tpu7x:2x2x1
jax: 0.10.0
libtpu: 0.0.40
codegen_flags: <defaults>
</compile_context>

<pallas_src>
import functools

import jax
import jax.numpy as jnp
from jax.experimental import pallas as pl
from jax.experimental.pallas import tpu as pltpu

NEG_SLOPE = 0.01     # nn.LeakyReLU default
BN_EPS = 1e-5        # nn.BatchNorm2d default


def _ru(x, m):
    return ((x + m - 1) // m) * m


def _cdiv(a, b):
    return -(-a // b)


# ----------------------------------------------------------------------------
# Pallas kernel builders (cached on static shapes)
# ----------------------------------------------------------------------------

@functools.lru_cache(maxsize=None)
def _build_matmul_stats(G, K, Np, TM, nmt, last_valid):
    """Batched fused conv-as-matmul:
         y[g] = A[g] @ W[g] + bias[g]      (bf16 x bf16 -> f32, stored bf16)
         stats[g, i] = per-M-tile [sum; sum of squares] over valid rows (f32).
       Grid (G, nmt), both 'parallel' (per-tile partial stats are reduced in
       glue, so there is no cross-core race).  Full-width N and full K."""
    Mp = nmt * TM
    needs_mask = last_valid != TM

    def kernel(a_ref, w_ref, b_ref, y_ref, s_ref):
        acc = jnp.dot(a_ref[...], w_ref[...],
                      preferred_element_type=jnp.float32) + b_ref[...]
        y_ref[...] = acc.astype(y_ref.dtype)

        def write_stats(v):
            s_ref[0:1, :] = jnp.sum(v, axis=0, keepdims=True)
            s_ref[1:2, :] = jnp.sum(v * v, axis=0, keepdims=True)

        if needs_mask:
            # Only the last M tile contains padded rows -> mask only there.
            i = pl.program_id(1)

            @pl.when(i == nmt - 1)
            def _():
                rows = jax.lax.broadcasted_iota(jnp.int32, acc.shape, 0)
                write_stats(jnp.where(rows < last_valid, acc, 0.0))

            @pl.when(i != nmt - 1)
            def _():
                write_stats(acc)
        else:
            write_stats(acc)

    return pl.pallas_call(
        kernel,
        out_shape=(jax.ShapeDtypeStruct((G, Mp, Np), jnp.bfloat16),
                   jax.ShapeDtypeStruct((G, nmt, 2, Np), jnp.float32)),
        grid_spec=pltpu.PrefetchScalarGridSpec(
            num_scalar_prefetch=0,
            grid=(G, nmt),
            in_specs=[
                pl.BlockSpec((None, TM, K), lambda g, i: (g, i, 0)),
                pl.BlockSpec((None, K, Np), lambda g, i: (g, 0, 0)),
                pl.BlockSpec((None, 1, Np), lambda g, i: (g, 0, 0)),
            ],
            out_specs=[
                pl.BlockSpec((None, TM, Np), lambda g, i: (g, i, 0)),
                pl.BlockSpec((None, None, 2, Np), lambda g, i: (g, i, 0, 0)),
            ],
        ),
        compiler_params=pltpu.CompilerParams(
            dimension_semantics=("parallel", "parallel")),
    )


@functools.lru_cache(maxsize=None)
def _build_bn_apply(Gout, Np, TM, nmt, g_off):
    """y * scale + shift then LeakyReLU with a per-channel slope (slope == 1.0
    means "no activation").  Reads slabs [g_off, g_off+Gout) of the stacked y
    input; bf16 in, bf16 out."""
    Mp = nmt * TM

    def kernel(y_ref, p_ref, o_ref):
        v = y_ref[...].astype(jnp.float32) * p_ref[0:1, :] + p_ref[1:2, :]
        o_ref[...] = jnp.where(v >= 0.0, v, p_ref[2:3, :] * v).astype(o_ref.dtype)

    return pl.pallas_call(
        kernel,
        out_shape=jax.ShapeDtypeStruct((Gout, Mp, Np), jnp.bfloat16),
        grid_spec=pltpu.PrefetchScalarGridSpec(
            num_scalar_prefetch=0,
            grid=(Gout, nmt),
            in_specs=[
                pl.BlockSpec((None, TM, Np), lambda g, i: (g + g_off, i, 0)),
                pl.BlockSpec((None, 3, Np), lambda g, i: (g, 0, 0)),
            ],
            out_specs=pl.BlockSpec((None, TM, Np), lambda g, i: (g, i, 0)),
        ),
        compiler_params=pltpu.CompilerParams(
            dimension_semantics=("parallel", "parallel")),
    )


@functools.lru_cache(maxsize=None)
def _build_tail(NE, NQ, TM, nmt):
    """Fused ResB tail: out = LeakyReLU(x0 + cat(x1, x2, x3, x4)).
       x0/x1 are extracted from the post-BN entry slab with a 0/1 selection
       matmul (no odd-offset lane slicing); x2/x3/x4 arrive as raw final-conv
       outputs whose channels already sit at their concat offsets, so their
       (activation-free) BatchNorm is just a per-channel FMA here."""
    assert NE == NQ
    Mp = nmt * TM

    def kernel(ent_ref, sel_ref, y2_ref, p2_ref, y3_ref, p3_ref, y4_ref, p4_ref,
               o_ref):
        s = jnp.dot(ent_ref[...], sel_ref[...],
                    preferred_element_type=jnp.float32)

        def bn(y_ref, p_ref):
            return y_ref[...].astype(jnp.float32) * p_ref[0:1, :] + p_ref[1:2, :]

        s = s + bn(y2_ref, p2_ref) + bn(y3_ref, p3_ref) + bn(y4_ref, p4_ref)
        o_ref[...] = jnp.where(s >= 0.0, s, NEG_SLOPE * s)

    yspec = pl.BlockSpec((None, TM, NQ), lambda i: (0, i, 0))
    pspec = pl.BlockSpec((2, NQ), lambda i: (0, 0))
    return pl.pallas_call(
        kernel,
        out_shape=jax.ShapeDtypeStruct((Mp, NE), jnp.float32),
        grid_spec=pltpu.PrefetchScalarGridSpec(
            num_scalar_prefetch=0,
            grid=(nmt,),
            in_specs=[
                pl.BlockSpec((TM, NE), lambda i: (i, 0)),
                pl.BlockSpec((NE, NE), lambda i: (0, 0)),
                yspec, pspec, yspec, pspec, yspec, pspec,
            ],
            out_specs=pl.BlockSpec((TM, NE), lambda i: (i, 0)),
        ),
        compiler_params=pltpu.CompilerParams(
            dimension_semantics=("parallel",)),
    )


# ----------------------------------------------------------------------------
# Glue helpers
# ----------------------------------------------------------------------------

def _im2col3(x):
    """(N, H, W, C) -> (N*H*W, 9*C) with 'same' padding; tap order (dy, dx)."""
    N, H, W, C = x.shape
    xp = jnp.pad(x, ((0, 0), (1, 1), (1, 1), (0, 0)))
    cols = [xp[:, dy:dy + H, dx:dx + W, :] for dy in range(3) for dx in range(3)]
    return jnp.concatenate(cols, axis=-1).reshape(N * H * W, 9 * C)


def _pick_tm(M):
    """M tile <= 512 with at most one sublane row of padding per forward."""
    nt = _cdiv(M, 512)
    TM = _ru(_cdiv(M, nt), 8)
    nmt = _cdiv(M, TM)
    return TM, nmt


def _pad_rows(a, Mp):
    M = a.shape[-2]
    if M == Mp:
        return a
    pad = [(0, 0)] * a.ndim
    pad[-2] = (0, Mp - M)
    return jnp.pad(a, pad)


def _bn_scale_shift(stats, gamma, beta, m_true):
    """Per-channel scale/shift from fused batch statistics (training-mode BN).
    TODO(synk): E[x^2]-E[x]^2 in f32 can cancel for large activation means;
    shifted sums or a Welford pass would be more robust."""
    cnt = jnp.float32(m_true)
    mean = stats[..., 0, :] / cnt
    var = jnp.maximum(stats[..., 1, :] / cnt - mean * mean, 0.0)
    scale = gamma * jax.lax.rsqrt(var + BN_EPS)
    shift = beta - mean * scale
    return scale, shift


# ----------------------------------------------------------------------------
# One-time parameter preparation (hoisted out of the forward path)
# ----------------------------------------------------------------------------

def prepare_params(p):
    cin = p['b0']['w'].shape[1]
    cout = p['b0']['w'].shape[0]
    q = cout // 4
    NE = _ru(2 * cout, 128)     # entry slab width
    NQ = _ru(q, 128)            # chain-conv slab width

    def flat3(w):  # torch (Co, Ci, 3, 3) -> (9*Ci, Co), matching _im2col3 order
        return jnp.transpose(w, (2, 3, 1, 0)).reshape(-1, w.shape[0])

    # -- fused entry pass layout: [x0 (cout) | x1 (q) | h2 (q) | h3 (q) | h4 (q)]
    w_ent = jnp.zeros((9 * cin, NE), jnp.float32)
    w_ent = w_ent.at[4 * cin:5 * cin, 0:cout].set(          # 1x1 at centre tap
        jnp.transpose(p['b0']['w'][:, :, 0, 0], (1, 0)))
    b_ent = jnp.zeros((NE,), jnp.float32).at[0:cout].set(p['b0']['b'])
    g_ent = jnp.ones((NE,), jnp.float32).at[0:cout].set(p['b0']['gamma'])
    be_ent = jnp.zeros((NE,), jnp.float32).at[0:cout].set(p['b0']['beta'])
    sl_ent = jnp.ones((NE,), jnp.float32)
    ent_convs = [p['b1'][0], p['b2'][0], p['b3'][0], p['b4'][0]]
    for j, cp in enumerate(ent_convs):
        off = cout + j * q
        w_ent = w_ent.at[:, off:off + q].set(flat3(cp['w']))
        b_ent = b_ent.at[off:off + q].set(cp['b'])
        g_ent = g_ent.at[off:off + q].set(cp['gamma'])
        be_ent = be_ent.at[off:off + q].set(cp['beta'])
        if j >= 1:   # first conv of branches 2/3/4 is followed by LeakyReLU
            sl_ent = sl_ent.at[off:off + q].set(NEG_SLOPE)

    entry = {'w': w_ent.astype(jnp.bfloat16)[None],   # (1, 9*cin, NE)
             'b': b_ent.reshape(1, 1, NE),
             'gamma': g_ent.reshape(1, NE),
             'beta': be_ent.reshape(1, NE),
             'slope': sl_ent.reshape(1, NE)}

    # -- chain convs, batched per depth; branch k's channels sit at column
    #    offset (k-1)*q of the 128-lane slab (matches cat(x1,x2,x3,x4)).
    depth_branches = [[2, 3, 4], [3, 4], [4]]   # first id at each depth is final
    chain = []
    for d, ids in enumerate(depth_branches):
        G = len(ids)
        w = jnp.zeros((G, 9 * q, NQ), jnp.float32)
        b = jnp.zeros((G, 1, NQ), jnp.float32)
        ga = jnp.zeros((G, NQ), jnp.float32)   # gamma==0 in pad cols -> bn out 0
        be = jnp.zeros((G, NQ), jnp.float32)
        sl = jnp.ones((G, NQ), jnp.float32)
        for gidx, k in enumerate(ids):
            cp = p['b%d' % k][d + 1]
            off = (k - 1) * q
            w = w.at[gidx, :, off:off + q].set(flat3(cp['w']))
            b = b.at[gidx, 0, off:off + q].set(cp['b'])
            ga = ga.at[gidx, off:off + q].set(cp['gamma'])
            be = be.at[gidx, off:off + q].set(cp['beta'])
            sl = sl.at[gidx, off:off + q].set(NEG_SLOPE)
        chain.append({'w': w.astype(jnp.bfloat16), 'b': b, 'gamma': ga,
                      'beta': be, 'slope': sl})

    arrays = {'entry': entry, 'chain': chain}
    if NE == NQ:
        # 0/1 selection matrix: identity on x0 columns plus the x1 columns
        # mapped to output lanes [0, q) -> ent @ sel == x0 + placed(x1).
        sel = jnp.zeros((NE, NE), jnp.float32)
        sel = sel.at[jnp.arange(cout), jnp.arange(cout)].set(1.0)
        sel = sel.at[cout + jnp.arange(q), jnp.arange(q)].set(1.0)
        arrays['sel'] = sel.astype(jnp.bfloat16)

    meta = {'cin': cin, 'cout': cout, 'q': q, 'NE': NE, 'NQ': NQ,
            'depth_branches': depth_branches}
    return {'arrays': arrays, 'meta': meta}


# ----------------------------------------------------------------------------
# ResB forward
# ----------------------------------------------------------------------------

def resb_fwd(x_nhwc, arrs, meta):
    N, H, W, _ = x_nhwc.shape
    cout, q = meta['cout'], meta['q']
    NE, NQ = meta['NE'], meta['NQ']
    M = N * H * W
    TM, nmt = _pick_tm(M)
    Mp = TM * nmt
    last_valid = M - (nmt - 1) * TM

    def conv_stats(patches_g, wgt):
        G, _, K = patches_g.shape
        Np = wgt['w'].shape[-1]
        y, part = _build_matmul_stats(G, K, Np, TM, nmt, last_valid)(
            patches_g, wgt['w'], wgt['b'])
        stats = jnp.sum(part, axis=1)                      # (G, 2, Np)
        scale, shift = _bn_scale_shift(stats, wgt['gamma'], wgt['beta'], M)
        return y, scale, shift

    # ---- fused entry pass (branch0 1x1 + the first 3x3 conv of branches 1..4)
    xb = x_nhwc.astype(jnp.bfloat16)
    pat = _pad_rows(_im2col3(xb), Mp)[None]                # (1, Mp, 9*cin) bf16
    ent_y, ent_sc, ent_sh = conv_stats(pat, arrs['entry'])
    ent_p = jnp.stack([ent_sc, ent_sh, arrs['entry']['slope']], axis=1)
    ent_bn = _build_bn_apply(1, NE, TM, nmt, 0)(ent_y, ent_p)[0]   # (Mp, NE) bf16

    # chain inputs: branch k's first-conv activations live at entry columns
    # [cout + (k-1)*q, cout + k*q)
    h = {k: ent_bn[:M, cout + (k - 1) * q: cout + k * q].reshape(N, H, W, q)
         for k in (2, 3, 4)}

    # ---- chain convs of branches 2/3/4, batched per depth
    finals = {}
    for d, ids in enumerate(meta['depth_branches']):
        wgt = arrs['chain'][d]
        pat = jnp.stack([_pad_rows(_im2col3(h[k]), Mp) for k in ids])
        y, sc, sh = conv_stats(pat, wgt)
        # The first branch at this depth ends here: keep its raw conv output;
        # its final (activation-free) BatchNorm is folded into the tail kernel.
        finals[ids[0]] = (y, jnp.stack([sc[0], sh[0]]))
        if len(ids) > 1:
            pcont = jnp.stack([sc[1:], sh[1:], wgt['slope'][1:]], axis=1)
            hbn = _build_bn_apply(len(ids) - 1, NQ, TM, nmt, 1)(y, pcont)
            for j, k in enumerate(ids[1:]):
                off = (k - 1) * q
                h[k] = hbn[j, :M, off:off + q].reshape(N, H, W, q)

    # ---- fused tail: x0 + cat(x1, x2, x3, x4), LeakyReLU
    if 'sel' in arrs:
        y2, p2 = finals[2]
        y3, p3 = finals[3]
        y4, p4 = finals[4]
        out_full = _build_tail(NE, NQ, TM, nmt)(
            ent_bn, arrs['sel'], y2, p2, y3, p3, y4, p4)   # (Mp, NE) f32
        out = out_full[:M, :cout]
    else:
        # TODO(synk): wide-channel fallback (2*cout > 128) stays in XLA glue.
        xs = []
        for k in (2, 3, 4):
            y, pk = finals[k]
            v = y[0, :M].astype(jnp.float32) * pk[0] + pk[1]
            xs.append(v[:, (k - 1) * q:k * q])
        x0 = ent_bn[:M, :cout].astype(jnp.float32)
        x1 = ent_bn[:M, cout:cout + q].astype(jnp.float32)
        s = x0 + jnp.concatenate([x1] + xs, axis=1)
        out = jnp.where(s >= 0.0, s, NEG_SLOPE * s)

    return out.reshape(N, H, W, cout)


def resb_forward(x_nchw, arrs, meta):
    x = jnp.transpose(x_nchw, (0, 2, 3, 1)).astype(jnp.float32)   # NCHW -> NHWC
    y = resb_fwd(x, arrs, meta)
    return jnp.transpose(y, (0, 3, 1, 2))                          # NHWC -> NCHW


# ----------------------------------------------------------------------------
# Deterministic parameter construction (shapes from the torch __init__)
# ----------------------------------------------------------------------------

class _KeyGen:
    def __init__(self, seed):
        self.key = jax.random.PRNGKey(seed)

    def __call__(self):
        self.key, sub = jax.random.split(self.key)
        return sub


def _make_params(in_ch, out_ch, seed=0):
    kg = _KeyGen(seed)

    def cbn_p(cin, cout, k):
        fan = cin * k * k
        return {'w': jax.random.normal(kg(), (cout, cin, k, k), jnp.float32)
                     / jnp.sqrt(jnp.float32(fan)),
                'b': 0.1 * jax.random.normal(kg(), (cout,), jnp.float32),
                'gamma': 1.0 + 0.1 * jax.random.normal(kg(), (cout,), jnp.float32),
                'beta': 0.1 * jax.random.normal(kg(), (cout,), jnp.float32)}

    q = out_ch // 4
    return {'b0': cbn_p(in_ch, out_ch, 1),
            'b1': [cbn_p(in_ch, q, 3)],
            'b2': [cbn_p(in_ch, q, 3), cbn_p(q, q, 3)],
            'b3': [cbn_p(in_ch, q, 3), cbn_p(q, q, 3), cbn_p(q, q, 3)],
            'b4': [cbn_p(in_ch, q, 3), cbn_p(q, q, 3), cbn_p(q, q, 3),
                   cbn_p(q, q, 3)]}


# ----------------------------------------------------------------------------

if __name__ == "__main__":
    IN_CH, OUT_CH = 4, 16
    params = _make_params(IN_CH, OUT_CH, seed=0)
    prep = prepare_params(params)            # one-time weight preprocessing
    x = jax.random.normal(jax.random.PRNGKey(0), (2, IN_CH, 16, 16), jnp.float32)

    meta = prep['meta']
    fwd = jax.jit(lambda xx, arrs: resb_forward(xx, arrs, meta))
    out = jax.block_until_ready(fwd(x, prep['arrays']))

    assert out.shape == (2, OUT_CH, 16, 16), out.shape
    assert bool(jnp.all(jnp.isfinite(out)))
    print("KERNEL_OK")
</pallas_src>

<mosaic_0001>
module attributes {stable_mosaic.version = 11 : i64} {
  func.func @kernel(%arg0: i32, %arg1: i32, %arg2: memref<1x512x36xbf16, #tpu.memory_space<vmem>>, %arg3: memref<1x36x128xbf16, #tpu.memory_space<vmem>>, %arg4: memref<1x1x128xf32, #tpu.memory_space<vmem>>, %arg5: memref<1x512x128xbf16, #tpu.memory_space<vmem>>, %arg6: memref<1x1x2x128xf32, #tpu.memory_space<vmem>>) attributes {dimension_semantics = [#tpu.dimension_semantics<parallel>, #tpu.dimension_semantics<parallel>], iteration_bounds = array<i64: 1, 1>, scalar_prefetch = 0 : i64, scratch_operands = 0 : i64, tpu.core_type = #tpu.core_type<tc>, window_params = [{transform_indices = @transform_0, window_bounds = array<i64: 1, 512, 36>}, {transform_indices = @transform_1, window_bounds = array<i64: 1, 36, 128>}, {transform_indices = @transform_2, window_bounds = array<i64: 1, 1, 128>}, {transform_indices = @transform_3, window_bounds = array<i64: 1, 512, 128>}, {transform_indices = @transform_4, window_bounds = array<i64: 1, 1, 2, 128>}]} {
    %c0 = arith.constant 0 : index
    %c0_0 = arith.constant 0 : index
    %c0_1 = arith.constant 0 : index
    %0 = vector.load %arg2[%c0, %c0_0, %c0_1] : memref<1x512x36xbf16, #tpu.memory_space<vmem>>, vector<1x512x36xbf16>
    %1 = vector.shape_cast %0 : vector<1x512x36xbf16> to vector<512x36xbf16>
    %c0_2 = arith.constant 0 : index
    %c0_3 = arith.constant 0 : index
    %c0_4 = arith.constant 0 : index
    %2 = vector.load %arg3[%c0_2, %c0_3, %c0_4] : memref<1x36x128xbf16, #tpu.memory_space<vmem>>, vector<1x36x128xbf16>
    %3 = vector.shape_cast %2 : vector<1x36x128xbf16> to vector<36x128xbf16>
    %cst = arith.constant dense<0.000000e+00> : vector<512x128xf32>
    %4 = tpu.matmul %1, %3, %cst {dimension_numbers = #tpu.dot_dimension_numbers<[1], [0], [0], [1], [0, 0, 1, 1], [], []>} : vector<512x36xbf16>, vector<36x128xbf16>, vector<512x128xf32> -> vector<512x128xf32>
    %c0_5 = arith.constant 0 : index
    %c0_6 = arith.constant 0 : index
    %c0_7 = arith.constant 0 : index
    %5 = vector.load %arg4[%c0_5, %c0_6, %c0_7] : memref<1x1x128xf32, #tpu.memory_space<vmem>>, vector<1x1x128xf32>
    %6 = vector.shape_cast %5 : vector<1x1x128xf32> to vector<1x128xf32>
    %7 = vector.broadcast %6 : vector<1x128xf32> to vector<512x128xf32>
    %8 = arith.addf %4, %7 : vector<512x128xf32>
    %9 = arith.truncf %8 : vector<512x128xf32> to vector<512x128xbf16>
    %c0_8 = arith.constant 0 : index
    %c0_9 = arith.constant 0 : index
    %c0_10 = arith.constant 0 : index
    %10 = vector.load %arg5[%c0_8, %c0_9, %c0_10] : memref<1x512x128xbf16, #tpu.memory_space<vmem>>, vector<1x512x128xbf16>
    %11 = vector.shape_cast %10 : vector<1x512x128xbf16> to vector<512x128xbf16>
    %12 = vector.shape_cast %9 : vector<512x128xbf16> to vector<1x512x128xbf16>
    tpu.vector_store %arg5[%c0_8, %c0_9, %c0_10], %12 {strides = array<i32>} : memref<1x512x128xbf16, #tpu.memory_space<vmem>>, vector<1x512x128xbf16>,
    %cst_11 = arith.constant dense<0.000000e+00> : vector<128xf32>
    %13 = vector.multi_reduction <add>, %8, %cst_11 [0] : vector<512x128xf32> to vector<128xf32>
    %14 = vector.shape_cast %13 : vector<128xf32> to vector<1x128xf32>
    %c0_12 = arith.constant 0 : index
    %c0_13 = arith.constant 0 : index
    %c0_14 = arith.constant 0 : index
    %c0_15 = arith.constant 0 : index
    %15 = vector.load %arg6[%c0_12, %c0_13, %c0_14, %c0_15] : memref<1x1x2x128xf32, #tpu.memory_space<vmem>>, vector<1x1x1x128xf32>
    %16 = vector.shape_cast %15 : vector<1x1x1x128xf32> to vector<1x128xf32>
    %17 = vector.shape_cast %14 : vector<1x128xf32> to vector<1x1x1x128xf32>
    tpu.vector_store %arg6[%c0_12, %c0_13, %c0_14, %c0_15], %17 {strides = array<i32>} : memref<1x1x2x128xf32, #tpu.memory_space<vmem>>, vector<1x1x1x128xf32>,
    %18 = arith.mulf %8, %8 : vector<512x128xf32>
    %cst_16 = arith.constant dense<0.000000e+00> : vector<128xf32>
    %19 = vector.multi_reduction <add>, %18, %cst_16 [0] : vector<512x128xf32> to vector<128xf32>
    %20 = vector.shape_cast %19 : vector<128xf32> to vector<1x128xf32>
    %c0_17 = arith.constant 0 : index
    %c0_18 = arith.constant 0 : index
    %c1 = arith.constant 1 : index
    %c0_19 = arith.constant 0 : index
    %21 = vector.load %arg6[%c0_17, %c0_18, %c1, %c0_19] : memref<1x1x2x128xf32, #tpu.memory_space<vmem>>, vector<1x1x1x128xf32>
    %22 = vector.shape_cast %21 : vector<1x1x1x128xf32> to vector<1x128xf32>
    %23 = vector.shape_cast %20 : vector<1x128xf32> to vector<1x1x1x128xf32>
    tpu.vector_store %arg6[%c0_17, %c0_18, %c1, %c0_19], %23 {strides = array<i32>} : memref<1x1x2x128xf32, #tpu.memory_space<vmem>>, vector<1x1x1x128xf32>,
    return
  }
  func.func @transform_0(%arg0: i32, %arg1: i32) -> (i32, i32, i32) {
    %c0_i32 = arith.constant 0 : i32
    %c0_i32_0 = arith.constant 0 : i32
    return %arg0, %arg1, %c0_i32 : i32, i32, i32
  }
  func.func @transform_1(%arg0: i32, %arg1: i32) -> (i32, i32, i32) {
    %c0_i32 = arith.constant 0 : i32
    %c0_i32_0 = arith.constant 0 : i32
    %c0_i32_1 = arith.constant 0 : i32
    return %arg0, %c0_i32, %c0_i32_0 : i32, i32, i32
  }
  func.func @transform_2(%arg0: i32, %arg1: i32) -> (i32, i32, i32) {
    %c0_i32 = arith.constant 0 : i32
    %c0_i32_0 = arith.constant 0 : i32
    %c0_i32_1 = arith.constant 0 : i32
    return %arg0, %c0_i32, %c0_i32_0 : i32, i32, i32
  }
  func.func @transform_3(%arg0: i32, %arg1: i32) -> (i32, i32, i32) {
    %c0_i32 = arith.constant 0 : i32
    %c0_i32_0 = arith.constant 0 : i32
    return %arg0, %arg1, %c0_i32 : i32, i32, i32
  }
  func.func @transform_4(%arg0: i32, %arg1: i32) -> (i32, i32, i32, i32) {
    %c0_i32 = arith.constant 0 : i32
    %c0_i32_0 = arith.constant 0 : i32
    %c0_i32_1 = arith.constant 0 : i32
    return %arg0, %arg1, %c0_i32, %c0_i32_0 : i32, i32, i32, i32
  }
}

module attributes {stable_mosaic.version = 11 : i64} {
  func.func @kernel(%arg0: i32, %arg1: i32, %arg2: memref<1x512x128xbf16, #tpu.memory_space<vmem>>, %arg3: memref<1x3x128xf32, #tpu.memory_space<vmem>>, %arg4: memref<1x512x128xbf16, #tpu.memory_space<vmem>>) attributes {dimension_semantics = [#tpu.dimension_semantics<parallel>, #tpu.dimension_semantics<parallel>], iteration_bounds = array<i64: 1, 1>, scalar_prefetch = 0 : i64, scratch_operands = 0 : i64, tpu.core_type = #tpu.core_type<tc>, window_params = [{transform_indices = @transform_0, window_bounds = array<i64: 1, 512, 128>}, {transform_indices = @transform_1, window_bounds = array<i64: 1, 3, 128>}, {transform_indices = @transform_2, window_bounds = array<i64: 1, 512, 128>}]} {
    %c0 = arith.constant 0 : index
    %c0_0 = arith.constant 0 : index
    %c0_1 = arith.constant 0 : index
    %0 = vector.load %arg2[%c0, %c0_0, %c0_1] : memref<1x512x128xbf16, #tpu.memory_space<vmem>>, vector<1x512x128xbf16>
    %1 = vector.shape_cast %0 : vector<1x512x128xbf16> to vector<512x128xbf16>
    %2 = arith.extf %1 : vector<512x128xbf16> to vector<512x128xf32>
    %c0_2 = arith.constant 0 : index
    %c0_3 = arith.constant 0 : index
    %c0_4 = arith.constant 0 : index
    %3 = vector.load %arg3[%c0_2, %c0_3, %c0_4] : memref<1x3x128xf32, #tpu.memory_space<vmem>>, vector<1x1x128xf32>
    %4 = vector.shape_cast %3 : vector<1x1x128xf32> to vector<1x128xf32>
    %5 = vector.broadcast %4 : vector<1x128xf32> to vector<512x128xf32>
    %6 = arith.mulf %2, %5 : vector<512x128xf32>
    %c0_5 = arith.constant 0 : index
    %c1 = arith.constant 1 : index
    %c0_6 = arith.constant 0 : index
    %7 = vector.load %arg3[%c0_5, %c1, %c0_6] : memref<1x3x128xf32, #tpu.memory_space<vmem>>, vector<1x1x128xf32>
    %8 = vector.shape_cast %7 : vector<1x1x128xf32> to vector<1x128xf32>
    %9 = vector.broadcast %8 : vector<1x128xf32> to vector<512x128xf32>
    %10 = arith.addf %6, %9 : vector<512x128xf32>
    %cst = arith.constant 0.000000e+00 : f32
    %11 = vector.broadcast %cst : f32 to vector<512x128xf32>
    %12 = arith.cmpf oge, %10, %11 : vector<512x128xf32>
    %c0_7 = arith.constant 0 : index
    %c2 = arith.constant 2 : index
    %c0_8 = arith.constant 0 : index
    %13 = vector.load %arg3[%c0_7, %c2, %c0_8] : memref<1x3x128xf32, #tpu.memory_space<vmem>>, vector<1x1x128xf32>
    %14 = vector.shape_cast %13 : vector<1x1x128xf32> to vector<1x128xf32>
    %15 = vector.broadcast %14 : vector<1x128xf32> to vector<512x128xf32>
    %16 = arith.mulf %15, %10 : vector<512x128xf32>
    %17 = arith.select %12, %10, %16 : vector<512x128xi1>, vector<512x128xf32>
    %18 = arith.truncf %17 : vector<512x128xf32> to vector<512x128xbf16>
    %c0_9 = arith.constant 0 : index
    %c0_10 = arith.constant 0 : index
    %c0_11 = arith.constant 0 : index
    %19 = vector.load %arg4[%c0_9, %c0_10, %c0_11] : memref<1x512x128xbf16, #tpu.memory_space<vmem>>, vector<1x512x128xbf16>
    %20 = vector.shape_cast %19 : vector<1x512x128xbf16> to vector<512x128xbf16>
    %21 = vector.shape_cast %18 : vector<512x128xbf16> to vector<1x512x128xbf16>
    tpu.vector_store %arg4[%c0_9, %c0_10, %c0_11], %21 {strides = array<i32>} : memref<1x512x128xbf16, #tpu.memory_space<vmem>>, vector<1x512x128xbf16>,
    return
  }
  func.func @transform_0(%arg0: i32, %arg1: i32) -> (i32, i32, i32) {
    %c0_i32 = arith.constant 0 : i32
    %0 = arith.addi %arg0, %c0_i32 : i32
    %c0_i32_0 = arith.constant 0 : i32
    %c0_i32_1 = arith.constant 0 : i32
    return %0, %arg1, %c0_i32_0 : i32, i32, i32
  }
  func.func @transform_1(%arg0: i32, %arg1: i32) -> (i32, i32, i32) {
    %c0_i32 = arith.constant 0 : i32
    %c0_i32_0 = arith.constant 0 : i32
    %c0_i32_1 = arith.constant 0 : i32
    return %arg0, %c0_i32, %c0_i32_0 : i32, i32, i32
  }
  func.func @transform_2(%arg0: i32, %arg1: i32) -> (i32, i32, i32) {
    %c0_i32 = arith.constant 0 : i32
    %c0_i32_0 = arith.constant 0 : i32
    return %arg0, %arg1, %c0_i32 : i32, i32, i32
  }
}

module attributes {stable_mosaic.version = 11 : i64} {
  func.func @kernel(%arg0: i32, %arg1: i32, %arg2: memref<1x512x36xbf16, #tpu.memory_space<vmem>>, %arg3: memref<1x36x128xbf16, #tpu.memory_space<vmem>>, %arg4: memref<1x1x128xf32, #tpu.memory_space<vmem>>, %arg5: memref<1x512x128xbf16, #tpu.memory_space<vmem>>, %arg6: memref<1x1x2x128xf32, #tpu.memory_space<vmem>>) attributes {dimension_semantics = [#tpu.dimension_semantics<parallel>, #tpu.dimension_semantics<parallel>], iteration_bounds = array<i64: 3, 1>, scalar_prefetch = 0 : i64, scratch_operands = 0 : i64, tpu.core_type = #tpu.core_type<tc>, window_params = [{transform_indices = @transform_0, window_bounds = array<i64: 1, 512, 36>}, {transform_indices = @transform_1, window_bounds = array<i64: 1, 36, 128>}, {transform_indices = @transform_2, window_bounds = array<i64: 1, 1, 128>}, {transform_indices = @transform_3, window_bounds = array<i64: 1, 512, 128>}, {transform_indices = @transform_4, window_bounds = array<i64: 1, 1, 2, 128>}]} {
    %c0 = arith.constant 0 : index
    %c0_0 = arith.constant 0 : index
    %c0_1 = arith.constant 0 : index
    %0 = vector.load %arg2[%c0, %c0_0, %c0_1] : memref<1x512x36xbf16, #tpu.memory_space<vmem>>, vector<1x512x36xbf16>
    %1 = vector.shape_cast %0 : vector<1x512x36xbf16> to vector<512x36xbf16>
    %c0_2 = arith.constant 0 : index
    %c0_3 = arith.constant 0 : index
    %c0_4 = arith.constant 0 : index
    %2 = vector.load %arg3[%c0_2, %c0_3, %c0_4] : memref<1x36x128xbf16, #tpu.memory_space<vmem>>, vector<1x36x128xbf16>
    %3 = vector.shape_cast %2 : vector<1x36x128xbf16> to vector<36x128xbf16>
    %cst = arith.constant dense<0.000000e+00> : vector<512x128xf32>
    %4 = tpu.matmul %1, %3, %cst {dimension_numbers = #tpu.dot_dimension_numbers<[1], [0], [0], [1], [0, 0, 1, 1], [], []>} : vector<512x36xbf16>, vector<36x128xbf16>, vector<512x128xf32> -> vector<512x128xf32>
    %c0_5 = arith.constant 0 : index
    %c0_6 = arith.constant 0 : index
    %c0_7 = arith.constant 0 : index
    %5 = vector.load %arg4[%c0_5, %c0_6, %c0_7] : memref<1x1x128xf32, #tpu.memory_space<vmem>>, vector<1x1x128xf32>
    %6 = vector.shape_cast %5 : vector<1x1x128xf32> to vector<1x128xf32>
    %7 = vector.broadcast %6 : vector<1x128xf32> to vector<512x128xf32>
    %8 = arith.addf %4, %7 : vector<512x128xf32>
    %9 = arith.truncf %8 : vector<512x128xf32> to vector<512x128xbf16>
    %c0_8 = arith.constant 0 : index
    %c0_9 = arith.constant 0 : index
    %c0_10 = arith.constant 0 : index
    %10 = vector.load %arg5[%c0_8, %c0_9, %c0_10] : memref<1x512x128xbf16, #tpu.memory_space<vmem>>, vector<1x512x128xbf16>
    %11 = vector.shape_cast %10 : vector<1x512x128xbf16> to vector<512x128xbf16>
    %12 = vector.shape_cast %9 : vector<512x128xbf16> to vector<1x512x128xbf16>
    tpu.vector_store %arg5[%c0_8, %c0_9, %c0_10], %12 {strides = array<i32>} : memref<1x512x128xbf16, #tpu.memory_space<vmem>>, vector<1x512x128xbf16>,
    %cst_11 = arith.constant dense<0.000000e+00> : vector<128xf32>
    %13 = vector.multi_reduction <add>, %8, %cst_11 [0] : vector<512x128xf32> to vector<128xf32>
    %14 = vector.shape_cast %13 : vector<128xf32> to vector<1x128xf32>
    %c0_12 = arith.constant 0 : index
    %c0_13 = arith.constant 0 : index
    %c0_14 = arith.constant 0 : index
    %c0_15 = arith.constant 0 : index
    %15 = vector.load %arg6[%c0_12, %c0_13, %c0_14, %c0_15] : memref<1x1x2x128xf32, #tpu.memory_space<vmem>>, vector<1x1x1x128xf32>
    %16 = vector.shape_cast %15 : vector<1x1x1x128xf32> to vector<1x128xf32>
    %17 = vector.shape_cast %14 : vector<1x128xf32> to vector<1x1x1x128xf32>
    tpu.vector_store %arg6[%c0_12, %c0_13, %c0_14, %c0_15], %17 {strides = array<i32>} : memref<1x1x2x128xf32, #tpu.memory_space<vmem>>, vector<1x1x1x128xf32>,
    %18 = arith.mulf %8, %8 : vector<512x128xf32>
    %cst_16 = arith.constant dense<0.000000e+00> : vector<128xf32>
    %19 = vector.multi_reduction <add>, %18, %cst_16 [0] : vector<512x128xf32> to vector<128xf32>
    %20 = vector.shape_cast %19 : vector<128xf32> to vector<1x128xf32>
    %c0_17 = arith.constant 0 : index
    %c0_18 = arith.constant 0 : index
    %c1 = arith.constant 1 : index
    %c0_19 = arith.constant 0 : index
    %21 = vector.load %arg6[%c0_17, %c0_18, %c1, %c0_19] : memref<1x1x2x128xf32, #tpu.memory_space<vmem>>, vector<1x1x1x128xf32>
    %22 = vector.shape_cast %21 : vector<1x1x1x128xf32> to vector<1x128xf32>
    %23 = vector.shape_cast %20 : vector<1x128xf32> to vector<1x1x1x128xf32>
    tpu.vector_store %arg6[%c0_17, %c0_18, %c1, %c0_19], %23 {strides = array<i32>} : memref<1x1x2x128xf32, #tpu.memory_space<vmem>>, vector<1x1x1x128xf32>,
    return
  }
  func.func @transform_0(%arg0: i32, %arg1: i32) -> (i32, i32, i32) {
    %c0_i32 = arith.constant 0 : i32
    %c0_i32_0 = arith.constant 0 : i32
    return %arg0, %arg1, %c0_i32 : i32, i32, i32
  }
  func.func @transform_1(%arg0: i32, %arg1: i32) -> (i32, i32, i32) {
    %c0_i32 = arith.constant 0 : i32
    %c0_i32_0 = arith.constant 0 : i32
    %c0_i32_1 = arith.constant 0 : i32
    return %arg0, %c0_i32, %c0_i32_0 : i32, i32, i32
  }
  func.func @transform_2(%arg0: i32, %arg1: i32) -> (i32, i32, i32) {
    %c0_i32 = arith.constant 0 : i32
    %c0_i32_0 = arith.constant 0 : i32
    %c0_i32_1 = arith.constant 0 : i32
    return %arg0, %c0_i32, %c0_i32_0 : i32, i32, i32
  }
  func.func @transform_3(%arg0: i32, %arg1: i32) -> (i32, i32, i32) {
    %c0_i32 = arith.constant 0 : i32
    %c0_i32_0 = arith.constant 0 : i32
    return %arg0, %arg1, %c0_i32 : i32, i32, i32
  }
  func.func @transform_4(%arg0: i32, %arg1: i32) -> (i32, i32, i32, i32) {
    %c0_i32 = arith.constant 0 : i32
    %c0_i32_0 = arith.constant 0 : i32
    %c0_i32_1 = arith.constant 0 : i32
    return %arg0, %arg1, %c0_i32, %c0_i32_0 : i32, i32, i32, i32
  }
}

module attributes {stable_mosaic.version = 11 : i64} {
  func.func @kernel(%arg0: i32, %arg1: i32, %arg2: memref<1x512x128xbf16, #tpu.memory_space<vmem>>, %arg3: memref<1x3x128xf32, #tpu.memory_space<vmem>>, %arg4: memref<1x512x128xbf16, #tpu.memory_space<vmem>>) attributes {dimension_semantics = [#tpu.dimension_semantics<parallel>, #tpu.dimension_semantics<parallel>], iteration_bounds = array<i64: 2, 1>, scalar_prefetch = 0 : i64, scratch_operands = 0 : i64, tpu.core_type = #tpu.core_type<tc>, window_params = [{transform_indices = @transform_0, window_bounds = array<i64: 1, 512, 128>}, {transform_indices = @transform_1, window_bounds = array<i64: 1, 3, 128>}, {transform_indices = @transform_2, window_bounds = array<i64: 1, 512, 128>}]} {
    %c0 = arith.constant 0 : index
    %c0_0 = arith.constant 0 : index
    %c0_1 = arith.constant 0 : index
    %0 = vector.load %arg2[%c0, %c0_0, %c0_1] : memref<1x512x128xbf16, #tpu.memory_space<vmem>>, vector<1x512x128xbf16>
    %1 = vector.shape_cast %0 : vector<1x512x128xbf16> to vector<512x128xbf16>
    %2 = arith.extf %1 : vector<512x128xbf16> to vector<512x128xf32>
    %c0_2 = arith.constant 0 : index
    %c0_3 = arith.constant 0 : index
    %c0_4 = arith.constant 0 : index
    %3 = vector.load %arg3[%c0_2, %c0_3, %c0_4] : memref<1x3x128xf32, #tpu.memory_space<vmem>>, vector<1x1x128xf32>
    %4 = vector.shape_cast %3 : vector<1x1x128xf32> to vector<1x128xf32>
    %5 = vector.broadcast %4 : vector<1x128xf32> to vector<512x128xf32>
    %6 = arith.mulf %2, %5 : vector<512x128xf32>
    %c0_5 = arith.constant 0 : index
    %c1 = arith.constant 1 : index
    %c0_6 = arith.constant 0 : index
    %7 = vector.load %arg3[%c0_5, %c1, %c0_6] : memref<1x3x128xf32, #tpu.memory_space<vmem>>, vector<1x1x128xf32>
    %8 = vector.shape_cast %7 : vector<1x1x128xf32> to vector<1x128xf32>
    %9 = vector.broadcast %8 : vector<1x128xf32> to vector<512x128xf32>
    %10 = arith.addf %6, %9 : vector<512x128xf32>
    %cst = arith.constant 0.000000e+00 : f32
    %11 = vector.broadcast %cst : f32 to vector<512x128xf32>
    %12 = arith.cmpf oge, %10, %11 : vector<512x128xf32>
    %c0_7 = arith.constant 0 : index
    %c2 = arith.constant 2 : index
    %c0_8 = arith.constant 0 : index
    %13 = vector.load %arg3[%c0_7, %c2, %c0_8] : memref<1x3x128xf32, #tpu.memory_space<vmem>>, vector<1x1x128xf32>
    %14 = vector.shape_cast %13 : vector<1x1x128xf32> to vector<1x128xf32>
    %15 = vector.broadcast %14 : vector<1x128xf32> to vector<512x128xf32>
    %16 = arith.mulf %15, %10 : vector<512x128xf32>
    %17 = arith.select %12, %10, %16 : vector<512x128xi1>, vector<512x128xf32>
    %18 = arith.truncf %17 : vector<512x128xf32> to vector<512x128xbf16>
    %c0_9 = arith.constant 0 : index
    %c0_10 = arith.constant 0 : index
    %c0_11 = arith.constant 0 : index
    %19 = vector.load %arg4[%c0_9, %c0_10, %c0_11] : memref<1x512x128xbf16, #tpu.memory_space<vmem>>, vector<1x512x128xbf16>
    %20 = vector.shape_cast %19 : vector<1x512x128xbf16> to vector<512x128xbf16>
    %21 = vector.shape_cast %18 : vector<512x128xbf16> to vector<1x512x128xbf16>
    tpu.vector_store %arg4[%c0_9, %c0_10, %c0_11], %21 {strides = array<i32>} : memref<1x512x128xbf16, #tpu.memory_space<vmem>>, vector<1x512x128xbf16>,
    return
  }
  func.func @transform_0(%arg0: i32, %arg1: i32) -> (i32, i32, i32) {
    %c1_i32 = arith.constant 1 : i32
    %0 = arith.addi %arg0, %c1_i32 : i32
    %c0_i32 = arith.constant 0 : i32
    %c0_i32_0 = arith.constant 0 : i32
    return %0, %arg1, %c0_i32 : i32, i32, i32
  }
  func.func @transform_1(%arg0: i32, %arg1: i32) -> (i32, i32, i32) {
    %c0_i32 = arith.constant 0 : i32
    %c0_i32_0 = arith.constant 0 : i32
    %c0_i32_1 = arith.constant 0 : i32
    return %arg0, %c0_i32, %c0_i32_0 : i32, i32, i32
  }
  func.func @transform_2(%arg0: i32, %arg1: i32) -> (i32, i32, i32) {
    %c0_i32 = arith.constant 0 : i32
    %c0_i32_0 = arith.constant 0 : i32
    return %arg0, %arg1, %c0_i32 : i32, i32, i32
  }
}

module attributes {stable_mosaic.version = 11 : i64} {
  func.func @kernel(%arg0: i32, %arg1: i32, %arg2: memref<1x512x36xbf16, #tpu.memory_space<vmem>>, %arg3: memref<1x36x128xbf16, #tpu.memory_space<vmem>>, %arg4: memref<1x1x128xf32, #tpu.memory_space<vmem>>, %arg5: memref<1x512x128xbf16, #tpu.memory_space<vmem>>, %arg6: memref<1x1x2x128xf32, #tpu.memory_space<vmem>>) attributes {dimension_semantics = [#tpu.dimension_semantics<parallel>, #tpu.dimension_semantics<parallel>], iteration_bounds = array<i64: 2, 1>, scalar_prefetch = 0 : i64, scratch_operands = 0 : i64, tpu.core_type = #tpu.core_type<tc>, window_params = [{transform_indices = @transform_0, window_bounds = array<i64: 1, 512, 36>}, {transform_indices = @transform_1, window_bounds = array<i64: 1, 36, 128>}, {transform_indices = @transform_2, window_bounds = array<i64: 1, 1, 128>}, {transform_indices = @transform_3, window_bounds = array<i64: 1, 512, 128>}, {transform_indices = @transform_4, window_bounds = array<i64: 1, 1, 2, 128>}]} {
    %c0 = arith.constant 0 : index
    %c0_0 = arith.constant 0 : index
    %c0_1 = arith.constant 0 : index
    %0 = vector.load %arg2[%c0, %c0_0, %c0_1] : memref<1x512x36xbf16, #tpu.memory_space<vmem>>, vector<1x512x36xbf16>
    %1 = vector.shape_cast %0 : vector<1x512x36xbf16> to vector<512x36xbf16>
    %c0_2 = arith.constant 0 : index
    %c0_3 = arith.constant 0 : index
    %c0_4 = arith.constant 0 : index
    %2 = vector.load %arg3[%c0_2, %c0_3, %c0_4] : memref<1x36x128xbf16, #tpu.memory_space<vmem>>, vector<1x36x128xbf16>
    %3 = vector.shape_cast %2 : vector<1x36x128xbf16> to vector<36x128xbf16>
    %cst = arith.constant dense<0.000000e+00> : vector<512x128xf32>
    %4 = tpu.matmul %1, %3, %cst {dimension_numbers = #tpu.dot_dimension_numbers<[1], [0], [0], [1], [0, 0, 1, 1], [], []>} : vector<512x36xbf16>, vector<36x128xbf16>, vector<512x128xf32> -> vector<512x128xf32>
    %c0_5 = arith.constant 0 : index
    %c0_6 = arith.constant 0 : index
    %c0_7 = arith.constant 0 : index
    %5 = vector.load %arg4[%c0_5, %c0_6, %c0_7] : memref<1x1x128xf32, #tpu.memory_space<vmem>>, vector<1x1x128xf32>
    %6 = vector.shape_cast %5 : vector<1x1x128xf32> to vector<1x128xf32>
    %7 = vector.broadcast %6 : vector<1x128xf32> to vector<512x128xf32>
    %8 = arith.addf %4, %7 : vector<512x128xf32>
    %9 = arith.truncf %8 : vector<512x128xf32> to vector<512x128xbf16>
    %c0_8 = arith.constant 0 : index
    %c0_9 = arith.constant 0 : index
    %c0_10 = arith.constant 0 : index
    %10 = vector.load %arg5[%c0_8, %c0_9, %c0_10] : memref<1x512x128xbf16, #tpu.memory_space<vmem>>, vector<1x512x128xbf16>
    %11 = vector.shape_cast %10 : vector<1x512x128xbf16> to vector<512x128xbf16>
    %12 = vector.shape_cast %9 : vector<512x128xbf16> to vector<1x512x128xbf16>
    tpu.vector_store %arg5[%c0_8, %c0_9, %c0_10], %12 {strides = array<i32>} : memref<1x512x128xbf16, #tpu.memory_space<vmem>>, vector<1x512x128xbf16>,
    %cst_11 = arith.constant dense<0.000000e+00> : vector<128xf32>
    %13 = vector.multi_reduction <add>, %8, %cst_11 [0] : vector<512x128xf32> to vector<128xf32>
    %14 = vector.shape_cast %13 : vector<128xf32> to vector<1x128xf32>
    %c0_12 = arith.constant 0 : index
    %c0_13 = arith.constant 0 : index
    %c0_14 = arith.constant 0 : index
    %c0_15 = arith.constant 0 : index
    %15 = vector.load %arg6[%c0_12, %c0_13, %c0_14, %c0_15] : memref<1x1x2x128xf32, #tpu.memory_space<vmem>>, vector<1x1x1x128xf32>
    %16 = vector.shape_cast %15 : vector<1x1x1x128xf32> to vector<1x128xf32>
    %17 = vector.shape_cast %14 : vector<1x128xf32> to vector<1x1x1x128xf32>
    tpu.vector_store %arg6[%c0_12, %c0_13, %c0_14, %c0_15], %17 {strides = array<i32>} : memref<1x1x2x128xf32, #tpu.memory_space<vmem>>, vector<1x1x1x128xf32>,
    %18 = arith.mulf %8, %8 : vector<512x128xf32>
    %cst_16 = arith.constant dense<0.000000e+00> : vector<128xf32>
    %19 = vector.multi_reduction <add>, %18, %cst_16 [0] : vector<512x128xf32> to vector<128xf32>
    %20 = vector.shape_cast %19 : vector<128xf32> to vector<1x128xf32>
    %c0_17 = arith.constant 0 : index
    %c0_18 = arith.constant 0 : index
    %c1 = arith.constant 1 : index
    %c0_19 = arith.constant 0 : index
    %21 = vector.load %arg6[%c0_17, %c0_18, %c1, %c0_19] : memref<1x1x2x128xf32, #tpu.memory_space<vmem>>, vector<1x1x1x128xf32>
    %22 = vector.shape_cast %21 : vector<1x1x1x128xf32> to vector<1x128xf32>
    %23 = vector.shape_cast %20 : vector<1x128xf32> to vector<1x1x1x128xf32>
    tpu.vector_store %arg6[%c0_17, %c0_18, %c1, %c0_19], %23 {strides = array<i32>} : memref<1x1x2x128xf32, #tpu.memory_space<vmem>>, vector<1x1x1x128xf32>,
    return
  }
  func.func @transform_0(%arg0: i32, %arg1: i32) -> (i32, i32, i32) {
    %c0_i32 = arith.constant 0 : i32
    %c0_i32_0 = arith.constant 0 : i32
    return %arg0, %arg1, %c0_i32 : i32, i32, i32
  }
  func.func @transform_1(%arg0: i32, %arg1: i32) -> (i32, i32, i32) {
    %c0_i32 = arith.constant 0 : i32
    %c0_i32_0 = arith.constant 0 : i32
    %c0_i32_1 = arith.constant 0 : i32
    return %arg0, %c0_i32, %c0_i32_0 : i32, i32, i32
  }
  func.func @transform_2(%arg0: i32, %arg1: i32) -> (i32, i32, i32) {
    %c0_i32 = arith.constant 0 : i32
    %c0_i32_0 = arith.constant 0 : i32
    %c0_i32_1 = arith.constant 0 : i32
    return %arg0, %c0_i32, %c0_i32_0 : i32, i32, i32
  }
  func.func @transform_3(%arg0: i32, %arg1: i32) -> (i32, i32, i32) {
    %c0_i32 = arith.constant 0 : i32
    %c0_i32_0 = arith.constant 0 : i32
    return %arg0, %arg1, %c0_i32 : i32, i32, i32
  }
  func.func @transform_4(%arg0: i32, %arg1: i32) -> (i32, i32, i32, i32) {
    %c0_i32 = arith.constant 0 : i32
    %c0_i32_0 = arith.constant 0 : i32
    %c0_i32_1 = arith.constant 0 : i32
    return %arg0, %arg1, %c0_i32, %c0_i32_0 : i32, i32, i32, i32
  }
}

module attributes {stable_mosaic.version = 11 : i64} {
  func.func @kernel(%arg0: i32, %arg1: i32, %arg2: memref<1x512x128xbf16, #tpu.memory_space<vmem>>, %arg3: memref<1x3x128xf32, #tpu.memory_space<vmem>>, %arg4: memref<1x512x128xbf16, #tpu.memory_space<vmem>>) attributes {dimension_semantics = [#tpu.dimension_semantics<parallel>, #tpu.dimension_semantics<parallel>], iteration_bounds = array<i64: 1, 1>, scalar_prefetch = 0 : i64, scratch_operands = 0 : i64, tpu.core_type = #tpu.core_type<tc>, window_params = [{transform_indices = @transform_0, window_bounds = array<i64: 1, 512, 128>}, {transform_indices = @transform_1, window_bounds = array<i64: 1, 3, 128>}, {transform_indices = @transform_2, window_bounds = array<i64: 1, 512, 128>}]} {
    %c0 = arith.constant 0 : index
    %c0_0 = arith.constant 0 : index
    %c0_1 = arith.constant 0 : index
    %0 = vector.load %arg2[%c0, %c0_0, %c0_1] : memref<1x512x128xbf16, #tpu.memory_space<vmem>>, vector<1x512x128xbf16>
    %1 = vector.shape_cast %0 : vector<1x512x128xbf16> to vector<512x128xbf16>
    %2 = arith.extf %1 : vector<512x128xbf16> to vector<512x128xf32>
    %c0_2 = arith.constant 0 : index
    %c0_3 = arith.constant 0 : index
    %c0_4 = arith.constant 0 : index
    %3 = vector.load %arg3[%c0_2, %c0_3, %c0_4] : memref<1x3x128xf32, #tpu.memory_space<vmem>>, vector<1x1x128xf32>
    %4 = vector.shape_cast %3 : vector<1x1x128xf32> to vector<1x128xf32>
    %5 = vector.broadcast %4 : vector<1x128xf32> to vector<512x128xf32>
    %6 = arith.mulf %2, %5 : vector<512x128xf32>
    %c0_5 = arith.constant 0 : index
    %c1 = arith.constant 1 : index
    %c0_6 = arith.constant 0 : index
    %7 = vector.load %arg3[%c0_5, %c1, %c0_6] : memref<1x3x128xf32, #tpu.memory_space<vmem>>, vector<1x1x128xf32>
    %8 = vector.shape_cast %7 : vector<1x1x128xf32> to vector<1x128xf32>
    %9 = vector.broadcast %8 : vector<1x128xf32> to vector<512x128xf32>
    %10 = arith.addf %6, %9 : vector<512x128xf32>
    %cst = arith.constant 0.000000e+00 : f32
    %11 = vector.broadcast %cst : f32 to vector<512x128xf32>
    %12 = arith.cmpf oge, %10, %11 : vector<512x128xf32>
    %c0_7 = arith.constant 0 : index
    %c2 = arith.constant 2 : index
    %c0_8 = arith.constant 0 : index
    %13 = vector.load %arg3[%c0_7, %c2, %c0_8] : memref<1x3x128xf32, #tpu.memory_space<vmem>>, vector<1x1x128xf32>
    %14 = vector.shape_cast %13 : vector<1x1x128xf32> to vector<1x128xf32>
    %15 = vector.broadcast %14 : vector<1x128xf32> to vector<512x128xf32>
    %16 = arith.mulf %15, %10 : vector<512x128xf32>
    %17 = arith.select %12, %10, %16 : vector<512x128xi1>, vector<512x128xf32>
    %18 = arith.truncf %17 : vector<512x128xf32> to vector<512x128xbf16>
    %c0_9 = arith.constant 0 : index
    %c0_10 = arith.constant 0 : index
    %c0_11 = arith.constant 0 : index
    %19 = vector.load %arg4[%c0_9, %c0_10, %c0_11] : memref<1x512x128xbf16, #tpu.memory_space<vmem>>, vector<1x512x128xbf16>
    %20 = vector.shape_cast %19 : vector<1x512x128xbf16> to vector<512x128xbf16>
    %21 = vector.shape_cast %18 : vector<512x128xbf16> to vector<1x512x128xbf16>
    tpu.vector_store %arg4[%c0_9, %c0_10, %c0_11], %21 {strides = array<i32>} : memref<1x512x128xbf16, #tpu.memory_space<vmem>>, vector<1x512x128xbf16>,
    return
  }
  func.func @transform_0(%arg0: i32, %arg1: i32) -> (i32, i32, i32) {
    %c1_i32 = arith.constant 1 : i32
    %0 = arith.addi %arg0, %c1_i32 : i32
    %c0_i32 = arith.constant 0 : i32
    %c0_i32_0 = arith.constant 0 : i32
    return %0, %arg1, %c0_i32 : i32, i32, i32
  }
  func.func @transform_1(%arg0: i32, %arg1: i32) -> (i32, i32, i32) {
    %c0_i32 = arith.constant 0 : i32
    %c0_i32_0 = arith.constant 0 : i32
    %c0_i32_1 = arith.constant 0 : i32
    return %arg0, %c0_i32, %c0_i32_0 : i32, i32, i32
  }
  func.func @transform_2(%arg0: i32, %arg1: i32) -> (i32, i32, i32) {
    %c0_i32 = arith.constant 0 : i32
    %c0_i32_0 = arith.constant 0 : i32
    return %arg0, %arg1, %c0_i32 : i32, i32, i32
  }
}

module attributes {stable_mosaic.version = 11 : i64} {
  func.func @kernel(%arg0: i32, %arg1: memref<512x128xbf16, #tpu.memory_space<vmem>>, %arg2: memref<128x128xbf16, #tpu.memory_space<vmem>>, %arg3: memref<1x512x128xbf16, #tpu.memory_space<vmem>>, %arg4: memref<2x128xf32, #tpu.memory_space<vmem>>, %arg5: memref<1x512x128xbf16, #tpu.memory_space<vmem>>, %arg6: memref<2x128xf32, #tpu.memory_space<vmem>>, %arg7: memref<1x512x128xbf16, #tpu.memory_space<vmem>>, %arg8: memref<2x128xf32, #tpu.memory_space<vmem>>, %arg9: memref<512x128xf32, #tpu.memory_space<vmem>>) attributes {dimension_semantics = [#tpu.dimension_semantics<parallel>], iteration_bounds = array<i64: 1>, scalar_prefetch = 0 : i64, scratch_operands = 0 : i64, tpu.core_type = #tpu.core_type<tc>, window_params = [{transform_indices = @transform_0, window_bounds = array<i64: 512, 128>}, {pipeline_mode = #tpu.pipeline_mode<synchronous>, transform_indices = @transform_1, window_bounds = array<i64: 128, 128>}, {transform_indices = @transform_2, window_bounds = array<i64: 1, 512, 128>}, {pipeline_mode = #tpu.pipeline_mode<synchronous>, transform_indices = @transform_3, window_bounds = array<i64: 2, 128>}, {transform_indices = @transform_4, window_bounds = array<i64: 1, 512, 128>}, {pipeline_mode = #tpu.pipeline_mode<synchronous>, transform_indices = @transform_5, window_bounds = array<i64: 2, 128>}, {transform_indices = @transform_6, window_bounds = array<i64: 1, 512, 128>}, {pipeline_mode = #tpu.pipeline_mode<synchronous>, transform_indices = @transform_7, window_bounds = array<i64: 2, 128>}, {transform_indices = @transform_8, window_bounds = array<i64: 512, 128>}]} {
    %c0 = arith.constant 0 : index
    %c0_0 = arith.constant 0 : index
    %0 = vector.load %arg1[%c0, %c0_0] : memref<512x128xbf16, #tpu.memory_space<vmem>>, vector<512x128xbf16>
    %c0_1 = arith.constant 0 : index
    %c0_2 = arith.constant 0 : index
    %1 = vector.load %arg2[%c0_1, %c0_2] : memref<128x128xbf16, #tpu.memory_space<vmem>>, vector<128x128xbf16>
    %cst = arith.constant dense<0.000000e+00> : vector<512x128xf32>
    %2 = tpu.matmul %0, %1, %cst {dimension_numbers = #tpu.dot_dimension_numbers<[1], [0], [0], [1], [0, 0, 1, 1], [], []>} : vector<512x128xbf16>, vector<128x128xbf16>, vector<512x128xf32> -> vector<512x128xf32>
    %c0_3 = arith.constant 0 : index
    %c0_4 = arith.constant 0 : index
    %c0_5 = arith.constant 0 : index
    %3 = vector.load %arg3[%c0_3, %c0_4, %c0_5] : memref<1x512x128xbf16, #tpu.memory_space<vmem>>, vector<1x512x128xbf16>
    %4 = vector.shape_cast %3 : vector<1x512x128xbf16> to vector<512x128xbf16>
    %5 = arith.extf %4 : vector<512x128xbf16> to vector<512x128xf32>
    %c0_6 = arith.constant 0 : index
    %c0_7 = arith.constant 0 : index
    %6 = vector.load %arg4[%c0_6, %c0_7] : memref<2x128xf32, #tpu.memory_space<vmem>>, vector<1x128xf32>
    %7 = vector.broadcast %6 : vector<1x128xf32> to vector<512x128xf32>
    %8 = arith.mulf %5, %7 : vector<512x128xf32>
    %c1 = arith.constant 1 : index
    %c0_8 = arith.constant 0 : index
    %9 = vector.load %arg4[%c1, %c0_8] : memref<2x128xf32, #tpu.memory_space<vmem>>, vector<1x128xf32>
    %10 = vector.broadcast %9 : vector<1x128xf32> to vector<512x128xf32>
    %11 = arith.addf %8, %10 : vector<512x128xf32>
    %12 = arith.addf %2, %11 : vector<512x128xf32>
    %c0_9 = arith.constant 0 : index
    %c0_10 = arith.constant 0 : index
    %c0_11 = arith.constant 0 : index
    %13 = vector.load %arg5[%c0_9, %c0_10, %c0_11] : memref<1x512x128xbf16, #tpu.memory_space<vmem>>, vector<1x512x128xbf16>
    %14 = vector.shape_cast %13 : vector<1x512x128xbf16> to vector<512x128xbf16>
    %15 = arith.extf %14 : vector<512x128xbf16> to vector<512x128xf32>
    %c0_12 = arith.constant 0 : index
    %c0_13 = arith.constant 0 : index
    %16 = vector.load %arg6[%c0_12, %c0_13] : memref<2x128xf32, #tpu.memory_space<vmem>>, vector<1x128xf32>
    %17 = vector.broadcast %16 : vector<1x128xf32> to vector<512x128xf32>
    %18 = arith.mulf %15, %17 : vector<512x128xf32>
    %c1_14 = arith.constant 1 : index
    %c0_15 = arith.constant 0 : index
    %19 = vector.load %arg6[%c1_14, %c0_15] : memref<2x128xf32, #tpu.memory_space<vmem>>, vector<1x128xf32>
    %20 = vector.broadcast %19 : vector<1x128xf32> to vector<512x128xf32>
    %21 = arith.addf %18, %20 : vector<512x128xf32>
    %22 = arith.addf %12, %21 : vector<512x128xf32>
    %c0_16 = arith.constant 0 : index
    %c0_17 = arith.constant 0 : index
    %c0_18 = arith.constant 0 : index
    %23 = vector.load %arg7[%c0_16, %c0_17, %c0_18] : memref<1x512x128xbf16, #tpu.memory_space<vmem>>, vector<1x512x128xbf16>
    %24 = vector.shape_cast %23 : vector<1x512x128xbf16> to vector<512x128xbf16>
    %25 = arith.extf %24 : vector<512x128xbf16> to vector<512x128xf32>
    %c0_19 = arith.constant 0 : index
    %c0_20 = arith.constant 0 : index
    %26 = vector.load %arg8[%c0_19, %c0_20] : memref<2x128xf32, #tpu.memory_space<vmem>>, vector<1x128xf32>
    %27 = vector.broadcast %26 : vector<1x128xf32> to vector<512x128xf32>
    %28 = arith.mulf %25, %27 : vector<512x128xf32>
    %c1_21 = arith.constant 1 : index
    %c0_22 = arith.constant 0 : index
    %29 = vector.load %arg8[%c1_21, %c0_22] : memref<2x128xf32, #tpu.memory_space<vmem>>, vector<1x128xf32>
    %30 = vector.broadcast %29 : vector<1x128xf32> to vector<512x128xf32>
    %31 = arith.addf %28, %30 : vector<512x128xf32>
    %32 = arith.addf %22, %31 : vector<512x128xf32>
    %cst_23 = arith.constant 0.000000e+00 : f32
    %33 = vector.broadcast %cst_23 : f32 to vector<512x128xf32>
    %34 = arith.cmpf oge, %32, %33 : vector<512x128xf32>
    %cst_24 = arith.constant 0.00999999977 : f32
    %35 = vector.broadcast %cst_24 : f32 to vector<512x128xf32>
    %36 = arith.mulf %35, %32 : vector<512x128xf32>
    %37 = arith.select %34, %32, %36 : vector<512x128xi1>, vector<512x128xf32>
    %c0_25 = arith.constant 0 : index
    %c0_26 = arith.constant 0 : index
    %38 = vector.load %arg9[%c0_25, %c0_26] : memref<512x128xf32, #tpu.memory_space<vmem>>, vector<512x128xf32>
    tpu.vector_store %arg9[%c0_25, %c0_26], %37 {strides = array<i32>} : memref<512x128xf32, #tpu.memory_space<vmem>>, vector<512x128xf32>,
    return
  }
  func.func @transform_0(%arg0: i32) -> (i32, i32) {
    %c0_i32 = arith.constant 0 : i32
    %c0_i32_0 = arith.constant 0 : i32
    return %arg0, %c0_i32 : i32, i32
  }
  func.func @transform_1(%arg0: i32) -> (i32, i32) {
    %c0_i32 = arith.constant 0 : i32
    %c0_i32_0 = arith.constant 0 : i32
    %c0_i32_1 = arith.constant 0 : i32
    return %c0_i32, %c0_i32_0 : i32, i32
  }
  func.func @transform_2(%arg0: i32) -> (i32, i32, i32) {
    %c0_i32 = arith.constant 0 : i32
    %c0_i32_0 = arith.constant 0 : i32
    %c0_i32_1 = arith.constant 0 : i32
    return %c0_i32, %arg0, %c0_i32_0 : i32, i32, i32
  }
  func.func @transform_3(%arg0: i32) -> (i32, i32) {
    %c0_i32 = arith.constant 0 : i32
    %c0_i32_0 = arith.constant 0 : i32
    %c0_i32_1 = arith.constant 0 : i32
    return %c0_i32, %c0_i32_0 : i32, i32
  }
  func.func @transform_4(%arg0: i32) -> (i32, i32, i32) {
    %c0_i32 = arith.constant 0 : i32
    %c0_i32_0 = arith.constant 0 : i32
    %c0_i32_1 = arith.constant 0 : i32
    return %c0_i32, %arg0, %c0_i32_0 : i32, i32, i32
  }
  func.func @transform_5(%arg0: i32) -> (i32, i32) {
    %c0_i32 = arith.constant 0 : i32
    %c0_i32_0 = arith.constant 0 : i32
    %c0_i32_1 = arith.constant 0 : i32
    return %c0_i32, %c0_i32_0 : i32, i32
  }
  func.func @transform_6(%arg0: i32) -> (i32, i32, i32) {
    %c0_i32 = arith.constant 0 : i32
    %c0_i32_0 = arith.constant 0 : i32
    %c0_i32_1 = arith.constant 0 : i32
    return %c0_i32, %arg0, %c0_i32_0 : i32, i32, i32
  }
  func.func @transform_7(%arg0: i32) -> (i32, i32) {
    %c0_i32 = arith.constant 0 : i32
    %c0_i32_0 = arith.constant 0 : i32
    %c0_i32_1 = arith.constant 0 : i32
    return %c0_i32, %c0_i32_0 : i32, i32
  }
  func.func @transform_8(%arg0: i32) -> (i32, i32) {
    %c0_i32 = arith.constant 0 : i32
    %c0_i32_0 = arith.constant 0 : i32
    return %arg0, %c0_i32 : i32, i32
  }
}

</mosaic_0001>

<bundles_post_ra>
// kernel: _lambda_.8
= control target key start
LH: loop header
LB: loop body
LE: loop exit
PB: predicated region body
PF: predicated region fallthrough
CT: control target
= control target key end

     0   :  { %vm268_vm0 = vcmask 293888   ;;  %vm365_vm1 = vcmask 1041408   ;;  %s2250_s1 = inlined_call_operand.vmem [shape: bf16[1,36,128], index: 1, kind: input, shape index: {}]   ;;  %s2251_s0 = inlined_call_operand.vmem [shape: bf16[1,512,36], index: 0, kind: input, shape index: {}]   ;;  %s2252_s2 = inlined_call_operand.vmem [shape: f32[1,1,128], index: 2, kind: input, shape index: {}]   ;;  %s2253_s3 = inlined_call_operand.vmem [shape: bf16[1,512,128], index: 3, kind: output, shape index: {0}]   ;;  %s2254_s4 = inlined_call_operand.vmem [shape: f32[1,1,2,128], index: 4, kind: output, shape index: {1}]  }
   0x1   :  { %v1690_v0 = vld [vmem:[%s2250_s1] sm:$0xff]   ;;  %v1691_v1 = vld [vmem:[%s2250_s1 + $0x8] sm:$0xff]   ;;  %v1692_v2 = vld [vmem:[%s2250_s1 + $0x10] ss:$0 sps:$4 sm:$0x33]  }
   0x2   :  { %1612 = vmatprep.subr.bf16.mxu0 %v1690_v0  ;;  %v1693_v3 = vld [vmem:[%s2251_s0] sm:$0xff]   ;;  %1682 = vmatprep.subr.bf16.mxu1 %v1690_v0  ;;  %v367_v4 = vsel %vm365_vm1, %v1692_v2, 0  ;;  %v1694_v5 = vld [vmem:[%s2251_s0 + $0x8] sm:$0xff]   ;;  %v1695_v6 = vld [vmem:[%s2251_s0 + $0x10] sm:$0xff]  }
   0x3   :  { %1613 = vmatpush3.bf16.msra.mxu0 %v1690_v0  ;;  %1685 = vmatpush3.bf16.msra.mxu1 %v1690_v0  ;;  %v1696_v7 = vld [vmem:[%s2251_s0 + $0x18] sm:$0xff]   ;;  %v1697_v8 = vld [vmem:[%s2251_s0 + $0x20] sm:$0xff]   ;;  %v1710_v10 = vld [vmem:[%s2251_s0 + $0x88] sm:$0xff]  }
   0x4   :  { %1614 = vmatprep.subr.bf16.mxu0 %v1691_v1  ;;  %1618 = vmatprep.mubr.msk.bf16.mxu0 %vm268_vm0, %v1693_v3  ;;  %v1709_v9 = vld [vmem:[%s2251_s0 + $0x80] sm:$0xff]   ;;  %v1711_v11 = vld [vmem:[%s2251_s0 + $0x90] sm:$0xff]   ;;  %v1698_v12 = vld [vmem:[%s2251_s0 + $0x28] sm:$0xff]  }
   0x5   :  { %1683 = vmatprep.subr.bf16.mxu1 %v1691_v1  ;;  %1650 = vmatprep.mubr.msk.bf16.mxu1 %vm268_vm0, %v1709_v9  ;;  %v1699_v13 = vld [vmem:[%s2251_s0 + $0x30] sm:$0xff]   ;;  %v1712_v14 = vld [vmem:[%s2251_s0 + $0x98] sm:$0xff]   ;;  %v1713_v15 = vld [vmem:[%s2251_s0 + $0xa0] sm:$0xff]  }
   0x6   :  { %v1700_v16 = vld [vmem:[%s2251_s0 + $0x38] sm:$0xff]   ;;  %v1714_v17 = vld [vmem:[%s2251_s0 + $0xa8] sm:$0xff]   ;;  %v1701_v18 = vld [vmem:[%s2251_s0 + $0x40] sm:$0xff]  }
   0x7   :  { %1615 = vmatpush3.bf16.msra.mxu0 %v1691_v1  ;;  %1686 = vmatpush3.bf16.msra.mxu1 %v1691_v1  ;;  %v1715_v19 = vld [vmem:[%s2251_s0 + $0xb0] sm:$0xff]   ;;  %v1702_v20 = vld [vmem:[%s2251_s0 + $0x48] sm:$0xff]   ;;  %v1716_v21 = vld [vmem:[%s2251_s0 + $0xb8] sm:$0xff]  }
   0x8   :  { %1688 = vmatprep.subr.msk.bf16.mxu0 %vm365_vm1, %v1692_v2  ;;  %1689 = vmatprep.subr.msk.bf16.mxu1 %vm365_vm1, %v1692_v2  ;;  %v1703_v22 = vld [vmem:[%s2251_s0 + $0x50] sm:$0xff]   ;;  %v1717_v23 = vld [vmem:[%s2251_s0 + $0xc0] sm:$0xff]   ;;  %v1704_v24 = vld [vmem:[%s2251_s0 + $0x58] sm:$0xff]  }
   0x9   :  { %v1718_v25 = vld [vmem:[%s2251_s0 + $0xc8] sm:$0xff]   ;;  %v1705_v26 = vld [vmem:[%s2251_s0 + $0x60] sm:$0xff]   ;;  %v1719_v27 = vld [vmem:[%s2251_s0 + $0xd0] sm:$0xff]  }
   0xa   :  { %v1706_v28 = vld [vmem:[%s2251_s0 + $0x68] sm:$0xff]   ;;  %v1720_v29 = vld [vmem:[%s2251_s0 + $0xd8] sm:$0xff]   ;;  %v1707_v30 = vld [vmem:[%s2251_s0 + $0x70] sm:$0xff]  }
   0xb   :  { %1617 = vmatpush3.bf16.msra.mxu0 %v367_v4  ;;  %1687 = vmatpush3.bf16.msra.mxu1 %v367_v4  ;;  %v1721_v31 = vld [vmem:[%s2251_s0 + $0xe0] sm:$0xff]   ;;  %v1708_v32 = vld [vmem:[%s2251_s0 + $0x78] sm:$0xff]   ;;  %v1722_v33 = vld [vmem:[%s2251_s0 + $0xe8] sm:$0xff]  }
   0xc   :  { %v1723_v34 = vld [vmem:[%s2251_s0 + $0xf0] sm:$0xff]   ;;  %v1724_v35 = vld [vmem:[%s2251_s0 + $0xf8] sm:$0xff]   ;;  %v1890_v36 = vld [vmem:[%s2252_s2] ss:$0 sm:$0xff] }
   0xe   :  { %1619 = vmatmul.mubr.msk.bf16.vlgmr.msra.gmra.mrb[0].mxu0 %vm268_vm0, %v1694_v5  ;;  %1651 = vmatmul.mubr.msk.bf16.vlgmr.msra.gmra.mrb[0].mxu1 %vm268_vm0, %v1710_v10 }
   0xf   :  { %1622 = vmatprep.mubr.msk.bf16.mxu0 %vm268_vm0, %v1695_v6  ;;  %1654 = vmatprep.mubr.msk.bf16.mxu1 %vm268_vm0, %v1711_v11 }
  0x16   :  { %1623 = vmatmul.mubr.msk.bf16.gmra.mrb[4].mxu0 %vm268_vm0, %v1696_v7  ;;  %1655 = vmatmul.mubr.msk.bf16.gmra.mrb[4].mxu1 %vm268_vm0, %v1712_v14 }
  0x17   :  { %1626 = vmatprep.mubr.msk.bf16.mxu0 %vm268_vm0, %v1697_v8  ;;  %1658 = vmatprep.mubr.msk.bf16.mxu1 %vm268_vm0, %v1713_v15 }
  0x1e   :  { %1627 = vmatmul.mubr.msk.bf16.gmra.mrb[8].mxu0 %vm268_vm0, %v1698_v12  ;;  %1659 = vmatmul.mubr.msk.bf16.gmra.mrb[8].mxu1 %vm268_vm0, %v1714_v17 }
  0x1f   :  { %1630 = vmatprep.mubr.msk.bf16.mxu0 %vm268_vm0, %v1699_v13  ;;  %1662 = vmatprep.mubr.msk.bf16.mxu1 %vm268_vm0, %v1715_v19 }
  0x26   :  { %1631 = vmatmul.mubr.msk.bf16.gmra.mrb[12].mxu0 %vm268_vm0, %v1700_v16  ;;  %1663 = vmatmul.mubr.msk.bf16.gmra.mrb[12].mxu1 %vm268_vm0, %v1716_v21 }
  0x27   :  { %1634 = vmatprep.mubr.msk.bf16.mxu0 %vm268_vm0, %v1701_v18  ;;  %1666 = vmatprep.mubr.msk.bf16.mxu1 %vm268_vm0, %v1717_v23 }
  0x2e   :  { %1635 = vmatmul.mubr.msk.bf16.gmra.mrb[16].mxu0 %vm268_vm0, %v1702_v20  ;;  %1667 = vmatmul.mubr.msk.bf16.gmra.mrb[16].mxu1 %vm268_vm0, %v1718_v25 }
  0x2f   :  { %1638 = vmatprep.mubr.msk.bf16.mxu0 %vm268_vm0, %v1703_v22  ;;  %1670 = vmatprep.mubr.msk.bf16.mxu1 %vm268_vm0, %v1719_v27 }
  0x36   :  { %1639 = vmatmul.mubr.msk.bf16.gmra.mrb[20].mxu0 %vm268_vm0, %v1704_v24  ;;  %1671 = vmatmul.mubr.msk.bf16.gmra.mrb[20].mxu1 %vm268_vm0, %v1720_v29 }
  0x37   :  { %1642 = vmatprep.mubr.msk.bf16.mxu0 %vm268_vm0, %v1705_v26  ;;  %1674 = vmatprep.mubr.msk.bf16.mxu1 %vm268_vm0, %v1721_v31 }
  0x3e   :  { %1643 = vmatmul.mubr.msk.bf16.gmra.mrb[24].mxu0 %vm268_vm0, %v1706_v28  ;;  %1675 = vmatmul.mubr.msk.bf16.gmra.mrb[24].mxu1 %vm268_vm0, %v1722_v33 }
  0x3f   :  { %1646 = vmatprep.mubr.msk.bf16.mxu0 %vm268_vm0, %v1707_v30  ;;  %1678 = vmatprep.mubr.msk.bf16.mxu1 %vm268_vm0, %v1723_v34 }
  0x46   :  { %1647 = vmatmul.mubr.msk.bf16.gmra.mrb[28].mxu0 %vm268_vm0, %v1708_v32  ;;  %1679 = vmatmul.mubr.msk.bf16.gmra.mrb[28].mxu1 %vm268_vm0, %v1724_v35 }
  0xe1   :  { %v1620_v37 = vpop.f32.mrb[0].mxu0  ;;  %v1652_v54 = vpop.f32.mrb[0].mxu1 }
  0xe2   :  { %v403_v38 = vpop.f32.mrb[1].mxu0  ;;  %v412_v41 = vadd.f32 %v1620_v37, %v1890_v36  ;;  %v1903_v56 = vadd.f32 %v1652_v54, %v1890_v36  ;;  %v531_v57 = vpop.f32.mrb[1].mxu1 }
  0xe3   :  { %v404_v39 = vadd.f32 %v1890_v36, %v403_v38  ;;  %v1621_v40 = vpop.f32.mrb[2].mxu0  ;;  %v1653_v63 = vpop.f32.mrb[2].mxu1  ;;  %v1913_v10 = vadd.f32 %v1890_v36, %v531_v57 }
  0xe4   :  { %v415_v42 = vadd.f32 %v1621_v40, %v1890_v36  ;;  %v406_v43 = vpop.f32.mrb[3].mxu0  ;;  %v1050_v50 = vmul.f32 %v412_v41, %v412_v41  ;;  %v1909_v3 = vadd.f32 %v1653_v63, %v1890_v36  ;;  %v534_v4 = vpop.f32.mrb[3].mxu1 }
  0xe5   :  { %v407_v44 = vadd.f32 %v1890_v36, %v406_v43  ;;  %v1048_v46 = vmul.f32 %v404_v39, %v404_v39  ;;  %v1924_v16 = vadd.f32 %v1890_v36, %v534_v4 }
  0xe6   :  { %v1394_v45 = vpack.c.bf16 %v415_v42, %v412_v41  ;;  %v1051_v58 = vmul.f32 %v415_v42, %v415_v42  ;;  %v1474_v11 = vpack.c.bf16 %v1909_v3, %v1903_v56 }
  0xe7   :  { %v1389_v47 = vpack.c.bf16 %v407_v44, %v404_v39  ;;  %v978_v48 = vadd.f32 %v407_v44, %v404_v39  ;;  %v1049_v49 = vmul.f32 %v407_v44, %v407_v44  ;;  %v1469_v23 = vpack.c.bf16 %v1924_v16, %v1913_v10 }
  0xe8   :  { %1546 = vst [vmem:[%s2253_s3 + $0x8] sm:$0xff] %v1394_v45   ;;  %1562 = vst [vmem:[%s2253_s3 + $0x88] sm:$0xff] %v1474_v11  }
  0xe9   :  { %1390 = vst [vmem:[%s2253_s3] sm:$0xff] %v1389_v47   ;;  %v979_v51 = vadd.f32 %v978_v48, %v412_v41  ;;  %v1112_v52 = vadd.f32 %v1049_v49, %v1048_v46  ;;  %v1624_v53 = vpop.f32.mrb[4].mxu0  ;;  %v1656_v21 = vpop.f32.mrb[4].mxu1  ;;  %1561 = vst [vmem:[%s2253_s3 + $0x80] sm:$0xff] %v1469_v23  }
  0xea   :  { %v419_v55 = vpop.f32.mrb[5].mxu0  ;;  %v428_v0 = vadd.f32 %v1624_v53, %v1890_v36  ;;  %v1932_v24 = vadd.f32 %v1656_v21, %v1890_v36  ;;  %v547_v25 = vpop.f32.mrb[5].mxu1 }
  0xeb   :  { %v1113_v59 = vadd.f32 %v1112_v52, %v1050_v50  ;;  %v420_v60 = vadd.f32 %v1890_v36, %v419_v55  ;;  %v980_v61 = vadd.f32 %v979_v51, %v415_v42  ;;  %v1625_v62 = vpop.f32.mrb[6].mxu0  ;;  %v1657_v31 = vpop.f32.mrb[6].mxu1  ;;  %v1945_v43 = vadd.f32 %v1890_v36, %v547_v25 }
  0xec   :  { %v431_v1 = vadd.f32 %v1625_v62, %v1890_v36  ;;  %v422_v2 = vpop.f32.mrb[7].mxu0  ;;  %v1054_v17 = vmul.f32 %v428_v0, %v428_v0  ;;  %v1941_v35 = vadd.f32 %v1657_v31, %v1890_v36  ;;  %v550_v37 = vpop.f32.mrb[7].mxu1 }
  0xed   :  { %v981_v5 = vadd.f32 %v980_v61, %v420_v60  ;;  %v1052_v6 = vmul.f32 %v420_v60, %v420_v60  ;;  %v1114_v7 = vadd.f32 %v1113_v59, %v1051_v58  ;;  %v423_v8 = vadd.f32 %v1890_v36, %v422_v2 }
  0xee   :  { %v1404_v9 = vpack.c.bf16 %v431_v1, %v428_v0  ;;  %v1055_v26 = vmul.f32 %v431_v1, %v431_v1  ;;  %v1484_v44 = vpack.c.bf16 %v1941_v35, %v1932_v24  ;;  %v1956_v49 = vadd.f32 %v1890_v36, %v550_v37 }
  0xef   :  { %v1115_v12 = vadd.f32 %v1114_v7, %v1052_v6  ;;  %v1399_v13 = vpack.c.bf16 %v423_v8, %v420_v60  ;;  %v982_v14 = vadd.f32 %v981_v5, %v423_v8  ;;  %v1053_v15 = vmul.f32 %v423_v8, %v423_v8 }
  0xf0   :  { %1548 = vst [vmem:[%s2253_s3 + $0x18] sm:$0xff] %v1404_v9   ;;  %1564 = vst [vmem:[%s2253_s3 + $0x98] sm:$0xff] %v1484_v44   ;;  %v1479_v57 = vpack.c.bf16 %v1956_v49, %v1945_v43 }
  0xf1   :  { %1547 = vst [vmem:[%s2253_s3 + $0x10] sm:$0xff] %v1399_v13   ;;  %v983_v18 = vadd.f32 %v982_v14, %v428_v0  ;;  %v1116_v19 = vadd.f32 %v1115_v12, %v1053_v15  ;;  %v1628_v20 = vpop.f32.mrb[8].mxu0  ;;  %v1660_v54 = vpop.f32.mrb[8].mxu1 }
  0xf2   :  { %v435_v22 = vpop.f32.mrb[9].mxu0  ;;  %v444_v32 = vadd.f32 %v1628_v20, %v1890_v36  ;;  %v1964_v58 = vadd.f32 %v1660_v54, %v1890_v36  ;;  %v563_v59 = vpop.f32.mrb[9].mxu1  ;;  %1563 = vst [vmem:[%s2253_s3 + $0x90] sm:$0xff] %v1479_v57  }
  0xf3   :  { %v1117_v27 = vadd.f32 %v1116_v19, %v1054_v17  ;;  %v436_v28 = vadd.f32 %v1890_v36, %v435_v22  ;;  %v984_v29 = vadd.f32 %v983_v18, %v431_v1  ;;  %v1629_v30 = vpop.f32.mrb[10].mxu0  ;;  %v1661_v1 = vpop.f32.mrb[10].mxu1  ;;  %v1977_v14 = vadd.f32 %v1890_v36, %v563_v59 }
  0xf4   :  { %v447_v33 = vadd.f32 %v1629_v30, %v1890_v36  ;;  %v438_v34 = vpop.f32.mrb[11].mxu0  ;;  %v1058_v50 = vmul.f32 %v444_v32, %v444_v32  ;;  %v1973_v6 = vadd.f32 %v1661_v1, %v1890_v36  ;;  %v566_v7 = vpop.f32.mrb[11].mxu1 }
  0xf5   :  { %v985_v38 = vadd.f32 %v984_v29, %v436_v28  ;;  %v1056_v39 = vmul.f32 %v436_v28, %v436_v28  ;;  %v1118_v40 = vadd.f32 %v1117_v27, %v1055_v26  ;;  %v439_v41 = vadd.f32 %v1890_v36, %v438_v34 }
  0xf6   :  { %v1414_v42 = vpack.c.bf16 %v447_v33, %v444_v32  ;;  %v1059_v60 = vmul.f32 %v447_v33, %v447_v33  ;;  %v1494_v15 = vpack.c.bf16 %v1973_v6, %v1964_v58  ;;  %v1988_v21 = vadd.f32 %v1890_v36, %v566_v7 }
  0xf7   :  { %v1119_v45 = vadd.f32 %v1118_v40, %v1056_v39  ;;  %v1409_v46 = vpack.c.bf16 %v439_v41, %v436_v28  ;;  %v986_v47 = vadd.f32 %v985_v38, %v439_v41  ;;  %v1057_v48 = vmul.f32 %v439_v41, %v439_v41 }
  0xf8   :  { %1550 = vst [vmem:[%s2253_s3 + $0x28] sm:$0xff] %v1414_v42   ;;  %1566 = vst [vmem:[%s2253_s3 + $0xa8] sm:$0xff] %v1494_v15   ;;  %v1489_v29 = vpack.c.bf16 %v1988_v21, %v1977_v14 }
  0xf9   :  { %1549 = vst [vmem:[%s2253_s3 + $0x20] sm:$0xff] %v1409_v46   ;;  %v987_v51 = vadd.f32 %v986_v47, %v444_v32  ;;  %v1120_v52 = vadd.f32 %v1119_v45, %v1057_v48  ;;  %v1632_v53 = vpop.f32.mrb[12].mxu0  ;;  %v1664_v27 = vpop.f32.mrb[12].mxu1 }
  0xfa   :  { %v451_v55 = vpop.f32.mrb[13].mxu0  ;;  %v460_v2 = vadd.f32 %v1632_v53, %v1890_v36  ;;  %v1996_v30 = vadd.f32 %v1664_v27, %v1890_v36  ;;  %v579_v31 = vpop.f32.mrb[13].mxu1  ;;  %1565 = vst [vmem:[%s2253_s3 + $0xa0] sm:$0xff] %v1489_v29  }
  0xfb   :  { %v1121_v61 = vadd.f32 %v1120_v52, %v1058_v50  ;;  %v452_v62 = vadd.f32 %v1890_v36, %v451_v55  ;;  %v988_v63 = vadd.f32 %v987_v51, %v447_v33  ;;  %v1633_v0 = vpop.f32.mrb[14].mxu0  ;;  %v1665_v39 = vpop.f32.mrb[14].mxu1  ;;  %v2009_v52 = vadd.f32 %v1890_v36, %v579_v31 }
  0xfc   :  { %v463_v4 = vadd.f32 %v1633_v0, %v1890_v36  ;;  %v454_v5 = vpop.f32.mrb[15].mxu0  ;;  %v1062_v22 = vmul.f32 %v460_v2, %v460_v2  ;;  %v2005_v44 = vadd.f32 %v1665_v39, %v1890_v36  ;;  %v582_v45 = vpop.f32.mrb[15].mxu1 }
  0xfd   :  { %v989_v8 = vadd.f32 %v988_v63, %v452_v62  ;;  %v1060_v9 = vmul.f32 %v452_v62, %v452_v62  ;;  %v1122_v11 = vadd.f32 %v1121_v61, %v1059_v60  ;;  %v455_v12 = vadd.f32 %v1890_v36, %v454_v5 }
  0xfe   :  { %v1424_v13 = vpack.c.bf16 %v463_v4, %v460_v2  ;;  %v1063_v32 = vmul.f32 %v463_v4, %v463_v4  ;;  %v1504_v53 = vpack.c.bf16 %v2005_v44, %v1996_v30  ;;  %v2020_v60 = vadd.f32 %v1890_v36, %v582_v45 }
  0xff   :  { %v1123_v17 = vadd.f32 %v1122_v11, %v1060_v9  ;;  %v1419_v18 = vpack.c.bf16 %v455_v12, %v452_v62  ;;  %v990_v19 = vadd.f32 %v989_v8, %v455_v12  ;;  %v1061_v20 = vmul.f32 %v455_v12, %v455_v12 }
 0x100   :  { %1552 = vst [vmem:[%s2253_s3 + $0x38] sm:$0xff] %v1424_v13   ;;  %1568 = vst [vmem:[%s2253_s3 + $0xb8] sm:$0xff] %v1504_v53  }
 0x101   :  { %1551 = vst [vmem:[%s2253_s3 + $0x30] sm:$0xff] %v1419_v18   ;;  %v991_v23 = vadd.f32 %v990_v19, %v460_v2  ;;  %v1124_v25 = vadd.f32 %v1123_v17, %v1061_v20  ;;  %v1636_v26 = vpop.f32.mrb[16].mxu0  ;;  %v1668_v1 = vpop.f32.mrb[16].mxu1 }
 0x102   :  { %v467_v28 = vpop.f32.mrb[17].mxu0  ;;  %v476_v40 = vadd.f32 %v1636_v26, %v1890_v36  ;;  %v2028_v5 = vadd.f32 %v1668_v1, %v1890_v36  ;;  %v595_v7 = vpop.f32.mrb[17].mxu1 }
 0x103   :  { %v1125_v33 = vadd.f32 %v1124_v25, %v1062_v22  ;;  %v468_v34 = vadd.f32 %v1890_v36, %v467_v28  ;;  %v992_v37 = vadd.f32 %v991_v23, %v463_v4  ;;  %v1637_v38 = vpop.f32.mrb[18].mxu0  ;;  %v1499_v4 = vpack.c.bf16 %v2020_v60, %v2009_v52  ;;  %v1669_v15 = vpop.f32.mrb[18].mxu1 }
 0x104   :  { %v479_v41 = vadd.f32 %v1637_v38, %v1890_v36  ;;  %v470_v42 = vpop.f32.mrb[19].mxu0  ;;  %v1066_v61 = vmul.f32 %v476_v40, %v476_v40  ;;  %v2037_v20 = vadd.f32 %v1669_v15, %v1890_v36  ;;  %v598_v22 = vpop.f32.mrb[19].mxu1  ;;  %v2041_v29 = vadd.f32 %v1890_v36, %v595_v7 }
 0x105   :  { %v993_v46 = vadd.f32 %v992_v37, %v468_v34  ;;  %v1064_v47 = vmul.f32 %v468_v34, %v468_v34  ;;  %v1126_v48 = vadd.f32 %v1125_v33, %v1063_v32  ;;  %v471_v50 = vadd.f32 %v1890_v36, %v470_v42  ;;  %1567 = vst [vmem:[%s2253_s3 + $0xb0] sm:$0xff] %v1499_v4  }
 0x106   :  { %v1434_v51 = vpack.c.bf16 %v479_v41, %v476_v40  ;;  %v1067_v8 = vmul.f32 %v479_v41, %v479_v41  ;;  %v1514_v31 = vpack.c.bf16 %v2037_v20, %v2028_v5  ;;  %v2052_v38 = vadd.f32 %v1890_v36, %v598_v22 }
 0x107   :  { %v1127_v54 = vadd.f32 %v1126_v48, %v1064_v47  ;;  %v1429_v55 = vpack.c.bf16 %v471_v50, %v468_v34  ;;  %v994_v57 = vadd.f32 %v993_v46, %v471_v50  ;;  %v1065_v59 = vmul.f32 %v471_v50, %v471_v50 }
 0x108   :  { %1554 = vst [vmem:[%s2253_s3 + $0x48] sm:$0xff] %v1434_v51   ;;  %1570 = vst [vmem:[%s2253_s3 + $0xc8] sm:$0xff] %v1514_v31   ;;  %v1509_v47 = vpack.c.bf16 %v2052_v38, %v2041_v29 }
 0x109   :  { %1553 = vst [vmem:[%s2253_s3 + $0x40] sm:$0xff] %v1429_v55   ;;  %v995_v62 = vadd.f32 %v994_v57, %v476_v40  ;;  %v1128_v63 = vadd.f32 %v1127_v54, %v1065_v59  ;;  %v1640_v0 = vpop.f32.mrb[20].mxu0  ;;  %v1672_v45 = vpop.f32.mrb[20].mxu1 }
 0x10a   :  { %v483_v2 = vpop.f32.mrb[21].mxu0  ;;  %v492_v17 = vadd.f32 %v1640_v0, %v1890_v36  ;;  %v2060_v48 = vadd.f32 %v1672_v45, %v1890_v36  ;;  %v611_v50 = vpop.f32.mrb[21].mxu1  ;;  %1569 = vst [vmem:[%s2253_s3 + $0xc0] sm:$0xff] %v1509_v47  }
 0x10b   :  { %v1129_v9 = vadd.f32 %v1128_v63, %v1066_v61  ;;  %v484_v11 = vadd.f32 %v1890_v36, %v483_v2  ;;  %v996_v12 = vadd.f32 %v995_v62, %v479_v41  ;;  %v1641_v13 = vpop.f32.mrb[22].mxu0  ;;  %v1673_v59 = vpop.f32.mrb[22].mxu1 }
 0x10c   :  { %v495_v18 = vadd.f32 %v1641_v13, %v1890_v36  ;;  %v486_v19 = vpop.f32.mrb[23].mxu0  ;;  %v1070_v39 = vmul.f32 %v492_v17, %v492_v17  ;;  %v2069_v0 = vadd.f32 %v1673_v59, %v1890_v36  ;;  %v614_v1 = vpop.f32.mrb[23].mxu1 }
 0x10d   :  { %v997_v23 = vadd.f32 %v996_v12, %v484_v11  ;;  %v1068_v25 = vmul.f32 %v484_v11, %v484_v11  ;;  %v1130_v26 = vadd.f32 %v1129_v9, %v1067_v8  ;;  %v487_v27 = vadd.f32 %v1890_v36, %v486_v19 }
 0x10e   :  { %v1444_v28 = vpack.c.bf16 %v495_v18, %v492_v17  ;;  %v1071_v51 = vmul.f32 %v495_v18, %v495_v18  ;;  %v1524_v12 = vpack.c.bf16 %v2069_v0, %v2060_v48  ;;  %v2084_v19 = vadd.f32 %v1890_v36, %v614_v1 }
 0x10f   :  { %v1131_v32 = vadd.f32 %v1130_v26, %v1068_v25  ;;  %v1439_v33 = vpack.c.bf16 %v487_v27, %v484_v11  ;;  %v998_v34 = vadd.f32 %v997_v23, %v487_v27  ;;  %v1069_v37 = vmul.f32 %v487_v27, %v487_v27 }
 0x110   :  { %1556 = vst [vmem:[%s2253_s3 + $0x58] sm:$0xff] %v1444_v28   ;;  %v2073_v11 = vadd.f32 %v1890_v36, %v611_v50  ;;  %1572 = vst [vmem:[%s2253_s3 + $0xd8] sm:$0xff] %v1524_v12  }
 0x111   :  { %1555 = vst [vmem:[%s2253_s3 + $0x50] sm:$0xff] %v1439_v33   ;;  %v999_v40 = vadd.f32 %v998_v34, %v492_v17  ;;  %v1132_v41 = vadd.f32 %v1131_v32, %v1069_v37  ;;  %v1644_v42 = vpop.f32.mrb[24].mxu0  ;;  %v1676_v27 = vpop.f32.mrb[24].mxu1 }
 0x112   :  { %v499_v46 = vpop.f32.mrb[25].mxu0  ;;  %v508_v61 = vadd.f32 %v1644_v42, %v1890_v36  ;;  %v1519_v31 = vpack.c.bf16 %v2084_v19, %v2073_v11  ;;  %v2092_v32 = vadd.f32 %v1676_v27, %v1890_v36  ;;  %v627_v33 = vpop.f32.mrb[25].mxu1 }
 0x113   :  { %v1133_v53 = vadd.f32 %v1132_v41, %v1070_v39  ;;  %v500_v54 = vadd.f32 %v1890_v36, %v499_v46  ;;  %v1000_v55 = vadd.f32 %v999_v40, %v495_v18  ;;  %v1645_v57 = vpop.f32.mrb[26].mxu0  ;;  %v1677_v42 = vpop.f32.mrb[26].mxu1 }
 0x114   :  { %v511_v62 = vadd.f32 %v1645_v57, %v1890_v36  ;;  %v502_v63 = vpop.f32.mrb[27].mxu0  ;;  %v1074_v22 = vmul.f32 %v508_v61, %v508_v61  ;;  %1571 = vst [vmem:[%s2253_s3 + $0xd0] sm:$0xff] %v1519_v31   ;;  %v2101_v50 = vadd.f32 %v1677_v42, %v1890_v36 }
 0x115   :  { %v1001_v2 = vadd.f32 %v1000_v55, %v500_v54  ;;  %v1072_v4 = vmul.f32 %v500_v54, %v500_v54  ;;  %v1134_v7 = vadd.f32 %v1133_v53, %v1071_v51  ;;  %v503_v8 = vadd.f32 %v1890_v36, %v502_v63  ;;  %v630_v51 = vpop.f32.mrb[27].mxu1 }
 0x116   :  { %v1454_v9 = vpack.c.bf16 %v511_v62, %v508_v61  ;;  %v1075_v34 = vmul.f32 %v511_v62, %v511_v62 }
 0x117   :  { %v1135_v13 = vadd.f32 %v1134_v7, %v1072_v4  ;;  %v1449_v15 = vpack.c.bf16 %v503_v8, %v500_v54  ;;  %v1002_v17 = vadd.f32 %v1001_v2, %v503_v8  ;;  %v1073_v18 = vmul.f32 %v503_v8, %v503_v8 }
 0x118   :  { %1558 = vst [vmem:[%s2253_s3 + $0x68] sm:$0xff] %v1454_v9   ;;  %v2116_v7 = vadd.f32 %v1890_v36, %v630_v51 }
 0x119   :  { %1557 = vst [vmem:[%s2253_s3 + $0x60] sm:$0xff] %v1449_v15   ;;  %v1003_v23 = vadd.f32 %v1002_v17, %v508_v61  ;;  %v1136_v25 = vadd.f32 %v1135_v13, %v1073_v18  ;;  %v1648_v26 = vpop.f32.mrb[28].mxu0  ;;  %v2105_v61 = vadd.f32 %v1890_v36, %v627_v33  ;;  %v1680_v13 = vpop.f32.mrb[28].mxu1  ;;  %v1080_v15 = vmul.f32 %v1913_v10, %v1913_v10 }
 0x11a   :  { %v515_v28 = vpop.f32.mrb[29].mxu0  ;;  %v524_v45 = vadd.f32 %v1648_v26, %v1890_v36  ;;  %v2126_v18 = vadd.f32 %v1680_v13, %v1890_v36 }
 0x11b   :  { %v1137_v37 = vadd.f32 %v1136_v25, %v1074_v22  ;;  %v516_v39 = vadd.f32 %v1890_v36, %v515_v28  ;;  %v1004_v40 = vadd.f32 %v1003_v23, %v511_v62  ;;  %v1649_v41 = vpop.f32.mrb[30].mxu0  ;;  %v1534_v62 = vpack.c.bf16 %v2101_v50, %v2092_v32  ;;  %v643_v22 = vpop.f32.mrb[29].mxu1 }
 0x11c   :  { %v527_v46 = vadd.f32 %v1649_v41, %v1890_v36  ;;  %v518_v47 = vpop.f32.mrb[31].mxu0  ;;  %v1078_v8 = vmul.f32 %v524_v45, %v524_v45  ;;  %v1529_v17 = vpack.c.bf16 %v2116_v7, %v2105_v61  ;;  %v2129_v27 = vadd.f32 %v1890_v36, %v643_v22  ;;  %v1681_v28 = vpop.f32.mrb[30].mxu1 }
 0x11d   :  { %v1005_v53 = vadd.f32 %v1004_v40, %v516_v39  ;;  %v1076_v54 = vmul.f32 %v516_v39, %v516_v39  ;;  %v1138_v55 = vadd.f32 %v1137_v37, %v1075_v34  ;;  %v519_v57 = vadd.f32 %v1890_v36, %v518_v47  ;;  %1574 = vst [vmem:[%s2253_s3 + $0xe8] sm:$0xff] %v1534_v62   ;;  %v646_v33 = vpop.f32.mrb[31].mxu1 }
 0x11e   :  { %v1464_v59 = vpack.c.bf16 %v527_v46, %v524_v45  ;;  %v1079_v23 = vmul.f32 %v527_v46, %v527_v46  ;;  %1573 = vst [vmem:[%s2253_s3 + $0xe0] sm:$0xff] %v1529_v17   ;;  %v2135_v31 = vadd.f32 %v1681_v28, %v1890_v36  ;;  %v1085_v62 = vmul.f32 %v1956_v49, %v1956_v49 }
 0x11f   :  { %v1139_v63 = vadd.f32 %v1138_v55, %v1076_v54  ;;  %v1459_v1 = vpack.c.bf16 %v519_v57, %v516_v39  ;;  %v1006_v2 = vadd.f32 %v1005_v53, %v519_v57  ;;  %v1077_v4 = vmul.f32 %v519_v57, %v519_v57 }
 0x120   :  { %1560 = vst [vmem:[%s2253_s3 + $0x78] sm:$0xff] %v1464_v59   ;;  %v2139_v39 = vadd.f32 %v1890_v36, %v646_v33  ;;  %v1544_v40 = vpack.c.bf16 %v2135_v31, %v2126_v18  ;;  %v1082_v36 = vmul.f32 %v1903_v56, %v1903_v56  ;;  %v1084_v54 = vmul.f32 %v1945_v43, %v1945_v43 }
 0x121   :  { %1559 = vst [vmem:[%s2253_s3 + $0x70] sm:$0xff] %v1459_v1   ;;  %v1007_v9 = vadd.f32 %v1006_v2, %v524_v45  ;;  %v1140_v12 = vadd.f32 %v1139_v63, %v1077_v4  ;;  %v1081_v45 = vmul.f32 %v1924_v16, %v1924_v16  ;;  %v1086_v63 = vmul.f32 %v1932_v24, %v1932_v24 }
 0x122   :  { %1576 = vst [vmem:[%s2253_s3 + $0xf8] sm:$0xff] %v1544_v40  }
 0x123   :  { %v1141_v25 = vadd.f32 %v1140_v12, %v1078_v8  ;;  %v1008_v26 = vadd.f32 %v1007_v9, %v527_v46  ;;  %v1539_v46 = vpack.c.bf16 %v2139_v39, %v2129_v27 }
 0x125   :  { %v1009_v34 = vadd.f32 %v1008_v26, %v1913_v10  ;;  %v1142_v37 = vadd.f32 %v1141_v25, %v1079_v23  ;;  %1575 = vst [vmem:[%s2253_s3 + $0xf0] sm:$0xff] %v1539_v46  }
 0x127   :  { %v1143_v41 = vadd.f32 %v1142_v37, %v1080_v15  ;;  %v1010_v42 = vadd.f32 %v1009_v34, %v1924_v16  ;;  %v1083_v16 = vmul.f32 %v1909_v3, %v1909_v3  ;;  %v1089_v15 = vmul.f32 %v1988_v21, %v1988_v21 }
 0x128   :  { %v1093_v34 = vmul.f32 %v2020_v60, %v2020_v60 }
 0x129   :  { %v1011_v10 = vadd.f32 %v1010_v42, %v1903_v56  ;;  %v1144_v47 = vadd.f32 %v1143_v41, %v1081_v45 }
 0x12b   :  { %v1145_v51 = vadd.f32 %v1144_v47, %v1082_v36  ;;  %v1012_v53 = vadd.f32 %v1011_v10, %v1909_v3  ;;  %v1087_v3 = vmul.f32 %v1941_v35, %v1941_v35  ;;  %v1097_v10 = vmul.f32 %v2052_v38, %v2052_v38 }
 0x12d   :  { %v1013_v55 = vadd.f32 %v1012_v53, %v1945_v43  ;;  %v1146_v57 = vadd.f32 %v1145_v51, %v1083_v16  ;;  %v1088_v43 = vmul.f32 %v1977_v14, %v1977_v14 }
 0x12f   :  { %v1147_v59 = vadd.f32 %v1146_v57, %v1084_v54  ;;  %v1014_v56 = vadd.f32 %v1013_v55, %v1956_v49 }
 0x131   :  { %v1015_v1 = vadd.f32 %v1014_v56, %v1932_v24  ;;  %v1148_v2 = vadd.f32 %v1147_v59, %v1085_v62  ;;  %v1090_v24 = vmul.f32 %v1964_v58, %v1964_v58  ;;  %v1101_v59 = vmul.f32 %v2084_v19, %v2084_v19 }
 0x133   :  { %v1149_v4 = vadd.f32 %v1148_v2, %v1086_v63  ;;  %v1016_v8 = vadd.f32 %v1015_v1, %v1941_v35  ;;  %v1091_v35 = vmul.f32 %v1973_v6, %v1973_v6 }
 0x135   :  { %v1017_v9 = vadd.f32 %v1016_v8, %v1977_v14  ;;  %v1150_v12 = vadd.f32 %v1149_v4, %v1087_v3  ;;  %v1092_v14 = vmul.f32 %v2009_v52, %v2009_v52  ;;  %v1105_v8 = vmul.f32 %v2116_v7, %v2116_v7 }
 0x137   :  { %v1151_v13 = vadd.f32 %v1150_v12, %v1088_v43  ;;  %v1018_v49 = vadd.f32 %v1017_v9, %v1988_v21 }
 0x139   :  { %v1019_v17 = vadd.f32 %v1018_v49, %v1964_v58  ;;  %v1152_v22 = vadd.f32 %v1151_v13, %v1089_v15  ;;  %v1094_v58 = vmul.f32 %v1996_v30, %v1996_v30 }
 0x13b   :  { %v1153_v23 = vadd.f32 %v1152_v22, %v1090_v24  ;;  %v1020_v25 = vadd.f32 %v1019_v17, %v1973_v6  ;;  %v1095_v6 = vmul.f32 %v2005_v44, %v2005_v44  ;;  %v1109_v17 = vmul.f32 %v2139_v39, %v2139_v39 }
 0x13d   :  { %v1021_v26 = vadd.f32 %v1020_v25, %v2009_v52  ;;  %v1154_v28 = vadd.f32 %v1153_v23, %v1091_v35  ;;  %v1096_v52 = vmul.f32 %v2041_v29, %v2041_v29 }
 0x13f   :  { %v1155_v33 = vadd.f32 %v1154_v28, %v1092_v14  ;;  %v1022_v21 = vadd.f32 %v1021_v26, %v2020_v60 }
 0x141   :  { %v1023_v37 = vadd.f32 %v1022_v21, %v1996_v30  ;;  %v1156_v40 = vadd.f32 %v1155_v33, %v1093_v34  ;;  %v1098_v30 = vmul.f32 %v2028_v5, %v2028_v5 }
 0x143   :  { %v1157_v41 = vadd.f32 %v1156_v40, %v1094_v58  ;;  %v1024_v42 = vadd.f32 %v1023_v37, %v2005_v44  ;;  %v1099_v44 = vmul.f32 %v2037_v20, %v2037_v20 }
 0x145   :  { %v1025_v45 = vadd.f32 %v1024_v42, %v2041_v29  ;;  %v1158_v46 = vadd.f32 %v1157_v41, %v1095_v6  ;;  %v1100_v29 = vmul.f32 %v2073_v11, %v2073_v11 }
 0x147   :  { %v1159_v36 = vadd.f32 %v1158_v46, %v1096_v52  ;;  %v1026_v60 = vadd.f32 %v1025_v45, %v2052_v38 }
 0x149   :  { %v1027_v47 = vadd.f32 %v1026_v60, %v2028_v5  ;;  %v1160_v16 = vadd.f32 %v1159_v36, %v1097_v10  ;;  %v1102_v5 = vmul.f32 %v2060_v48, %v2060_v48 }
 0x14b   :  { %v1161_v51 = vadd.f32 %v1160_v16, %v1098_v30  ;;  %v1028_v53 = vadd.f32 %v1027_v47, %v2037_v20  ;;  %v1103_v20 = vmul.f32 %v2069_v0, %v2069_v0 }
 0x14d   :  { %v1029_v54 = vadd.f32 %v1028_v53, %v2073_v11  ;;  %v1162_v55 = vadd.f32 %v1161_v51, %v1099_v44  ;;  %v1104_v11 = vmul.f32 %v2105_v61, %v2105_v61 }
 0x14f   :  { %v1163_v57 = vadd.f32 %v1162_v55, %v1100_v29  ;;  %v1030_v38 = vadd.f32 %v1029_v54, %v2084_v19 }
 0x151   :  { %v1031_v56 = vadd.f32 %v1030_v38, %v2060_v48  ;;  %v1164_v62 = vadd.f32 %v1163_v57, %v1101_v59  ;;  %v1106_v48 = vmul.f32 %v2092_v32, %v2092_v32 }
 0x153   :  { %v1165_v63 = vadd.f32 %v1164_v62, %v1102_v5  ;;  %v1032_v1 = vadd.f32 %v1031_v56, %v2069_v0  ;;  %v1107_v0 = vmul.f32 %v2101_v50, %v2101_v50 }
 0x155   :  { %v1033_v2 = vadd.f32 %v1032_v1, %v2105_v61  ;;  %v1166_v3 = vadd.f32 %v1165_v63, %v1103_v20  ;;  %v1108_v61 = vmul.f32 %v2129_v27, %v2129_v27 }
 0x157   :  { %v1167_v4 = vadd.f32 %v1166_v3, %v1104_v11  ;;  %v1034_v19 = vadd.f32 %v1033_v2, %v2116_v7 }
 0x159   :  { %v1035_v43 = vadd.f32 %v1034_v19, %v2092_v32  ;;  %v1168_v9 = vadd.f32 %v1167_v4, %v1105_v8  ;;  %v1110_v32 = vmul.f32 %v2126_v18, %v2126_v18 }
 0x15b   :  { %v1169_v12 = vadd.f32 %v1168_v9, %v1106_v48  ;;  %v1036_v13 = vadd.f32 %v1035_v43, %v2101_v50  ;;  %v1111_v50 = vmul.f32 %v2135_v31, %v2135_v31 }
 0x15d   :  { %v1037_v49 = vadd.f32 %v1036_v13, %v2129_v27  ;;  %v1170_v15 = vadd.f32 %v1169_v12, %v1107_v0 }
 0x15f   :  { %v1171_v24 = vadd.f32 %v1170_v15, %v1108_v61  ;;  %v1038_v7 = vadd.f32 %v1037_v49, %v2139_v39 }
 0x161   :  { %v1039_v22 = vadd.f32 %v1038_v7, %v2126_v18  ;;  %v1172_v35 = vadd.f32 %v1171_v24, %v1109_v17 }
 0x163   :  { %v1040_v23 = vadd.f32 %v1039_v22, %v2135_v31  ;;  %v1173_v25 = vadd.f32 %v1172_v35, %v1110_v32 }
 0x165   :  { %v1041_v27 = vrot.slane %v1040_v23, 4  ;;  %v1174_v14 = vadd.f32 %v1173_v25, %v1111_v50 }
 0x167   :  { %v1042_v26 = vadd.f32 %v1041_v27, %v1040_v23  ;;  %v1175_v28 = vrot.slane %v1174_v14, 4 }
 0x169   :  { %v1043_v33 = vrot.slane %v1042_v26, 2  ;;  %v1176_v21 = vadd.f32 %v1175_v28, %v1174_v14 }
 0x16b   :  { %v1044_v34 = vadd.f32 %v1043_v33, %v1042_v26  ;;  %v1177_v39 = vrot.slane %v1176_v21, 2 }
 0x16d   :  { %v1045_v58 = vrot.slane %v1044_v34, 1  ;;  %v1178_v37 = vadd.f32 %v1177_v39, %v1176_v21 }
 0x16f   :  { %v1046_v40 = vadd.f32 %v1045_v58, %v1044_v34  ;;  %v1179_v6 = vrot.slane %v1178_v37, 1 }
 0x171   :  { %1047 = vst [vmem:[%s2254_s4] sm:$0x1] %v1046_v40  ;;  %v1180_v18 = vadd.f32 %v1179_v6, %v1178_v37 }
 0x173   :  { %1181 = vst [vmem:[%s2254_s4 + $0x1] sm:$0x1] %v1180_v18 }

// kernel: _lambda_.9
= control target key start
LH: loop header
LB: loop body
LE: loop exit
PB: predicated region body
PF: predicated region fallthrough
CT: control target
= control target key end

     0   :  { %s1694_s0 = inlined_call_operand.vmem [shape: bf16[1,512,128], index: 0, kind: input, shape index: {}]   ;;  %s1695_s1 = inlined_call_operand.vmem [shape: f32[1,3,128], index: 1, kind: input, shape index: {}]   ;;  %s1696_s2 = inlined_call_operand.vmem [shape: bf16[1,512,128], index: 2, kind: output, shape index: {}]  }
   0x1   :  { %v930_v0 = vld [vmem:[%s1694_s0] sm:$0xff]   ;;  %v1217_v4 = vld [vmem:[%s1694_s0 + $0x8] sm:$0xff]   ;;  %v1218_v5 = vld [vmem:[%s1694_s0 + $0x10] sm:$0xff]  }
   0x2   :  { %v1300_v1 = vld [vmem:[%s1695_s1] ss:$0 sm:$0xff]  ;;  %v931_v2 = vunpack.c.l.bf16 %v930_v0  ;;  %v932_v3 = vunpack.c.h.bf16 %v930_v0  ;;  %v1311_v6 = vld [vmem:[%s1695_s1 + $0x1] ss:$0 sm:$0xff]  ;;  %v935_v7 = vunpack.c.l.bf16 %v1217_v4  ;;  %v936_v8 = vunpack.c.h.bf16 %v1217_v4  ;;  %v1219_v11 = vld [vmem:[%s1694_s0 + $0x18] sm:$0xff]  }
   0x3   :  { %v939_v9 = vunpack.c.l.bf16 %v1218_v5  ;;  %v940_v10 = vunpack.c.h.bf16 %v1218_v5  ;;  %v943_v14 = vunpack.c.l.bf16 %v1219_v11  ;;  %v944_v15 = vunpack.c.h.bf16 %v1219_v11  ;;  %v1321_v16 = vld [vmem:[%s1695_s1 + $0x2] ss:$0 sm:$0xff]  ;;  %v1221_v36 = vld [vmem:[%s1694_s0 + $0x28] sm:$0xff]   ;;  %v1222_v49 = vld [vmem:[%s1694_s0 + $0x30] sm:$0xff]  }
   0x4   :  { %v144_v12 = vmul.f32 %v931_v2, %v1300_v1  ;;  %v145_v13 = vmul.f32 %v932_v3, %v1300_v1  ;;  %v146_v17 = vmul.f32 %v935_v7, %v1300_v1  ;;  %v147_v18 = vmul.f32 %v936_v8, %v1300_v1  ;;  %v1220_v35 = vld [vmem:[%s1694_s0 + $0x20] sm:$0xff]   ;;  %v1223_v5 = vld [vmem:[%s1694_s0 + $0x38] sm:$0xff]  }
   0x5   :  { %v148_v19 = vmul.f32 %v939_v9, %v1300_v1  ;;  %v149_v20 = vmul.f32 %v940_v10, %v1300_v1  ;;  %v150_v23 = vmul.f32 %v943_v14, %v1300_v1  ;;  %v151_v24 = vmul.f32 %v944_v15, %v1300_v1 }
   0x6   :  { %v213_v21 = vadd.f32 %v1311_v6, %v144_v12  ;;  %v214_v22 = vadd.f32 %v1311_v6, %v145_v13  ;;  %v215_v25 = vadd.f32 %v1311_v6, %v146_v17  ;;  %v216_v26 = vadd.f32 %v1311_v6, %v147_v18  ;;  %v1224_v17 = vld [vmem:[%s1694_s0 + $0x40] sm:$0xff]  }
   0x7   :  { %v217_v27 = vadd.f32 %v1311_v6, %v148_v19  ;;  %v218_v28 = vadd.f32 %v1311_v6, %v149_v20  ;;  %v219_v43 = vadd.f32 %v1311_v6, %v150_v23  ;;  %v220_v44 = vadd.f32 %v1311_v6, %v151_v24 }
   0x8   :  { %vm277_vm0 = vcmp.ge.f32.partialorder %v213_v21, 0.0  ;;  %vm278_vm1 = vcmp.ge.f32.partialorder %v214_v22, 0.0  ;;  %v346_v29 = vmul.f32 %v1321_v16, %v213_v21  ;;  %v347_v30 = vmul.f32 %v1321_v16, %v214_v22 }
   0x9   :  { %vm279_vm2 = vcmp.ge.f32.partialorder %v215_v25, 0.0  ;;  %vm280_vm3 = vcmp.ge.f32.partialorder %v216_v26, 0.0  ;;  %v348_v31 = vmul.f32 %v1321_v16, %v215_v25  ;;  %v349_v32 = vmul.f32 %v1321_v16, %v216_v26 }
   0xa   :  { %v410_v33 = vsel %vm277_vm0, %v213_v21, %v346_v29  ;;  %v411_v34 = vsel %vm278_vm1, %v214_v22, %v347_v30  ;;  %vm281_vm4 = vcmp.ge.f32.partialorder %v217_v27, 0.0  ;;  %vm282_vm5 = vcmp.ge.f32.partialorder %v218_v28, 0.0  ;;  %v1226_v29 = vld [vmem:[%s1694_s0 + $0x50] sm:$0xff]  }
   0xb   :  { %v1060_v37 = vpack.c.bf16 %v411_v34, %v410_v33  ;;  %v412_v38 = vsel %vm279_vm2, %v215_v25, %v348_v31  ;;  %v413_v39 = vsel %vm280_vm3, %v216_v26, %v349_v32  ;;  %v350_v40 = vmul.f32 %v1321_v16, %v217_v27 }
   0xc   :  { %v1065_v41 = vpack.c.bf16 %v413_v39, %v412_v38  ;;  %v351_v42 = vmul.f32 %v1321_v16, %v218_v28  ;;  %v947_v46 = vunpack.c.l.bf16 %v1220_v35  ;;  %v948_v47 = vunpack.c.h.bf16 %v1220_v35 }
   0xd   :  { %1061 = vst [vmem:[%s1696_s2] sm:$0xff] %v1060_v37   ;;  %v414_v45 = vsel %vm281_vm4, %v217_v27, %v350_v40  ;;  %v951_v48 = vunpack.c.l.bf16 %v1221_v36  ;;  %vm283_vm6 = vcmp.ge.f32.partialorder %v219_v43, 0.0  ;;  %vm284_vm7 = vcmp.ge.f32.partialorder %v220_v44, 0.0 }
   0xe   :  { %1248 = vst [vmem:[%s1696_s2 + $0x8] sm:$0xff] %v1065_v41   ;;  %v415_v50 = vsel %vm282_vm5, %v218_v28, %v351_v42  ;;  %v352_v51 = vmul.f32 %v1321_v16, %v219_v43  ;;  %v353_v53 = vmul.f32 %v1321_v16, %v220_v44  ;;  %v152_v54 = vmul.f32 %v947_v46, %v1300_v1  ;;  %v1225_v28 = vld [vmem:[%s1694_s0 + $0x48] sm:$0xff]  }
   0xf   :  { %v1070_v52 = vpack.c.bf16 %v415_v50, %v414_v45  ;;  %v153_v55 = vmul.f32 %v948_v47, %v1300_v1  ;;  %v952_v57 = vunpack.c.h.bf16 %v1221_v36  ;;  %v154_v58 = vmul.f32 %v951_v48, %v1300_v1 }
  0x10   :  { %v416_v56 = vsel %vm283_vm6, %v219_v43, %v352_v51  ;;  %v955_v59 = vunpack.c.l.bf16 %v1222_v49  ;;  %v417_v60 = vsel %vm284_vm7, %v220_v44, %v353_v53  ;;  %v221_v61 = vadd.f32 %v1311_v6, %v152_v54 }
  0x11   :  { %1249 = vst [vmem:[%s1696_s2 + $0x10] sm:$0xff] %v1070_v52   ;;  %v222_v62 = vadd.f32 %v1311_v6, %v153_v55  ;;  %v956_v63 = vunpack.c.h.bf16 %v1222_v49  ;;  %v1075_v0 = vpack.c.bf16 %v417_v60, %v416_v56  ;;  %v155_v2 = vmul.f32 %v952_v57, %v1300_v1  ;;  %v1227_v57 = vld [vmem:[%s1694_s0 + $0x58] sm:$0xff]  }
  0x12   :  { %v223_v3 = vadd.f32 %v1311_v6, %v154_v58  ;;  %v156_v4 = vmul.f32 %v955_v59, %v1300_v1  ;;  %vm285_vm8 = vcmp.ge.f32.partialorder %v221_v61, 0.0  ;;  %v354_v7 = vmul.f32 %v1321_v16, %v221_v61 }
  0x13   :  { %vm286_vm9 = vcmp.ge.f32.partialorder %v222_v62, 0.0  ;;  %v355_v8 = vmul.f32 %v1321_v16, %v222_v62  ;;  %1250 = vst [vmem:[%s1696_s2 + $0x18] sm:$0xff] %v1075_v0   ;;  %v224_v9 = vadd.f32 %v1311_v6, %v155_v2  ;;  %v157_v11 = vmul.f32 %v956_v63, %v1300_v1 }
  0x14   :  { %vm287_vm10 = vcmp.ge.f32.partialorder %v223_v3, 0.0  ;;  %v356_v10 = vmul.f32 %v1321_v16, %v223_v3  ;;  %v418_v12 = vsel %vm285_vm8, %v221_v61, %v354_v7  ;;  %v225_v14 = vadd.f32 %v1311_v6, %v156_v4 }
  0x15   :  { %v419_v13 = vsel %vm286_vm9, %v222_v62, %v355_v8  ;;  %v959_v15 = vunpack.c.l.bf16 %v1223_v5  ;;  %vm288_vm11 = vcmp.ge.f32.partialorder %v224_v9, 0.0  ;;  %v357_v19 = vmul.f32 %v1321_v16, %v224_v9  ;;  %v1228_v62 = vld [vmem:[%s1694_s0 + $0x60] sm:$0xff]  }
  0x16   :  { %v1080_v18 = vpack.c.bf16 %v419_v13, %v418_v12  ;;  %v420_v20 = vsel %vm287_vm10, %v223_v3, %v356_v10  ;;  %v226_v21 = vadd.f32 %v1311_v6, %v157_v11  ;;  %vm289_vm12 = vcmp.ge.f32.partialorder %v225_v14, 0.0  ;;  %v1229_v11 = vld [vmem:[%s1694_s0 + $0x68] sm:$0xff]  }
  0x17   :  { %v358_v22 = vmul.f32 %v1321_v16, %v225_v14  ;;  %v960_v23 = vunpack.c.h.bf16 %v1223_v5  ;;  %v421_v24 = vsel %vm288_vm11, %v224_v9, %v357_v19  ;;  %v158_v25 = vmul.f32 %v959_v15, %v1300_v1 }
  0x18   :  { %1251 = vst [vmem:[%s1696_s2 + $0x20] sm:$0xff] %v1080_v18   ;;  %v963_v26 = vunpack.c.l.bf16 %v1224_v17  ;;  %v964_v27 = vunpack.c.h.bf16 %v1224_v17  ;;  %v1085_v30 = vpack.c.bf16 %v421_v24, %v420_v20  ;;  %vm290_vm13 = vcmp.ge.f32.partialorder %v226_v21, 0.0 }
  0x19   :  { %v359_v31 = vmul.f32 %v1321_v16, %v226_v21  ;;  %v422_v32 = vsel %vm289_vm12, %v225_v14, %v358_v22  ;;  %v159_v33 = vmul.f32 %v960_v23, %v1300_v1  ;;  %v227_v34 = vadd.f32 %v1311_v6, %v158_v25 }
  0x1a   :  { %v160_v35 = vmul.f32 %v963_v26, %v1300_v1  ;;  %v161_v36 = vmul.f32 %v964_v27, %v1300_v1  ;;  %1252 = vst [vmem:[%s1696_s2 + $0x28] sm:$0xff] %v1085_v30   ;;  %v967_v38 = vunpack.c.l.bf16 %v1225_v28  ;;  %v968_v39 = vunpack.c.h.bf16 %v1225_v28 }
  0x1b   :  { %v423_v37 = vsel %vm290_vm13, %v226_v21, %v359_v31  ;;  %v971_v40 = vunpack.c.l.bf16 %v1226_v29  ;;  %v228_v42 = vadd.f32 %v1311_v6, %v159_v33  ;;  %vm291_vm14 = vcmp.ge.f32.partialorder %v227_v34, 0.0  ;;  %v1230_v33 = vld [vmem:[%s1694_s0 + $0x70] sm:$0xff]  }
  0x1c   :  { %v1090_v41 = vpack.c.bf16 %v423_v37, %v422_v32  ;;  %v360_v43 = vmul.f32 %v1321_v16, %v227_v34  ;;  %v229_v44 = vadd.f32 %v1311_v6, %v160_v35  ;;  %v230_v45 = vadd.f32 %v1311_v6, %v161_v36 }
  0x1d   :  { %v162_v46 = vmul.f32 %v967_v38, %v1300_v1  ;;  %v163_v47 = vmul.f32 %v968_v39, %v1300_v1  ;;  %vm292_vm15 = vcmp.ge.f32.partialorder %v228_v42, 0.0  ;;  %v361_v48 = vmul.f32 %v1321_v16, %v228_v42 }
  0x1e   :  { %1253 = vst [vmem:[%s1696_s2 + $0x30] sm:$0xff] %v1090_v41   ;;  %v424_v49 = vsel %vm291_vm14, %v227_v34, %v360_v43  ;;  %v972_v50 = vunpack.c.h.bf16 %v1226_v29  ;;  %vm293_vm0 = vcmp.ge.f32.partialorder %v229_v44, 0.0  ;;  %vm294_vm1 = vcmp.ge.f32.partialorder %v230_v45, 0.0 }
  0x1f   :  { %v362_v51 = vmul.f32 %v1321_v16, %v229_v44  ;;  %v363_v52 = vmul.f32 %v1321_v16, %v230_v45  ;;  %v425_v53 = vsel %vm292_vm15, %v228_v42, %v361_v48  ;;  %v231_v54 = vadd.f32 %v1311_v6, %v162_v46 }
  0x20   :  { %v232_v55 = vadd.f32 %v1311_v6, %v163_v47  ;;  %v164_v56 = vmul.f32 %v971_v40, %v1300_v1  ;;  %v1095_v58 = vpack.c.bf16 %v425_v53, %v424_v49  ;;  %v165_v61 = vmul.f32 %v972_v50, %v1300_v1  ;;  %v1231_v40 = vld [vmem:[%s1694_s0 + $0x78] sm:$0xff]   ;;  %v1233_v53 = vld [vmem:[%s1694_s0 + $0x88] sm:$0xff]  }
  0x21   :  { %v426_v59 = vsel %vm293_vm0, %v229_v44, %v362_v51  ;;  %v427_v60 = vsel %vm294_vm1, %v230_v45, %v363_v52  ;;  %vm295_vm2 = vcmp.ge.f32.partialorder %v231_v54, 0.0  ;;  %v364_v0 = vmul.f32 %v1321_v16, %v231_v54  ;;  %v1232_v45 = vld [vmem:[%s1694_s0 + $0x80] sm:$0xff]  }
  0x22   :  { %v1100_v63 = vpack.c.bf16 %v427_v60, %v426_v59  ;;  %vm296_vm3 = vcmp.ge.f32.partialorder %v232_v55, 0.0  ;;  %1254 = vst [vmem:[%s1696_s2 + $0x38] sm:$0xff] %v1095_v58   ;;  %v365_v2 = vmul.f32 %v1321_v16, %v232_v55  ;;  %v233_v3 = vadd.f32 %v1311_v6, %v164_v56 }
  0x23   :  { %v234_v4 = vadd.f32 %v1311_v6, %v165_v61  ;;  %v975_v5 = vunpack.c.l.bf16 %v1227_v57  ;;  %v428_v7 = vsel %vm295_vm2, %v231_v54, %v364_v0  ;;  %v976_v8 = vunpack.c.h.bf16 %v1227_v57 }
  0x24   :  { %1255 = vst [vmem:[%s1696_s2 + $0x40] sm:$0xff] %v1100_v63   ;;  %v979_v9 = vunpack.c.l.bf16 %v1228_v62  ;;  %v980_v10 = vunpack.c.h.bf16 %v1228_v62  ;;  %v429_v12 = vsel %vm296_vm3, %v232_v55, %v365_v2  ;;  %vm297_vm4 = vcmp.ge.f32.partialorder %v233_v3, 0.0 }
  0x25   :  { %vm298_vm5 = vcmp.ge.f32.partialorder %v234_v4, 0.0  ;;  %v366_v13 = vmul.f32 %v1321_v16, %v233_v3  ;;  %v1105_v14 = vpack.c.bf16 %v429_v12, %v428_v7  ;;  %v367_v15 = vmul.f32 %v1321_v16, %v234_v4 }
  0x26   :  { %v166_v17 = vmul.f32 %v975_v5, %v1300_v1  ;;  %v167_v18 = vmul.f32 %v976_v8, %v1300_v1  ;;  %v168_v20 = vmul.f32 %v979_v9, %v1300_v1  ;;  %v169_v21 = vmul.f32 %v980_v10, %v1300_v1 }
  0x27   :  { %v430_v19 = vsel %vm297_vm4, %v233_v3, %v366_v13  ;;  %v983_v22 = vunpack.c.l.bf16 %v1229_v11  ;;  %1256 = vst [vmem:[%s1696_s2 + $0x48] sm:$0xff] %v1105_v14   ;;  %v431_v23 = vsel %vm298_vm5, %v234_v4, %v367_v15  ;;  %v984_v26 = vunpack.c.h.bf16 %v1229_v11 }
  0x28   :  { %v235_v24 = vadd.f32 %v1311_v6, %v166_v17  ;;  %v236_v25 = vadd.f32 %v1311_v6, %v167_v18  ;;  %v1110_v27 = vpack.c.bf16 %v431_v23, %v430_v19  ;;  %v237_v28 = vadd.f32 %v1311_v6, %v168_v20  ;;  %v1234_v19 = vld [vmem:[%s1694_s0 + $0x90] sm:$0xff]  }
  0x29   :  { %v238_v29 = vadd.f32 %v1311_v6, %v169_v21  ;;  %v170_v30 = vmul.f32 %v983_v22, %v1300_v1  ;;  %v171_v38 = vmul.f32 %v984_v26, %v1300_v1  ;;  %v987_v44 = vunpack.c.l.bf16 %v1230_v33 }
  0x2a   :  { %vm299_vm6 = vcmp.ge.f32.partialorder %v235_v24, 0.0  ;;  %vm300_vm7 = vcmp.ge.f32.partialorder %v236_v25, 0.0  ;;  %v368_v31 = vmul.f32 %v1321_v16, %v235_v24  ;;  %v369_v32 = vmul.f32 %v1321_v16, %v236_v25  ;;  %1257 = vst [vmem:[%s1696_s2 + $0x50] sm:$0xff] %v1110_v27  }
  0x2b   :  { %vm301_vm8 = vcmp.ge.f32.partialorder %v237_v28, 0.0  ;;  %vm302_vm9 = vcmp.ge.f32.partialorder %v238_v29, 0.0  ;;  %v370_v34 = vmul.f32 %v1321_v16, %v237_v28  ;;  %v371_v35 = vmul.f32 %v1321_v16, %v238_v29 }
  0x2c   :  { %v432_v36 = vsel %vm299_vm6, %v235_v24, %v368_v31  ;;  %v433_v37 = vsel %vm300_vm7, %v236_v25, %v369_v32  ;;  %v239_v39 = vadd.f32 %v1311_v6, %v170_v30  ;;  %v240_v47 = vadd.f32 %v1311_v6, %v171_v38  ;;  %v1235_v24 = vld [vmem:[%s1694_s0 + $0x98] sm:$0xff]   ;;  %v1236_v25 = vld [vmem:[%s1694_s0 + $0xa0] sm:$0xff]  }
  0x2d   :  { %v1115_v41 = vpack.c.bf16 %v433_v37, %v432_v36  ;;  %v434_v42 = vsel %vm301_vm8, %v237_v28, %v370_v34  ;;  %v435_v43 = vsel %vm302_vm9, %v238_v29, %v371_v35  ;;  %v988_v49 = vunpack.c.h.bf16 %v1230_v33 }
  0x2e   :  { %v1120_v46 = vpack.c.bf16 %v435_v43, %v434_v42  ;;  %vm303_vm10 = vcmp.ge.f32.partialorder %v239_v39, 0.0  ;;  %v372_v48 = vmul.f32 %v1321_v16, %v239_v39  ;;  %v172_v50 = vmul.f32 %v987_v44, %v1300_v1  ;;  %v1237_v44 = vld [vmem:[%s1694_s0 + $0xa8] sm:$0xff]  }
  0x2f   :  { %1258 = vst [vmem:[%s1696_s2 + $0x58] sm:$0xff] %v1115_v41   ;;  %v991_v51 = vunpack.c.l.bf16 %v1231_v40  ;;  %v992_v52 = vunpack.c.h.bf16 %v1231_v40  ;;  %vm304_vm11 = vcmp.ge.f32.partialorder %v240_v47, 0.0  ;;  %v373_v54 = vmul.f32 %v1321_v16, %v240_v47 }
  0x30   :  { %1259 = vst [vmem:[%s1696_s2 + $0x60] sm:$0xff] %v1120_v46   ;;  %v436_v55 = vsel %vm303_vm10, %v239_v39, %v372_v48  ;;  %v995_v56 = vunpack.c.l.bf16 %v1232_v45  ;;  %v173_v57 = vmul.f32 %v988_v49, %v1300_v1  ;;  %v241_v58 = vadd.f32 %v1311_v6, %v172_v50 }
  0x31   :  { %v174_v59 = vmul.f32 %v991_v51, %v1300_v1  ;;  %v175_v60 = vmul.f32 %v992_v52, %v1300_v1  ;;  %v437_v61 = vsel %vm304_vm11, %v240_v47, %v373_v54  ;;  %v996_v62 = vunpack.c.h.bf16 %v1232_v45 }
  0x32   :  { %v176_v63 = vmul.f32 %v995_v56, %v1300_v1  ;;  %v999_v0 = vunpack.c.l.bf16 %v1233_v53  ;;  %v1125_v2 = vpack.c.bf16 %v437_v61, %v436_v55  ;;  %v242_v3 = vadd.f32 %v1311_v6, %v173_v57 }
  0x33   :  { %vm305_vm12 = vcmp.ge.f32.partialorder %v241_v58, 0.0  ;;  %v374_v4 = vmul.f32 %v1321_v16, %v241_v58  ;;  %v243_v5 = vadd.f32 %v1311_v6, %v174_v59  ;;  %v244_v7 = vadd.f32 %v1311_v6, %v175_v60 }
  0x34   :  { %v177_v8 = vmul.f32 %v996_v62, %v1300_v1  ;;  %v245_v9 = vadd.f32 %v1311_v6, %v176_v63  ;;  %1260 = vst [vmem:[%s1696_s2 + $0x68] sm:$0xff] %v1125_v2   ;;  %vm306_vm13 = vcmp.ge.f32.partialorder %v242_v3, 0.0  ;;  %v375_v10 = vmul.f32 %v1321_v16, %v242_v3 }
  0x35   :  { %v438_v11 = vsel %vm305_vm12, %v241_v58, %v374_v4  ;;  %v1000_v12 = vunpack.c.h.bf16 %v1233_v53  ;;  %vm307_vm14 = vcmp.ge.f32.partialorder %v243_v5, 0.0  ;;  %vm308_vm15 = vcmp.ge.f32.partialorder %v244_v7, 0.0 }
  0x36   :  { %v376_v13 = vmul.f32 %v1321_v16, %v243_v5  ;;  %v377_v14 = vmul.f32 %v1321_v16, %v244_v7  ;;  %v439_v15 = vsel %vm306_vm13, %v242_v3, %v375_v10  ;;  %v246_v17 = vadd.f32 %v1311_v6, %v177_v8 }
  0x37   :  { %vm309_vm0 = vcmp.ge.f32.partialorder %v245_v9, 0.0  ;;  %v378_v18 = vmul.f32 %v1321_v16, %v245_v9  ;;  %v1130_v20 = vpack.c.bf16 %v439_v15, %v438_v11  ;;  %v178_v23 = vmul.f32 %v999_v0, %v1300_v1 }
  0x38   :  { %v440_v21 = vsel %vm307_vm14, %v243_v5, %v376_v13  ;;  %v441_v22 = vsel %vm308_vm15, %v244_v7, %v377_v14  ;;  %vm310_vm1 = vcmp.ge.f32.partialorder %v246_v17, 0.0  ;;  %v379_v27 = vmul.f32 %v1321_v16, %v246_v17  ;;  %v1238_v5 = vld [vmem:[%s1694_s0 + $0xb0] sm:$0xff]   ;;  %v1239_v7 = vld [vmem:[%s1694_s0 + $0xb8] sm:$0xff]  }
  0x39   :  { %v1135_v26 = vpack.c.bf16 %v441_v22, %v440_v21  ;;  %v442_v28 = vsel %vm309_vm0, %v245_v9, %v378_v18  ;;  %1261 = vst [vmem:[%s1696_s2 + $0x70] sm:$0xff] %v1130_v20   ;;  %v179_v29 = vmul.f32 %v1000_v12, %v1300_v1  ;;  %v247_v30 = vadd.f32 %v1311_v6, %v178_v23  ;;  %v1240_v23 = vld [vmem:[%s1694_s0 + $0xc0] sm:$0xff]  }
  0x3a   :  { %v1003_v31 = vunpack.c.l.bf16 %v1234_v19  ;;  %v1004_v32 = vunpack.c.h.bf16 %v1234_v19  ;;  %v443_v33 = vsel %vm310_vm1, %v246_v17, %v379_v27  ;;  %v1007_v34 = vunpack.c.l.bf16 %v1235_v24 }
  0x3b   :  { %1262 = vst [vmem:[%s1696_s2 + $0x78] sm:$0xff] %v1135_v26   ;;  %v1008_v35 = vunpack.c.h.bf16 %v1235_v24  ;;  %v1011_v36 = vunpack.c.l.bf16 %v1236_v25  ;;  %v1140_v37 = vpack.c.bf16 %v443_v33, %v442_v28  ;;  %v248_v38 = vadd.f32 %v1311_v6, %v179_v29 }
  0x3c   :  { %vm311_vm2 = vcmp.ge.f32.partialorder %v247_v30, 0.0  ;;  %v380_v39 = vmul.f32 %v1321_v16, %v247_v30  ;;  %v180_v40 = vmul.f32 %v1003_v31, %v1300_v1  ;;  %v181_v41 = vmul.f32 %v1004_v32, %v1300_v1 }
  0x3d   :  { %v182_v42 = vmul.f32 %v1007_v34, %v1300_v1  ;;  %v183_v43 = vmul.f32 %v1008_v35, %v1300_v1  ;;  %1263 = vst [vmem:[%s1696_s2 + $0x80] sm:$0xff] %v1140_v37   ;;  %vm312_vm3 = vcmp.ge.f32.partialorder %v248_v38, 0.0  ;;  %v381_v45 = vmul.f32 %v1321_v16, %v248_v38 }
  0x3e   :  { %v444_v46 = vsel %vm311_vm2, %v247_v30, %v380_v39  ;;  %v1012_v47 = vunpack.c.h.bf16 %v1236_v25  ;;  %v249_v48 = vadd.f32 %v1311_v6, %v180_v40  ;;  %v250_v49 = vadd.f32 %v1311_v6, %v181_v41  ;;  %v1241_v41 = vld [vmem:[%s1694_s0 + $0xc8] sm:$0xff]  }
  0x3f   :  { %v251_v50 = vadd.f32 %v1311_v6, %v182_v42  ;;  %v252_v51 = vadd.f32 %v1311_v6, %v183_v43  ;;  %v445_v52 = vsel %vm312_vm3, %v248_v38, %v381_v45  ;;  %v184_v53 = vmul.f32 %v1011_v36, %v1300_v1 }
  0x40   :  { %v185_v54 = vmul.f32 %v1012_v47, %v1300_v1  ;;  %v1015_v55 = vunpack.c.l.bf16 %v1237_v44  ;;  %v1145_v56 = vpack.c.bf16 %v445_v52, %v444_v46  ;;  %vm313_vm4 = vcmp.ge.f32.partialorder %v249_v48, 0.0  ;;  %v1242_v47 = vld [vmem:[%s1694_s0 + $0xd0] sm:$0xff]  }
  0x41   :  { %vm314_vm5 = vcmp.ge.f32.partialorder %v250_v49, 0.0  ;;  %v382_v57 = vmul.f32 %v1321_v16, %v249_v48  ;;  %v383_v58 = vmul.f32 %v1321_v16, %v250_v49  ;;  %vm315_vm6 = vcmp.ge.f32.partialorder %v251_v50, 0.0 }
  0x42   :  { %vm316_vm7 = vcmp.ge.f32.partialorder %v252_v51, 0.0  ;;  %v384_v59 = vmul.f32 %v1321_v16, %v251_v50  ;;  %1264 = vst [vmem:[%s1696_s2 + $0x88] sm:$0xff] %v1145_v56   ;;  %v385_v61 = vmul.f32 %v1321_v16, %v252_v51  ;;  %v253_v62 = vadd.f32 %v1311_v6, %v184_v53 }
  0x43   :  { %v446_v60 = vsel %vm313_vm4, %v249_v48, %v382_v57  ;;  %v254_v63 = vadd.f32 %v1311_v6, %v185_v54  ;;  %v447_v0 = vsel %vm314_vm5, %v250_v49, %v383_v58  ;;  %v1016_v3 = vunpack.c.h.bf16 %v1237_v44 }
  0x44   :  { %v448_v2 = vsel %vm315_vm6, %v251_v50, %v384_v59  ;;  %v186_v4 = vmul.f32 %v1015_v55, %v1300_v1  ;;  %v1150_v8 = vpack.c.bf16 %v447_v0, %v446_v60  ;;  %v449_v9 = vsel %vm316_vm7, %v252_v51, %v385_v61  ;;  %v1243_v60 = vld [vmem:[%s1694_s0 + $0xd8] sm:$0xff]  }
  0x45   :  { %vm317_vm8 = vcmp.ge.f32.partialorder %v253_v62, 0.0  ;;  %vm318_vm9 = vcmp.ge.f32.partialorder %v254_v63, 0.0  ;;  %v1155_v10 = vpack.c.bf16 %v449_v9, %v448_v2  ;;  %v386_v11 = vmul.f32 %v1321_v16, %v253_v62 }
  0x46   :  { %v387_v12 = vmul.f32 %v1321_v16, %v254_v63  ;;  %v187_v13 = vmul.f32 %v1016_v3, %v1300_v1  ;;  %1265 = vst [vmem:[%s1696_s2 + $0x90] sm:$0xff] %v1150_v8   ;;  %v255_v14 = vadd.f32 %v1311_v6, %v186_v4  ;;  %v1019_v15 = vunpack.c.l.bf16 %v1238_v5 }
  0x47   :  { %v1020_v17 = vunpack.c.h.bf16 %v1238_v5  ;;  %v1023_v18 = vunpack.c.l.bf16 %v1239_v7  ;;  %1266 = vst [vmem:[%s1696_s2 + $0x98] sm:$0xff] %v1155_v10   ;;  %v450_v19 = vsel %vm317_vm8, %v253_v62, %v386_v11  ;;  %v1024_v22 = vunpack.c.h.bf16 %v1239_v7 }
  0x48   :  { %v451_v20 = vsel %vm318_vm9, %v254_v63, %v387_v12  ;;  %v256_v21 = vadd.f32 %v1311_v6, %v187_v13  ;;  %vm319_vm10 = vcmp.ge.f32.partialorder %v255_v14, 0.0  ;;  %v388_v25 = vmul.f32 %v1321_v16, %v255_v14 }
  0x49   :  { %v1160_v24 = vpack.c.bf16 %v451_v20, %v450_v19  ;;  %v188_v26 = vmul.f32 %v1019_v15, %v1300_v1  ;;  %v189_v28 = vmul.f32 %v1020_v17, %v1300_v1  ;;  %v190_v29 = vmul.f32 %v1023_v18, %v1300_v1  ;;  %v1244_v15 = vld [vmem:[%s1694_s0 + $0xe0] sm:$0xff]   ;;  %v1245_v20 = vld [vmem:[%s1694_s0 + $0xe8] sm:$0xff]  }
  0x4a   :  { %vm320_vm11 = vcmp.ge.f32.partialorder %v256_v21, 0.0  ;;  %v389_v27 = vmul.f32 %v1321_v16, %v256_v21  ;;  %v452_v30 = vsel %vm319_vm10, %v255_v14, %v388_v25  ;;  %v191_v32 = vmul.f32 %v1024_v22, %v1300_v1 }
  0x4b   :  { %1267 = vst [vmem:[%s1696_s2 + $0xa0] sm:$0xff] %v1160_v24   ;;  %v257_v31 = vadd.f32 %v1311_v6, %v188_v26  ;;  %v1027_v33 = vunpack.c.l.bf16 %v1240_v23  ;;  %v258_v35 = vadd.f32 %v1311_v6, %v189_v28  ;;  %v259_v36 = vadd.f32 %v1311_v6, %v190_v29 }
  0x4c   :  { %v453_v34 = vsel %vm320_vm11, %v256_v21, %v389_v27  ;;  %v1028_v37 = vunpack.c.h.bf16 %v1240_v23  ;;  %v260_v40 = vadd.f32 %v1311_v6, %v191_v32  ;;  %v1031_v51 = vunpack.c.l.bf16 %v1241_v41 }
  0x4d   :  { %v1165_v38 = vpack.c.bf16 %v453_v34, %v452_v30  ;;  %vm321_vm12 = vcmp.ge.f32.partialorder %v257_v31, 0.0  ;;  %v390_v39 = vmul.f32 %v1321_v16, %v257_v31  ;;  %vm322_vm13 = vcmp.ge.f32.partialorder %v258_v35, 0.0 }
  0x4e   :  { %v391_v42 = vmul.f32 %v1321_v16, %v258_v35  ;;  %vm323_vm14 = vcmp.ge.f32.partialorder %v259_v36, 0.0  ;;  %v392_v43 = vmul.f32 %v1321_v16, %v259_v36  ;;  %vm324_vm15 = vcmp.ge.f32.partialorder %v260_v40, 0.0 }
  0x4f   :  { %1268 = vst [vmem:[%s1696_s2 + $0xa8] sm:$0xff] %v1165_v38   ;;  %v454_v44 = vsel %vm321_vm12, %v257_v31, %v390_v39  ;;  %v393_v45 = vmul.f32 %v1321_v16, %v260_v40  ;;  %v192_v46 = vmul.f32 %v1027_v33, %v1300_v1  ;;  %v193_v50 = vmul.f32 %v1028_v37, %v1300_v1 }
  0x50   :  { %v455_v48 = vsel %vm322_vm13, %v258_v35, %v391_v42  ;;  %v456_v49 = vsel %vm323_vm14, %v259_v36, %v392_v43  ;;  %v1032_v55 = vunpack.c.h.bf16 %v1241_v41  ;;  %v194_v58 = vmul.f32 %v1031_v51, %v1300_v1  ;;  %v1246_v36 = vld [vmem:[%s1694_s0 + $0xf0] sm:$0xff]  }
  0x51   :  { %v1170_v52 = vpack.c.bf16 %v455_v48, %v454_v44  ;;  %v457_v53 = vsel %vm324_vm15, %v260_v40, %v393_v45  ;;  %v261_v54 = vadd.f32 %v1311_v6, %v192_v46  ;;  %v262_v57 = vadd.f32 %v1311_v6, %v193_v50  ;;  %v1247_v50 = vld [vmem:[%s1694_s0 + $0xf8] sm:$0xff]  }
  0x52   :  { %v1175_v56 = vpack.c.bf16 %v457_v53, %v456_v49  ;;  %v1035_v59 = vunpack.c.l.bf16 %v1242_v47  ;;  %v195_v62 = vmul.f32 %v1032_v55, %v1300_v1  ;;  %v1036_v63 = vunpack.c.h.bf16 %v1242_v47 }
  0x53   :  { %1269 = vst [vmem:[%s1696_s2 + $0xb0] sm:$0xff] %v1170_v52   ;;  %vm325_vm0 = vcmp.ge.f32.partialorder %v261_v54, 0.0  ;;  %v394_v61 = vmul.f32 %v1321_v16, %v261_v54  ;;  %vm326_vm1 = vcmp.ge.f32.partialorder %v262_v57, 0.0  ;;  %v395_v0 = vmul.f32 %v1321_v16, %v262_v57 }
  0x54   :  { %1270 = vst [vmem:[%s1696_s2 + $0xb8] sm:$0xff] %v1175_v56   ;;  %v263_v2 = vadd.f32 %v1311_v6, %v194_v58  ;;  %v196_v3 = vmul.f32 %v1035_v59, %v1300_v1  ;;  %v264_v5 = vadd.f32 %v1311_v6, %v195_v62  ;;  %v197_v7 = vmul.f32 %v1036_v63, %v1300_v1 }
  0x55   :  { %v458_v4 = vsel %vm325_vm0, %v261_v54, %v394_v61  ;;  %v1039_v8 = vunpack.c.l.bf16 %v1243_v60  ;;  %v459_v9 = vsel %vm326_vm1, %v262_v57, %v395_v0  ;;  %v1040_v19 = vunpack.c.h.bf16 %v1243_v60 }
  0x56   :  { %vm327_vm2 = vcmp.ge.f32.partialorder %v263_v2, 0.0  ;;  %v396_v10 = vmul.f32 %v1321_v16, %v263_v2  ;;  %v265_v11 = vadd.f32 %v1311_v6, %v196_v3  ;;  %v1180_v12 = vpack.c.bf16 %v459_v9, %v458_v4 }
  0x57   :  { %vm328_vm3 = vcmp.ge.f32.partialorder %v264_v5, 0.0  ;;  %v397_v13 = vmul.f32 %v1321_v16, %v264_v5  ;;  %v266_v14 = vadd.f32 %v1311_v6, %v197_v7  ;;  %v198_v23 = vmul.f32 %v1039_v8, %v1300_v1 }
  0x58   :  { %v460_v17 = vsel %vm327_vm2, %v263_v2, %v396_v10  ;;  %vm329_vm4 = vcmp.ge.f32.partialorder %v265_v11, 0.0  ;;  %v398_v18 = vmul.f32 %v1321_v16, %v265_v11  ;;  %1271 = vst [vmem:[%s1696_s2 + $0xc0] sm:$0xff] %v1180_v12   ;;  %v199_v26 = vmul.f32 %v1040_v19, %v1300_v1 }
  0x59   :  { %v461_v21 = vsel %vm328_vm3, %v264_v5, %v397_v13  ;;  %vm330_vm5 = vcmp.ge.f32.partialorder %v266_v14, 0.0  ;;  %v399_v22 = vmul.f32 %v1321_v16, %v266_v14  ;;  %v1043_v27 = vunpack.c.l.bf16 %v1244_v15 }
  0x5a   :  { %v1185_v24 = vpack.c.bf16 %v461_v21, %v460_v17  ;;  %v462_v25 = vsel %vm329_vm4, %v265_v11, %v398_v18  ;;  %v267_v29 = vadd.f32 %v1311_v6, %v198_v23  ;;  %v1044_v30 = vunpack.c.h.bf16 %v1244_v15 }
  0x5b   :  { %v463_v28 = vsel %vm330_vm5, %v266_v14, %v399_v22  ;;  %v1047_v31 = vunpack.c.l.bf16 %v1245_v20  ;;  %v268_v33 = vadd.f32 %v1311_v6, %v199_v26  ;;  %v200_v34 = vmul.f32 %v1043_v27, %v1300_v1 }
  0x5c   :  { %1272 = vst [vmem:[%s1696_s2 + $0xc8] sm:$0xff] %v1185_v24   ;;  %v1190_v32 = vpack.c.bf16 %v463_v28, %v462_v25  ;;  %v1048_v35 = vunpack.c.h.bf16 %v1245_v20  ;;  %vm331_vm6 = vcmp.ge.f32.partialorder %v267_v29, 0.0  ;;  %v400_v37 = vmul.f32 %v1321_v16, %v267_v29 }
  0x5d   :  { %v201_v38 = vmul.f32 %v1044_v30, %v1300_v1  ;;  %v202_v39 = vmul.f32 %v1047_v31, %v1300_v1  ;;  %vm332_vm7 = vcmp.ge.f32.partialorder %v268_v33, 0.0  ;;  %v401_v40 = vmul.f32 %v1321_v16, %v268_v33 }
  0x5e   :  { %1273 = vst [vmem:[%s1696_s2 + $0xd0] sm:$0xff] %v1190_v32   ;;  %v269_v41 = vadd.f32 %v1311_v6, %v200_v34  ;;  %v203_v42 = vmul.f32 %v1048_v35, %v1300_v1  ;;  %v464_v43 = vsel %vm331_vm6, %v267_v29, %v400_v37  ;;  %v1051_v46 = vunpack.c.l.bf16 %v1246_v36 }
  0x5f   :  { %v270_v44 = vadd.f32 %v1311_v6, %v201_v38  ;;  %v271_v45 = vadd.f32 %v1311_v6, %v202_v39  ;;  %v465_v47 = vsel %vm332_vm7, %v268_v33, %v401_v40  ;;  %v1052_v57 = vunpack.c.h.bf16 %v1246_v36 }
  0x60   :  { %vm333_vm8 = vcmp.ge.f32.partialorder %v269_v41, 0.0  ;;  %v402_v48 = vmul.f32 %v1321_v16, %v269_v41  ;;  %v272_v49 = vadd.f32 %v1311_v6, %v203_v42  ;;  %v1195_v51 = vpack.c.bf16 %v465_v47, %v464_v43 }
  0x61   :  { %vm334_vm9 = vcmp.ge.f32.partialorder %v270_v44, 0.0  ;;  %v403_v52 = vmul.f32 %v1321_v16, %v270_v44  ;;  %vm335_vm10 = vcmp.ge.f32.partialorder %v271_v45, 0.0  ;;  %v404_v54 = vmul.f32 %v1321_v16, %v271_v45 }
  0x62   :  { %v466_v53 = vsel %vm333_vm8, %v269_v41, %v402_v48  ;;  %vm336_vm11 = vcmp.ge.f32.partialorder %v272_v49, 0.0  ;;  %v405_v55 = vmul.f32 %v1321_v16, %v272_v49  ;;  %1274 = vst [vmem:[%s1696_s2 + $0xd8] sm:$0xff] %v1195_v51   ;;  %v204_v58 = vmul.f32 %v1051_v46, %v1300_v1 }
  0x63   :  { %v467_v56 = vsel %vm334_vm9, %v270_v44, %v403_v52  ;;  %v1055_v59 = vunpack.c.l.bf16 %v1247_v50  ;;  %v468_v61 = vsel %vm335_vm10, %v271_v45, %v404_v54  ;;  %v1056_v63 = vunpack.c.h.bf16 %v1247_v50 }
  0x64   :  { %v1200_v60 = vpack.c.bf16 %v467_v56, %v466_v53  ;;  %v469_v62 = vsel %vm336_vm11, %v272_v49, %v405_v55  ;;  %v205_v2 = vmul.f32 %v1052_v57, %v1300_v1  ;;  %v273_v3 = vadd.f32 %v1311_v6, %v204_v58 }
  0x65   :  { %v1205_v0 = vpack.c.bf16 %v469_v62, %v468_v61  ;;  %v206_v4 = vmul.f32 %v1055_v59, %v1300_v1  ;;  %v207_v5 = vmul.f32 %v1056_v63, %v1300_v1 }
  0x66   :  { %1275 = vst [vmem:[%s1696_s2 + $0xe0] sm:$0xff] %v1200_v60   ;;  %v274_v7 = vadd.f32 %v1311_v6, %v205_v2  ;;  %vm337_vm12 = vcmp.ge.f32.partialorder %v273_v3, 0.0  ;;  %v406_v8 = vmul.f32 %v1321_v16, %v273_v3 }
  0x67   :  { %1276 = vst [vmem:[%s1696_s2 + $0xe8] sm:$0xff] %v1205_v0   ;;  %v275_v9 = vadd.f32 %v1311_v6, %v206_v4  ;;  %v276_v10 = vadd.f32 %v1311_v6, %v207_v5 }
  0x68   :  { %vm338_vm13 = vcmp.ge.f32.partialorder %v274_v7, 0.0  ;;  %v407_v11 = vmul.f32 %v1321_v16, %v274_v7  ;;  %v470_v12 = vsel %vm337_vm12, %v273_v3, %v406_v8 }
  0x69   :  { %vm339_vm14 = vcmp.ge.f32.partialorder %v275_v9, 0.0  ;;  %vm340_vm15 = vcmp.ge.f32.partialorder %v276_v10, 0.0  ;;  %v408_v1 = vmul.f32 %v1321_v16, %v275_v9  ;;  %v409_v13 = vmul.f32 %v1321_v16, %v276_v10 }
  0x6a   :  { %v471_v14 = vsel %vm338_vm13, %v274_v7, %v407_v11 }
  0x6b   :  { %v1210_v15 = vpack.c.bf16 %v471_v14, %v470_v12  ;;  %v472_v17 = vsel %vm339_vm14, %v275_v9, %v408_v1  ;;  %v473_v18 = vsel %vm340_vm15, %v276_v10, %v409_v13 }
  0x6c   :  { %v1215_v19 = vpack.c.bf16 %v473_v18, %v472_v17 }
  0x6d   :  { %1277 = vst [vmem:[%s1696_s2 + $0xf0] sm:$0xff] %v1210_v15  }
  0x6e   :  { %1278 = vst [vmem:[%s1696_s2 + $0xf8] sm:$0xff] %v1215_v19  }

// kernel: _lambda_.10
= control target key start
LH: loop header
LB: loop body
LE: loop exit
PB: predicated region body
PF: predicated region fallthrough
CT: control target
= control target key end

     0   :  { %s2229_s15 = smov 0   ;;  %s2231_s16 = smov 0   ;;  %s2639_s0 = inlined_call_operand.vmem [shape: bf16[3,512,36], index: 0, kind: input, shape index: {}]   ;;  %s2640_s1 = inlined_call_operand.vmem [shape: bf16[3,36,128], index: 1, kind: input, shape index: {}]   ;;  %s2641_s2 = inlined_call_operand.vmem [shape: f32[3,1,128], index: 2, kind: input, shape index: {}]   ;;  %s2642_s3 = inlined_call_operand.vmem [shape: bf16[3,512,128], index: 3, kind: output, shape index: {0}]   ;;  %s2643_s4 = inlined_call_operand.vmem [shape: f32[3,1,2,128], index: 4, kind: output, shape index: {1}]  }
   0x1   :  { %s2233_s17 = smov 0  }
   0x2 LB: > { %s27_s18 = sadd.s32 1, %s2198_s16  ;;  %p1609_p0 = scmp.ge.s32.totalorder %s2202_s17, 1  ;;  %s2202_s17 = sphi %s2233_s17, %s15_s17   ;;  %s2198_s16 = sphi %s2231_s16, %s2645_s16   ;;  %s2194_s15 = sphi %s2229_s15, %s2644_s15  }
   0x3   : > { %p29_p1 = scmp.ge.s32.totalorder %s27_s18, 3  ;;  %p206_p2 = scmp.lt.s32.totalorder %s2202_s17, 4 }
   0x5   : > { %s2647_s18 = smov (%p29_p1, %s27_s18), 0  ;;  %p207_p3 = pnand %p1609_p0, %p206_p2 }
   0x6   : > { %p256_p4 = scmp.lt.s32.totalorder (!%p207_p3), %s2194_s15, 2  ;;  %vm542_vm0 = vcmask (!%p207_p3), 293888   ;;  %vm639_vm1 = vcmask (!%p207_p3), 1041408  }
   0x7   : > { %210 = sbr.rel (%p207_p3) target bundleno = 389 (0x185), region = 32 }
   0xe   : > { %s2649_s15 = smov (!%p256_p4, %s2194_s15), 2 }
   0xf   : > { %s1750_s19 = sshll.u32 %s2649_s15, 8  ;;  %s2120_s20 = smul.u32 20, %s2649_s15 }
  0x10   : > { %s2256_s23 = scalar_lea.vmem %s2639_s0, %s1750_s19  ;;  %s272_s29 = scalar_lea.vmem %s2641_s2, %s2649_s15 }
  0x11   : > { %s269_s26 = scalar_lea.vmem %s2640_s1, %s2120_s20  ;;  %v2148_v3 = vld [vmem:[%s2256_s23] sm:$0xff]   ;;  %v2149_v5 = vld [vmem:[%s2256_s23 + $0x8] sm:$0xff]   ;;  %v2150_v6 = vld [vmem:[%s2256_s23 + $0x10] sm:$0xff]   ;;  %s2339_s6 = scalar_lea.vmem %s2642_s3, %s1750_s19 }
  0x12   : > { %v2145_v0 = vld [vmem:[%s269_s26] sm:$0xff]   ;;  %v2146_v1 = vld [vmem:[%s269_s26 + $0x8] sm:$0xff]   ;;  %v2147_v2 = vld [vmem:[%s269_s26 + $0x10] ss:$0 sps:$4 sm:$0x33]   ;;  %2048 = vmatprep.mubr.msk.bf16.mxu0 %vm542_vm0, %v2148_v3  ;;  %s1615_s7 = sshll.u32 %s2649_s15, 1 }
  0x13   : > { %2042 = vmatprep.subr.bf16.mxu0 %v2145_v0  ;;  %2112 = vmatprep.subr.bf16.mxu1 %v2145_v0  ;;  %v641_v4 = vsel %vm639_vm1, %v2147_v2, 0  ;;  %v2151_v7 = vld [vmem:[%s2256_s23 + $0x18] sm:$0xff]   ;;  %v2152_v8 = vld [vmem:[%s2256_s23 + $0x20] sm:$0xff]   ;;  %v2165_v10 = vld [vmem:[%s2256_s23 + $0x88] sm:$0xff]   ;;  %s289_s10 = scalar_lea.vmem %s2643_s4, %s1615_s7 }
  0x14   : > { %2043 = vmatpush3.bf16.msra.mxu0 %v2145_v0  ;;  %2115 = vmatpush3.bf16.msra.mxu1 %v2145_v0  ;;  %v2164_v9 = vld [vmem:[%s2256_s23 + $0x80] sm:$0xff]   ;;  %v2166_v11 = vld [vmem:[%s2256_s23 + $0x90] sm:$0xff]   ;;  %v2153_v12 = vld [vmem:[%s2256_s23 + $0x28] sm:$0xff]  }
  0x15   : > { %2044 = vmatprep.subr.bf16.mxu0 %v2146_v1  ;;  %2113 = vmatprep.subr.bf16.mxu1 %v2146_v1  ;;  %v2167_v13 = vld [vmem:[%s2256_s23 + $0x98] sm:$0xff]   ;;  %v2168_v14 = vld [vmem:[%s2256_s23 + $0xa0] sm:$0xff]   ;;  %v2154_v15 = vld [vmem:[%s2256_s23 + $0x30] sm:$0xff]  }
  0x16   : > { %2080 = vmatprep.mubr.msk.bf16.mxu1 %vm542_vm0, %v2164_v9  ;;  %v2169_v16 = vld [vmem:[%s2256_s23 + $0xa8] sm:$0xff]   ;;  %v2155_v17 = vld [vmem:[%s2256_s23 + $0x38] sm:$0xff]   ;;  %v2170_v18 = vld [vmem:[%s2256_s23 + $0xb0] sm:$0xff]  }
  0x17   : > { %v2156_v19 = vld [vmem:[%s2256_s23 + $0x40] sm:$0xff]   ;;  %v2171_v20 = vld [vmem:[%s2256_s23 + $0xb8] sm:$0xff]   ;;  %v2157_v21 = vld [vmem:[%s2256_s23 + $0x48] sm:$0xff]  }
  0x18   : > { %2045 = vmatpush3.bf16.msra.mxu0 %v2146_v1  ;;  %2116 = vmatpush3.bf16.msra.mxu1 %v2146_v1  ;;  %v2172_v22 = vld [vmem:[%s2256_s23 + $0xc0] sm:$0xff]   ;;  %v2158_v23 = vld [vmem:[%s2256_s23 + $0x50] sm:$0xff]   ;;  %v2173_v24 = vld [vmem:[%s2256_s23 + $0xc8] sm:$0xff]  }
  0x19   : > { %2118 = vmatprep.subr.msk.bf16.mxu0 %vm639_vm1, %v2147_v2  ;;  %2119 = vmatprep.subr.msk.bf16.mxu1 %vm639_vm1, %v2147_v2  ;;  %v2159_v25 = vld [vmem:[%s2256_s23 + $0x58] sm:$0xff]   ;;  %v2174_v26 = vld [vmem:[%s2256_s23 + $0xd0] sm:$0xff]   ;;  %v2160_v27 = vld [vmem:[%s2256_s23 + $0x60] sm:$0xff]  }
  0x1a   : > { %v2175_v28 = vld [vmem:[%s2256_s23 + $0xd8] sm:$0xff]   ;;  %v2161_v29 = vld [vmem:[%s2256_s23 + $0x68] sm:$0xff]   ;;  %v2176_v30 = vld [vmem:[%s2256_s23 + $0xe0] sm:$0xff]  }
  0x1b   : > { %v2162_v31 = vld [vmem:[%s2256_s23 + $0x70] sm:$0xff]   ;;  %v2177_v32 = vld [vmem:[%s2256_s23 + $0xe8] sm:$0xff]   ;;  %v2163_v33 = vld [vmem:[%s2256_s23 + $0x78] sm:$0xff]  }
  0x1c   : > { %2047 = vmatpush3.bf16.msra.mxu0 %v641_v4  ;;  %2117 = vmatpush3.bf16.msra.mxu1 %v641_v4  ;;  %v2178_v34 = vld [vmem:[%s2256_s23 + $0xf0] sm:$0xff]   ;;  %v2179_v35 = vld [vmem:[%s2256_s23 + $0xf8] sm:$0xff]   ;;  %v2329_v36 = vld [vmem:[%s272_s29] ss:$0 sm:$0xff] }
  0x1f   : > { %2049 = vmatmul.mubr.msk.bf16.vlgmr.msra.gmra.mrb[0].mxu0 %vm542_vm0, %v2149_v5  ;;  %2081 = vmatmul.mubr.msk.bf16.vlgmr.msra.gmra.mrb[0].mxu1 %vm542_vm0, %v2165_v10 }
  0x20   : > { %2052 = vmatprep.mubr.msk.bf16.mxu0 %vm542_vm0, %v2150_v6  ;;  %2084 = vmatprep.mubr.msk.bf16.mxu1 %vm542_vm0, %v2166_v11 }
  0x27   : > { %2053 = vmatmul.mubr.msk.bf16.gmra.mrb[4].mxu0 %vm542_vm0, %v2151_v7  ;;  %2085 = vmatmul.mubr.msk.bf16.gmra.mrb[4].mxu1 %vm542_vm0, %v2167_v13 }
  0x28   : > { %2056 = vmatprep.mubr.msk.bf16.mxu0 %vm542_vm0, %v2152_v8  ;;  %2088 = vmatprep.mubr.msk.bf16.mxu1 %vm542_vm0, %v2168_v14 }
  0x2f   : > { %2057 = vmatmul.mubr.msk.bf16.gmra.mrb[8].mxu0 %vm542_vm0, %v2153_v12  ;;  %2089 = vmatmul.mubr.msk.bf16.gmra.mrb[8].mxu1 %vm542_vm0, %v2169_v16 }
  0x30   : > { %2060 = vmatprep.mubr.msk.bf16.mxu0 %vm542_vm0, %v2154_v15  ;;  %2092 = vmatprep.mubr.msk.bf16.mxu1 %vm542_vm0, %v2170_v18 }
  0x37   : > { %2061 = vmatmul.mubr.msk.bf16.gmra.mrb[12].mxu0 %vm542_vm0, %v2155_v17  ;;  %2093 = vmatmul.mubr.msk.bf16.gmra.mrb[12].mxu1 %vm542_vm0, %v2171_v20 }
  0x38   : > { %2064 = vmatprep.mubr.msk.bf16.mxu0 %vm542_vm0, %v2156_v19  ;;  %2096 = vmatprep.mubr.msk.bf16.mxu1 %vm542_vm0, %v2172_v22 }
  0x3f   : > { %2065 = vmatmul.mubr.msk.bf16.gmra.mrb[16].mxu0 %vm542_vm0, %v2157_v21  ;;  %2097 = vmatmul.mubr.msk.bf16.gmra.mrb[16].mxu1 %vm542_vm0, %v2173_v24 }
  0x40   : > { %2068 = vmatprep.mubr.msk.bf16.mxu0 %vm542_vm0, %v2158_v23  ;;  %2100 = vmatprep.mubr.msk.bf16.mxu1 %vm542_vm0, %v2174_v26 }
  0x47   : > { %2069 = vmatmul.mubr.msk.bf16.gmra.mrb[20].mxu0 %vm542_vm0, %v2159_v25  ;;  %2101 = vmatmul.mubr.msk.bf16.gmra.mrb[20].mxu1 %vm542_vm0, %v2175_v28 }
  0x48   : > { %2072 = vmatprep.mubr.msk.bf16.mxu0 %vm542_vm0, %v2160_v27  ;;  %2104 = vmatprep.mubr.msk.bf16.mxu1 %vm542_vm0, %v2176_v30 }
  0x4f   : > { %2073 = vmatmul.mubr.msk.bf16.gmra.mrb[24].mxu0 %vm542_vm0, %v2161_v29  ;;  %2105 = vmatmul.mubr.msk.bf16.gmra.mrb[24].mxu1 %vm542_vm0, %v2177_v32 }
  0x50   : > { %2076 = vmatprep.mubr.msk.bf16.mxu0 %vm542_vm0, %v2162_v31  ;;  %2108 = vmatprep.mubr.msk.bf16.mxu1 %vm542_vm0, %v2178_v34 }
  0x57   : > { %2077 = vmatmul.mubr.msk.bf16.gmra.mrb[28].mxu0 %vm542_vm0, %v2163_v33  ;;  %2109 = vmatmul.mubr.msk.bf16.gmra.mrb[28].mxu1 %vm542_vm0, %v2179_v35 }
  0xf2   : > { %v2050_v37 = vpop.f32.mrb[0].mxu0  ;;  %v2082_v50 = vpop.f32.mrb[0].mxu1 }
  0xf3   : > { %v677_v38 = vpop.f32.mrb[1].mxu0  ;;  %v686_v41 = vadd.f32 %v2050_v37, %v2329_v36  ;;  %v805_v55 = vpop.f32.mrb[1].mxu1  ;;  %v2345_v57 = vadd.f32 %v2082_v50, %v2329_v36 }
  0xf4   : > { %v678_v39 = vadd.f32 %v2329_v36, %v677_v38  ;;  %v2051_v40 = vpop.f32.mrb[2].mxu0  ;;  %v2083_v58 = vpop.f32.mrb[2].mxu1  ;;  %v2355_v10 = vadd.f32 %v2329_v36, %v805_v55 }
  0xf5   : > { %v689_v42 = vadd.f32 %v2051_v40, %v2329_v36  ;;  %v680_v43 = vpop.f32.mrb[3].mxu0  ;;  %v1324_v51 = vmul.f32 %v686_v41, %v686_v41  ;;  %v808_v0 = vpop.f32.mrb[3].mxu1  ;;  %v2351_v4 = vadd.f32 %v2083_v58, %v2329_v36 }
  0xf6   : > { %v681_v44 = vadd.f32 %v2329_v36, %v680_v43  ;;  %v1322_v46 = vmul.f32 %v678_v39, %v678_v39  ;;  %v2362_v16 = vadd.f32 %v2329_v36, %v808_v0 }
  0xf7   : > { %v1824_v45 = vpack.c.bf16 %v689_v42, %v686_v41  ;;  %v1325_v59 = vmul.f32 %v689_v42, %v689_v42  ;;  %v1904_v11 = vpack.c.bf16 %v2351_v4, %v2345_v57 }
  0xf8   : > { %v1819_v47 = vpack.c.bf16 %v681_v44, %v678_v39  ;;  %v1252_v48 = vadd.f32 %v681_v44, %v678_v39  ;;  %v1323_v49 = vmul.f32 %v681_v44, %v681_v44  ;;  %v1899_v24 = vpack.c.bf16 %v2362_v16, %v2355_v10 }
  0xf9   : > { %1976 = vst [vmem:[%s2339_s6 + $0x8] sm:$0xff] %v1824_v45   ;;  %1992 = vst [vmem:[%s2339_s6 + $0x88] sm:$0xff] %v1904_v11  }
  0xfa   : > { %1820 = vst [vmem:[%s2339_s6] sm:$0xff] %v1819_v47   ;;  %v1253_v52 = vadd.f32 %v1252_v48, %v686_v41  ;;  %v1386_v53 = vadd.f32 %v1323_v49, %v1322_v46  ;;  %v2054_v54 = vpop.f32.mrb[4].mxu0  ;;  %v2086_v17 = vpop.f32.mrb[4].mxu1  ;;  %1991 = vst [vmem:[%s2339_s6 + $0x80] sm:$0xff] %v1899_v24  }
  0xfb   : > { %v693_v56 = vpop.f32.mrb[5].mxu0  ;;  %v702_v1 = vadd.f32 %v2054_v54, %v2329_v36  ;;  %v821_v22 = vpop.f32.mrb[5].mxu1  ;;  %v2368_v25 = vadd.f32 %v2086_v17, %v2329_v36 }
  0xfc   : > { %v1387_v60 = vadd.f32 %v1386_v53, %v1324_v51  ;;  %v694_v61 = vadd.f32 %v2329_v36, %v693_v56  ;;  %v1254_v62 = vadd.f32 %v1253_v52, %v689_v42  ;;  %v2055_v63 = vpop.f32.mrb[6].mxu0  ;;  %v2087_v26 = vpop.f32.mrb[6].mxu1  ;;  %v2379_v43 = vadd.f32 %v2329_v36, %v821_v22 }
  0xfd   : > { %v705_v2 = vadd.f32 %v2055_v63, %v2329_v36  ;;  %v696_v3 = vpop.f32.mrb[7].mxu0  ;;  %v1328_v18 = vmul.f32 %v702_v1, %v702_v1  ;;  %v824_v32 = vpop.f32.mrb[7].mxu1  ;;  %v2375_v37 = vadd.f32 %v2087_v26, %v2329_v36 }
  0xfe   : > { %v1255_v5 = vadd.f32 %v1254_v62, %v694_v61  ;;  %v1326_v6 = vmul.f32 %v694_v61, %v694_v61  ;;  %v1388_v7 = vadd.f32 %v1387_v60, %v1325_v59  ;;  %v697_v8 = vadd.f32 %v2329_v36, %v696_v3 }
  0xff   : > { %v1834_v9 = vpack.c.bf16 %v705_v2, %v702_v1  ;;  %v1329_v27 = vmul.f32 %v705_v2, %v705_v2  ;;  %v1914_v44 = vpack.c.bf16 %v2375_v37, %v2368_v25  ;;  %v2386_v49 = vadd.f32 %v2329_v36, %v824_v32 }
 0x100   : > { %v1389_v12 = vadd.f32 %v1388_v7, %v1326_v6  ;;  %v1829_v13 = vpack.c.bf16 %v697_v8, %v694_v61  ;;  %v1256_v14 = vadd.f32 %v1255_v5, %v697_v8  ;;  %v1327_v15 = vmul.f32 %v697_v8, %v697_v8 }
 0x101   : > { %1978 = vst [vmem:[%s2339_s6 + $0x18] sm:$0xff] %v1834_v9   ;;  %1994 = vst [vmem:[%s2339_s6 + $0x98] sm:$0xff] %v1914_v44   ;;  %v1909_v58 = vpack.c.bf16 %v2386_v49, %v2379_v43 }
 0x102   : > { %1977 = vst [vmem:[%s2339_s6 + $0x10] sm:$0xff] %v1829_v13   ;;  %v1257_v19 = vadd.f32 %v1256_v14, %v702_v1  ;;  %v1390_v20 = vadd.f32 %v1389_v12, %v1327_v15  ;;  %v2058_v21 = vpop.f32.mrb[8].mxu0  ;;  %v2090_v50 = vpop.f32.mrb[8].mxu1 }
 0x103   : > { %v709_v23 = vpop.f32.mrb[9].mxu0  ;;  %v718_v33 = vadd.f32 %v2058_v21, %v2329_v36  ;;  %v837_v55 = vpop.f32.mrb[9].mxu1  ;;  %v2392_v59 = vadd.f32 %v2090_v50, %v2329_v36  ;;  %1993 = vst [vmem:[%s2339_s6 + $0x90] sm:$0xff] %v1909_v58  }
 0x104   : > { %v1391_v28 = vadd.f32 %v1390_v20, %v1328_v18  ;;  %v710_v29 = vadd.f32 %v2329_v36, %v709_v23  ;;  %v1258_v30 = vadd.f32 %v1257_v19, %v705_v2  ;;  %v2059_v31 = vpop.f32.mrb[10].mxu0  ;;  %v2091_v60 = vpop.f32.mrb[10].mxu1  ;;  %v2403_v14 = vadd.f32 %v2329_v36, %v837_v55 }
 0x105   : > { %v721_v34 = vadd.f32 %v2059_v31, %v2329_v36  ;;  %v712_v35 = vpop.f32.mrb[11].mxu0  ;;  %v1332_v51 = vmul.f32 %v718_v33, %v718_v33  ;;  %v840_v2 = vpop.f32.mrb[11].mxu1  ;;  %v2399_v7 = vadd.f32 %v2091_v60, %v2329_v36 }
 0x106   : > { %v1259_v38 = vadd.f32 %v1258_v30, %v710_v29  ;;  %v1330_v39 = vmul.f32 %v710_v29, %v710_v29  ;;  %v1392_v40 = vadd.f32 %v1391_v28, %v1329_v27  ;;  %v713_v41 = vadd.f32 %v2329_v36, %v712_v35 }
 0x107   : > { %v1844_v42 = vpack.c.bf16 %v721_v34, %v718_v33  ;;  %v1333_v61 = vmul.f32 %v721_v34, %v721_v34  ;;  %v1924_v15 = vpack.c.bf16 %v2399_v7, %v2392_v59  ;;  %v2410_v21 = vadd.f32 %v2329_v36, %v840_v2 }
 0x108   : > { %v1393_v45 = vadd.f32 %v1392_v40, %v1330_v39  ;;  %v1839_v46 = vpack.c.bf16 %v713_v41, %v710_v29  ;;  %v1260_v47 = vadd.f32 %v1259_v38, %v713_v41  ;;  %v1331_v48 = vmul.f32 %v713_v41, %v713_v41 }
 0x109   : > { %1980 = vst [vmem:[%s2339_s6 + $0x28] sm:$0xff] %v1844_v42   ;;  %1996 = vst [vmem:[%s2339_s6 + $0xa8] sm:$0xff] %v1924_v15   ;;  %v1919_v30 = vpack.c.bf16 %v2410_v21, %v2403_v14 }
 0x10a   : > { %1979 = vst [vmem:[%s2339_s6 + $0x20] sm:$0xff] %v1839_v46   ;;  %v1261_v52 = vadd.f32 %v1260_v47, %v718_v33  ;;  %v1394_v53 = vadd.f32 %v1393_v45, %v1331_v48  ;;  %v2062_v54 = vpop.f32.mrb[12].mxu0  ;;  %v2094_v22 = vpop.f32.mrb[12].mxu1 }
 0x10b   : > { %v725_v56 = vpop.f32.mrb[13].mxu0  ;;  %v734_v3 = vadd.f32 %v2062_v54, %v2329_v36  ;;  %v853_v28 = vpop.f32.mrb[13].mxu1  ;;  %v2416_v31 = vadd.f32 %v2094_v22, %v2329_v36  ;;  %1995 = vst [vmem:[%s2339_s6 + $0xa0] sm:$0xff] %v1919_v30  }
 0x10c   : > { %v1395_v62 = vadd.f32 %v1394_v53, %v1332_v51  ;;  %v726_v63 = vadd.f32 %v2329_v36, %v725_v56  ;;  %v1262_v0 = vadd.f32 %v1261_v52, %v721_v34  ;;  %v2063_v1 = vpop.f32.mrb[14].mxu0  ;;  %v2095_v32 = vpop.f32.mrb[14].mxu1  ;;  %v2427_v52 = vadd.f32 %v2329_v36, %v853_v28 }
 0x10d   : > { %v737_v5 = vadd.f32 %v2063_v1, %v2329_v36  ;;  %v728_v6 = vpop.f32.mrb[15].mxu0  ;;  %v1336_v23 = vmul.f32 %v734_v3, %v734_v3  ;;  %v856_v40 = vpop.f32.mrb[15].mxu1  ;;  %v2423_v45 = vadd.f32 %v2095_v32, %v2329_v36 }
 0x10e   : > { %v1263_v8 = vadd.f32 %v1262_v0, %v726_v63  ;;  %v1334_v9 = vmul.f32 %v726_v63, %v726_v63  ;;  %v1396_v11 = vadd.f32 %v1395_v62, %v1333_v61  ;;  %v729_v12 = vadd.f32 %v2329_v36, %v728_v6 }
 0x10f   : > { %v1854_v13 = vpack.c.bf16 %v737_v5, %v734_v3  ;;  %v1337_v33 = vmul.f32 %v737_v5, %v737_v5  ;;  %v1934_v53 = vpack.c.bf16 %v2423_v45, %v2416_v31  ;;  %v2434_v60 = vadd.f32 %v2329_v36, %v856_v40 }
 0x110   : > { %v1397_v17 = vadd.f32 %v1396_v11, %v1334_v9  ;;  %v1849_v18 = vpack.c.bf16 %v729_v12, %v726_v63  ;;  %v1264_v19 = vadd.f32 %v1263_v8, %v729_v12  ;;  %v1335_v20 = vmul.f32 %v729_v12, %v729_v12 }
 0x111   : > { %1982 = vst [vmem:[%s2339_s6 + $0x38] sm:$0xff] %v1854_v13   ;;  %1998 = vst [vmem:[%s2339_s6 + $0xb8] sm:$0xff] %v1934_v53  }
 0x112   : > { %1981 = vst [vmem:[%s2339_s6 + $0x30] sm:$0xff] %v1849_v18   ;;  %v1265_v24 = vadd.f32 %v1264_v19, %v734_v3  ;;  %v1398_v26 = vadd.f32 %v1397_v17, %v1335_v20  ;;  %v2066_v27 = vpop.f32.mrb[16].mxu0  ;;  %v2098_v61 = vpop.f32.mrb[16].mxu1 }
 0x113   : > { %v741_v29 = vpop.f32.mrb[17].mxu0  ;;  %v750_v41 = vadd.f32 %v2066_v27, %v2329_v36  ;;  %v869_v2 = vpop.f32.mrb[17].mxu1  ;;  %v2440_v6 = vadd.f32 %v2098_v61, %v2329_v36 }
 0x114   : > { %v1399_v34 = vadd.f32 %v1398_v26, %v1336_v23  ;;  %v742_v35 = vadd.f32 %v2329_v36, %v741_v29  ;;  %v1266_v38 = vadd.f32 %v1265_v24, %v737_v5  ;;  %v2067_v39 = vpop.f32.mrb[18].mxu0  ;;  %v1929_v5 = vpack.c.bf16 %v2434_v60, %v2427_v52  ;;  %v2099_v8 = vpop.f32.mrb[18].mxu1 }
 0x115   : > { %v753_v42 = vadd.f32 %v2067_v39, %v2329_v36  ;;  %v744_v44 = vpop.f32.mrb[19].mxu0  ;;  %v1340_v62 = vmul.f32 %v750_v41, %v750_v41  ;;  %v872_v17 = vpop.f32.mrb[19].mxu1  ;;  %v2447_v22 = vadd.f32 %v2099_v8, %v2329_v36  ;;  %v2451_v29 = vadd.f32 %v2329_v36, %v869_v2 }
 0x116   : > { %v1267_v46 = vadd.f32 %v1266_v38, %v742_v35  ;;  %v1338_v47 = vmul.f32 %v742_v35, %v742_v35  ;;  %v1400_v48 = vadd.f32 %v1399_v34, %v1337_v33  ;;  %v745_v50 = vadd.f32 %v2329_v36, %v744_v44  ;;  %1997 = vst [vmem:[%s2339_s6 + $0xb0] sm:$0xff] %v1929_v5  }
 0x117   : > { %v1864_v51 = vpack.c.bf16 %v753_v42, %v750_v41  ;;  %v1341_v9 = vmul.f32 %v753_v42, %v753_v42  ;;  %v1944_v30 = vpack.c.bf16 %v2447_v22, %v2440_v6  ;;  %v2458_v38 = vadd.f32 %v2329_v36, %v872_v17 }
 0x118   : > { %v1401_v54 = vadd.f32 %v1400_v48, %v1338_v47  ;;  %v1859_v55 = vpack.c.bf16 %v745_v50, %v742_v35  ;;  %v1268_v56 = vadd.f32 %v1267_v46, %v745_v50  ;;  %v1339_v58 = vmul.f32 %v745_v50, %v745_v50 }
 0x119   : > { %1984 = vst [vmem:[%s2339_s6 + $0x48] sm:$0xff] %v1864_v51   ;;  %2000 = vst [vmem:[%s2339_s6 + $0xc8] sm:$0xff] %v1944_v30   ;;  %v1939_v48 = vpack.c.bf16 %v2458_v38, %v2451_v29 }
 0x11a   : > { %1983 = vst [vmem:[%s2339_s6 + $0x40] sm:$0xff] %v1859_v55   ;;  %v1269_v63 = vadd.f32 %v1268_v56, %v750_v41  ;;  %v1402_v0 = vadd.f32 %v1401_v54, %v1339_v58  ;;  %v2070_v1 = vpop.f32.mrb[20].mxu0  ;;  %v2102_v39 = vpop.f32.mrb[20].mxu1 }
 0x11b   : > { %v757_v3 = vpop.f32.mrb[21].mxu0  ;;  %v766_v18 = vadd.f32 %v2070_v1, %v2329_v36  ;;  %v885_v46 = vpop.f32.mrb[21].mxu1  ;;  %v2464_v50 = vadd.f32 %v2102_v39, %v2329_v36  ;;  %1999 = vst [vmem:[%s2339_s6 + $0xc0] sm:$0xff] %v1939_v48  }
 0x11c   : > { %v1403_v11 = vadd.f32 %v1402_v0, %v1340_v62  ;;  %v758_v12 = vadd.f32 %v2329_v36, %v757_v3  ;;  %v1270_v13 = vadd.f32 %v1269_v63, %v753_v42  ;;  %v2071_v15 = vpop.f32.mrb[22].mxu0  ;;  %v2103_v51 = vpop.f32.mrb[22].mxu1 }
 0x11d   : > { %v769_v19 = vadd.f32 %v2071_v15, %v2329_v36  ;;  %v760_v20 = vpop.f32.mrb[23].mxu0  ;;  %v1344_v40 = vmul.f32 %v766_v18, %v766_v18  ;;  %v888_v61 = vpop.f32.mrb[23].mxu1  ;;  %v2471_v1 = vadd.f32 %v2103_v51, %v2329_v36 }
 0x11e   : > { %v1271_v23 = vadd.f32 %v1270_v13, %v758_v12  ;;  %v1342_v24 = vmul.f32 %v758_v12, %v758_v12  ;;  %v1404_v26 = vadd.f32 %v1403_v11, %v1341_v9  ;;  %v761_v27 = vadd.f32 %v2329_v36, %v760_v20 }
 0x11f   : > { %v1874_v28 = vpack.c.bf16 %v769_v19, %v766_v18  ;;  %v1345_v53 = vmul.f32 %v769_v19, %v769_v19  ;;  %v2475_v11 = vadd.f32 %v2329_v36, %v885_v46 }
 0x120   : > { %v1405_v32 = vadd.f32 %v1404_v26, %v1342_v24  ;;  %v1869_v33 = vpack.c.bf16 %v761_v27, %v758_v12  ;;  %v1272_v34 = vadd.f32 %v1271_v23, %v761_v27  ;;  %v1343_v35 = vmul.f32 %v761_v27, %v761_v27 }
 0x121   : > { %1986 = vst [vmem:[%s2339_s6 + $0x58] sm:$0xff] %v1874_v28   ;;  %v1954_v12 = vpack.c.bf16 %v2471_v1, %v2464_v50 }
 0x122   : > { %1985 = vst [vmem:[%s2339_s6 + $0x50] sm:$0xff] %v1869_v33   ;;  %v1273_v41 = vadd.f32 %v1272_v34, %v766_v18  ;;  %v1406_v42 = vadd.f32 %v1405_v32, %v1343_v35  ;;  %v2074_v44 = vpop.f32.mrb[24].mxu0  ;;  %v2106_v20 = vpop.f32.mrb[24].mxu1 }
 0x123   : > { %v773_v47 = vpop.f32.mrb[25].mxu0  ;;  %v782_v62 = vadd.f32 %v2074_v44, %v2329_v36  ;;  %2002 = vst [vmem:[%s2339_s6 + $0xd8] sm:$0xff] %v1954_v12   ;;  %v901_v28 = vpop.f32.mrb[25].mxu1  ;;  %v2488_v33 = vadd.f32 %v2106_v20, %v2329_v36 }
 0x124   : > { %v1407_v54 = vadd.f32 %v1406_v42, %v1344_v40  ;;  %v774_v55 = vadd.f32 %v2329_v36, %v773_v47  ;;  %v1274_v56 = vadd.f32 %v1273_v41, %v769_v19  ;;  %v2075_v58 = vpop.f32.mrb[26].mxu0  ;;  %v2482_v19 = vadd.f32 %v2329_v36, %v888_v61  ;;  %v2107_v34 = vpop.f32.mrb[26].mxu1 }
 0x125   : > { %v785_v63 = vadd.f32 %v2075_v58, %v2329_v36  ;;  %v776_v0 = vpop.f32.mrb[27].mxu0  ;;  %v1348_v23 = vmul.f32 %v782_v62, %v782_v62  ;;  %v904_v44 = vpop.f32.mrb[27].mxu1  ;;  %v2495_v51 = vadd.f32 %v2107_v34, %v2329_v36  ;;  %v2499_v61 = vadd.f32 %v2329_v36, %v901_v28 }
 0x126   : > { %v1275_v2 = vadd.f32 %v1274_v56, %v774_v55  ;;  %v1346_v3 = vmul.f32 %v774_v55, %v774_v55  ;;  %v1408_v5 = vadd.f32 %v1407_v54, %v1345_v53  ;;  %v777_v8 = vadd.f32 %v2329_v36, %v776_v0 }
 0x127   : > { %v1884_v9 = vpack.c.bf16 %v785_v63, %v782_v62  ;;  %v1949_v32 = vpack.c.bf16 %v2482_v19, %v2475_v11  ;;  %v1349_v35 = vmul.f32 %v785_v63, %v785_v63 }
 0x128   : > { %v1409_v13 = vadd.f32 %v1408_v5, %v1346_v3  ;;  %v1879_v15 = vpack.c.bf16 %v777_v8, %v774_v55  ;;  %v1276_v17 = vadd.f32 %v1275_v2, %v777_v8  ;;  %v1347_v18 = vmul.f32 %v777_v8, %v777_v8 }
 0x129   : > { %1988 = vst [vmem:[%s2339_s6 + $0x68] sm:$0xff] %v1884_v9   ;;  %2001 = vst [vmem:[%s2339_s6 + $0xd0] sm:$0xff] %v1949_v32   ;;  %v2506_v5 = vadd.f32 %v2329_v36, %v904_v44 }
 0x12a   : > { %1987 = vst [vmem:[%s2339_s6 + $0x60] sm:$0xff] %v1879_v15   ;;  %v1277_v24 = vadd.f32 %v1276_v17, %v782_v62  ;;  %v1410_v26 = vadd.f32 %v1409_v13, %v1347_v18  ;;  %v2078_v27 = vpop.f32.mrb[28].mxu0  ;;  %v1964_v62 = vpack.c.bf16 %v2495_v51, %v2488_v33  ;;  %v2110_v8 = vpop.f32.mrb[28].mxu1  ;;  %v1354_v18 = vmul.f32 %v2355_v10, %v2355_v10 }
 0x12b   : > { %v789_v30 = vpop.f32.mrb[29].mxu0  ;;  %v798_v46 = vadd.f32 %v2078_v27, %v2329_v36  ;;  %v2510_v15 = vadd.f32 %v2110_v8, %v2329_v36  ;;  %v917_v17 = vpop.f32.mrb[29].mxu1  ;;  %v1959_v20 = vpack.c.bf16 %v2506_v5, %v2499_v61 }
 0x12c   : > { %v1411_v39 = vadd.f32 %v1410_v26, %v1348_v23  ;;  %v790_v40 = vadd.f32 %v2329_v36, %v789_v30  ;;  %v1278_v41 = vadd.f32 %v1277_v24, %v785_v63  ;;  %v2079_v42 = vpop.f32.mrb[30].mxu0  ;;  %2004 = vst [vmem:[%s2339_s6 + $0xe8] sm:$0xff] %v1964_v62   ;;  %v2517_v23 = vadd.f32 %v2329_v36, %v917_v17  ;;  %v2111_v24 = vpop.f32.mrb[30].mxu1 }
 0x12d   : > { %v801_v47 = vadd.f32 %v2079_v42, %v2329_v36  ;;  %v792_v48 = vpop.f32.mrb[31].mxu0  ;;  %v1352_v9 = vmul.f32 %v798_v46, %v798_v46  ;;  %v2520_v30 = vadd.f32 %v2111_v24, %v2329_v36  ;;  %v920_v32 = vpop.f32.mrb[31].mxu1  ;;  %2003 = vst [vmem:[%s2339_s6 + $0xe0] sm:$0xff] %v1959_v20   ;;  %v1363_v17 = vmul.f32 %v2410_v21, %v2410_v21 }
 0x12e   : > { %v1279_v53 = vadd.f32 %v1278_v41, %v790_v40  ;;  %v1350_v54 = vmul.f32 %v790_v40, %v790_v40  ;;  %v1412_v55 = vadd.f32 %v1411_v39, %v1349_v35  ;;  %v793_v56 = vadd.f32 %v2329_v36, %v792_v48 }
 0x12f   : > { %v1894_v58 = vpack.c.bf16 %v801_v47, %v798_v46  ;;  %v1353_v26 = vmul.f32 %v801_v47, %v801_v47  ;;  %v2524_v34 = vadd.f32 %v2329_v36, %v920_v32  ;;  %v1356_v36 = vmul.f32 %v2345_v57, %v2345_v57 }
 0x130   : > { %v1413_v63 = vadd.f32 %v1412_v55, %v1350_v54  ;;  %v1889_v0 = vpack.c.bf16 %v793_v56, %v790_v40  ;;  %v1280_v2 = vadd.f32 %v1279_v53, %v793_v56  ;;  %v1351_v3 = vmul.f32 %v793_v56, %v793_v56 }
 0x131   : > { %1990 = vst [vmem:[%s2339_s6 + $0x78] sm:$0xff] %v1894_v58   ;;  %v1974_v40 = vpack.c.bf16 %v2520_v30, %v2510_v15  ;;  %v1969_v41 = vpack.c.bf16 %v2524_v34, %v2517_v23  ;;  %v1357_v48 = vmul.f32 %v2351_v4, %v2351_v4  ;;  %v1358_v55 = vmul.f32 %v2379_v43, %v2379_v43 }
 0x132   : > { %1989 = vst [vmem:[%s2339_s6 + $0x70] sm:$0xff] %v1889_v0   ;;  %v1281_v12 = vadd.f32 %v1280_v2, %v798_v46  ;;  %v1414_v13 = vadd.f32 %v1413_v63, %v1351_v3  ;;  %v1355_v46 = vmul.f32 %v2362_v16, %v2362_v16  ;;  %v1359_v63 = vmul.f32 %v2386_v49, %v2386_v49 }
 0x133   : > { %2006 = vst [vmem:[%s2339_s6 + $0xf8] sm:$0xff] %v1974_v40   ;;  %2005 = vst [vmem:[%s2339_s6 + $0xf0] sm:$0xff] %v1969_v41  }
 0x134   : > { %v1415_v27 = vadd.f32 %v1414_v13, %v1352_v9  ;;  %v1282_v28 = vadd.f32 %v1281_v12, %v801_v47 }
 0x136   : > { %v1283_v35 = vadd.f32 %v1282_v28, %v2355_v10  ;;  %v1416_v39 = vadd.f32 %v1415_v27, %v1353_v26 }
 0x138   : > { %v1417_v42 = vadd.f32 %v1416_v39, %v1354_v18  ;;  %v1284_v44 = vadd.f32 %v1283_v35, %v2362_v16  ;;  %v1367_v35 = vmul.f32 %v2434_v60, %v2434_v60 }
 0x13a   : > { %v1285_v10 = vadd.f32 %v1284_v44, %v2345_v57  ;;  %v1418_v47 = vadd.f32 %v1417_v42, %v1355_v46  ;;  %v1360_v57 = vmul.f32 %v2368_v25, %v2368_v25 }
 0x13c   : > { %v1419_v53 = vadd.f32 %v1418_v47, %v1356_v36  ;;  %v1286_v54 = vadd.f32 %v1285_v10, %v2351_v4  ;;  %v1361_v4 = vmul.f32 %v2375_v37, %v2375_v37  ;;  %v1371_v10 = vmul.f32 %v2458_v38, %v2458_v38 }
 0x13e   : > { %v1287_v56 = vadd.f32 %v1286_v54, %v2379_v43  ;;  %v1420_v16 = vadd.f32 %v1419_v53, %v1357_v48  ;;  %v1362_v43 = vmul.f32 %v2403_v14, %v2403_v14 }
 0x140   : > { %v1421_v58 = vadd.f32 %v1420_v16, %v1358_v55  ;;  %v1288_v62 = vadd.f32 %v1287_v56, %v2386_v49 }
 0x142   : > { %v1289_v0 = vadd.f32 %v1288_v62, %v2368_v25  ;;  %v1422_v2 = vadd.f32 %v1421_v58, %v1359_v63  ;;  %v1364_v25 = vmul.f32 %v2392_v59, %v2392_v59  ;;  %v1375_v58 = vmul.f32 %v2482_v19, %v2482_v19 }
 0x144   : > { %v1423_v3 = vadd.f32 %v1422_v2, %v1360_v57  ;;  %v1290_v8 = vadd.f32 %v1289_v0, %v2375_v37  ;;  %v1365_v37 = vmul.f32 %v2399_v7, %v2399_v7 }
 0x146   : > { %v1291_v9 = vadd.f32 %v1290_v8, %v2403_v14  ;;  %v1424_v12 = vadd.f32 %v1423_v3, %v1361_v4  ;;  %v1366_v14 = vmul.f32 %v2427_v52, %v2427_v52  ;;  %v1379_v8 = vmul.f32 %v2506_v5, %v2506_v5 }
 0x148   : > { %v1425_v13 = vadd.f32 %v1424_v12, %v1362_v43  ;;  %v1292_v49 = vadd.f32 %v1291_v9, %v2410_v21 }
 0x14a   : > { %v1293_v18 = vadd.f32 %v1292_v49, %v2392_v59  ;;  %v1426_v20 = vadd.f32 %v1425_v13, %v1363_v17  ;;  %v1368_v59 = vmul.f32 %v2416_v31, %v2416_v31 }
 0x14c   : > { %v1427_v24 = vadd.f32 %v1426_v20, %v1364_v25  ;;  %v1294_v26 = vadd.f32 %v1293_v18, %v2399_v7  ;;  %v1369_v7 = vmul.f32 %v2423_v45, %v2423_v45  ;;  %v1384_v18 = vmul.f32 %v2510_v15, %v2510_v15 }
 0x14e   : > { %v1295_v27 = vadd.f32 %v1294_v26, %v2427_v52  ;;  %v1428_v28 = vadd.f32 %v1427_v24, %v1365_v37  ;;  %v1370_v52 = vmul.f32 %v2451_v29, %v2451_v29 }
 0x150   : > { %v1429_v32 = vadd.f32 %v1428_v28, %v1366_v14  ;;  %v1296_v21 = vadd.f32 %v1295_v27, %v2434_v60 }
 0x152   : > { %v1297_v39 = vadd.f32 %v1296_v21, %v2416_v31  ;;  %v1430_v40 = vadd.f32 %v1429_v32, %v1367_v35  ;;  %v1372_v31 = vmul.f32 %v2440_v6, %v2440_v6 }
 0x154   : > { %v1431_v41 = vadd.f32 %v1430_v40, %v1368_v59  ;;  %v1298_v42 = vadd.f32 %v1297_v39, %v2423_v45  ;;  %v1373_v45 = vmul.f32 %v2447_v22, %v2447_v22 }
 0x156   : > { %v1299_v44 = vadd.f32 %v1298_v42, %v2451_v29  ;;  %v1432_v46 = vadd.f32 %v1431_v41, %v1369_v7  ;;  %v1374_v29 = vmul.f32 %v2475_v11, %v2475_v11 }
 0x158   : > { %v1433_v36 = vadd.f32 %v1432_v46, %v1370_v52  ;;  %v1300_v60 = vadd.f32 %v1299_v44, %v2458_v38 }
 0x15a   : > { %v1301_v47 = vadd.f32 %v1300_v60, %v2440_v6  ;;  %v1434_v48 = vadd.f32 %v1433_v36, %v1371_v10  ;;  %v1376_v6 = vmul.f32 %v2464_v50, %v2464_v50 }
 0x15c   : > { %v1435_v53 = vadd.f32 %v1434_v48, %v1372_v31  ;;  %v1302_v54 = vadd.f32 %v1301_v47, %v2447_v22  ;;  %v1377_v22 = vmul.f32 %v2471_v1, %v2471_v1 }
 0x15e   : > { %v1303_v55 = vadd.f32 %v1302_v54, %v2475_v11  ;;  %v1436_v56 = vadd.f32 %v1435_v53, %v1373_v45  ;;  %v1378_v11 = vmul.f32 %v2499_v61, %v2499_v61 }
 0x160   : > { %v1437_v16 = vadd.f32 %v1436_v56, %v1374_v29  ;;  %v1304_v38 = vadd.f32 %v1303_v55, %v2482_v19 }
 0x162   : > { %v1305_v62 = vadd.f32 %v1304_v38, %v2464_v50  ;;  %v1438_v63 = vadd.f32 %v1437_v16, %v1375_v58  ;;  %v1380_v50 = vmul.f32 %v2488_v33, %v2488_v33 }
 0x164   : > { %v1439_v57 = vadd.f32 %v1438_v63, %v1376_v6  ;;  %v1306_v0 = vadd.f32 %v1305_v62, %v2471_v1  ;;  %v1381_v1 = vmul.f32 %v2495_v51, %v2495_v51 }
 0x166   : > { %v1307_v2 = vadd.f32 %v1306_v0, %v2499_v61  ;;  %v1440_v4 = vadd.f32 %v1439_v57, %v1377_v22  ;;  %v1382_v61 = vmul.f32 %v2517_v23, %v2517_v23 }
 0x168   : > { %v1441_v3 = vadd.f32 %v1440_v4, %v1378_v11  ;;  %v1308_v19 = vadd.f32 %v1307_v2, %v2506_v5 }
 0x16a   : > { %v1309_v43 = vadd.f32 %v1308_v19, %v2488_v33  ;;  %v1442_v9 = vadd.f32 %v1441_v3, %v1379_v8  ;;  %v1383_v33 = vmul.f32 %v2524_v34, %v2524_v34 }
 0x16c   : > { %v1443_v12 = vadd.f32 %v1442_v9, %v1380_v50  ;;  %v1310_v13 = vadd.f32 %v1309_v43, %v2495_v51  ;;  %v1385_v51 = vmul.f32 %v2520_v30, %v2520_v30 }
 0x16e   : > { %v1311_v49 = vadd.f32 %v1310_v13, %v2517_v23  ;;  %v1444_v17 = vadd.f32 %v1443_v12, %v1381_v1 }
 0x170   : > { %v1445_v5 = vadd.f32 %v1444_v17, %v1382_v61  ;;  %v1312_v25 = vadd.f32 %v1311_v49, %v2524_v34 }
 0x172   : > { %v1313_v20 = vadd.f32 %v1312_v25, %v2510_v15  ;;  %v1446_v37 = vadd.f32 %v1445_v5, %v1383_v33 }
 0x174   : > { %v1314_v24 = vadd.f32 %v1313_v20, %v2520_v30  ;;  %v1447_v23 = vadd.f32 %v1446_v37, %v1384_v18 }
 0x176   : > { %v1315_v26 = vrot.slane %v1314_v24, 4  ;;  %v1448_v14 = vadd.f32 %v1447_v23, %v1385_v51 }
 0x178   : > { %v1316_v27 = vadd.f32 %v1315_v26, %v1314_v24  ;;  %v1449_v28 = vrot.slane %v1448_v14, 4 }
 0x17a   : > { %v1317_v32 = vrot.slane %v1316_v27, 2  ;;  %v1450_v21 = vadd.f32 %v1449_v28, %v1448_v14 }
 0x17c   : > { %v1318_v34 = vadd.f32 %v1317_v32, %v1316_v27  ;;  %v1451_v35 = vrot.slane %v1450_v21, 2 }
 0x17e   : > { %v1319_v59 = vrot.slane %v1318_v34, 1  ;;  %v1452_v39 = vadd.f32 %v1451_v35, %v1450_v21 }
 0x180   : > { %v1320_v15 = vadd.f32 %v1319_v59, %v1318_v34  ;;  %v1453_v40 = vrot.slane %v1452_v39, 1 }
 0x182   : > { %1321 = vst [vmem:[%s289_s10] sm:$0x1] %v1320_v15  ;;  %v1454_v30 = vadd.f32 %v1453_v40, %v1452_v39 }
 0x184   : > { %1455 = vst [vmem:[%s289_s10 + $0x1] sm:$0x1] %v1454_v30 }
 0x185 PF: > { %s15_s17 = sadd.s32 1, %s2202_s17   ;;  %s2644_s15 = smov %s2198_s16 }
 0x186   : > { %p12_p5 = scmp.ge.s32.totalorder %s15_s17, 5   ;;  %s2645_s16 = smov %s2647_s18 }
 0x188   :  { %14 = sbr.rel (!%p12_p5) target bundleno = 2 (0x2), region = 80 }

// kernel: _lambda_.11
= control target key start
LH: loop header
LB: loop body
LE: loop exit
PB: predicated region body
PF: predicated region fallthrough
CT: control target
= control target key end

     0   :  { %s1647_s9 = smov 0   ;;  %s1649_s10 = smov 0   ;;  %s1954_s0 = inlined_call_operand.vmem [shape: bf16[3,512,128], index: 0, kind: input, shape index: {}]   ;;  %s1955_s1 = inlined_call_operand.vmem [shape: f32[2,3,128], index: 1, kind: input, shape index: {}]   ;;  %s1956_s2 = inlined_call_operand.vmem [shape: bf16[2,512,128], index: 2, kind: output, shape index: {}]  }
   0x1   :  { %s1651_s11 = smov 0  }
   0x2 LB: > { %s24_s12 = sadd.s32 1, %s1626_s10  ;;  %p1093_p0 = scmp.ge.s32.totalorder %s1630_s11, 1  ;;  %s1630_s11 = sphi %s1651_s11, %s12_s11   ;;  %s1626_s10 = sphi %s1649_s10, %s1958_s10   ;;  %s1622_s9 = sphi %s1647_s9, %s1957_s9  }
   0x3   : > { %p26_p1 = scmp.ge.s32.totalorder %s24_s12, 2  ;;  %p146_p2 = scmp.lt.s32.totalorder %s1630_s11, 3 }
   0x5   : > { %s1960_s12 = smov (%p26_p1, %s24_s12), 0  ;;  %p147_p3 = pnand %p1093_p0, %p146_p2 }
   0x6   : > { %s181_s13 = sadd.s32 (!%p147_p3), 1, %s1622_s9  ;;  %p193_p4 = scmp.lt.s32.totalorder (!%p147_p3), %s1622_s9, 1 }
   0x7   : > { %150 = sbr.rel (%p147_p3) target bundleno = 130 (0x82), region = 28  ;;  %p183_p5 = scmp.lt.s32.totalorder (!%p147_p3), %s181_s13, 2 }
   0xe   : > { %s1962_s9 = smov (!%p193_p4, %s1622_s9), 1  ;;  %s1964_s13 = smov (!%p183_p5, %s181_s13), 2 }
   0xf   : > { %s1096_s14 = sshll.u32 %s1962_s9, 2  ;;  %s1168_s15 = sshll.u32 %s1964_s13, 8 }
  0x10   : > { %s196_s18 = scalar_lea.vmem %s1955_s1, %s1096_s14  ;;  %s1674_s21 = scalar_lea.vmem %s1954_s0, %s1168_s15 }
  0x11   : > { %v1676_v0 = vld [vmem:[%s196_s18] ss:$0 sm:$0xff]  ;;  %v1522_v2 = vld [vmem:[%s1674_s21 + $0x8] sm:$0xff]   ;;  %v1523_v3 = vld [vmem:[%s1674_s21 + $0x10] sm:$0xff]   ;;  %s1169_s22 = sshll.u32 %s1962_s9, 8 }
  0x12   : > { %v1235_v1 = vld [vmem:[%s1674_s21] sm:$0xff]   ;;  %v1240_v6 = vunpack.c.l.bf16 %v1522_v2  ;;  %v1241_v7 = vunpack.c.h.bf16 %v1522_v2  ;;  %v1524_v8 = vld [vmem:[%s1674_s21 + $0x18] sm:$0xff]   ;;  %v1244_v10 = vunpack.c.l.bf16 %v1523_v3  ;;  %v1245_v11 = vunpack.c.h.bf16 %v1523_v3  ;;  %s1710_s25 = scalar_lea.vmem %s1956_s2, %s1169_s22  ;;  %v1526_v42 = vld [vmem:[%s1674_s21 + $0x28] sm:$0xff]  }
  0x13   : > { %v1236_v4 = vunpack.c.l.bf16 %v1235_v1  ;;  %v1237_v5 = vunpack.c.h.bf16 %v1235_v1  ;;  %v1682_v9 = vld [vmem:[%s196_s18 + $0x1] ss:$0 sm:$0xff]  ;;  %v1248_v12 = vunpack.c.l.bf16 %v1524_v8  ;;  %v1249_v13 = vunpack.c.h.bf16 %v1524_v8  ;;  %v1688_v18 = vld [vmem:[%s196_s18 + $0x2] ss:$0 sm:$0xff]  ;;  %v1527_v53 = vld [vmem:[%s1674_s21 + $0x30] sm:$0xff]  }
  0x14   : > { %v342_v16 = vmul.f32 %v1240_v6, %v1676_v0  ;;  %v343_v17 = vmul.f32 %v1241_v7, %v1676_v0  ;;  %v344_v19 = vmul.f32 %v1244_v10, %v1676_v0  ;;  %v345_v20 = vmul.f32 %v1245_v11, %v1676_v0  ;;  %v1525_v37 = vld [vmem:[%s1674_s21 + $0x20] sm:$0xff]   ;;  %v1528_v54 = vld [vmem:[%s1674_s21 + $0x38] sm:$0xff]  }
  0x15   : > { %v340_v14 = vmul.f32 %v1236_v4, %v1676_v0  ;;  %v341_v15 = vmul.f32 %v1237_v5, %v1676_v0  ;;  %v346_v21 = vmul.f32 %v1248_v12, %v1676_v0  ;;  %v347_v22 = vmul.f32 %v1249_v13, %v1676_v0 }
  0x16   : > { %v411_v25 = vadd.f32 %v1682_v9, %v342_v16  ;;  %v412_v26 = vadd.f32 %v1682_v9, %v343_v17  ;;  %v413_v27 = vadd.f32 %v1682_v9, %v344_v19  ;;  %v414_v28 = vadd.f32 %v1682_v9, %v345_v20 }
  0x17   : > { %v409_v23 = vadd.f32 %v1682_v9, %v340_v14  ;;  %v410_v24 = vadd.f32 %v1682_v9, %v341_v15  ;;  %v415_v29 = vadd.f32 %v1682_v9, %v346_v21  ;;  %v416_v30 = vadd.f32 %v1682_v9, %v347_v22  ;;  %v1529_v22 = vld [vmem:[%s1674_s21 + $0x40] sm:$0xff]  }
  0x18   : > { %vm475_vm2 = vcmp.ge.f32.partialorder %v411_v25, 0.0  ;;  %vm476_vm3 = vcmp.ge.f32.partialorder %v412_v26, 0.0  ;;  %v544_v33 = vmul.f32 %v1688_v18, %v411_v25  ;;  %v545_v34 = vmul.f32 %v1688_v18, %v412_v26 }
  0x19   : > { %vm473_vm0 = vcmp.ge.f32.partialorder %v409_v23, 0.0  ;;  %vm474_vm1 = vcmp.ge.f32.partialorder %v410_v24, 0.0  ;;  %v542_v31 = vmul.f32 %v1688_v18, %v409_v23  ;;  %v543_v32 = vmul.f32 %v1688_v18, %v410_v24 }
  0x1a   : > { %vm477_vm4 = vcmp.ge.f32.partialorder %v413_v27, 0.0  ;;  %vm478_vm5 = vcmp.ge.f32.partialorder %v414_v28, 0.0  ;;  %v608_v39 = vsel %vm475_vm2, %v411_v25, %v544_v33  ;;  %v609_v40 = vsel %vm476_vm3, %v412_v26, %v545_v34  ;;  %v1530_v26 = vld [vmem:[%s1674_s21 + $0x48] sm:$0xff]  }
  0x1b   : > { %v606_v35 = vsel %vm473_vm0, %v409_v23, %v542_v31  ;;  %v607_v36 = vsel %vm474_vm1, %v410_v24, %v543_v32  ;;  %v546_v41 = vmul.f32 %v1688_v18, %v413_v27  ;;  %v1370_v43 = vpack.c.bf16 %v609_v40, %v608_v39 }
  0x1c   : > { %v1365_v38 = vpack.c.bf16 %v607_v36, %v606_v35  ;;  %v547_v44 = vmul.f32 %v1688_v18, %v414_v28  ;;  %vm479_vm6 = vcmp.ge.f32.partialorder %v415_v29, 0.0  ;;  %vm480_vm7 = vcmp.ge.f32.partialorder %v416_v30, 0.0 }
  0x1d   : > { %v610_v45 = vsel %vm477_vm4, %v413_v27, %v546_v41  ;;  %v548_v46 = vmul.f32 %v1688_v18, %v415_v29  ;;  %v549_v47 = vmul.f32 %v1688_v18, %v416_v30  ;;  %v1252_v48 = vunpack.c.l.bf16 %v1525_v37  ;;  %1553 = vst [vmem:[%s1710_s25 + $0x8] sm:$0xff] %v1370_v43  }
  0x1e   : > { %1366 = vst [vmem:[%s1710_s25] sm:$0xff] %v1365_v38   ;;  %v611_v49 = vsel %vm478_vm5, %v414_v28, %v547_v44  ;;  %v1253_v50 = vunpack.c.h.bf16 %v1525_v37  ;;  %v1256_v51 = vunpack.c.l.bf16 %v1526_v42  ;;  %v1257_v52 = vunpack.c.h.bf16 %v1526_v42  ;;  %v1531_v38 = vld [vmem:[%s1674_s21 + $0x50] sm:$0xff]  }
  0x1f   : > { %v1375_v55 = vpack.c.bf16 %v611_v49, %v610_v45  ;;  %v612_v56 = vsel %vm479_vm6, %v415_v29, %v548_v46  ;;  %v613_v57 = vsel %vm480_vm7, %v416_v30, %v549_v47  ;;  %v348_v58 = vmul.f32 %v1252_v48, %v1676_v0 }
  0x20   : > { %v1380_v59 = vpack.c.bf16 %v613_v57, %v612_v56  ;;  %v349_v60 = vmul.f32 %v1253_v50, %v1676_v0  ;;  %v350_v61 = vmul.f32 %v1256_v51, %v1676_v0  ;;  %v351_v62 = vmul.f32 %v1257_v52, %v1676_v0 }
  0x21   : > { %1554 = vst [vmem:[%s1710_s25 + $0x10] sm:$0xff] %v1375_v55   ;;  %v417_v63 = vadd.f32 %v1682_v9, %v348_v58  ;;  %v1260_v1 = vunpack.c.l.bf16 %v1527_v53  ;;  %v1261_v2 = vunpack.c.h.bf16 %v1527_v53  ;;  %v1264_v3 = vunpack.c.l.bf16 %v1528_v54 }
  0x22   : > { %1555 = vst [vmem:[%s1710_s25 + $0x18] sm:$0xff] %v1380_v59   ;;  %v418_v4 = vadd.f32 %v1682_v9, %v349_v60  ;;  %v419_v5 = vadd.f32 %v1682_v9, %v350_v61  ;;  %v420_v6 = vadd.f32 %v1682_v9, %v351_v62  ;;  %v1265_v7 = vunpack.c.h.bf16 %v1528_v54  ;;  %v1532_v59 = vld [vmem:[%s1674_s21 + $0x58] sm:$0xff]  }
  0x23   : > { %vm481_vm8 = vcmp.ge.f32.partialorder %v417_v63, 0.0  ;;  %v550_v8 = vmul.f32 %v1688_v18, %v417_v63  ;;  %v352_v10 = vmul.f32 %v1260_v1, %v1676_v0  ;;  %v353_v11 = vmul.f32 %v1261_v2, %v1676_v0 }
  0x24   : > { %vm482_vm9 = vcmp.ge.f32.partialorder %v418_v4, 0.0  ;;  %v551_v12 = vmul.f32 %v1688_v18, %v418_v4  ;;  %vm483_vm10 = vcmp.ge.f32.partialorder %v419_v5, 0.0  ;;  %vm484_vm11 = vcmp.ge.f32.partialorder %v420_v6, 0.0 }
  0x25   : > { %v614_v13 = vsel %vm481_vm8, %v417_v63, %v550_v8  ;;  %v552_v14 = vmul.f32 %v1688_v18, %v419_v5  ;;  %v553_v15 = vmul.f32 %v1688_v18, %v420_v6  ;;  %v421_v16 = vadd.f32 %v1682_v9, %v352_v10  ;;  %v1534_v8 = vld [vmem:[%s1674_s21 + $0x68] sm:$0xff]  }
  0x26   : > { %v615_v17 = vsel %vm482_vm9, %v418_v4, %v551_v12  ;;  %v422_v19 = vadd.f32 %v1682_v9, %v353_v11  ;;  %v354_v20 = vmul.f32 %v1264_v3, %v1676_v0  ;;  %v355_v21 = vmul.f32 %v1265_v7, %v1676_v0  ;;  %v1533_v3 = vld [vmem:[%s1674_s21 + $0x60] sm:$0xff]  }
  0x27   : > { %v1385_v23 = vpack.c.bf16 %v615_v17, %v614_v13  ;;  %v616_v24 = vsel %vm483_vm10, %v419_v5, %v552_v14  ;;  %v617_v25 = vsel %vm484_vm11, %v420_v6, %v553_v15  ;;  %vm485_vm12 = vcmp.ge.f32.partialorder %v421_v16, 0.0 }
  0x28   : > { %v1390_v27 = vpack.c.bf16 %v617_v25, %v616_v24  ;;  %vm486_vm13 = vcmp.ge.f32.partialorder %v422_v19, 0.0  ;;  %v554_v28 = vmul.f32 %v1688_v18, %v421_v16  ;;  %v555_v29 = vmul.f32 %v1688_v18, %v422_v19  ;;  %v1535_v25 = vld [vmem:[%s1674_s21 + $0x70] sm:$0xff]  }
  0x29   : > { %1556 = vst [vmem:[%s1710_s25 + $0x20] sm:$0xff] %v1385_v23   ;;  %v423_v30 = vadd.f32 %v1682_v9, %v354_v20  ;;  %v424_v31 = vadd.f32 %v1682_v9, %v355_v21  ;;  %v1268_v32 = vunpack.c.l.bf16 %v1529_v22  ;;  %v1269_v33 = vunpack.c.h.bf16 %v1529_v22 }
  0x2a   : > { %1557 = vst [vmem:[%s1710_s25 + $0x28] sm:$0xff] %v1390_v27   ;;  %v618_v34 = vsel %vm485_vm12, %v421_v16, %v554_v28  ;;  %v619_v35 = vsel %vm486_vm13, %v422_v19, %v555_v29  ;;  %v1272_v36 = vunpack.c.l.bf16 %v1530_v26  ;;  %v1273_v37 = vunpack.c.h.bf16 %v1530_v26 }
  0x2b   : > { %v1395_v39 = vpack.c.bf16 %v619_v35, %v618_v34  ;;  %vm487_vm14 = vcmp.ge.f32.partialorder %v423_v30, 0.0  ;;  %vm488_vm15 = vcmp.ge.f32.partialorder %v424_v31, 0.0  ;;  %v556_v40 = vmul.f32 %v1688_v18, %v423_v30 }
  0x2c   : > { %v557_v41 = vmul.f32 %v1688_v18, %v424_v31  ;;  %v356_v42 = vmul.f32 %v1268_v32, %v1676_v0  ;;  %v357_v43 = vmul.f32 %v1269_v33, %v1676_v0  ;;  %v358_v44 = vmul.f32 %v1272_v36, %v1676_v0 }
  0x2d   : > { %1558 = vst [vmem:[%s1710_s25 + $0x30] sm:$0xff] %v1395_v39   ;;  %v620_v45 = vsel %vm487_vm14, %v423_v30, %v556_v40  ;;  %v359_v46 = vmul.f32 %v1273_v37, %v1676_v0  ;;  %v1276_v47 = vunpack.c.l.bf16 %v1531_v38  ;;  %v1277_v48 = vunpack.c.h.bf16 %v1531_v38 }
  0x2e   : > { %v621_v49 = vsel %vm488_vm15, %v424_v31, %v557_v41  ;;  %v425_v50 = vadd.f32 %v1682_v9, %v356_v42  ;;  %v426_v51 = vadd.f32 %v1682_v9, %v357_v43  ;;  %v427_v52 = vadd.f32 %v1682_v9, %v358_v44  ;;  %v1536_v44 = vld [vmem:[%s1674_s21 + $0x78] sm:$0xff]  }
  0x2f   : > { %v1400_v53 = vpack.c.bf16 %v621_v49, %v620_v45  ;;  %v428_v54 = vadd.f32 %v1682_v9, %v359_v46  ;;  %v360_v55 = vmul.f32 %v1276_v47, %v1676_v0  ;;  %v361_v56 = vmul.f32 %v1277_v48, %v1676_v0  ;;  %v1537_v49 = vld [vmem:[%s1674_s21 + $0x80] sm:$0xff]  }
  0x30   : > { %vm489_vm0 = vcmp.ge.f32.partialorder %v425_v50, 0.0  ;;  %vm490_vm1 = vcmp.ge.f32.partialorder %v426_v51, 0.0  ;;  %v558_v57 = vmul.f32 %v1688_v18, %v425_v50  ;;  %v559_v58 = vmul.f32 %v1688_v18, %v426_v51 }
  0x31   : > { %1559 = vst [vmem:[%s1710_s25 + $0x38] sm:$0xff] %v1400_v53   ;;  %vm491_vm2 = vcmp.ge.f32.partialorder %v427_v52, 0.0  ;;  %vm492_vm3 = vcmp.ge.f32.partialorder %v428_v54, 0.0  ;;  %v560_v60 = vmul.f32 %v1688_v18, %v427_v52  ;;  %v561_v61 = vmul.f32 %v1688_v18, %v428_v54 }
  0x32   : > { %v622_v62 = vsel %vm489_vm0, %v425_v50, %v558_v57  ;;  %v623_v63 = vsel %vm490_vm1, %v426_v51, %v559_v58  ;;  %v429_v1 = vadd.f32 %v1682_v9, %v360_v55  ;;  %v430_v2 = vadd.f32 %v1682_v9, %v361_v56  ;;  %v1538_v50 = vld [vmem:[%s1674_s21 + $0x88] sm:$0xff]  }
  0x33   : > { %v1405_v4 = vpack.c.bf16 %v623_v63, %v622_v62  ;;  %v624_v5 = vsel %vm491_vm2, %v427_v52, %v560_v60  ;;  %v625_v6 = vsel %vm492_vm3, %v428_v54, %v561_v61  ;;  %v1280_v7 = vunpack.c.l.bf16 %v1532_v59 }
  0x34   : > { %v1410_v10 = vpack.c.bf16 %v625_v6, %v624_v5  ;;  %vm493_vm4 = vcmp.ge.f32.partialorder %v429_v1, 0.0  ;;  %vm494_vm5 = vcmp.ge.f32.partialorder %v430_v2, 0.0  ;;  %v562_v11 = vmul.f32 %v1688_v18, %v429_v1 }
  0x35   : > { %1560 = vst [vmem:[%s1710_s25 + $0x40] sm:$0xff] %v1405_v4   ;;  %v563_v12 = vmul.f32 %v1688_v18, %v430_v2  ;;  %v1281_v13 = vunpack.c.h.bf16 %v1532_v59  ;;  %v362_v14 = vmul.f32 %v1280_v7, %v1676_v0  ;;  %v1284_v15 = vunpack.c.l.bf16 %v1533_v3 }
  0x36   : > { %1561 = vst [vmem:[%s1710_s25 + $0x48] sm:$0xff] %v1410_v10   ;;  %v626_v16 = vsel %vm493_vm4, %v429_v1, %v562_v11  ;;  %v1285_v17 = vunpack.c.h.bf16 %v1533_v3  ;;  %v1288_v19 = vunpack.c.l.bf16 %v1534_v8  ;;  %v1289_v20 = vunpack.c.h.bf16 %v1534_v8 }
  0x37   : > { %v627_v21 = vsel %vm494_vm5, %v430_v2, %v563_v12  ;;  %v363_v22 = vmul.f32 %v1281_v13, %v1676_v0  ;;  %v431_v23 = vadd.f32 %v1682_v9, %v362_v14  ;;  %v364_v24 = vmul.f32 %v1284_v15, %v1676_v0 }
  0x38   : > { %v1415_v26 = vpack.c.bf16 %v627_v21, %v626_v16  ;;  %v365_v27 = vmul.f32 %v1285_v17, %v1676_v0  ;;  %v366_v28 = vmul.f32 %v1288_v19, %v1676_v0  ;;  %v367_v29 = vmul.f32 %v1289_v20, %v1676_v0  ;;  %v1539_v17 = vld [vmem:[%s1674_s21 + $0x90] sm:$0xff]  }
  0x39   : > { %v432_v30 = vadd.f32 %v1682_v9, %v363_v22  ;;  %vm495_vm6 = vcmp.ge.f32.partialorder %v431_v23, 0.0  ;;  %v564_v31 = vmul.f32 %v1688_v18, %v431_v23  ;;  %v433_v32 = vadd.f32 %v1682_v9, %v364_v24 }
  0x3a   : > { %1562 = vst [vmem:[%s1710_s25 + $0x50] sm:$0xff] %v1415_v26   ;;  %v434_v33 = vadd.f32 %v1682_v9, %v365_v27  ;;  %v435_v34 = vadd.f32 %v1682_v9, %v366_v28  ;;  %v436_v35 = vadd.f32 %v1682_v9, %v367_v29  ;;  %v1292_v36 = vunpack.c.l.bf16 %v1535_v25  ;;  %v1540_v29 = vld [vmem:[%s1674_s21 + $0x98] sm:$0xff]  }
  0x3b   : > { %vm496_vm7 = vcmp.ge.f32.partialorder %v432_v30, 0.0  ;;  %v565_v37 = vmul.f32 %v1688_v18, %v432_v30  ;;  %v628_v38 = vsel %vm495_vm6, %v431_v23, %v564_v31  ;;  %vm497_vm8 = vcmp.ge.f32.partialorder %v433_v32, 0.0 }
  0x3c   : > { %vm498_vm9 = vcmp.ge.f32.partialorder %v434_v33, 0.0  ;;  %v566_v39 = vmul.f32 %v1688_v18, %v433_v32  ;;  %v567_v40 = vmul.f32 %v1688_v18, %v434_v33  ;;  %vm499_vm10 = vcmp.ge.f32.partialorder %v435_v34, 0.0 }
  0x3d   : > { %v629_v41 = vsel %vm496_vm7, %v432_v30, %v565_v37  ;;  %vm500_vm11 = vcmp.ge.f32.partialorder %v436_v35, 0.0  ;;  %v568_v42 = vmul.f32 %v1688_v18, %v435_v34  ;;  %v569_v43 = vmul.f32 %v1688_v18, %v436_v35 }
  0x3e   : > { %v1420_v45 = vpack.c.bf16 %v629_v41, %v628_v38  ;;  %v630_v46 = vsel %vm497_vm8, %v433_v32, %v566_v39  ;;  %v631_v47 = vsel %vm498_vm9, %v434_v33, %v567_v40  ;;  %v1293_v48 = vunpack.c.h.bf16 %v1535_v25 }
  0x3f   : > { %v1425_v51 = vpack.c.bf16 %v631_v47, %v630_v46  ;;  %v632_v52 = vsel %vm499_vm10, %v435_v34, %v568_v42  ;;  %v633_v53 = vsel %vm500_vm11, %v436_v35, %v569_v43  ;;  %v368_v54 = vmul.f32 %v1292_v36, %v1676_v0  ;;  %v1541_v34 = vld [vmem:[%s1674_s21 + $0xa0] sm:$0xff]  }
  0x40   : > { %1563 = vst [vmem:[%s1710_s25 + $0x58] sm:$0xff] %v1420_v45   ;;  %v1430_v55 = vpack.c.bf16 %v633_v53, %v632_v52  ;;  %v369_v56 = vmul.f32 %v1293_v48, %v1676_v0  ;;  %v1296_v57 = vunpack.c.l.bf16 %v1536_v44  ;;  %v1297_v58 = vunpack.c.h.bf16 %v1536_v44 }
  0x41   : > { %1564 = vst [vmem:[%s1710_s25 + $0x60] sm:$0xff] %v1425_v51   ;;  %v437_v59 = vadd.f32 %v1682_v9, %v368_v54  ;;  %v1300_v60 = vunpack.c.l.bf16 %v1537_v49  ;;  %v1301_v61 = vunpack.c.h.bf16 %v1537_v49  ;;  %v1304_v62 = vunpack.c.l.bf16 %v1538_v50  ;;  %v1542_v49 = vld [vmem:[%s1674_s21 + $0xa8] sm:$0xff]  }
  0x42   : > { %1565 = vst [vmem:[%s1710_s25 + $0x68] sm:$0xff] %v1430_v55   ;;  %v438_v63 = vadd.f32 %v1682_v9, %v369_v56  ;;  %v370_v1 = vmul.f32 %v1296_v57, %v1676_v0  ;;  %v371_v2 = vmul.f32 %v1297_v58, %v1676_v0  ;;  %v1305_v3 = vunpack.c.h.bf16 %v1538_v50 }
  0x43   : > { %vm501_vm12 = vcmp.ge.f32.partialorder %v437_v59, 0.0  ;;  %v570_v4 = vmul.f32 %v1688_v18, %v437_v59  ;;  %v372_v5 = vmul.f32 %v1300_v60, %v1676_v0  ;;  %v373_v6 = vmul.f32 %v1301_v61, %v1676_v0 }
  0x44   : > { %vm502_vm13 = vcmp.ge.f32.partialorder %v438_v63, 0.0  ;;  %v571_v7 = vmul.f32 %v1688_v18, %v438_v63  ;;  %v439_v8 = vadd.f32 %v1682_v9, %v370_v1  ;;  %v440_v10 = vadd.f32 %v1682_v9, %v371_v2 }
  0x45   : > { %v634_v11 = vsel %vm501_vm12, %v437_v59, %v570_v4  ;;  %v441_v12 = vadd.f32 %v1682_v9, %v372_v5  ;;  %v442_v13 = vadd.f32 %v1682_v9, %v373_v6  ;;  %v374_v14 = vmul.f32 %v1304_v62, %v1676_v0 }
  0x46   : > { %v635_v15 = vsel %vm502_vm13, %v438_v63, %v571_v7  ;;  %vm503_vm14 = vcmp.ge.f32.partialorder %v439_v8, 0.0  ;;  %vm504_vm15 = vcmp.ge.f32.partialorder %v440_v10, 0.0  ;;  %v572_v16 = vmul.f32 %v1688_v18, %v439_v8  ;;  %v1544_v7 = vld [vmem:[%s1674_s21 + $0xb8] sm:$0xff]  }
  0x47   : > { %v1435_v19 = vpack.c.bf16 %v635_v15, %v634_v11  ;;  %v573_v20 = vmul.f32 %v1688_v18, %v440_v10  ;;  %vm505_vm0 = vcmp.ge.f32.partialorder %v441_v12, 0.0  ;;  %vm506_vm1 = vcmp.ge.f32.partialorder %v442_v13, 0.0 }
  0x48   : > { %v636_v21 = vsel %vm503_vm14, %v439_v8, %v572_v16  ;;  %v574_v22 = vmul.f32 %v1688_v18, %v441_v12  ;;  %v575_v23 = vmul.f32 %v1688_v18, %v442_v13  ;;  %v375_v24 = vmul.f32 %v1305_v3, %v1676_v0  ;;  %v1543_v3 = vld [vmem:[%s1674_s21 + $0xb0] sm:$0xff]  }
  0x49   : > { %1566 = vst [vmem:[%s1710_s25 + $0x70] sm:$0xff] %v1435_v19   ;;  %v637_v25 = vsel %vm504_vm15, %v440_v10, %v573_v20  ;;  %v443_v26 = vadd.f32 %v1682_v9, %v374_v14  ;;  %v1308_v27 = vunpack.c.l.bf16 %v1539_v17  ;;  %v1309_v28 = vunpack.c.h.bf16 %v1539_v17 }
  0x4a   : > { %v1440_v30 = vpack.c.bf16 %v637_v25, %v636_v21  ;;  %v638_v31 = vsel %vm505_vm0, %v441_v12, %v574_v22  ;;  %v639_v32 = vsel %vm506_vm1, %v442_v13, %v575_v23  ;;  %v444_v33 = vadd.f32 %v1682_v9, %v375_v24  ;;  %v1545_v25 = vld [vmem:[%s1674_s21 + $0xc0] sm:$0xff]  }
  0x4b   : > { %v1445_v35 = vpack.c.bf16 %v639_v32, %v638_v31  ;;  %vm507_vm2 = vcmp.ge.f32.partialorder %v443_v26, 0.0  ;;  %v576_v36 = vmul.f32 %v1688_v18, %v443_v26  ;;  %v376_v37 = vmul.f32 %v1308_v27, %v1676_v0 }
  0x4c   : > { %1567 = vst [vmem:[%s1710_s25 + $0x78] sm:$0xff] %v1440_v30   ;;  %vm508_vm3 = vcmp.ge.f32.partialorder %v444_v33, 0.0  ;;  %v577_v38 = vmul.f32 %v1688_v18, %v444_v33  ;;  %v377_v39 = vmul.f32 %v1309_v28, %v1676_v0  ;;  %v1312_v40 = vunpack.c.l.bf16 %v1540_v29 }
  0x4d   : > { %1568 = vst [vmem:[%s1710_s25 + $0x80] sm:$0xff] %v1445_v35   ;;  %v640_v41 = vsel %vm507_vm2, %v443_v26, %v576_v36  ;;  %v445_v42 = vadd.f32 %v1682_v9, %v376_v37  ;;  %v1313_v43 = vunpack.c.h.bf16 %v1540_v29  ;;  %v1316_v44 = vunpack.c.l.bf16 %v1541_v34 }
  0x4e   : > { %v641_v45 = vsel %vm508_vm3, %v444_v33, %v577_v38  ;;  %v446_v46 = vadd.f32 %v1682_v9, %v377_v39  ;;  %v378_v47 = vmul.f32 %v1312_v40, %v1676_v0  ;;  %v1317_v48 = vunpack.c.h.bf16 %v1541_v34  ;;  %v1546_v39 = vld [vmem:[%s1674_s21 + $0xc8] sm:$0xff]  }
  0x4f   : > { %v1450_v50 = vpack.c.bf16 %v641_v45, %v640_v41  ;;  %vm509_vm4 = vcmp.ge.f32.partialorder %v445_v42, 0.0  ;;  %v578_v51 = vmul.f32 %v1688_v18, %v445_v42  ;;  %v379_v52 = vmul.f32 %v1313_v43, %v1676_v0 }
  0x50   : > { %vm510_vm5 = vcmp.ge.f32.partialorder %v446_v46, 0.0  ;;  %v579_v53 = vmul.f32 %v1688_v18, %v446_v46  ;;  %v447_v54 = vadd.f32 %v1682_v9, %v378_v47  ;;  %v380_v55 = vmul.f32 %v1316_v44, %v1676_v0 }
  0x51   : > { %1569 = vst [vmem:[%s1710_s25 + $0x88] sm:$0xff] %v1450_v50   ;;  %v642_v56 = vsel %vm509_vm4, %v445_v42, %v578_v51  ;;  %v448_v57 = vadd.f32 %v1682_v9, %v379_v52  ;;  %v381_v58 = vmul.f32 %v1317_v48, %v1676_v0  ;;  %v1320_v59 = vunpack.c.l.bf16 %v1542_v49  ;;  %v1548_v50 = vld [vmem:[%s1674_s21 + $0xd8] sm:$0xff]  }
  0x52   : > { %v643_v60 = vsel %vm510_vm5, %v446_v46, %v579_v53  ;;  %vm511_vm6 = vcmp.ge.f32.partialorder %v447_v54, 0.0  ;;  %v580_v61 = vmul.f32 %v1688_v18, %v447_v54  ;;  %v449_v62 = vadd.f32 %v1682_v9, %v380_v55 }
  0x53   : > { %v1455_v63 = vpack.c.bf16 %v643_v60, %v642_v56  ;;  %vm512_vm7 = vcmp.ge.f32.partialorder %v448_v57, 0.0  ;;  %v581_v1 = vmul.f32 %v1688_v18, %v448_v57  ;;  %v450_v2 = vadd.f32 %v1682_v9, %v381_v58 }
  0x54   : > { %v644_v4 = vsel %vm511_vm6, %v447_v54, %v580_v61  ;;  %vm513_vm8 = vcmp.ge.f32.partialorder %v449_v62, 0.0  ;;  %v582_v5 = vmul.f32 %v1688_v18, %v449_v62  ;;  %v1321_v6 = vunpack.c.h.bf16 %v1542_v49  ;;  %v1547_v49 = vld [vmem:[%s1674_s21 + $0xd0] sm:$0xff]  }
  0x55   : > { %1570 = vst [vmem:[%s1710_s25 + $0x90] sm:$0xff] %v1455_v63   ;;  %v645_v8 = vsel %vm512_vm7, %v448_v57, %v581_v1  ;;  %vm514_vm9 = vcmp.ge.f32.partialorder %v450_v2, 0.0  ;;  %v583_v10 = vmul.f32 %v1688_v18, %v450_v2  ;;  %v382_v11 = vmul.f32 %v1320_v59, %v1676_v0 }
  0x56   : > { %v1460_v12 = vpack.c.bf16 %v645_v8, %v644_v4  ;;  %v646_v13 = vsel %vm513_vm8, %v449_v62, %v582_v5  ;;  %v383_v14 = vmul.f32 %v1321_v6, %v1676_v0  ;;  %v1324_v15 = vunpack.c.l.bf16 %v1543_v3 }
  0x57   : > { %v647_v16 = vsel %vm514_vm9, %v450_v2, %v583_v10  ;;  %v451_v17 = vadd.f32 %v1682_v9, %v382_v11  ;;  %v1325_v19 = vunpack.c.h.bf16 %v1543_v3  ;;  %v1328_v20 = vunpack.c.l.bf16 %v1544_v7 }
  0x58   : > { %1571 = vst [vmem:[%s1710_s25 + $0x98] sm:$0xff] %v1460_v12   ;;  %v1465_v21 = vpack.c.bf16 %v647_v16, %v646_v13  ;;  %v452_v22 = vadd.f32 %v1682_v9, %v383_v14  ;;  %v384_v23 = vmul.f32 %v1324_v15, %v1676_v0  ;;  %v1329_v24 = vunpack.c.h.bf16 %v1544_v7 }
  0x59   : > { %vm515_vm10 = vcmp.ge.f32.partialorder %v451_v17, 0.0  ;;  %v584_v26 = vmul.f32 %v1688_v18, %v451_v17  ;;  %v385_v27 = vmul.f32 %v1325_v19, %v1676_v0  ;;  %v386_v28 = vmul.f32 %v1328_v20, %v1676_v0 }
  0x5a   : > { %1572 = vst [vmem:[%s1710_s25 + $0xa0] sm:$0xff] %v1465_v21   ;;  %vm516_vm11 = vcmp.ge.f32.partialorder %v452_v22, 0.0  ;;  %v585_v29 = vmul.f32 %v1688_v18, %v452_v22  ;;  %v453_v30 = vadd.f32 %v1682_v9, %v384_v23  ;;  %v387_v31 = vmul.f32 %v1329_v24, %v1676_v0 }
  0x5b   : > { %v648_v32 = vsel %vm515_vm10, %v451_v17, %v584_v26  ;;  %v454_v33 = vadd.f32 %v1682_v9, %v385_v27  ;;  %v455_v34 = vadd.f32 %v1682_v9, %v386_v28  ;;  %v1332_v35 = vunpack.c.l.bf16 %v1545_v25  ;;  %v1549_v17 = vld [vmem:[%s1674_s21 + $0xe0] sm:$0xff]  }
  0x5c   : > { %v649_v36 = vsel %vm516_vm11, %v452_v22, %v585_v29  ;;  %vm517_vm12 = vcmp.ge.f32.partialorder %v453_v30, 0.0  ;;  %v586_v37 = vmul.f32 %v1688_v18, %v453_v30  ;;  %v456_v38 = vadd.f32 %v1682_v9, %v387_v31  ;;  %v1550_v22 = vld [vmem:[%s1674_s21 + $0xe8] sm:$0xff]  }
  0x5d   : > { %v1470_v40 = vpack.c.bf16 %v649_v36, %v648_v32  ;;  %vm518_vm13 = vcmp.ge.f32.partialorder %v454_v33, 0.0  ;;  %v587_v41 = vmul.f32 %v1688_v18, %v454_v33  ;;  %vm519_vm14 = vcmp.ge.f32.partialorder %v455_v34, 0.0 }
  0x5e   : > { %v650_v42 = vsel %vm517_vm12, %v453_v30, %v586_v37  ;;  %vm520_vm15 = vcmp.ge.f32.partialorder %v456_v38, 0.0  ;;  %v588_v43 = vmul.f32 %v1688_v18, %v455_v34  ;;  %v589_v44 = vmul.f32 %v1688_v18, %v456_v38 }
  0x5f   : > { %1573 = vst [vmem:[%s1710_s25 + $0xa8] sm:$0xff] %v1470_v40   ;;  %v651_v45 = vsel %vm518_vm13, %v454_v33, %v587_v41  ;;  %v1333_v46 = vunpack.c.h.bf16 %v1545_v25  ;;  %v388_v47 = vmul.f32 %v1332_v35, %v1676_v0  ;;  %v1336_v48 = vunpack.c.l.bf16 %v1546_v39 }
  0x60   : > { %v1475_v51 = vpack.c.bf16 %v651_v45, %v650_v42  ;;  %v652_v52 = vsel %vm519_vm14, %v455_v34, %v588_v43  ;;  %v653_v53 = vsel %vm520_vm15, %v456_v38, %v589_v44  ;;  %v1337_v54 = vunpack.c.h.bf16 %v1546_v39  ;;  %v1551_v34 = vld [vmem:[%s1674_s21 + $0xf0] sm:$0xff]  }
  0x61   : > { %v1480_v55 = vpack.c.bf16 %v653_v53, %v652_v52  ;;  %v389_v56 = vmul.f32 %v1333_v46, %v1676_v0  ;;  %v457_v57 = vadd.f32 %v1682_v9, %v388_v47  ;;  %v390_v58 = vmul.f32 %v1336_v48, %v1676_v0 }
  0x62   : > { %1574 = vst [vmem:[%s1710_s25 + $0xb0] sm:$0xff] %v1475_v51   ;;  %v391_v59 = vmul.f32 %v1337_v54, %v1676_v0  ;;  %v1340_v60 = vunpack.c.l.bf16 %v1547_v49  ;;  %v1341_v61 = vunpack.c.h.bf16 %v1547_v49  ;;  %v1344_v62 = vunpack.c.l.bf16 %v1548_v50 }
  0x63   : > { %1575 = vst [vmem:[%s1710_s25 + $0xb8] sm:$0xff] %v1480_v55   ;;  %v458_v63 = vadd.f32 %v1682_v9, %v389_v56  ;;  %vm521_vm0 = vcmp.ge.f32.partialorder %v457_v57, 0.0  ;;  %v590_v1 = vmul.f32 %v1688_v18, %v457_v57  ;;  %v459_v2 = vadd.f32 %v1682_v9, %v390_v58  ;;  %v1552_v55 = vld [vmem:[%s1674_s21 + $0xf8] sm:$0xff]  }
  0x64   : > { %v460_v3 = vadd.f32 %v1682_v9, %v391_v59  ;;  %v392_v4 = vmul.f32 %v1340_v60, %v1676_v0  ;;  %v393_v5 = vmul.f32 %v1341_v61, %v1676_v0  ;;  %v1345_v6 = vunpack.c.h.bf16 %v1548_v50 }
  0x65   : > { %vm522_vm1 = vcmp.ge.f32.partialorder %v458_v63, 0.0  ;;  %v591_v7 = vmul.f32 %v1688_v18, %v458_v63  ;;  %v654_v8 = vsel %vm521_vm0, %v457_v57, %v590_v1  ;;  %vm523_vm2 = vcmp.ge.f32.partialorder %v459_v2, 0.0 }
  0x66   : > { %vm524_vm3 = vcmp.ge.f32.partialorder %v460_v3, 0.0  ;;  %v592_v10 = vmul.f32 %v1688_v18, %v459_v2  ;;  %v593_v11 = vmul.f32 %v1688_v18, %v460_v3  ;;  %v461_v12 = vadd.f32 %v1682_v9, %v392_v4 }
  0x67   : > { %v655_v13 = vsel %vm522_vm1, %v458_v63, %v591_v7  ;;  %v462_v14 = vadd.f32 %v1682_v9, %v393_v5  ;;  %v394_v15 = vmul.f32 %v1344_v62, %v1676_v0  ;;  %v395_v16 = vmul.f32 %v1345_v6, %v1676_v0 }
  0x68   : > { %v1485_v19 = vpack.c.bf16 %v655_v13, %v654_v8  ;;  %v656_v20 = vsel %vm523_vm2, %v459_v2, %v592_v10  ;;  %v657_v21 = vsel %vm524_vm3, %v460_v3, %v593_v11  ;;  %vm525_vm4 = vcmp.ge.f32.partialorder %v461_v12, 0.0 }
  0x69   : > { %v1490_v23 = vpack.c.bf16 %v657_v21, %v656_v20  ;;  %vm526_vm5 = vcmp.ge.f32.partialorder %v462_v14, 0.0  ;;  %v594_v24 = vmul.f32 %v1688_v18, %v461_v12  ;;  %v595_v25 = vmul.f32 %v1688_v18, %v462_v14 }
  0x6a   : > { %1576 = vst [vmem:[%s1710_s25 + $0xc0] sm:$0xff] %v1485_v19   ;;  %v463_v26 = vadd.f32 %v1682_v9, %v394_v15  ;;  %v464_v27 = vadd.f32 %v1682_v9, %v395_v16  ;;  %v1348_v28 = vunpack.c.l.bf16 %v1549_v17  ;;  %v1349_v29 = vunpack.c.h.bf16 %v1549_v17 }
  0x6b   : > { %1577 = vst [vmem:[%s1710_s25 + $0xc8] sm:$0xff] %v1490_v23   ;;  %v658_v30 = vsel %vm525_vm4, %v461_v12, %v594_v24  ;;  %v659_v31 = vsel %vm526_vm5, %v462_v14, %v595_v25  ;;  %v1352_v32 = vunpack.c.l.bf16 %v1550_v22  ;;  %v1353_v33 = vunpack.c.h.bf16 %v1550_v22 }
  0x6c   : > { %v1495_v35 = vpack.c.bf16 %v659_v31, %v658_v30  ;;  %vm527_vm6 = vcmp.ge.f32.partialorder %v463_v26, 0.0  ;;  %vm528_vm7 = vcmp.ge.f32.partialorder %v464_v27, 0.0  ;;  %v596_v36 = vmul.f32 %v1688_v18, %v463_v26 }
  0x6d   : > { %v597_v37 = vmul.f32 %v1688_v18, %v464_v27  ;;  %v396_v38 = vmul.f32 %v1348_v28, %v1676_v0  ;;  %v397_v39 = vmul.f32 %v1349_v29, %v1676_v0  ;;  %v398_v40 = vmul.f32 %v1352_v32, %v1676_v0 }
  0x6e   : > { %1578 = vst [vmem:[%s1710_s25 + $0xd0] sm:$0xff] %v1495_v35   ;;  %v660_v41 = vsel %vm527_vm6, %v463_v26, %v596_v36  ;;  %v399_v42 = vmul.f32 %v1353_v33, %v1676_v0  ;;  %v1356_v43 = vunpack.c.l.bf16 %v1551_v34  ;;  %v1357_v44 = vunpack.c.h.bf16 %v1551_v34 }
  0x6f   : > { %v661_v45 = vsel %vm528_vm7, %v464_v27, %v597_v37  ;;  %v465_v46 = vadd.f32 %v1682_v9, %v396_v38  ;;  %v466_v47 = vadd.f32 %v1682_v9, %v397_v39  ;;  %v467_v48 = vadd.f32 %v1682_v9, %v398_v40 }
  0x70   : > { %v1500_v49 = vpack.c.bf16 %v661_v45, %v660_v41  ;;  %v468_v50 = vadd.f32 %v1682_v9, %v399_v42  ;;  %v400_v51 = vmul.f32 %v1356_v43, %v1676_v0  ;;  %v401_v52 = vmul.f32 %v1357_v44, %v1676_v0 }
  0x71   : > { %vm529_vm8 = vcmp.ge.f32.partialorder %v465_v46, 0.0  ;;  %vm530_vm9 = vcmp.ge.f32.partialorder %v466_v47, 0.0  ;;  %v598_v53 = vmul.f32 %v1688_v18, %v465_v46  ;;  %v599_v54 = vmul.f32 %v1688_v18, %v466_v47 }
  0x72   : > { %1579 = vst [vmem:[%s1710_s25 + $0xd8] sm:$0xff] %v1500_v49   ;;  %vm531_vm10 = vcmp.ge.f32.partialorder %v467_v48, 0.0  ;;  %vm532_vm11 = vcmp.ge.f32.partialorder %v468_v50, 0.0  ;;  %v600_v56 = vmul.f32 %v1688_v18, %v467_v48  ;;  %v601_v57 = vmul.f32 %v1688_v18, %v468_v50 }
  0x73   : > { %v662_v58 = vsel %vm529_vm8, %v465_v46, %v598_v53  ;;  %v663_v59 = vsel %vm530_vm9, %v466_v47, %v599_v54  ;;  %v469_v60 = vadd.f32 %v1682_v9, %v400_v51  ;;  %v470_v61 = vadd.f32 %v1682_v9, %v401_v52 }
  0x74   : > { %v1505_v62 = vpack.c.bf16 %v663_v59, %v662_v58  ;;  %v664_v63 = vsel %vm531_vm10, %v467_v48, %v600_v56  ;;  %v665_v1 = vsel %vm532_vm11, %v468_v50, %v601_v57  ;;  %v1360_v2 = vunpack.c.l.bf16 %v1552_v55 }
  0x75   : > { %v1510_v3 = vpack.c.bf16 %v665_v1, %v664_v63  ;;  %vm533_vm12 = vcmp.ge.f32.partialorder %v469_v60, 0.0  ;;  %vm534_vm13 = vcmp.ge.f32.partialorder %v470_v61, 0.0  ;;  %v602_v4 = vmul.f32 %v1688_v18, %v469_v60 }
  0x76   : > { %1580 = vst [vmem:[%s1710_s25 + $0xe0] sm:$0xff] %v1505_v62   ;;  %v603_v5 = vmul.f32 %v1688_v18, %v470_v61  ;;  %v1361_v6 = vunpack.c.h.bf16 %v1552_v55  ;;  %v402_v7 = vmul.f32 %v1360_v2, %v1676_v0 }
  0x77   : > { %1581 = vst [vmem:[%s1710_s25 + $0xe8] sm:$0xff] %v1510_v3   ;;  %v666_v8 = vsel %vm533_vm12, %v469_v60, %v602_v4 }
  0x78   : > { %v667_v10 = vsel %vm534_vm13, %v470_v61, %v603_v5  ;;  %v403_v11 = vmul.f32 %v1361_v6, %v1676_v0  ;;  %v471_v12 = vadd.f32 %v1682_v9, %v402_v7 }
  0x79   : > { %v1515_v13 = vpack.c.bf16 %v667_v10, %v666_v8 }
  0x7a   : > { %v472_v14 = vadd.f32 %v1682_v9, %v403_v11  ;;  %vm535_vm14 = vcmp.ge.f32.partialorder %v471_v12, 0.0  ;;  %v604_v15 = vmul.f32 %v1688_v18, %v471_v12 }
  0x7b   : > { %1582 = vst [vmem:[%s1710_s25 + $0xf0] sm:$0xff] %v1515_v13  }
  0x7c   : > { %vm536_vm15 = vcmp.ge.f32.partialorder %v472_v14, 0.0  ;;  %v605_v16 = vmul.f32 %v1688_v18, %v472_v14  ;;  %v668_v17 = vsel %vm535_vm14, %v471_v12, %v604_v15 }
  0x7e   : > { %v669_v19 = vsel %vm536_vm15, %v472_v14, %v605_v16 }
  0x7f   : > { %v1520_v20 = vpack.c.bf16 %v669_v19, %v668_v17 }
  0x81   : > { %1583 = vst [vmem:[%s1710_s25 + $0xf8] sm:$0xff] %v1520_v20  }
  0x82 PF: > { %s12_s11 = sadd.s32 1, %s1630_s11   ;;  %s1957_s9 = smov %s1626_s10 }
  0x83   : > { %p9_p6 = scmp.ge.s32.totalorder %s12_s11, 4   ;;  %s1958_s10 = smov %s1960_s12 }
  0x85   :  { %11 = sbr.rel (!%p9_p6) target bundleno = 2 (0x2), region = 61 }

// kernel: _lambda_.12
= control target key start
LH: loop header
LB: loop body
LE: loop exit
PB: predicated region body
PF: predicated region fallthrough
CT: control target
= control target key end

     0   :  { %s2229_s15 = smov 0   ;;  %s2231_s16 = smov 0   ;;  %s2639_s0 = inlined_call_operand.vmem [shape: bf16[2,512,36], index: 0, kind: input, shape index: {}]   ;;  %s2640_s1 = inlined_call_operand.vmem [shape: bf16[2,36,128], index: 1, kind: input, shape index: {}]   ;;  %s2641_s2 = inlined_call_operand.vmem [shape: f32[2,1,128], index: 2, kind: input, shape index: {}]   ;;  %s2642_s3 = inlined_call_operand.vmem [shape: bf16[2,512,128], index: 3, kind: output, shape index: {0}]   ;;  %s2643_s4 = inlined_call_operand.vmem [shape: f32[2,1,2,128], index: 4, kind: output, shape index: {1}]  }
   0x1   :  { %s2233_s17 = smov 0  }
   0x2 LB: > { %s27_s18 = sadd.s32 1, %s2198_s16  ;;  %p1609_p0 = scmp.ge.s32.totalorder %s2202_s17, 1  ;;  %s2202_s17 = sphi %s2233_s17, %s15_s17   ;;  %s2198_s16 = sphi %s2231_s16, %s2645_s16   ;;  %s2194_s15 = sphi %s2229_s15, %s2644_s15  }
   0x3   : > { %p29_p1 = scmp.ge.s32.totalorder %s27_s18, 2  ;;  %p206_p2 = scmp.lt.s32.totalorder %s2202_s17, 3 }
   0x5   : > { %s2647_s18 = smov (%p29_p1, %s27_s18), 0  ;;  %p207_p3 = pnand %p1609_p0, %p206_p2 }
   0x6   : > { %p256_p4 = scmp.lt.s32.totalorder (!%p207_p3), %s2194_s15, 1  ;;  %vm542_vm0 = vcmask (!%p207_p3), 293888   ;;  %vm639_vm1 = vcmask (!%p207_p3), 1041408  }
   0x7   : > { %210 = sbr.rel (%p207_p3) target bundleno = 389 (0x185), region = 32 }
   0xe   : > { %s2649_s15 = smov (!%p256_p4, %s2194_s15), 1 }
   0xf   : > { %s1750_s19 = sshll.u32 %s2649_s15, 8  ;;  %s2120_s20 = smul.u32 20, %s2649_s15 }
  0x10   : > { %s2256_s23 = scalar_lea.vmem %s2639_s0, %s1750_s19  ;;  %s272_s29 = scalar_lea.vmem %s2641_s2, %s2649_s15 }
  0x11   : > { %s269_s26 = scalar_lea.vmem %s2640_s1, %s2120_s20  ;;  %v2148_v3 = vld [vmem:[%s2256_s23] sm:$0xff]   ;;  %v2149_v5 = vld [vmem:[%s2256_s23 + $0x8] sm:$0xff]   ;;  %v2150_v6 = vld [vmem:[%s2256_s23 + $0x10] sm:$0xff]   ;;  %s2339_s6 = scalar_lea.vmem %s2642_s3, %s1750_s19 }
  0x12   : > { %v2145_v0 = vld [vmem:[%s269_s26] sm:$0xff]   ;;  %v2146_v1 = vld [vmem:[%s269_s26 + $0x8] sm:$0xff]   ;;  %v2147_v2 = vld [vmem:[%s269_s26 + $0x10] ss:$0 sps:$4 sm:$0x33]   ;;  %2048 = vmatprep.mubr.msk.bf16.mxu0 %vm542_vm0, %v2148_v3  ;;  %s1615_s7 = sshll.u32 %s2649_s15, 1 }
  0x13   : > { %2042 = vmatprep.subr.bf16.mxu0 %v2145_v0  ;;  %2112 = vmatprep.subr.bf16.mxu1 %v2145_v0  ;;  %v641_v4 = vsel %vm639_vm1, %v2147_v2, 0  ;;  %v2151_v7 = vld [vmem:[%s2256_s23 + $0x18] sm:$0xff]   ;;  %v2152_v8 = vld [vmem:[%s2256_s23 + $0x20] sm:$0xff]   ;;  %v2165_v10 = vld [vmem:[%s2256_s23 + $0x88] sm:$0xff]   ;;  %s289_s10 = scalar_lea.vmem %s2643_s4, %s1615_s7 }
  0x14   : > { %2043 = vmatpush3.bf16.msra.mxu0 %v2145_v0  ;;  %2115 = vmatpush3.bf16.msra.mxu1 %v2145_v0  ;;  %v2164_v9 = vld [vmem:[%s2256_s23 + $0x80] sm:$0xff]   ;;  %v2166_v11 = vld [vmem:[%s2256_s23 + $0x90] sm:$0xff]   ;;  %v2153_v12 = vld [vmem:[%s2256_s23 + $0x28] sm:$0xff]  }
  0x15   : > { %2044 = vmatprep.subr.bf16.mxu0 %v2146_v1  ;;  %2113 = vmatprep.subr.bf16.mxu1 %v2146_v1  ;;  %v2167_v13 = vld [vmem:[%s2256_s23 + $0x98] sm:$0xff]   ;;  %v2168_v14 = vld [vmem:[%s2256_s23 + $0xa0] sm:$0xff]   ;;  %v2154_v15 = vld [vmem:[%s2256_s23 + $0x30] sm:$0xff]  }
  0x16   : > { %2080 = vmatprep.mubr.msk.bf16.mxu1 %vm542_vm0, %v2164_v9  ;;  %v2169_v16 = vld [vmem:[%s2256_s23 + $0xa8] sm:$0xff]   ;;  %v2155_v17 = vld [vmem:[%s2256_s23 + $0x38] sm:$0xff]   ;;  %v2170_v18 = vld [vmem:[%s2256_s23 + $0xb0] sm:$0xff]  }
  0x17   : > { %v2156_v19 = vld [vmem:[%s2256_s23 + $0x40] sm:$0xff]   ;;  %v2171_v20 = vld [vmem:[%s2256_s23 + $0xb8] sm:$0xff]   ;;  %v2157_v21 = vld [vmem:[%s2256_s23 + $0x48] sm:$0xff]  }
  0x18   : > { %2045 = vmatpush3.bf16.msra.mxu0 %v2146_v1  ;;  %2116 = vmatpush3.bf16.msra.mxu1 %v2146_v1  ;;  %v2172_v22 = vld [vmem:[%s2256_s23 + $0xc0] sm:$0xff]   ;;  %v2158_v23 = vld [vmem:[%s2256_s23 + $0x50] sm:$0xff]   ;;  %v2173_v24 = vld [vmem:[%s2256_s23 + $0xc8] sm:$0xff]  }
  0x19   : > { %2118 = vmatprep.subr.msk.bf16.mxu0 %vm639_vm1, %v2147_v2  ;;  %2119 = vmatprep.subr.msk.bf16.mxu1 %vm639_vm1, %v2147_v2  ;;  %v2159_v25 = vld [vmem:[%s2256_s23 + $0x58] sm:$0xff]   ;;  %v2174_v26 = vld [vmem:[%s2256_s23 + $0xd0] sm:$0xff]   ;;  %v2160_v27 = vld [vmem:[%s2256_s23 + $0x60] sm:$0xff]  }
  0x1a   : > { %v2175_v28 = vld [vmem:[%s2256_s23 + $0xd8] sm:$0xff]   ;;  %v2161_v29 = vld [vmem:[%s2256_s23 + $0x68] sm:$0xff]   ;;  %v2176_v30 = vld [vmem:[%s2256_s23 + $0xe0] sm:$0xff]  }
  0x1b   : > { %v2162_v31 = vld [vmem:[%s2256_s23 + $0x70] sm:$0xff]   ;;  %v2177_v32 = vld [vmem:[%s2256_s23 + $0xe8] sm:$0xff]   ;;  %v2163_v33 = vld [vmem:[%s2256_s23 + $0x78] sm:$0xff]  }
  0x1c   : > { %2047 = vmatpush3.bf16.msra.mxu0 %v641_v4  ;;  %2117 = vmatpush3.bf16.msra.mxu1 %v641_v4  ;;  %v2178_v34 = vld [vmem:[%s2256_s23 + $0xf0] sm:$0xff]   ;;  %v2179_v35 = vld [vmem:[%s2256_s23 + $0xf8] sm:$0xff]   ;;  %v2329_v36 = vld [vmem:[%s272_s29] ss:$0 sm:$0xff] }
  0x1f   : > { %2049 = vmatmul.mubr.msk.bf16.vlgmr.msra.gmra.mrb[0].mxu0 %vm542_vm0, %v2149_v5  ;;  %2081 = vmatmul.mubr.msk.bf16.vlgmr.msra.gmra.mrb[0].mxu1 %vm542_vm0, %v2165_v10 }
  0x20   : > { %2052 = vmatprep.mubr.msk.bf16.mxu0 %vm542_vm0, %v2150_v6  ;;  %2084 = vmatprep.mubr.msk.bf16.mxu1 %vm542_vm0, %v2166_v11 }
  0x27   : > { %2053 = vmatmul.mubr.msk.bf16.gmra.mrb[4].mxu0 %vm542_vm0, %v2151_v7  ;;  %2085 = vmatmul.mubr.msk.bf16.gmra.mrb[4].mxu1 %vm542_vm0, %v2167_v13 }
  0x28   : > { %2056 = vmatprep.mubr.msk.bf16.mxu0 %vm542_vm0, %v2152_v8  ;;  %2088 = vmatprep.mubr.msk.bf16.mxu1 %vm542_vm0, %v2168_v14 }
  0x2f   : > { %2057 = vmatmul.mubr.msk.bf16.gmra.mrb[8].mxu0 %vm542_vm0, %v2153_v12  ;;  %2089 = vmatmul.mubr.msk.bf16.gmra.mrb[8].mxu1 %vm542_vm0, %v2169_v16 }
  0x30   : > { %2060 = vmatprep.mubr.msk.bf16.mxu0 %vm542_vm0, %v2154_v15  ;;  %2092 = vmatprep.mubr.msk.bf16.mxu1 %vm542_vm0, %v2170_v18 }
  0x37   : > { %2061 = vmatmul.mubr.msk.bf16.gmra.mrb[12].mxu0 %vm542_vm0, %v2155_v17  ;;  %2093 = vmatmul.mubr.msk.bf16.gmra.mrb[12].mxu1 %vm542_vm0, %v2171_v20 }
  0x38   : > { %2064 = vmatprep.mubr.msk.bf16.mxu0 %vm542_vm0, %v2156_v19  ;;  %2096 = vmatprep.mubr.msk.bf16.mxu1 %vm542_vm0, %v2172_v22 }
  0x3f   : > { %2065 = vmatmul.mubr.msk.bf16.gmra.mrb[16].mxu0 %vm542_vm0, %v2157_v21  ;;  %2097 = vmatmul.mubr.msk.bf16.gmra.mrb[16].mxu1 %vm542_vm0, %v2173_v24 }
  0x40   : > { %2068 = vmatprep.mubr.msk.bf16.mxu0 %vm542_vm0, %v2158_v23  ;;  %2100 = vmatprep.mubr.msk.bf16.mxu1 %vm542_vm0, %v2174_v26 }
  0x47   : > { %2069 = vmatmul.mubr.msk.bf16.gmra.mrb[20].mxu0 %vm542_vm0, %v2159_v25  ;;  %2101 = vmatmul.mubr.msk.bf16.gmra.mrb[20].mxu1 %vm542_vm0, %v2175_v28 }
  0x48   : > { %2072 = vmatprep.mubr.msk.bf16.mxu0 %vm542_vm0, %v2160_v27  ;;  %2104 = vmatprep.mubr.msk.bf16.mxu1 %vm542_vm0, %v2176_v30 }
  0x4f   : > { %2073 = vmatmul.mubr.msk.bf16.gmra.mrb[24].mxu0 %vm542_vm0, %v2161_v29  ;;  %2105 = vmatmul.mubr.msk.bf16.gmra.mrb[24].mxu1 %vm542_vm0, %v2177_v32 }
  0x50   : > { %2076 = vmatprep.mubr.msk.bf16.mxu0 %vm542_vm0, %v2162_v31  ;;  %2108 = vmatprep.mubr.msk.bf16.mxu1 %vm542_vm0, %v2178_v34 }
  0x57   : > { %2077 = vmatmul.mubr.msk.bf16.gmra.mrb[28].mxu0 %vm542_vm0, %v2163_v33  ;;  %2109 = vmatmul.mubr.msk.bf16.gmra.mrb[28].mxu1 %vm542_vm0, %v2179_v35 }
  0xf2   : > { %v2050_v37 = vpop.f32.mrb[0].mxu0  ;;  %v2082_v50 = vpop.f32.mrb[0].mxu1 }
  0xf3   : > { %v677_v38 = vpop.f32.mrb[1].mxu0  ;;  %v686_v41 = vadd.f32 %v2050_v37, %v2329_v36  ;;  %v805_v55 = vpop.f32.mrb[1].mxu1  ;;  %v2345_v57 = vadd.f32 %v2082_v50, %v2329_v36 }
  0xf4   : > { %v678_v39 = vadd.f32 %v2329_v36, %v677_v38  ;;  %v2051_v40 = vpop.f32.mrb[2].mxu0  ;;  %v2083_v58 = vpop.f32.mrb[2].mxu1  ;;  %v2355_v10 = vadd.f32 %v2329_v36, %v805_v55 }
  0xf5   : > { %v689_v42 = vadd.f32 %v2051_v40, %v2329_v36  ;;  %v680_v43 = vpop.f32.mrb[3].mxu0  ;;  %v1324_v51 = vmul.f32 %v686_v41, %v686_v41  ;;  %v808_v0 = vpop.f32.mrb[3].mxu1  ;;  %v2351_v4 = vadd.f32 %v2083_v58, %v2329_v36 }
  0xf6   : > { %v681_v44 = vadd.f32 %v2329_v36, %v680_v43  ;;  %v1322_v46 = vmul.f32 %v678_v39, %v678_v39  ;;  %v2362_v16 = vadd.f32 %v2329_v36, %v808_v0 }
  0xf7   : > { %v1824_v45 = vpack.c.bf16 %v689_v42, %v686_v41  ;;  %v1325_v59 = vmul.f32 %v689_v42, %v689_v42  ;;  %v1904_v11 = vpack.c.bf16 %v2351_v4, %v2345_v57 }
  0xf8   : > { %v1819_v47 = vpack.c.bf16 %v681_v44, %v678_v39  ;;  %v1252_v48 = vadd.f32 %v681_v44, %v678_v39  ;;  %v1323_v49 = vmul.f32 %v681_v44, %v681_v44  ;;  %v1899_v24 = vpack.c.bf16 %v2362_v16, %v2355_v10 }
  0xf9   : > { %1976 = vst [vmem:[%s2339_s6 + $0x8] sm:$0xff] %v1824_v45   ;;  %1992 = vst [vmem:[%s2339_s6 + $0x88] sm:$0xff] %v1904_v11  }
  0xfa   : > { %1820 = vst [vmem:[%s2339_s6] sm:$0xff] %v1819_v47   ;;  %v1253_v52 = vadd.f32 %v1252_v48, %v686_v41  ;;  %v1386_v53 = vadd.f32 %v1323_v49, %v1322_v46  ;;  %v2054_v54 = vpop.f32.mrb[4].mxu0  ;;  %v2086_v17 = vpop.f32.mrb[4].mxu1  ;;  %1991 = vst [vmem:[%s2339_s6 + $0x80] sm:$0xff] %v1899_v24  }
  0xfb   : > { %v693_v56 = vpop.f32.mrb[5].mxu0  ;;  %v702_v1 = vadd.f32 %v2054_v54, %v2329_v36  ;;  %v821_v22 = vpop.f32.mrb[5].mxu1  ;;  %v2368_v25 = vadd.f32 %v2086_v17, %v2329_v36 }
  0xfc   : > { %v1387_v60 = vadd.f32 %v1386_v53, %v1324_v51  ;;  %v694_v61 = vadd.f32 %v2329_v36, %v693_v56  ;;  %v1254_v62 = vadd.f32 %v1253_v52, %v689_v42  ;;  %v2055_v63 = vpop.f32.mrb[6].mxu0  ;;  %v2087_v26 = vpop.f32.mrb[6].mxu1  ;;  %v2379_v43 = vadd.f32 %v2329_v36, %v821_v22 }
  0xfd   : > { %v705_v2 = vadd.f32 %v2055_v63, %v2329_v36  ;;  %v696_v3 = vpop.f32.mrb[7].mxu0  ;;  %v1328_v18 = vmul.f32 %v702_v1, %v702_v1  ;;  %v824_v32 = vpop.f32.mrb[7].mxu1  ;;  %v2375_v37 = vadd.f32 %v2087_v26, %v2329_v36 }
  0xfe   : > { %v1255_v5 = vadd.f32 %v1254_v62, %v694_v61  ;;  %v1326_v6 = vmul.f32 %v694_v61, %v694_v61  ;;  %v1388_v7 = vadd.f32 %v1387_v60, %v1325_v59  ;;  %v697_v8 = vadd.f32 %v2329_v36, %v696_v3 }
  0xff   : > { %v1834_v9 = vpack.c.bf16 %v705_v2, %v702_v1  ;;  %v1329_v27 = vmul.f32 %v705_v2, %v705_v2  ;;  %v1914_v44 = vpack.c.bf16 %v2375_v37, %v2368_v25  ;;  %v2386_v49 = vadd.f32 %v2329_v36, %v824_v32 }
 0x100   : > { %v1389_v12 = vadd.f32 %v1388_v7, %v1326_v6  ;;  %v1829_v13 = vpack.c.bf16 %v697_v8, %v694_v61  ;;  %v1256_v14 = vadd.f32 %v1255_v5, %v697_v8  ;;  %v1327_v15 = vmul.f32 %v697_v8, %v697_v8 }
 0x101   : > { %1978 = vst [vmem:[%s2339_s6 + $0x18] sm:$0xff] %v1834_v9   ;;  %1994 = vst [vmem:[%s2339_s6 + $0x98] sm:$0xff] %v1914_v44   ;;  %v1909_v58 = vpack.c.bf16 %v2386_v49, %v2379_v43 }
 0x102   : > { %1977 = vst [vmem:[%s2339_s6 + $0x10] sm:$0xff] %v1829_v13   ;;  %v1257_v19 = vadd.f32 %v1256_v14, %v702_v1  ;;  %v1390_v20 = vadd.f32 %v1389_v12, %v1327_v15  ;;  %v2058_v21 = vpop.f32.mrb[8].mxu0  ;;  %v2090_v50 = vpop.f32.mrb[8].mxu1 }
 0x103   : > { %v709_v23 = vpop.f32.mrb[9].mxu0  ;;  %v718_v33 = vadd.f32 %v2058_v21, %v2329_v36  ;;  %v837_v55 = vpop.f32.mrb[9].mxu1  ;;  %v2392_v59 = vadd.f32 %v2090_v50, %v2329_v36  ;;  %1993 = vst [vmem:[%s2339_s6 + $0x90] sm:$0xff] %v1909_v58  }
 0x104   : > { %v1391_v28 = vadd.f32 %v1390_v20, %v1328_v18  ;;  %v710_v29 = vadd.f32 %v2329_v36, %v709_v23  ;;  %v1258_v30 = vadd.f32 %v1257_v19, %v705_v2  ;;  %v2059_v31 = vpop.f32.mrb[10].mxu0  ;;  %v2091_v60 = vpop.f32.mrb[10].mxu1  ;;  %v2403_v14 = vadd.f32 %v2329_v36, %v837_v55 }
 0x105   : > { %v721_v34 = vadd.f32 %v2059_v31, %v2329_v36  ;;  %v712_v35 = vpop.f32.mrb[11].mxu0  ;;  %v1332_v51 = vmul.f32 %v718_v33, %v718_v33  ;;  %v840_v2 = vpop.f32.mrb[11].mxu1  ;;  %v2399_v7 = vadd.f32 %v2091_v60, %v2329_v36 }
 0x106   : > { %v1259_v38 = vadd.f32 %v1258_v30, %v710_v29  ;;  %v1330_v39 = vmul.f32 %v710_v29, %v710_v29  ;;  %v1392_v40 = vadd.f32 %v1391_v28, %v1329_v27  ;;  %v713_v41 = vadd.f32 %v2329_v36, %v712_v35 }
 0x107   : > { %v1844_v42 = vpack.c.bf16 %v721_v34, %v718_v33  ;;  %v1333_v61 = vmul.f32 %v721_v34, %v721_v34  ;;  %v1924_v15 = vpack.c.bf16 %v2399_v7, %v2392_v59  ;;  %v2410_v21 = vadd.f32 %v2329_v36, %v840_v2 }
 0x108   : > { %v1393_v45 = vadd.f32 %v1392_v40, %v1330_v39  ;;  %v1839_v46 = vpack.c.bf16 %v713_v41, %v710_v29  ;;  %v1260_v47 = vadd.f32 %v1259_v38, %v713_v41  ;;  %v1331_v48 = vmul.f32 %v713_v41, %v713_v41 }
 0x109   : > { %1980 = vst [vmem:[%s2339_s6 + $0x28] sm:$0xff] %v1844_v42   ;;  %1996 = vst [vmem:[%s2339_s6 + $0xa8] sm:$0xff] %v1924_v15   ;;  %v1919_v30 = vpack.c.bf16 %v2410_v21, %v2403_v14 }
 0x10a   : > { %1979 = vst [vmem:[%s2339_s6 + $0x20] sm:$0xff] %v1839_v46   ;;  %v1261_v52 = vadd.f32 %v1260_v47, %v718_v33  ;;  %v1394_v53 = vadd.f32 %v1393_v45, %v1331_v48  ;;  %v2062_v54 = vpop.f32.mrb[12].mxu0  ;;  %v2094_v22 = vpop.f32.mrb[12].mxu1 }
 0x10b   : > { %v725_v56 = vpop.f32.mrb[13].mxu0  ;;  %v734_v3 = vadd.f32 %v2062_v54, %v2329_v36  ;;  %v853_v28 = vpop.f32.mrb[13].mxu1  ;;  %v2416_v31 = vadd.f32 %v2094_v22, %v2329_v36  ;;  %1995 = vst [vmem:[%s2339_s6 + $0xa0] sm:$0xff] %v1919_v30  }
 0x10c   : > { %v1395_v62 = vadd.f32 %v1394_v53, %v1332_v51  ;;  %v726_v63 = vadd.f32 %v2329_v36, %v725_v56  ;;  %v1262_v0 = vadd.f32 %v1261_v52, %v721_v34  ;;  %v2063_v1 = vpop.f32.mrb[14].mxu0  ;;  %v2095_v32 = vpop.f32.mrb[14].mxu1  ;;  %v2427_v52 = vadd.f32 %v2329_v36, %v853_v28 }
 0x10d   : > { %v737_v5 = vadd.f32 %v2063_v1, %v2329_v36  ;;  %v728_v6 = vpop.f32.mrb[15].mxu0  ;;  %v1336_v23 = vmul.f32 %v734_v3, %v734_v3  ;;  %v856_v40 = vpop.f32.mrb[15].mxu1  ;;  %v2423_v45 = vadd.f32 %v2095_v32, %v2329_v36 }
 0x10e   : > { %v1263_v8 = vadd.f32 %v1262_v0, %v726_v63  ;;  %v1334_v9 = vmul.f32 %v726_v63, %v726_v63  ;;  %v1396_v11 = vadd.f32 %v1395_v62, %v1333_v61  ;;  %v729_v12 = vadd.f32 %v2329_v36, %v728_v6 }
 0x10f   : > { %v1854_v13 = vpack.c.bf16 %v737_v5, %v734_v3  ;;  %v1337_v33 = vmul.f32 %v737_v5, %v737_v5  ;;  %v1934_v53 = vpack.c.bf16 %v2423_v45, %v2416_v31  ;;  %v2434_v60 = vadd.f32 %v2329_v36, %v856_v40 }
 0x110   : > { %v1397_v17 = vadd.f32 %v1396_v11, %v1334_v9  ;;  %v1849_v18 = vpack.c.bf16 %v729_v12, %v726_v63  ;;  %v1264_v19 = vadd.f32 %v1263_v8, %v729_v12  ;;  %v1335_v20 = vmul.f32 %v729_v12, %v729_v12 }
 0x111   : > { %1982 = vst [vmem:[%s2339_s6 + $0x38] sm:$0xff] %v1854_v13   ;;  %1998 = vst [vmem:[%s2339_s6 + $0xb8] sm:$0xff] %v1934_v53  }
 0x112   : > { %1981 = vst [vmem:[%s2339_s6 + $0x30] sm:$0xff] %v1849_v18   ;;  %v1265_v24 = vadd.f32 %v1264_v19, %v734_v3  ;;  %v1398_v26 = vadd.f32 %v1397_v17, %v1335_v20  ;;  %v2066_v27 = vpop.f32.mrb[16].mxu0  ;;  %v2098_v61 = vpop.f32.mrb[16].mxu1 }
 0x113   : > { %v741_v29 = vpop.f32.mrb[17].mxu0  ;;  %v750_v41 = vadd.f32 %v2066_v27, %v2329_v36  ;;  %v869_v2 = vpop.f32.mrb[17].mxu1  ;;  %v2440_v6 = vadd.f32 %v2098_v61, %v2329_v36 }
 0x114   : > { %v1399_v34 = vadd.f32 %v1398_v26, %v1336_v23  ;;  %v742_v35 = vadd.f32 %v2329_v36, %v741_v29  ;;  %v1266_v38 = vadd.f32 %v1265_v24, %v737_v5  ;;  %v2067_v39 = vpop.f32.mrb[18].mxu0  ;;  %v1929_v5 = vpack.c.bf16 %v2434_v60, %v2427_v52  ;;  %v2099_v8 = vpop.f32.mrb[18].mxu1 }
 0x115   : > { %v753_v42 = vadd.f32 %v2067_v39, %v2329_v36  ;;  %v744_v44 = vpop.f32.mrb[19].mxu0  ;;  %v1340_v62 = vmul.f32 %v750_v41, %v750_v41  ;;  %v872_v17 = vpop.f32.mrb[19].mxu1  ;;  %v2447_v22 = vadd.f32 %v2099_v8, %v2329_v36  ;;  %v2451_v29 = vadd.f32 %v2329_v36, %v869_v2 }
 0x116   : > { %v1267_v46 = vadd.f32 %v1266_v38, %v742_v35  ;;  %v1338_v47 = vmul.f32 %v742_v35, %v742_v35  ;;  %v1400_v48 = vadd.f32 %v1399_v34, %v1337_v33  ;;  %v745_v50 = vadd.f32 %v2329_v36, %v744_v44  ;;  %1997 = vst [vmem:[%s2339_s6 + $0xb0] sm:$0xff] %v1929_v5  }
 0x117   : > { %v1864_v51 = vpack.c.bf16 %v753_v42, %v750_v41  ;;  %v1341_v9 = vmul.f32 %v753_v42, %v753_v42  ;;  %v1944_v30 = vpack.c.bf16 %v2447_v22, %v2440_v6  ;;  %v2458_v38 = vadd.f32 %v2329_v36, %v872_v17 }
 0x118   : > { %v1401_v54 = vadd.f32 %v1400_v48, %v1338_v47  ;;  %v1859_v55 = vpack.c.bf16 %v745_v50, %v742_v35  ;;  %v1268_v56 = vadd.f32 %v1267_v46, %v745_v50  ;;  %v1339_v58 = vmul.f32 %v745_v50, %v745_v50 }
 0x119   : > { %1984 = vst [vmem:[%s2339_s6 + $0x48] sm:$0xff] %v1864_v51   ;;  %2000 = vst [vmem:[%s2339_s6 + $0xc8] sm:$0xff] %v1944_v30   ;;  %v1939_v48 = vpack.c.bf16 %v2458_v38, %v2451_v29 }
 0x11a   : > { %1983 = vst [vmem:[%s2339_s6 + $0x40] sm:$0xff] %v1859_v55   ;;  %v1269_v63 = vadd.f32 %v1268_v56, %v750_v41  ;;  %v1402_v0 = vadd.f32 %v1401_v54, %v1339_v58  ;;  %v2070_v1 = vpop.f32.mrb[20].mxu0  ;;  %v2102_v39 = vpop.f32.mrb[20].mxu1 }
 0x11b   : > { %v757_v3 = vpop.f32.mrb[21].mxu0  ;;  %v766_v18 = vadd.f32 %v2070_v1, %v2329_v36  ;;  %v885_v46 = vpop.f32.mrb[21].mxu1  ;;  %v2464_v50 = vadd.f32 %v2102_v39, %v2329_v36  ;;  %1999 = vst [vmem:[%s2339_s6 + $0xc0] sm:$0xff] %v1939_v48  }
 0x11c   : > { %v1403_v11 = vadd.f32 %v1402_v0, %v1340_v62  ;;  %v758_v12 = vadd.f32 %v2329_v36, %v757_v3  ;;  %v1270_v13 = vadd.f32 %v1269_v63, %v753_v42  ;;  %v2071_v15 = vpop.f32.mrb[22].mxu0  ;;  %v2103_v51 = vpop.f32.mrb[22].mxu1 }
 0x11d   : > { %v769_v19 = vadd.f32 %v2071_v15, %v2329_v36  ;;  %v760_v20 = vpop.f32.mrb[23].mxu0  ;;  %v1344_v40 = vmul.f32 %v766_v18, %v766_v18  ;;  %v888_v61 = vpop.f32.mrb[23].mxu1  ;;  %v2471_v1 = vadd.f32 %v2103_v51, %v2329_v36 }
 0x11e   : > { %v1271_v23 = vadd.f32 %v1270_v13, %v758_v12  ;;  %v1342_v24 = vmul.f32 %v758_v12, %v758_v12  ;;  %v1404_v26 = vadd.f32 %v1403_v11, %v1341_v9  ;;  %v761_v27 = vadd.f32 %v2329_v36, %v760_v20 }
 0x11f   : > { %v1874_v28 = vpack.c.bf16 %v769_v19, %v766_v18  ;;  %v1345_v53 = vmul.f32 %v769_v19, %v769_v19  ;;  %v2475_v11 = vadd.f32 %v2329_v36, %v885_v46 }
 0x120   : > { %v1405_v32 = vadd.f32 %v1404_v26, %v1342_v24  ;;  %v1869_v33 = vpack.c.bf16 %v761_v27, %v758_v12  ;;  %v1272_v34 = vadd.f32 %v1271_v23, %v761_v27  ;;  %v1343_v35 = vmul.f32 %v761_v27, %v761_v27 }
 0x121   : > { %1986 = vst [vmem:[%s2339_s6 + $0x58] sm:$0xff] %v1874_v28   ;;  %v1954_v12 = vpack.c.bf16 %v2471_v1, %v2464_v50 }
 0x122   : > { %1985 = vst [vmem:[%s2339_s6 + $0x50] sm:$0xff] %v1869_v33   ;;  %v1273_v41 = vadd.f32 %v1272_v34, %v766_v18  ;;  %v1406_v42 = vadd.f32 %v1405_v32, %v1343_v35  ;;  %v2074_v44 = vpop.f32.mrb[24].mxu0  ;;  %v2106_v20 = vpop.f32.mrb[24].mxu1 }
 0x123   : > { %v773_v47 = vpop.f32.mrb[25].mxu0  ;;  %v782_v62 = vadd.f32 %v2074_v44, %v2329_v36  ;;  %2002 = vst [vmem:[%s2339_s6 + $0xd8] sm:$0xff] %v1954_v12   ;;  %v901_v28 = vpop.f32.mrb[25].mxu1  ;;  %v2488_v33 = vadd.f32 %v2106_v20, %v2329_v36 }
 0x124   : > { %v1407_v54 = vadd.f32 %v1406_v42, %v1344_v40  ;;  %v774_v55 = vadd.f32 %v2329_v36, %v773_v47  ;;  %v1274_v56 = vadd.f32 %v1273_v41, %v769_v19  ;;  %v2075_v58 = vpop.f32.mrb[26].mxu0  ;;  %v2482_v19 = vadd.f32 %v2329_v36, %v888_v61  ;;  %v2107_v34 = vpop.f32.mrb[26].mxu1 }
 0x125   : > { %v785_v63 = vadd.f32 %v2075_v58, %v2329_v36  ;;  %v776_v0 = vpop.f32.mrb[27].mxu0  ;;  %v1348_v23 = vmul.f32 %v782_v62, %v782_v62  ;;  %v904_v44 = vpop.f32.mrb[27].mxu1  ;;  %v2495_v51 = vadd.f32 %v2107_v34, %v2329_v36  ;;  %v2499_v61 = vadd.f32 %v2329_v36, %v901_v28 }
 0x126   : > { %v1275_v2 = vadd.f32 %v1274_v56, %v774_v55  ;;  %v1346_v3 = vmul.f32 %v774_v55, %v774_v55  ;;  %v1408_v5 = vadd.f32 %v1407_v54, %v1345_v53  ;;  %v777_v8 = vadd.f32 %v2329_v36, %v776_v0 }
 0x127   : > { %v1884_v9 = vpack.c.bf16 %v785_v63, %v782_v62  ;;  %v1949_v32 = vpack.c.bf16 %v2482_v19, %v2475_v11  ;;  %v1349_v35 = vmul.f32 %v785_v63, %v785_v63 }
 0x128   : > { %v1409_v13 = vadd.f32 %v1408_v5, %v1346_v3  ;;  %v1879_v15 = vpack.c.bf16 %v777_v8, %v774_v55  ;;  %v1276_v17 = vadd.f32 %v1275_v2, %v777_v8  ;;  %v1347_v18 = vmul.f32 %v777_v8, %v777_v8 }
 0x129   : > { %1988 = vst [vmem:[%s2339_s6 + $0x68] sm:$0xff] %v1884_v9   ;;  %2001 = vst [vmem:[%s2339_s6 + $0xd0] sm:$0xff] %v1949_v32   ;;  %v2506_v5 = vadd.f32 %v2329_v36, %v904_v44 }
 0x12a   : > { %1987 = vst [vmem:[%s2339_s6 + $0x60] sm:$0xff] %v1879_v15   ;;  %v1277_v24 = vadd.f32 %v1276_v17, %v782_v62  ;;  %v1410_v26 = vadd.f32 %v1409_v13, %v1347_v18  ;;  %v2078_v27 = vpop.f32.mrb[28].mxu0  ;;  %v1964_v62 = vpack.c.bf16 %v2495_v51, %v2488_v33  ;;  %v2110_v8 = vpop.f32.mrb[28].mxu1  ;;  %v1354_v18 = vmul.f32 %v2355_v10, %v2355_v10 }
 0x12b   : > { %v789_v30 = vpop.f32.mrb[29].mxu0  ;;  %v798_v46 = vadd.f32 %v2078_v27, %v2329_v36  ;;  %v2510_v15 = vadd.f32 %v2110_v8, %v2329_v36  ;;  %v917_v17 = vpop.f32.mrb[29].mxu1  ;;  %v1959_v20 = vpack.c.bf16 %v2506_v5, %v2499_v61 }
 0x12c   : > { %v1411_v39 = vadd.f32 %v1410_v26, %v1348_v23  ;;  %v790_v40 = vadd.f32 %v2329_v36, %v789_v30  ;;  %v1278_v41 = vadd.f32 %v1277_v24, %v785_v63  ;;  %v2079_v42 = vpop.f32.mrb[30].mxu0  ;;  %2004 = vst [vmem:[%s2339_s6 + $0xe8] sm:$0xff] %v1964_v62   ;;  %v2517_v23 = vadd.f32 %v2329_v36, %v917_v17  ;;  %v2111_v24 = vpop.f32.mrb[30].mxu1 }
 0x12d   : > { %v801_v47 = vadd.f32 %v2079_v42, %v2329_v36  ;;  %v792_v48 = vpop.f32.mrb[31].mxu0  ;;  %v1352_v9 = vmul.f32 %v798_v46, %v798_v46  ;;  %v2520_v30 = vadd.f32 %v2111_v24, %v2329_v36  ;;  %v920_v32 = vpop.f32.mrb[31].mxu1  ;;  %2003 = vst [vmem:[%s2339_s6 + $0xe0] sm:$0xff] %v1959_v20   ;;  %v1363_v17 = vmul.f32 %v2410_v21, %v2410_v21 }
 0x12e   : > { %v1279_v53 = vadd.f32 %v1278_v41, %v790_v40  ;;  %v1350_v54 = vmul.f32 %v790_v40, %v790_v40  ;;  %v1412_v55 = vadd.f32 %v1411_v39, %v1349_v35  ;;  %v793_v56 = vadd.f32 %v2329_v36, %v792_v48 }
 0x12f   : > { %v1894_v58 = vpack.c.bf16 %v801_v47, %v798_v46  ;;  %v1353_v26 = vmul.f32 %v801_v47, %v801_v47  ;;  %v2524_v34 = vadd.f32 %v2329_v36, %v920_v32  ;;  %v1356_v36 = vmul.f32 %v2345_v57, %v2345_v57 }
 0x130   : > { %v1413_v63 = vadd.f32 %v1412_v55, %v1350_v54  ;;  %v1889_v0 = vpack.c.bf16 %v793_v56, %v790_v40  ;;  %v1280_v2 = vadd.f32 %v1279_v53, %v793_v56  ;;  %v1351_v3 = vmul.f32 %v793_v56, %v793_v56 }
 0x131   : > { %1990 = vst [vmem:[%s2339_s6 + $0x78] sm:$0xff] %v1894_v58   ;;  %v1974_v40 = vpack.c.bf16 %v2520_v30, %v2510_v15  ;;  %v1969_v41 = vpack.c.bf16 %v2524_v34, %v2517_v23  ;;  %v1357_v48 = vmul.f32 %v2351_v4, %v2351_v4  ;;  %v1358_v55 = vmul.f32 %v2379_v43, %v2379_v43 }
 0x132   : > { %1989 = vst [vmem:[%s2339_s6 + $0x70] sm:$0xff] %v1889_v0   ;;  %v1281_v12 = vadd.f32 %v1280_v2, %v798_v46  ;;  %v1414_v13 = vadd.f32 %v1413_v63, %v1351_v3  ;;  %v1355_v46 = vmul.f32 %v2362_v16, %v2362_v16  ;;  %v1359_v63 = vmul.f32 %v2386_v49, %v2386_v49 }
 0x133   : > { %2006 = vst [vmem:[%s2339_s6 + $0xf8] sm:$0xff] %v1974_v40   ;;  %2005 = vst [vmem:[%s2339_s6 + $0xf0] sm:$0xff] %v1969_v41  }
 0x134   : > { %v1415_v27 = vadd.f32 %v1414_v13, %v1352_v9  ;;  %v1282_v28 = vadd.f32 %v1281_v12, %v801_v47 }
 0x136   : > { %v1283_v35 = vadd.f32 %v1282_v28, %v2355_v10  ;;  %v1416_v39 = vadd.f32 %v1415_v27, %v1353_v26 }
 0x138   : > { %v1417_v42 = vadd.f32 %v1416_v39, %v1354_v18  ;;  %v1284_v44 = vadd.f32 %v1283_v35, %v2362_v16  ;;  %v1367_v35 = vmul.f32 %v2434_v60, %v2434_v60 }
 0x13a   : > { %v1285_v10 = vadd.f32 %v1284_v44, %v2345_v57  ;;  %v1418_v47 = vadd.f32 %v1417_v42, %v1355_v46  ;;  %v1360_v57 = vmul.f32 %v2368_v25, %v2368_v25 }
 0x13c   : > { %v1419_v53 = vadd.f32 %v1418_v47, %v1356_v36  ;;  %v1286_v54 = vadd.f32 %v1285_v10, %v2351_v4  ;;  %v1361_v4 = vmul.f32 %v2375_v37, %v2375_v37  ;;  %v1371_v10 = vmul.f32 %v2458_v38, %v2458_v38 }
 0x13e   : > { %v1287_v56 = vadd.f32 %v1286_v54, %v2379_v43  ;;  %v1420_v16 = vadd.f32 %v1419_v53, %v1357_v48  ;;  %v1362_v43 = vmul.f32 %v2403_v14, %v2403_v14 }
 0x140   : > { %v1421_v58 = vadd.f32 %v1420_v16, %v1358_v55  ;;  %v1288_v62 = vadd.f32 %v1287_v56, %v2386_v49 }
 0x142   : > { %v1289_v0 = vadd.f32 %v1288_v62, %v2368_v25  ;;  %v1422_v2 = vadd.f32 %v1421_v58, %v1359_v63  ;;  %v1364_v25 = vmul.f32 %v2392_v59, %v2392_v59  ;;  %v1375_v58 = vmul.f32 %v2482_v19, %v2482_v19 }
 0x144   : > { %v1423_v3 = vadd.f32 %v1422_v2, %v1360_v57  ;;  %v1290_v8 = vadd.f32 %v1289_v0, %v2375_v37  ;;  %v1365_v37 = vmul.f32 %v2399_v7, %v2399_v7 }
 0x146   : > { %v1291_v9 = vadd.f32 %v1290_v8, %v2403_v14  ;;  %v1424_v12 = vadd.f32 %v1423_v3, %v1361_v4  ;;  %v1366_v14 = vmul.f32 %v2427_v52, %v2427_v52  ;;  %v1379_v8 = vmul.f32 %v2506_v5, %v2506_v5 }
 0x148   : > { %v1425_v13 = vadd.f32 %v1424_v12, %v1362_v43  ;;  %v1292_v49 = vadd.f32 %v1291_v9, %v2410_v21 }
 0x14a   : > { %v1293_v18 = vadd.f32 %v1292_v49, %v2392_v59  ;;  %v1426_v20 = vadd.f32 %v1425_v13, %v1363_v17  ;;  %v1368_v59 = vmul.f32 %v2416_v31, %v2416_v31 }
 0x14c   : > { %v1427_v24 = vadd.f32 %v1426_v20, %v1364_v25  ;;  %v1294_v26 = vadd.f32 %v1293_v18, %v2399_v7  ;;  %v1369_v7 = vmul.f32 %v2423_v45, %v2423_v45  ;;  %v1384_v18 = vmul.f32 %v2510_v15, %v2510_v15 }
 0x14e   : > { %v1295_v27 = vadd.f32 %v1294_v26, %v2427_v52  ;;  %v1428_v28 = vadd.f32 %v1427_v24, %v1365_v37  ;;  %v1370_v52 = vmul.f32 %v2451_v29, %v2451_v29 }
 0x150   : > { %v1429_v32 = vadd.f32 %v1428_v28, %v1366_v14  ;;  %v1296_v21 = vadd.f32 %v1295_v27, %v2434_v60 }
 0x152   : > { %v1297_v39 = vadd.f32 %v1296_v21, %v2416_v31  ;;  %v1430_v40 = vadd.f32 %v1429_v32, %v1367_v35  ;;  %v1372_v31 = vmul.f32 %v2440_v6, %v2440_v6 }
 0x154   : > { %v1431_v41 = vadd.f32 %v1430_v40, %v1368_v59  ;;  %v1298_v42 = vadd.f32 %v1297_v39, %v2423_v45  ;;  %v1373_v45 = vmul.f32 %v2447_v22, %v2447_v22 }
 0x156   : > { %v1299_v44 = vadd.f32 %v1298_v42, %v2451_v29  ;;  %v1432_v46 = vadd.f32 %v1431_v41, %v1369_v7  ;;  %v1374_v29 = vmul.f32 %v2475_v11, %v2475_v11 }
 0x158   : > { %v1433_v36 = vadd.f32 %v1432_v46, %v1370_v52  ;;  %v1300_v60 = vadd.f32 %v1299_v44, %v2458_v38 }
 0x15a   : > { %v1301_v47 = vadd.f32 %v1300_v60, %v2440_v6  ;;  %v1434_v48 = vadd.f32 %v1433_v36, %v1371_v10  ;;  %v1376_v6 = vmul.f32 %v2464_v50, %v2464_v50 }
 0x15c   : > { %v1435_v53 = vadd.f32 %v1434_v48, %v1372_v31  ;;  %v1302_v54 = vadd.f32 %v1301_v47, %v2447_v22  ;;  %v1377_v22 = vmul.f32 %v2471_v1, %v2471_v1 }
 0x15e   : > { %v1303_v55 = vadd.f32 %v1302_v54, %v2475_v11  ;;  %v1436_v56 = vadd.f32 %v1435_v53, %v1373_v45  ;;  %v1378_v11 = vmul.f32 %v2499_v61, %v2499_v61 }
 0x160   : > { %v1437_v16 = vadd.f32 %v1436_v56, %v1374_v29  ;;  %v1304_v38 = vadd.f32 %v1303_v55, %v2482_v19 }
 0x162   : > { %v1305_v62 = vadd.f32 %v1304_v38, %v2464_v50  ;;  %v1438_v63 = vadd.f32 %v1437_v16, %v1375_v58  ;;  %v1380_v50 = vmul.f32 %v2488_v33, %v2488_v33 }
 0x164   : > { %v1439_v57 = vadd.f32 %v1438_v63, %v1376_v6  ;;  %v1306_v0 = vadd.f32 %v1305_v62, %v2471_v1  ;;  %v1381_v1 = vmul.f32 %v2495_v51, %v2495_v51 }
 0x166   : > { %v1307_v2 = vadd.f32 %v1306_v0, %v2499_v61  ;;  %v1440_v4 = vadd.f32 %v1439_v57, %v1377_v22  ;;  %v1382_v61 = vmul.f32 %v2517_v23, %v2517_v23 }
 0x168   : > { %v1441_v3 = vadd.f32 %v1440_v4, %v1378_v11  ;;  %v1308_v19 = vadd.f32 %v1307_v2, %v2506_v5 }
 0x16a   : > { %v1309_v43 = vadd.f32 %v1308_v19, %v2488_v33  ;;  %v1442_v9 = vadd.f32 %v1441_v3, %v1379_v8  ;;  %v1383_v33 = vmul.f32 %v2524_v34, %v2524_v34 }
 0x16c   : > { %v1443_v12 = vadd.f32 %v1442_v9, %v1380_v50  ;;  %v1310_v13 = vadd.f32 %v1309_v43, %v2495_v51  ;;  %v1385_v51 = vmul.f32 %v2520_v30, %v2520_v30 }
 0x16e   : > { %v1311_v49 = vadd.f32 %v1310_v13, %v2517_v23  ;;  %v1444_v17 = vadd.f32 %v1443_v12, %v1381_v1 }
 0x170   : > { %v1445_v5 = vadd.f32 %v1444_v17, %v1382_v61  ;;  %v1312_v25 = vadd.f32 %v1311_v49, %v2524_v34 }
 0x172   : > { %v1313_v20 = vadd.f32 %v1312_v25, %v2510_v15  ;;  %v1446_v37 = vadd.f32 %v1445_v5, %v1383_v33 }
 0x174   : > { %v1314_v24 = vadd.f32 %v1313_v20, %v2520_v30  ;;  %v1447_v23 = vadd.f32 %v1446_v37, %v1384_v18 }
 0x176   : > { %v1315_v26 = vrot.slane %v1314_v24, 4  ;;  %v1448_v14 = vadd.f32 %v1447_v23, %v1385_v51 }
 0x178   : > { %v1316_v27 = vadd.f32 %v1315_v26, %v1314_v24  ;;  %v1449_v28 = vrot.slane %v1448_v14, 4 }
 0x17a   : > { %v1317_v32 = vrot.slane %v1316_v27, 2  ;;  %v1450_v21 = vadd.f32 %v1449_v28, %v1448_v14 }
 0x17c   : > { %v1318_v34 = vadd.f32 %v1317_v32, %v1316_v27  ;;  %v1451_v35 = vrot.slane %v1450_v21, 2 }
 0x17e   : > { %v1319_v59 = vrot.slane %v1318_v34, 1  ;;  %v1452_v39 = vadd.f32 %v1451_v35, %v1450_v21 }
 0x180   : > { %v1320_v15 = vadd.f32 %v1319_v59, %v1318_v34  ;;  %v1453_v40 = vrot.slane %v1452_v39, 1 }
 0x182   : > { %1321 = vst [vmem:[%s289_s10] sm:$0x1] %v1320_v15  ;;  %v1454_v30 = vadd.f32 %v1453_v40, %v1452_v39 }
 0x184   : > { %1455 = vst [vmem:[%s289_s10 + $0x1] sm:$0x1] %v1454_v30 }
 0x185 PF: > { %s15_s17 = sadd.s32 1, %s2202_s17   ;;  %s2644_s15 = smov %s2198_s16 }
 0x186   : > { %p12_p5 = scmp.ge.s32.totalorder %s15_s17, 4   ;;  %s2645_s16 = smov %s2647_s18 }
 0x188   :  { %14 = sbr.rel (!%p12_p5) target bundleno = 2 (0x2), region = 80 }

// kernel: _lambda_.13
= control target key start
LH: loop header
LB: loop body
LE: loop exit
PB: predicated region body
PF: predicated region fallthrough
CT: control target
= control target key end

     0   :  { %s1785_s0 = inlined_call_operand.vmem [shape: bf16[2,512,128], index: 0, kind: input, shape index: {}]   ;;  %s1786_s1 = inlined_call_operand.vmem [shape: f32[1,3,128], index: 1, kind: input, shape index: {}]   ;;  %s1787_s2 = inlined_call_operand.vmem [shape: bf16[1,512,128], index: 2, kind: output, shape index: {}]  }
   0x1   :  { %v1307_v0 = vld [vmem:[%s1785_s0 + $0x100] sm:$0xff]   ;;  %v1308_v4 = vld [vmem:[%s1785_s0 + $0x108] sm:$0xff]   ;;  %v1309_v5 = vld [vmem:[%s1785_s0 + $0x110] sm:$0xff]  }
   0x2   :  { %v1391_v1 = vld [vmem:[%s1786_s1] ss:$0 sm:$0xff]  ;;  %v1021_v2 = vunpack.c.l.bf16 %v1307_v0  ;;  %v1022_v3 = vunpack.c.h.bf16 %v1307_v0  ;;  %v1402_v6 = vld [vmem:[%s1786_s1 + $0x1] ss:$0 sm:$0xff]  ;;  %v1025_v7 = vunpack.c.l.bf16 %v1308_v4  ;;  %v1026_v8 = vunpack.c.h.bf16 %v1308_v4  ;;  %v1310_v11 = vld [vmem:[%s1785_s0 + $0x118] sm:$0xff]  }
   0x3   :  { %v1029_v9 = vunpack.c.l.bf16 %v1309_v5  ;;  %v1030_v10 = vunpack.c.h.bf16 %v1309_v5  ;;  %v1033_v14 = vunpack.c.l.bf16 %v1310_v11  ;;  %v1034_v15 = vunpack.c.h.bf16 %v1310_v11  ;;  %v1412_v16 = vld [vmem:[%s1786_s1 + $0x2] ss:$0 sm:$0xff]  ;;  %v1312_v36 = vld [vmem:[%s1785_s0 + $0x128] sm:$0xff]   ;;  %v1313_v49 = vld [vmem:[%s1785_s0 + $0x130] sm:$0xff]  }
   0x4   :  { %v164_v12 = vmul.f32 %v1021_v2, %v1391_v1  ;;  %v165_v13 = vmul.f32 %v1022_v3, %v1391_v1  ;;  %v166_v17 = vmul.f32 %v1025_v7, %v1391_v1  ;;  %v167_v18 = vmul.f32 %v1026_v8, %v1391_v1  ;;  %v1311_v35 = vld [vmem:[%s1785_s0 + $0x120] sm:$0xff]   ;;  %v1314_v5 = vld [vmem:[%s1785_s0 + $0x138] sm:$0xff]  }
   0x5   :  { %v168_v19 = vmul.f32 %v1029_v9, %v1391_v1  ;;  %v169_v20 = vmul.f32 %v1030_v10, %v1391_v1  ;;  %v170_v23 = vmul.f32 %v1033_v14, %v1391_v1  ;;  %v171_v24 = vmul.f32 %v1034_v15, %v1391_v1 }
   0x6   :  { %v233_v21 = vadd.f32 %v1402_v6, %v164_v12  ;;  %v234_v22 = vadd.f32 %v1402_v6, %v165_v13  ;;  %v235_v25 = vadd.f32 %v1402_v6, %v166_v17  ;;  %v236_v26 = vadd.f32 %v1402_v6, %v167_v18  ;;  %v1315_v17 = vld [vmem:[%s1785_s0 + $0x140] sm:$0xff]  }
   0x7   :  { %v237_v27 = vadd.f32 %v1402_v6, %v168_v19  ;;  %v238_v28 = vadd.f32 %v1402_v6, %v169_v20  ;;  %v239_v43 = vadd.f32 %v1402_v6, %v170_v23  ;;  %v240_v44 = vadd.f32 %v1402_v6, %v171_v24 }
   0x8   :  { %vm297_vm0 = vcmp.ge.f32.partialorder %v233_v21, 0.0  ;;  %vm298_vm1 = vcmp.ge.f32.partialorder %v234_v22, 0.0  ;;  %v366_v29 = vmul.f32 %v1412_v16, %v233_v21  ;;  %v367_v30 = vmul.f32 %v1412_v16, %v234_v22 }
   0x9   :  { %vm299_vm2 = vcmp.ge.f32.partialorder %v235_v25, 0.0  ;;  %vm300_vm3 = vcmp.ge.f32.partialorder %v236_v26, 0.0  ;;  %v368_v31 = vmul.f32 %v1412_v16, %v235_v25  ;;  %v369_v32 = vmul.f32 %v1412_v16, %v236_v26 }
   0xa   :  { %v430_v33 = vsel %vm297_vm0, %v233_v21, %v366_v29  ;;  %v431_v34 = vsel %vm298_vm1, %v234_v22, %v367_v30  ;;  %vm301_vm4 = vcmp.ge.f32.partialorder %v237_v27, 0.0  ;;  %vm302_vm5 = vcmp.ge.f32.partialorder %v238_v28, 0.0  ;;  %v1317_v29 = vld [vmem:[%s1785_s0 + $0x150] sm:$0xff]  }
   0xb   :  { %v1150_v37 = vpack.c.bf16 %v431_v34, %v430_v33  ;;  %v432_v38 = vsel %vm299_vm2, %v235_v25, %v368_v31  ;;  %v433_v39 = vsel %vm300_vm3, %v236_v26, %v369_v32  ;;  %v370_v40 = vmul.f32 %v1412_v16, %v237_v27 }
   0xc   :  { %v1155_v41 = vpack.c.bf16 %v433_v39, %v432_v38  ;;  %v371_v42 = vmul.f32 %v1412_v16, %v238_v28  ;;  %v1037_v46 = vunpack.c.l.bf16 %v1311_v35  ;;  %v1038_v47 = vunpack.c.h.bf16 %v1311_v35 }
   0xd   :  { %1151 = vst [vmem:[%s1787_s2] sm:$0xff] %v1150_v37   ;;  %v434_v45 = vsel %vm301_vm4, %v237_v27, %v370_v40  ;;  %v1041_v48 = vunpack.c.l.bf16 %v1312_v36  ;;  %vm303_vm6 = vcmp.ge.f32.partialorder %v239_v43, 0.0  ;;  %vm304_vm7 = vcmp.ge.f32.partialorder %v240_v44, 0.0 }
   0xe   :  { %1339 = vst [vmem:[%s1787_s2 + $0x8] sm:$0xff] %v1155_v41   ;;  %v435_v50 = vsel %vm302_vm5, %v238_v28, %v371_v42  ;;  %v372_v51 = vmul.f32 %v1412_v16, %v239_v43  ;;  %v373_v53 = vmul.f32 %v1412_v16, %v240_v44  ;;  %v172_v54 = vmul.f32 %v1037_v46, %v1391_v1  ;;  %v1316_v28 = vld [vmem:[%s1785_s0 + $0x148] sm:$0xff]  }
   0xf   :  { %v1160_v52 = vpack.c.bf16 %v435_v50, %v434_v45  ;;  %v173_v55 = vmul.f32 %v1038_v47, %v1391_v1  ;;  %v1042_v57 = vunpack.c.h.bf16 %v1312_v36  ;;  %v174_v58 = vmul.f32 %v1041_v48, %v1391_v1 }
  0x10   :  { %v436_v56 = vsel %vm303_vm6, %v239_v43, %v372_v51  ;;  %v1045_v59 = vunpack.c.l.bf16 %v1313_v49  ;;  %v437_v60 = vsel %vm304_vm7, %v240_v44, %v373_v53  ;;  %v241_v61 = vadd.f32 %v1402_v6, %v172_v54 }
  0x11   :  { %1340 = vst [vmem:[%s1787_s2 + $0x10] sm:$0xff] %v1160_v52   ;;  %v242_v62 = vadd.f32 %v1402_v6, %v173_v55  ;;  %v1046_v63 = vunpack.c.h.bf16 %v1313_v49  ;;  %v1165_v0 = vpack.c.bf16 %v437_v60, %v436_v56  ;;  %v175_v2 = vmul.f32 %v1042_v57, %v1391_v1  ;;  %v1318_v57 = vld [vmem:[%s1785_s0 + $0x158] sm:$0xff]  }
  0x12   :  { %v243_v3 = vadd.f32 %v1402_v6, %v174_v58  ;;  %v176_v4 = vmul.f32 %v1045_v59, %v1391_v1  ;;  %vm305_vm8 = vcmp.ge.f32.partialorder %v241_v61, 0.0  ;;  %v374_v7 = vmul.f32 %v1412_v16, %v241_v61 }
  0x13   :  { %vm306_vm9 = vcmp.ge.f32.partialorder %v242_v62, 0.0  ;;  %v375_v8 = vmul.f32 %v1412_v16, %v242_v62  ;;  %1341 = vst [vmem:[%s1787_s2 + $0x18] sm:$0xff] %v1165_v0   ;;  %v244_v9 = vadd.f32 %v1402_v6, %v175_v2  ;;  %v177_v11 = vmul.f32 %v1046_v63, %v1391_v1 }
  0x14   :  { %vm307_vm10 = vcmp.ge.f32.partialorder %v243_v3, 0.0  ;;  %v376_v10 = vmul.f32 %v1412_v16, %v243_v3  ;;  %v438_v12 = vsel %vm305_vm8, %v241_v61, %v374_v7  ;;  %v245_v14 = vadd.f32 %v1402_v6, %v176_v4 }
  0x15   :  { %v439_v13 = vsel %vm306_vm9, %v242_v62, %v375_v8  ;;  %v1049_v15 = vunpack.c.l.bf16 %v1314_v5  ;;  %vm308_vm11 = vcmp.ge.f32.partialorder %v244_v9, 0.0  ;;  %v377_v19 = vmul.f32 %v1412_v16, %v244_v9  ;;  %v1319_v62 = vld [vmem:[%s1785_s0 + $0x160] sm:$0xff]  }
  0x16   :  { %v1170_v18 = vpack.c.bf16 %v439_v13, %v438_v12  ;;  %v440_v20 = vsel %vm307_vm10, %v243_v3, %v376_v10  ;;  %v246_v21 = vadd.f32 %v1402_v6, %v177_v11  ;;  %vm309_vm12 = vcmp.ge.f32.partialorder %v245_v14, 0.0  ;;  %v1320_v11 = vld [vmem:[%s1785_s0 + $0x168] sm:$0xff]  }
  0x17   :  { %v378_v22 = vmul.f32 %v1412_v16, %v245_v14  ;;  %v1050_v23 = vunpack.c.h.bf16 %v1314_v5  ;;  %v441_v24 = vsel %vm308_vm11, %v244_v9, %v377_v19  ;;  %v178_v25 = vmul.f32 %v1049_v15, %v1391_v1 }
  0x18   :  { %1342 = vst [vmem:[%s1787_s2 + $0x20] sm:$0xff] %v1170_v18   ;;  %v1053_v26 = vunpack.c.l.bf16 %v1315_v17  ;;  %v1054_v27 = vunpack.c.h.bf16 %v1315_v17  ;;  %v1175_v30 = vpack.c.bf16 %v441_v24, %v440_v20  ;;  %vm310_vm13 = vcmp.ge.f32.partialorder %v246_v21, 0.0 }
  0x19   :  { %v379_v31 = vmul.f32 %v1412_v16, %v246_v21  ;;  %v442_v32 = vsel %vm309_vm12, %v245_v14, %v378_v22  ;;  %v179_v33 = vmul.f32 %v1050_v23, %v1391_v1  ;;  %v247_v34 = vadd.f32 %v1402_v6, %v178_v25 }
  0x1a   :  { %v180_v35 = vmul.f32 %v1053_v26, %v1391_v1  ;;  %v181_v36 = vmul.f32 %v1054_v27, %v1391_v1  ;;  %1343 = vst [vmem:[%s1787_s2 + $0x28] sm:$0xff] %v1175_v30   ;;  %v1057_v38 = vunpack.c.l.bf16 %v1316_v28  ;;  %v1058_v39 = vunpack.c.h.bf16 %v1316_v28 }
  0x1b   :  { %v443_v37 = vsel %vm310_vm13, %v246_v21, %v379_v31  ;;  %v1061_v40 = vunpack.c.l.bf16 %v1317_v29  ;;  %v248_v42 = vadd.f32 %v1402_v6, %v179_v33  ;;  %vm311_vm14 = vcmp.ge.f32.partialorder %v247_v34, 0.0  ;;  %v1321_v33 = vld [vmem:[%s1785_s0 + $0x170] sm:$0xff]  }
  0x1c   :  { %v1180_v41 = vpack.c.bf16 %v443_v37, %v442_v32  ;;  %v380_v43 = vmul.f32 %v1412_v16, %v247_v34  ;;  %v249_v44 = vadd.f32 %v1402_v6, %v180_v35  ;;  %v250_v45 = vadd.f32 %v1402_v6, %v181_v36 }
  0x1d   :  { %v182_v46 = vmul.f32 %v1057_v38, %v1391_v1  ;;  %v183_v47 = vmul.f32 %v1058_v39, %v1391_v1  ;;  %vm312_vm15 = vcmp.ge.f32.partialorder %v248_v42, 0.0  ;;  %v381_v48 = vmul.f32 %v1412_v16, %v248_v42 }
  0x1e   :  { %1344 = vst [vmem:[%s1787_s2 + $0x30] sm:$0xff] %v1180_v41   ;;  %v444_v49 = vsel %vm311_vm14, %v247_v34, %v380_v43  ;;  %v1062_v50 = vunpack.c.h.bf16 %v1317_v29  ;;  %vm313_vm0 = vcmp.ge.f32.partialorder %v249_v44, 0.0  ;;  %vm314_vm1 = vcmp.ge.f32.partialorder %v250_v45, 0.0 }
  0x1f   :  { %v382_v51 = vmul.f32 %v1412_v16, %v249_v44  ;;  %v383_v52 = vmul.f32 %v1412_v16, %v250_v45  ;;  %v445_v53 = vsel %vm312_vm15, %v248_v42, %v381_v48  ;;  %v251_v54 = vadd.f32 %v1402_v6, %v182_v46 }
  0x20   :  { %v252_v55 = vadd.f32 %v1402_v6, %v183_v47  ;;  %v184_v56 = vmul.f32 %v1061_v40, %v1391_v1  ;;  %v1185_v58 = vpack.c.bf16 %v445_v53, %v444_v49  ;;  %v185_v61 = vmul.f32 %v1062_v50, %v1391_v1  ;;  %v1322_v40 = vld [vmem:[%s1785_s0 + $0x178] sm:$0xff]   ;;  %v1324_v53 = vld [vmem:[%s1785_s0 + $0x188] sm:$0xff]  }
  0x21   :  { %v446_v59 = vsel %vm313_vm0, %v249_v44, %v382_v51  ;;  %v447_v60 = vsel %vm314_vm1, %v250_v45, %v383_v52  ;;  %vm315_vm2 = vcmp.ge.f32.partialorder %v251_v54, 0.0  ;;  %v384_v0 = vmul.f32 %v1412_v16, %v251_v54  ;;  %v1323_v45 = vld [vmem:[%s1785_s0 + $0x180] sm:$0xff]  }
  0x22   :  { %v1190_v63 = vpack.c.bf16 %v447_v60, %v446_v59  ;;  %vm316_vm3 = vcmp.ge.f32.partialorder %v252_v55, 0.0  ;;  %1345 = vst [vmem:[%s1787_s2 + $0x38] sm:$0xff] %v1185_v58   ;;  %v385_v2 = vmul.f32 %v1412_v16, %v252_v55  ;;  %v253_v3 = vadd.f32 %v1402_v6, %v184_v56 }
  0x23   :  { %v254_v4 = vadd.f32 %v1402_v6, %v185_v61  ;;  %v1065_v5 = vunpack.c.l.bf16 %v1318_v57  ;;  %v448_v7 = vsel %vm315_vm2, %v251_v54, %v384_v0  ;;  %v1066_v8 = vunpack.c.h.bf16 %v1318_v57 }
  0x24   :  { %1346 = vst [vmem:[%s1787_s2 + $0x40] sm:$0xff] %v1190_v63   ;;  %v1069_v9 = vunpack.c.l.bf16 %v1319_v62  ;;  %v1070_v10 = vunpack.c.h.bf16 %v1319_v62  ;;  %v449_v12 = vsel %vm316_vm3, %v252_v55, %v385_v2  ;;  %vm317_vm4 = vcmp.ge.f32.partialorder %v253_v3, 0.0 }
  0x25   :  { %vm318_vm5 = vcmp.ge.f32.partialorder %v254_v4, 0.0  ;;  %v386_v13 = vmul.f32 %v1412_v16, %v253_v3  ;;  %v1195_v14 = vpack.c.bf16 %v449_v12, %v448_v7  ;;  %v387_v15 = vmul.f32 %v1412_v16, %v254_v4 }
  0x26   :  { %v186_v17 = vmul.f32 %v1065_v5, %v1391_v1  ;;  %v187_v18 = vmul.f32 %v1066_v8, %v1391_v1  ;;  %v188_v20 = vmul.f32 %v1069_v9, %v1391_v1  ;;  %v189_v21 = vmul.f32 %v1070_v10, %v1391_v1 }
  0x27   :  { %v450_v19 = vsel %vm317_vm4, %v253_v3, %v386_v13  ;;  %v1073_v22 = vunpack.c.l.bf16 %v1320_v11  ;;  %1347 = vst [vmem:[%s1787_s2 + $0x48] sm:$0xff] %v1195_v14   ;;  %v451_v23 = vsel %vm318_vm5, %v254_v4, %v387_v15  ;;  %v1074_v26 = vunpack.c.h.bf16 %v1320_v11 }
  0x28   :  { %v255_v24 = vadd.f32 %v1402_v6, %v186_v17  ;;  %v256_v25 = vadd.f32 %v1402_v6, %v187_v18  ;;  %v1200_v27 = vpack.c.bf16 %v451_v23, %v450_v19  ;;  %v257_v28 = vadd.f32 %v1402_v6, %v188_v20  ;;  %v1325_v19 = vld [vmem:[%s1785_s0 + $0x190] sm:$0xff]  }
  0x29   :  { %v258_v29 = vadd.f32 %v1402_v6, %v189_v21  ;;  %v190_v30 = vmul.f32 %v1073_v22, %v1391_v1  ;;  %v191_v38 = vmul.f32 %v1074_v26, %v1391_v1  ;;  %v1077_v44 = vunpack.c.l.bf16 %v1321_v33 }
  0x2a   :  { %vm319_vm6 = vcmp.ge.f32.partialorder %v255_v24, 0.0  ;;  %vm320_vm7 = vcmp.ge.f32.partialorder %v256_v25, 0.0  ;;  %v388_v31 = vmul.f32 %v1412_v16, %v255_v24  ;;  %v389_v32 = vmul.f32 %v1412_v16, %v256_v25  ;;  %1348 = vst [vmem:[%s1787_s2 + $0x50] sm:$0xff] %v1200_v27  }
  0x2b   :  { %vm321_vm8 = vcmp.ge.f32.partialorder %v257_v28, 0.0  ;;  %vm322_vm9 = vcmp.ge.f32.partialorder %v258_v29, 0.0  ;;  %v390_v34 = vmul.f32 %v1412_v16, %v257_v28  ;;  %v391_v35 = vmul.f32 %v1412_v16, %v258_v29 }
  0x2c   :  { %v452_v36 = vsel %vm319_vm6, %v255_v24, %v388_v31  ;;  %v453_v37 = vsel %vm320_vm7, %v256_v25, %v389_v32  ;;  %v259_v39 = vadd.f32 %v1402_v6, %v190_v30  ;;  %v260_v47 = vadd.f32 %v1402_v6, %v191_v38  ;;  %v1326_v24 = vld [vmem:[%s1785_s0 + $0x198] sm:$0xff]   ;;  %v1327_v25 = vld [vmem:[%s1785_s0 + $0x1a0] sm:$0xff]  }
  0x2d   :  { %v1205_v41 = vpack.c.bf16 %v453_v37, %v452_v36  ;;  %v454_v42 = vsel %vm321_vm8, %v257_v28, %v390_v34  ;;  %v455_v43 = vsel %vm322_vm9, %v258_v29, %v391_v35  ;;  %v1078_v49 = vunpack.c.h.bf16 %v1321_v33 }
  0x2e   :  { %v1210_v46 = vpack.c.bf16 %v455_v43, %v454_v42  ;;  %vm323_vm10 = vcmp.ge.f32.partialorder %v259_v39, 0.0  ;;  %v392_v48 = vmul.f32 %v1412_v16, %v259_v39  ;;  %v192_v50 = vmul.f32 %v1077_v44, %v1391_v1  ;;  %v1328_v44 = vld [vmem:[%s1785_s0 + $0x1a8] sm:$0xff]  }
  0x2f   :  { %1349 = vst [vmem:[%s1787_s2 + $0x58] sm:$0xff] %v1205_v41   ;;  %v1081_v51 = vunpack.c.l.bf16 %v1322_v40  ;;  %v1082_v52 = vunpack.c.h.bf16 %v1322_v40  ;;  %vm324_vm11 = vcmp.ge.f32.partialorder %v260_v47, 0.0  ;;  %v393_v54 = vmul.f32 %v1412_v16, %v260_v47 }
  0x30   :  { %1350 = vst [vmem:[%s1787_s2 + $0x60] sm:$0xff] %v1210_v46   ;;  %v456_v55 = vsel %vm323_vm10, %v259_v39, %v392_v48  ;;  %v1085_v56 = vunpack.c.l.bf16 %v1323_v45  ;;  %v193_v57 = vmul.f32 %v1078_v49, %v1391_v1  ;;  %v261_v58 = vadd.f32 %v1402_v6, %v192_v50 }
  0x31   :  { %v194_v59 = vmul.f32 %v1081_v51, %v1391_v1  ;;  %v195_v60 = vmul.f32 %v1082_v52, %v1391_v1  ;;  %v457_v61 = vsel %vm324_vm11, %v260_v47, %v393_v54  ;;  %v1086_v62 = vunpack.c.h.bf16 %v1323_v45 }
  0x32   :  { %v196_v63 = vmul.f32 %v1085_v56, %v1391_v1  ;;  %v1089_v0 = vunpack.c.l.bf16 %v1324_v53  ;;  %v1215_v2 = vpack.c.bf16 %v457_v61, %v456_v55  ;;  %v262_v3 = vadd.f32 %v1402_v6, %v193_v57 }
  0x33   :  { %vm325_vm12 = vcmp.ge.f32.partialorder %v261_v58, 0.0  ;;  %v394_v4 = vmul.f32 %v1412_v16, %v261_v58  ;;  %v263_v5 = vadd.f32 %v1402_v6, %v194_v59  ;;  %v264_v7 = vadd.f32 %v1402_v6, %v195_v60 }
  0x34   :  { %v197_v8 = vmul.f32 %v1086_v62, %v1391_v1  ;;  %v265_v9 = vadd.f32 %v1402_v6, %v196_v63  ;;  %1351 = vst [vmem:[%s1787_s2 + $0x68] sm:$0xff] %v1215_v2   ;;  %vm326_vm13 = vcmp.ge.f32.partialorder %v262_v3, 0.0  ;;  %v395_v10 = vmul.f32 %v1412_v16, %v262_v3 }
  0x35   :  { %v458_v11 = vsel %vm325_vm12, %v261_v58, %v394_v4  ;;  %v1090_v12 = vunpack.c.h.bf16 %v1324_v53  ;;  %vm327_vm14 = vcmp.ge.f32.partialorder %v263_v5, 0.0  ;;  %vm328_vm15 = vcmp.ge.f32.partialorder %v264_v7, 0.0 }
  0x36   :  { %v396_v13 = vmul.f32 %v1412_v16, %v263_v5  ;;  %v397_v14 = vmul.f32 %v1412_v16, %v264_v7  ;;  %v459_v15 = vsel %vm326_vm13, %v262_v3, %v395_v10  ;;  %v266_v17 = vadd.f32 %v1402_v6, %v197_v8 }
  0x37   :  { %vm329_vm0 = vcmp.ge.f32.partialorder %v265_v9, 0.0  ;;  %v398_v18 = vmul.f32 %v1412_v16, %v265_v9  ;;  %v1220_v20 = vpack.c.bf16 %v459_v15, %v458_v11  ;;  %v198_v23 = vmul.f32 %v1089_v0, %v1391_v1 }
  0x38   :  { %v460_v21 = vsel %vm327_vm14, %v263_v5, %v396_v13  ;;  %v461_v22 = vsel %vm328_vm15, %v264_v7, %v397_v14  ;;  %vm330_vm1 = vcmp.ge.f32.partialorder %v266_v17, 0.0  ;;  %v399_v27 = vmul.f32 %v1412_v16, %v266_v17  ;;  %v1329_v5 = vld [vmem:[%s1785_s0 + $0x1b0] sm:$0xff]   ;;  %v1330_v7 = vld [vmem:[%s1785_s0 + $0x1b8] sm:$0xff]  }
  0x39   :  { %v1225_v26 = vpack.c.bf16 %v461_v22, %v460_v21  ;;  %v462_v28 = vsel %vm329_vm0, %v265_v9, %v398_v18  ;;  %1352 = vst [vmem:[%s1787_s2 + $0x70] sm:$0xff] %v1220_v20   ;;  %v199_v29 = vmul.f32 %v1090_v12, %v1391_v1  ;;  %v267_v30 = vadd.f32 %v1402_v6, %v198_v23  ;;  %v1331_v23 = vld [vmem:[%s1785_s0 + $0x1c0] sm:$0xff]  }
  0x3a   :  { %v1093_v31 = vunpack.c.l.bf16 %v1325_v19  ;;  %v1094_v32 = vunpack.c.h.bf16 %v1325_v19  ;;  %v463_v33 = vsel %vm330_vm1, %v266_v17, %v399_v27  ;;  %v1097_v34 = vunpack.c.l.bf16 %v1326_v24 }
  0x3b   :  { %1353 = vst [vmem:[%s1787_s2 + $0x78] sm:$0xff] %v1225_v26   ;;  %v1098_v35 = vunpack.c.h.bf16 %v1326_v24  ;;  %v1101_v36 = vunpack.c.l.bf16 %v1327_v25  ;;  %v1230_v37 = vpack.c.bf16 %v463_v33, %v462_v28  ;;  %v268_v38 = vadd.f32 %v1402_v6, %v199_v29 }
  0x3c   :  { %vm331_vm2 = vcmp.ge.f32.partialorder %v267_v30, 0.0  ;;  %v400_v39 = vmul.f32 %v1412_v16, %v267_v30  ;;  %v200_v40 = vmul.f32 %v1093_v31, %v1391_v1  ;;  %v201_v41 = vmul.f32 %v1094_v32, %v1391_v1 }
  0x3d   :  { %v202_v42 = vmul.f32 %v1097_v34, %v1391_v1  ;;  %v203_v43 = vmul.f32 %v1098_v35, %v1391_v1  ;;  %1354 = vst [vmem:[%s1787_s2 + $0x80] sm:$0xff] %v1230_v37   ;;  %vm332_vm3 = vcmp.ge.f32.partialorder %v268_v38, 0.0  ;;  %v401_v45 = vmul.f32 %v1412_v16, %v268_v38 }
  0x3e   :  { %v464_v46 = vsel %vm331_vm2, %v267_v30, %v400_v39  ;;  %v1102_v47 = vunpack.c.h.bf16 %v1327_v25  ;;  %v269_v48 = vadd.f32 %v1402_v6, %v200_v40  ;;  %v270_v49 = vadd.f32 %v1402_v6, %v201_v41  ;;  %v1332_v41 = vld [vmem:[%s1785_s0 + $0x1c8] sm:$0xff]  }
  0x3f   :  { %v271_v50 = vadd.f32 %v1402_v6, %v202_v42  ;;  %v272_v51 = vadd.f32 %v1402_v6, %v203_v43  ;;  %v465_v52 = vsel %vm332_vm3, %v268_v38, %v401_v45  ;;  %v204_v53 = vmul.f32 %v1101_v36, %v1391_v1 }
  0x40   :  { %v205_v54 = vmul.f32 %v1102_v47, %v1391_v1  ;;  %v1105_v55 = vunpack.c.l.bf16 %v1328_v44  ;;  %v1235_v56 = vpack.c.bf16 %v465_v52, %v464_v46  ;;  %vm333_vm4 = vcmp.ge.f32.partialorder %v269_v48, 0.0  ;;  %v1333_v47 = vld [vmem:[%s1785_s0 + $0x1d0] sm:$0xff]  }
  0x41   :  { %vm334_vm5 = vcmp.ge.f32.partialorder %v270_v49, 0.0  ;;  %v402_v57 = vmul.f32 %v1412_v16, %v269_v48  ;;  %v403_v58 = vmul.f32 %v1412_v16, %v270_v49  ;;  %vm335_vm6 = vcmp.ge.f32.partialorder %v271_v50, 0.0 }
  0x42   :  { %vm336_vm7 = vcmp.ge.f32.partialorder %v272_v51, 0.0  ;;  %v404_v59 = vmul.f32 %v1412_v16, %v271_v50  ;;  %1355 = vst [vmem:[%s1787_s2 + $0x88] sm:$0xff] %v1235_v56   ;;  %v405_v61 = vmul.f32 %v1412_v16, %v272_v51  ;;  %v273_v62 = vadd.f32 %v1402_v6, %v204_v53 }
  0x43   :  { %v466_v60 = vsel %vm333_vm4, %v269_v48, %v402_v57  ;;  %v274_v63 = vadd.f32 %v1402_v6, %v205_v54  ;;  %v467_v0 = vsel %vm334_vm5, %v270_v49, %v403_v58  ;;  %v1106_v3 = vunpack.c.h.bf16 %v1328_v44 }
  0x44   :  { %v468_v2 = vsel %vm335_vm6, %v271_v50, %v404_v59  ;;  %v206_v4 = vmul.f32 %v1105_v55, %v1391_v1  ;;  %v1240_v8 = vpack.c.bf16 %v467_v0, %v466_v60  ;;  %v469_v9 = vsel %vm336_vm7, %v272_v51, %v405_v61  ;;  %v1334_v60 = vld [vmem:[%s1785_s0 + $0x1d8] sm:$0xff]  }
  0x45   :  { %vm337_vm8 = vcmp.ge.f32.partialorder %v273_v62, 0.0  ;;  %vm338_vm9 = vcmp.ge.f32.partialorder %v274_v63, 0.0  ;;  %v1245_v10 = vpack.c.bf16 %v469_v9, %v468_v2  ;;  %v406_v11 = vmul.f32 %v1412_v16, %v273_v62 }
  0x46   :  { %v407_v12 = vmul.f32 %v1412_v16, %v274_v63  ;;  %v207_v13 = vmul.f32 %v1106_v3, %v1391_v1  ;;  %1356 = vst [vmem:[%s1787_s2 + $0x90] sm:$0xff] %v1240_v8   ;;  %v275_v14 = vadd.f32 %v1402_v6, %v206_v4  ;;  %v1109_v15 = vunpack.c.l.bf16 %v1329_v5 }
  0x47   :  { %v1110_v17 = vunpack.c.h.bf16 %v1329_v5  ;;  %v1113_v18 = vunpack.c.l.bf16 %v1330_v7  ;;  %1357 = vst [vmem:[%s1787_s2 + $0x98] sm:$0xff] %v1245_v10   ;;  %v470_v19 = vsel %vm337_vm8, %v273_v62, %v406_v11  ;;  %v1114_v22 = vunpack.c.h.bf16 %v1330_v7 }
  0x48   :  { %v471_v20 = vsel %vm338_vm9, %v274_v63, %v407_v12  ;;  %v276_v21 = vadd.f32 %v1402_v6, %v207_v13  ;;  %vm339_vm10 = vcmp.ge.f32.partialorder %v275_v14, 0.0  ;;  %v408_v25 = vmul.f32 %v1412_v16, %v275_v14 }
  0x49   :  { %v1250_v24 = vpack.c.bf16 %v471_v20, %v470_v19  ;;  %v208_v26 = vmul.f32 %v1109_v15, %v1391_v1  ;;  %v209_v28 = vmul.f32 %v1110_v17, %v1391_v1  ;;  %v210_v29 = vmul.f32 %v1113_v18, %v1391_v1  ;;  %v1335_v15 = vld [vmem:[%s1785_s0 + $0x1e0] sm:$0xff]   ;;  %v1336_v20 = vld [vmem:[%s1785_s0 + $0x1e8] sm:$0xff]  }
  0x4a   :  { %vm340_vm11 = vcmp.ge.f32.partialorder %v276_v21, 0.0  ;;  %v409_v27 = vmul.f32 %v1412_v16, %v276_v21  ;;  %v472_v30 = vsel %vm339_vm10, %v275_v14, %v408_v25  ;;  %v211_v32 = vmul.f32 %v1114_v22, %v1391_v1 }
  0x4b   :  { %1358 = vst [vmem:[%s1787_s2 + $0xa0] sm:$0xff] %v1250_v24   ;;  %v277_v31 = vadd.f32 %v1402_v6, %v208_v26  ;;  %v1117_v33 = vunpack.c.l.bf16 %v1331_v23  ;;  %v278_v35 = vadd.f32 %v1402_v6, %v209_v28  ;;  %v279_v36 = vadd.f32 %v1402_v6, %v210_v29 }
  0x4c   :  { %v473_v34 = vsel %vm340_vm11, %v276_v21, %v409_v27  ;;  %v1118_v37 = vunpack.c.h.bf16 %v1331_v23  ;;  %v280_v40 = vadd.f32 %v1402_v6, %v211_v32  ;;  %v1121_v51 = vunpack.c.l.bf16 %v1332_v41 }
  0x4d   :  { %v1255_v38 = vpack.c.bf16 %v473_v34, %v472_v30  ;;  %vm341_vm12 = vcmp.ge.f32.partialorder %v277_v31, 0.0  ;;  %v410_v39 = vmul.f32 %v1412_v16, %v277_v31  ;;  %vm342_vm13 = vcmp.ge.f32.partialorder %v278_v35, 0.0 }
  0x4e   :  { %v411_v42 = vmul.f32 %v1412_v16, %v278_v35  ;;  %vm343_vm14 = vcmp.ge.f32.partialorder %v279_v36, 0.0  ;;  %v412_v43 = vmul.f32 %v1412_v16, %v279_v36  ;;  %vm344_vm15 = vcmp.ge.f32.partialorder %v280_v40, 0.0 }
  0x4f   :  { %1359 = vst [vmem:[%s1787_s2 + $0xa8] sm:$0xff] %v1255_v38   ;;  %v474_v44 = vsel %vm341_vm12, %v277_v31, %v410_v39  ;;  %v413_v45 = vmul.f32 %v1412_v16, %v280_v40  ;;  %v212_v46 = vmul.f32 %v1117_v33, %v1391_v1  ;;  %v213_v50 = vmul.f32 %v1118_v37, %v1391_v1 }
  0x50   :  { %v475_v48 = vsel %vm342_vm13, %v278_v35, %v411_v42  ;;  %v476_v49 = vsel %vm343_vm14, %v279_v36, %v412_v43  ;;  %v1122_v55 = vunpack.c.h.bf16 %v1332_v41  ;;  %v214_v58 = vmul.f32 %v1121_v51, %v1391_v1  ;;  %v1337_v36 = vld [vmem:[%s1785_s0 + $0x1f0] sm:$0xff]  }
  0x51   :  { %v1260_v52 = vpack.c.bf16 %v475_v48, %v474_v44  ;;  %v477_v53 = vsel %vm344_vm15, %v280_v40, %v413_v45  ;;  %v281_v54 = vadd.f32 %v1402_v6, %v212_v46  ;;  %v282_v57 = vadd.f32 %v1402_v6, %v213_v50  ;;  %v1338_v50 = vld [vmem:[%s1785_s0 + $0x1f8] sm:$0xff]  }
  0x52   :  { %v1265_v56 = vpack.c.bf16 %v477_v53, %v476_v49  ;;  %v1125_v59 = vunpack.c.l.bf16 %v1333_v47  ;;  %v215_v62 = vmul.f32 %v1122_v55, %v1391_v1  ;;  %v1126_v63 = vunpack.c.h.bf16 %v1333_v47 }
  0x53   :  { %1360 = vst [vmem:[%s1787_s2 + $0xb0] sm:$0xff] %v1260_v52   ;;  %vm345_vm0 = vcmp.ge.f32.partialorder %v281_v54, 0.0  ;;  %v414_v61 = vmul.f32 %v1412_v16, %v281_v54  ;;  %vm346_vm1 = vcmp.ge.f32.partialorder %v282_v57, 0.0  ;;  %v415_v0 = vmul.f32 %v1412_v16, %v282_v57 }
  0x54   :  { %1361 = vst [vmem:[%s1787_s2 + $0xb8] sm:$0xff] %v1265_v56   ;;  %v283_v2 = vadd.f32 %v1402_v6, %v214_v58  ;;  %v216_v3 = vmul.f32 %v1125_v59, %v1391_v1  ;;  %v284_v5 = vadd.f32 %v1402_v6, %v215_v62  ;;  %v217_v7 = vmul.f32 %v1126_v63, %v1391_v1 }
  0x55   :  { %v478_v4 = vsel %vm345_vm0, %v281_v54, %v414_v61  ;;  %v1129_v8 = vunpack.c.l.bf16 %v1334_v60  ;;  %v479_v9 = vsel %vm346_vm1, %v282_v57, %v415_v0  ;;  %v1130_v19 = vunpack.c.h.bf16 %v1334_v60 }
  0x56   :  { %vm347_vm2 = vcmp.ge.f32.partialorder %v283_v2, 0.0  ;;  %v416_v10 = vmul.f32 %v1412_v16, %v283_v2  ;;  %v285_v11 = vadd.f32 %v1402_v6, %v216_v3  ;;  %v1270_v12 = vpack.c.bf16 %v479_v9, %v478_v4 }
  0x57   :  { %vm348_vm3 = vcmp.ge.f32.partialorder %v284_v5, 0.0  ;;  %v417_v13 = vmul.f32 %v1412_v16, %v284_v5  ;;  %v286_v14 = vadd.f32 %v1402_v6, %v217_v7  ;;  %v218_v23 = vmul.f32 %v1129_v8, %v1391_v1 }
  0x58   :  { %v480_v17 = vsel %vm347_vm2, %v283_v2, %v416_v10  ;;  %vm349_vm4 = vcmp.ge.f32.partialorder %v285_v11, 0.0  ;;  %v418_v18 = vmul.f32 %v1412_v16, %v285_v11  ;;  %1362 = vst [vmem:[%s1787_s2 + $0xc0] sm:$0xff] %v1270_v12   ;;  %v219_v26 = vmul.f32 %v1130_v19, %v1391_v1 }
  0x59   :  { %v481_v21 = vsel %vm348_vm3, %v284_v5, %v417_v13  ;;  %vm350_vm5 = vcmp.ge.f32.partialorder %v286_v14, 0.0  ;;  %v419_v22 = vmul.f32 %v1412_v16, %v286_v14  ;;  %v1133_v27 = vunpack.c.l.bf16 %v1335_v15 }
  0x5a   :  { %v1275_v24 = vpack.c.bf16 %v481_v21, %v480_v17  ;;  %v482_v25 = vsel %vm349_vm4, %v285_v11, %v418_v18  ;;  %v287_v29 = vadd.f32 %v1402_v6, %v218_v23  ;;  %v1134_v30 = vunpack.c.h.bf16 %v1335_v15 }
  0x5b   :  { %v483_v28 = vsel %vm350_vm5, %v286_v14, %v419_v22  ;;  %v1137_v31 = vunpack.c.l.bf16 %v1336_v20  ;;  %v288_v33 = vadd.f32 %v1402_v6, %v219_v26  ;;  %v220_v34 = vmul.f32 %v1133_v27, %v1391_v1 }
  0x5c   :  { %1363 = vst [vmem:[%s1787_s2 + $0xc8] sm:$0xff] %v1275_v24   ;;  %v1280_v32 = vpack.c.bf16 %v483_v28, %v482_v25  ;;  %v1138_v35 = vunpack.c.h.bf16 %v1336_v20  ;;  %vm351_vm6 = vcmp.ge.f32.partialorder %v287_v29, 0.0  ;;  %v420_v37 = vmul.f32 %v1412_v16, %v287_v29 }
  0x5d   :  { %v221_v38 = vmul.f32 %v1134_v30, %v1391_v1  ;;  %v222_v39 = vmul.f32 %v1137_v31, %v1391_v1  ;;  %vm352_vm7 = vcmp.ge.f32.partialorder %v288_v33, 0.0  ;;  %v421_v40 = vmul.f32 %v1412_v16, %v288_v33 }
  0x5e   :  { %1364 = vst [vmem:[%s1787_s2 + $0xd0] sm:$0xff] %v1280_v32   ;;  %v289_v41 = vadd.f32 %v1402_v6, %v220_v34  ;;  %v223_v42 = vmul.f32 %v1138_v35, %v1391_v1  ;;  %v484_v43 = vsel %vm351_vm6, %v287_v29, %v420_v37  ;;  %v1141_v46 = vunpack.c.l.bf16 %v1337_v36 }
  0x5f   :  { %v290_v44 = vadd.f32 %v1402_v6, %v221_v38  ;;  %v291_v45 = vadd.f32 %v1402_v6, %v222_v39  ;;  %v485_v47 = vsel %vm352_vm7, %v288_v33, %v421_v40  ;;  %v1142_v57 = vunpack.c.h.bf16 %v1337_v36 }
  0x60   :  { %vm353_vm8 = vcmp.ge.f32.partialorder %v289_v41, 0.0  ;;  %v422_v48 = vmul.f32 %v1412_v16, %v289_v41  ;;  %v292_v49 = vadd.f32 %v1402_v6, %v223_v42  ;;  %v1285_v51 = vpack.c.bf16 %v485_v47, %v484_v43 }
  0x61   :  { %vm354_vm9 = vcmp.ge.f32.partialorder %v290_v44, 0.0  ;;  %v423_v52 = vmul.f32 %v1412_v16, %v290_v44  ;;  %vm355_vm10 = vcmp.ge.f32.partialorder %v291_v45, 0.0  ;;  %v424_v54 = vmul.f32 %v1412_v16, %v291_v45 }
  0x62   :  { %v486_v53 = vsel %vm353_vm8, %v289_v41, %v422_v48  ;;  %vm356_vm11 = vcmp.ge.f32.partialorder %v292_v49, 0.0  ;;  %v425_v55 = vmul.f32 %v1412_v16, %v292_v49  ;;  %1365 = vst [vmem:[%s1787_s2 + $0xd8] sm:$0xff] %v1285_v51   ;;  %v224_v58 = vmul.f32 %v1141_v46, %v1391_v1 }
  0x63   :  { %v487_v56 = vsel %vm354_vm9, %v290_v44, %v423_v52  ;;  %v1145_v59 = vunpack.c.l.bf16 %v1338_v50  ;;  %v488_v61 = vsel %vm355_vm10, %v291_v45, %v424_v54  ;;  %v1146_v63 = vunpack.c.h.bf16 %v1338_v50 }
  0x64   :  { %v1290_v60 = vpack.c.bf16 %v487_v56, %v486_v53  ;;  %v489_v62 = vsel %vm356_vm11, %v292_v49, %v425_v55  ;;  %v225_v2 = vmul.f32 %v1142_v57, %v1391_v1  ;;  %v293_v3 = vadd.f32 %v1402_v6, %v224_v58 }
  0x65   :  { %v1295_v0 = vpack.c.bf16 %v489_v62, %v488_v61  ;;  %v226_v4 = vmul.f32 %v1145_v59, %v1391_v1  ;;  %v227_v5 = vmul.f32 %v1146_v63, %v1391_v1 }
  0x66   :  { %1366 = vst [vmem:[%s1787_s2 + $0xe0] sm:$0xff] %v1290_v60   ;;  %v294_v7 = vadd.f32 %v1402_v6, %v225_v2  ;;  %vm357_vm12 = vcmp.ge.f32.partialorder %v293_v3, 0.0  ;;  %v426_v8 = vmul.f32 %v1412_v16, %v293_v3 }
  0x67   :  { %1367 = vst [vmem:[%s1787_s2 + $0xe8] sm:$0xff] %v1295_v0   ;;  %v295_v9 = vadd.f32 %v1402_v6, %v226_v4  ;;  %v296_v10 = vadd.f32 %v1402_v6, %v227_v5 }
  0x68   :  { %vm358_vm13 = vcmp.ge.f32.partialorder %v294_v7, 0.0  ;;  %v427_v11 = vmul.f32 %v1412_v16, %v294_v7  ;;  %v490_v12 = vsel %vm357_vm12, %v293_v3, %v426_v8 }
  0x69   :  { %vm359_vm14 = vcmp.ge.f32.partialorder %v295_v9, 0.0  ;;  %vm360_vm15 = vcmp.ge.f32.partialorder %v296_v10, 0.0  ;;  %v428_v1 = vmul.f32 %v1412_v16, %v295_v9  ;;  %v429_v13 = vmul.f32 %v1412_v16, %v296_v10 }
  0x6a   :  { %v491_v14 = vsel %vm358_vm13, %v294_v7, %v427_v11 }
  0x6b   :  { %v1300_v15 = vpack.c.bf16 %v491_v14, %v490_v12  ;;  %v492_v17 = vsel %vm359_vm14, %v295_v9, %v428_v1  ;;  %v493_v18 = vsel %vm360_vm15, %v296_v10, %v429_v13 }
  0x6c   :  { %v1305_v19 = vpack.c.bf16 %v493_v18, %v492_v17 }
  0x6d   :  { %1368 = vst [vmem:[%s1787_s2 + $0xf0] sm:$0xff] %v1300_v15  }
  0x6e   :  { %1369 = vst [vmem:[%s1787_s2 + $0xf8] sm:$0xff] %v1305_v19  }

// kernel: _lambda_.15
= control target key start
LH: loop header
LB: loop body
LE: loop exit
PB: predicated region body
PF: predicated region fallthrough
CT: control target
= control target key end

     0   :  { %s4531_s1 = inlined_call_operand.vmem [shape: bf16[128,128], index: 1, kind: input, shape index: {}]   ;;  %s4532_s0 = inlined_call_operand.vmem [shape: bf16[512,128], index: 0, kind: input, shape index: {}]   ;;  %s4533_s2 = inlined_call_operand.vmem [shape: bf16[3,512,128], index: 2, kind: input, shape index: {}]   ;;  %s4534_s3 = inlined_call_operand.vmem [shape: f32[2,128], index: 3, kind: input, shape index: {}]   ;;  %s4535_s4 = inlined_call_operand.vmem [shape: bf16[2,512,128], index: 4, kind: input, shape index: {}]   ;;  %s4536_s5 = inlined_call_operand.vmem [shape: f32[2,128], index: 5, kind: input, shape index: {}]   ;;  %s4537_s6 = inlined_call_operand.vmem [shape: bf16[1,512,128], index: 6, kind: input, shape index: {}]   ;;  %s4538_s7 = inlined_call_operand.vmem [shape: f32[2,128], index: 7, kind: input, shape index: {}]   ;;  %s4539_s8 = inlined_call_operand.vmem [shape: f32[512,128], index: 8, kind: output, shape index: {}]  }
   0x1   :  { %v2484_v0 = vld [vmem:[%s4531_s1] sm:$0xff]   ;;  %v2485_v1 = vld [vmem:[%s4531_s1 + $0x8] sm:$0xff]   ;;  %v2486_v2 = vld [vmem:[%s4531_s1 + $0x10] sm:$0xff]  }
   0x2   :  { %2388 = vmatprep.subr.bf16.mxu0 %v2484_v0  ;;  %2468 = vmatprep.subr.bf16.mxu1 %v2484_v0  ;;  %v2487_v3 = vld [vmem:[%s4531_s1 + $0x18] sm:$0xff]   ;;  %v2492_v4 = vld [vmem:[%s4532_s0] sm:$0xff]   ;;  %v2489_v7 = vld [vmem:[%s4531_s1 + $0x28] sm:$0xff]  }
   0x3   :  { %2389 = vmatpush3.bf16.msra.mxu0 %v2484_v0  ;;  %2476 = vmatpush3.bf16.msra.mxu1 %v2484_v0  ;;  %v2493_v5 = vld [vmem:[%s4532_s0 + $0x80] sm:$0xff]   ;;  %v2490_v8 = vld [vmem:[%s4531_s1 + $0x30] sm:$0xff]   ;;  %v2491_v9 = vld [vmem:[%s4531_s1 + $0x38] sm:$0xff]  }
   0x4   :  { %2390 = vmatprep.subr.bf16.mxu0 %v2485_v1  ;;  %2469 = vmatprep.subr.bf16.mxu1 %v2485_v1  ;;  %v2488_v6 = vld [vmem:[%s4531_s1 + $0x20] sm:$0xff]   ;;  %v2494_v10 = vld [vmem:[%s4532_s0 + $0x8] sm:$0xff]   ;;  %v2496_v12 = vld [vmem:[%s4532_s0 + $0x10] sm:$0xff]  }
   0x5   :  { %2404 = vmatprep.mubr.bf16.mxu0 %v2492_v4  ;;  %2436 = vmatprep.mubr.bf16.mxu1 %v2493_v5  ;;  %v2495_v11 = vld [vmem:[%s4532_s0 + $0x88] sm:$0xff]   ;;  %v2497_v13 = vld [vmem:[%s4532_s0 + $0x90] sm:$0xff]   ;;  %v2498_v14 = vld [vmem:[%s4532_s0 + $0x18] sm:$0xff]  }
   0x6   :  { %v2499_v15 = vld [vmem:[%s4532_s0 + $0x98] sm:$0xff]   ;;  %v2500_v16 = vld [vmem:[%s4532_s0 + $0x20] sm:$0xff]   ;;  %v2502_v18 = vld [vmem:[%s4532_s0 + $0x28] sm:$0xff]  }
   0x7   :  { %2391 = vmatpush3.bf16.msra.mxu0 %v2485_v1  ;;  %2477 = vmatpush3.bf16.msra.mxu1 %v2485_v1  ;;  %v2501_v17 = vld [vmem:[%s4532_s0 + $0xa0] sm:$0xff]   ;;  %v2503_v19 = vld [vmem:[%s4532_s0 + $0xa8] sm:$0xff]   ;;  %v2504_v20 = vld [vmem:[%s4532_s0 + $0x30] sm:$0xff]  }
   0x8   :  { %2392 = vmatprep.subr.bf16.mxu0 %v2486_v2  ;;  %2470 = vmatprep.subr.bf16.mxu1 %v2486_v2  ;;  %v2505_v21 = vld [vmem:[%s4532_s0 + $0xb0] sm:$0xff]   ;;  %v2506_v22 = vld [vmem:[%s4532_s0 + $0x38] sm:$0xff]   ;;  %v2508_v24 = vld [vmem:[%s4532_s0 + $0x40] sm:$0xff]  }
   0x9   :  { %v2507_v23 = vld [vmem:[%s4532_s0 + $0xb8] sm:$0xff]   ;;  %v2509_v25 = vld [vmem:[%s4532_s0 + $0xc0] sm:$0xff]   ;;  %v2510_v26 = vld [vmem:[%s4532_s0 + $0x48] sm:$0xff]  }
   0xa   :  { %v2511_v27 = vld [vmem:[%s4532_s0 + $0xc8] sm:$0xff]   ;;  %v2512_v28 = vld [vmem:[%s4532_s0 + $0x50] sm:$0xff]   ;;  %v2514_v30 = vld [vmem:[%s4532_s0 + $0x58] sm:$0xff]  }
   0xb   :  { %2393 = vmatpush3.bf16.msra.mxu0 %v2486_v2  ;;  %2478 = vmatpush3.bf16.msra.mxu1 %v2486_v2  ;;  %v2513_v29 = vld [vmem:[%s4532_s0 + $0xd0] sm:$0xff]   ;;  %v2515_v31 = vld [vmem:[%s4532_s0 + $0xd8] sm:$0xff]   ;;  %v2516_v32 = vld [vmem:[%s4532_s0 + $0x60] sm:$0xff]  }
   0xc   :  { %2394 = vmatprep.subr.bf16.mxu0 %v2487_v3  ;;  %2471 = vmatprep.subr.bf16.mxu1 %v2487_v3  ;;  %v2517_v33 = vld [vmem:[%s4532_s0 + $0xe0] sm:$0xff]   ;;  %v2518_v34 = vld [vmem:[%s4532_s0 + $0x68] sm:$0xff]   ;;  %v2520_v36 = vld [vmem:[%s4532_s0 + $0x70] sm:$0xff]  }
   0xd   :  { %v2519_v35 = vld [vmem:[%s4532_s0 + $0xe8] sm:$0xff]   ;;  %v2521_v37 = vld [vmem:[%s4532_s0 + $0xf0] sm:$0xff]   ;;  %v2522_v38 = vld [vmem:[%s4532_s0 + $0x78] sm:$0xff]  }
   0xe   :  { %v2523_v39 = vld [vmem:[%s4532_s0 + $0xf8] sm:$0xff]   ;;  %v2255_v40 = vld [vmem:[%s4533_s2 + $0x8] sm:$0xff]   ;;  %v2719_v42 = vld [vmem:[%s4534_s3] ss:$0 sm:$0xff] }
   0xf   :  { %2395 = vmatpush3.bf16.msra.mxu0 %v2487_v3  ;;  %2479 = vmatpush3.bf16.msra.mxu1 %v2487_v3  ;;  %v1877_v41 = vunpack.c.l.bf16 %v2255_v40  ;;  %v2725_v44 = vld [vmem:[%s4534_s3 + $0x1] ss:$0 sm:$0xff]  ;;  %v2730_v45 = vld [vmem:[%s4533_s2 + $0x88] sm:$0xff]   ;;  %v1878_v59 = vunpack.c.h.bf16 %v2255_v40  ;;  %v2766_v60 = vld [vmem:[%s4536_s5] ss:$0 sm:$0xff] }
  0x10   :  { %2396 = vmatprep.subr.bf16.mxu0 %v2488_v6  ;;  %2472 = vmatprep.subr.bf16.mxu1 %v2488_v6  ;;  %v1941_v46 = vunpack.c.l.bf16 %v2730_v45  ;;  %v2736_v47 = vld [vmem:[%s4533_s2] sm:$0xff]   ;;  %v2286_v50 = vld [vmem:[%s4535_s4 + $0x8] sm:$0xff]  }
  0x11   :  { %v245_v43 = vmul.f32 %v1877_v41, %v2719_v42  ;;  %v2741_v48 = vld [vmem:[%s4533_s2 + $0x80] sm:$0xff]   ;;  %v2302_v51 = vld [vmem:[%s4535_s4 + $0x88] sm:$0xff]   ;;  %v1873_v52 = vunpack.c.l.bf16 %v2736_v47  ;;  %v2005_v54 = vunpack.c.l.bf16 %v2286_v50 }
  0x12   :  { %v1937_v53 = vunpack.c.l.bf16 %v2741_v48  ;;  %v277_v55 = vmul.f32 %v1941_v46, %v2719_v42  ;;  %v2069_v56 = vunpack.c.l.bf16 %v2302_v51  ;;  %v2000_v57 = vld [vmem:[%s4535_s4] sm:$0xff]   ;;  %v2317_v61 = vld [vmem:[%s4537_s6 + $0x8] sm:$0xff]  }
  0x13   :  { %2397 = vmatpush3.bf16.msra.mxu0 %v2488_v6  ;;  %2480 = vmatpush3.bf16.msra.mxu1 %v2488_v6  ;;  %v2744_v49 = vadd.f32 %v2725_v44, %v245_v43  ;;  %v2761_v58 = vld [vmem:[%s4535_s4 + $0x80] sm:$0xff]   ;;  %v2333_v62 = vld [vmem:[%s4537_s6 + $0x88] sm:$0xff]   ;;  %v243_v63 = vmul.f32 %v1873_v52, %v2719_v42  ;;  %v2001_v0 = vunpack.c.l.bf16 %v2000_v57  ;;  %v1040_v3 = vmul.f32 %v2005_v54, %v2766_v60 }
  0x14   :  { %2398 = vmatprep.subr.bf16.mxu0 %v2489_v7  ;;  %2473 = vmatprep.subr.bf16.mxu1 %v2489_v7  ;;  %v275_v1 = vmul.f32 %v1937_v53, %v2719_v42  ;;  %v2065_v2 = vunpack.c.l.bf16 %v2761_v58  ;;  %v2133_v4 = vunpack.c.l.bf16 %v2317_v61  ;;  %v2779_v5 = vadd.f32 %v2725_v44, %v277_v55 }
  0x15   :  { %v1072_v6 = vmul.f32 %v2069_v56, %v2766_v60  ;;  %v2002_v46 = vunpack.c.h.bf16 %v2000_v57  ;;  %v1938_v55 = vunpack.c.h.bf16 %v2741_v48  ;;  %v2865_v56 = vld [vmem:[%s4533_s2 + $0x18] sm:$0xff]   ;;  %v2066_v48 = vunpack.c.h.bf16 %v2761_v58 }
  0x16   :  { %v2870_v57 = vld [vmem:[%s4535_s4 + $0x18] sm:$0xff]  }
  0x17   :  { %2399 = vmatpush3.bf16.msra.mxu0 %v2489_v7  ;;  %2481 = vmatpush3.bf16.msra.mxu1 %v2489_v7  ;;  %v2128_v7 = vld [vmem:[%s4537_s6] sm:$0xff]   ;;  %v1039_v53 = vmul.f32 %v2002_v46, %v2766_v60  ;;  %v1071_v58 = vmul.f32 %v2066_v48, %v2766_v60 }
  0x18   :  { %2400 = vmatprep.subr.bf16.mxu0 %v2490_v8  ;;  %2474 = vmatprep.subr.bf16.mxu1 %v2490_v8  ;;  %v2130_v54 = vunpack.c.h.bf16 %v2128_v7 }
  0x1b   :  { %2401 = vmatpush3.bf16.msra.mxu0 %v2490_v8  ;;  %2482 = vmatpush3.bf16.msra.mxu1 %v2490_v8  ;;  %v2788_v8 = vld [vmem:[%s4536_s5 + $0x1] ss:$0 sm:$0xff] }
  0x1c   :  { %2402 = vmatprep.subr.bf16.mxu0 %v2491_v9  ;;  %2475 = vmatprep.subr.bf16.mxu1 %v2491_v9 }
  0x1f   :  { %2403 = vmatpush3.bf16.msra.mxu0 %v2491_v9  ;;  %2483 = vmatpush3.bf16.msra.mxu1 %v2491_v9  ;;  %v2793_v9 = vld [vmem:[%s4538_s7] ss:$0 sm:$0xff] }
  0x22   :  { %2405 = vmatmul.mubr.bf16.vlgmr.msra.gmra.mrb[0].mxu0 %v2494_v10  ;;  %2437 = vmatmul.mubr.bf16.vlgmr.msra.gmra.mrb[0].mxu1 %v2495_v11  ;;  %v2197_v10 = vunpack.c.l.bf16 %v2333_v62  ;;  %v2796_v11 = vadd.f32 %v2725_v44, %v243_v63  ;;  %v2885_v63 = vld [vmem:[%s4537_s6 + $0x18] sm:$0xff]  }
  0x23   :  { %2408 = vmatprep.mubr.bf16.mxu0 %v2496_v12  ;;  %2440 = vmatprep.mubr.bf16.mxu1 %v2497_v13  ;;  %v1038_v12 = vmul.f32 %v2001_v0, %v2766_v60  ;;  %v2129_v13 = vunpack.c.l.bf16 %v2128_v7  ;;  %v2890_v0 = vld [vmem:[%s4533_s2 + $0x98] sm:$0xff]   ;;  %v2013_v7 = vunpack.c.l.bf16 %v2870_v57 }
  0x2a   :  { %2409 = vmatmul.mubr.bf16.gmra.mrb[4].mxu0 %v2498_v14  ;;  %2441 = vmatmul.mubr.bf16.gmra.mrb[4].mxu1 %v2499_v15  ;;  %v2332_v14 = vld [vmem:[%s4537_s6 + $0x80] sm:$0xff]   ;;  %v2803_v15 = vadd.f32 %v2788_v8, %v1040_v3  ;;  %v276_v3 = vmul.f32 %v1938_v55, %v2719_v42 }
  0x2b   :  { %2412 = vmatprep.mubr.bf16.mxu0 %v2500_v16  ;;  %2444 = vmatprep.mubr.bf16.mxu1 %v2501_v17  ;;  %v1370_v16 = vmul.f32 %v2133_v4, %v2793_v9  ;;  %v2807_v17 = vadd.f32 %v2788_v8, %v1072_v6  ;;  %v2194_v4 = vunpack.c.h.bf16 %v2332_v14  ;;  %v1885_v6 = vunpack.c.l.bf16 %v2865_v56 }
  0x32   :  { %2413 = vmatmul.mubr.bf16.gmra.mrb[8].mxu0 %v2502_v18  ;;  %2445 = vmatmul.mubr.bf16.gmra.mrb[8].mxu1 %v2503_v19  ;;  %v2810_v18 = vadd.f32 %v2725_v44, %v275_v1  ;;  %v2815_v19 = vld [vmem:[%s4538_s7 + $0x1] ss:$0 sm:$0xff]  ;;  %v2893_v1 = vadd.f32 %v2788_v8, %v1039_v53  ;;  %v2954_v53 = vld [vmem:[%s4537_s6 + $0x90] sm:$0xff]  }
  0x33   :  { %2416 = vmatprep.mubr.bf16.mxu0 %v2504_v20  ;;  %2448 = vmatprep.mubr.bf16.mxu1 %v2505_v21  ;;  %v1402_v20 = vmul.f32 %v2197_v10, %v2793_v9  ;;  %v2819_v21 = vadd.f32 %v2788_v8, %v1038_v12  ;;  %v2141_v10 = vunpack.c.l.bf16 %v2885_v63  ;;  %v2304_v12 = vld [vmem:[%s4535_s4 + $0x98] sm:$0xff]  }
  0x3a   :  { %2417 = vmatmul.mubr.bf16.gmra.mrb[12].mxu0 %v2506_v22  ;;  %2449 = vmatmul.mubr.bf16.gmra.mrb[12].mxu1 %v2507_v23  ;;  %v1368_v22 = vmul.f32 %v2129_v13, %v2793_v9  ;;  %v1070_v23 = vmul.f32 %v2065_v2, %v2766_v60  ;;  %v1369_v2 = vmul.f32 %v2130_v54, %v2793_v9  ;;  %v2335_v13 = vld [vmem:[%s4537_s6 + $0x98] sm:$0xff]  }
  0x3b   :  { %2420 = vmatprep.mubr.bf16.mxu0 %v2508_v24  ;;  %2452 = vmatprep.mubr.bf16.mxu1 %v2509_v25  ;;  %v2824_v24 = vadd.f32 %v2815_v19, %v1370_v16  ;;  %v2193_v25 = vunpack.c.l.bf16 %v2332_v14  ;;  %v2911_v14 = vadd.f32 %v2725_v44, %v276_v3 }
  0x3c   :  { %v2908_v16 = vadd.f32 %v2815_v19, %v1369_v2 }
  0x42   :  { %2421 = vmatmul.mubr.bf16.gmra.mrb[16].mxu0 %v2510_v26  ;;  %2453 = vmatmul.mubr.bf16.gmra.mrb[16].mxu1 %v2511_v27  ;;  %v246_v26 = vmul.f32 %v1878_v59, %v2719_v42  ;;  %v2006_v27 = vunpack.c.h.bf16 %v2286_v50 }
  0x43   :  { %2424 = vmatprep.mubr.bf16.mxu0 %v2512_v28  ;;  %2456 = vmatprep.mubr.bf16.mxu1 %v2513_v29  ;;  %v2828_v28 = vadd.f32 %v2815_v19, %v1402_v20  ;;  %v2831_v29 = vadd.f32 %v2815_v19, %v1368_v22  ;;  %v1401_v20 = vmul.f32 %v2194_v4, %v2793_v9  ;;  %v1949_v22 = vunpack.c.l.bf16 %v2890_v0 }
  0x4a   :  { %2425 = vmatmul.mubr.bf16.gmra.mrb[20].mxu0 %v2514_v30  ;;  %2457 = vmatmul.mubr.bf16.gmra.mrb[20].mxu1 %v2515_v31  ;;  %v2834_v30 = vadd.f32 %v2788_v8, %v1070_v23  ;;  %v2134_v31 = vunpack.c.h.bf16 %v2317_v61  ;;  %v2256_v23 = vld [vmem:[%s4533_s2 + $0x10] sm:$0xff]  }
  0x4b   :  { %2428 = vmatprep.mubr.bf16.mxu0 %v2516_v32  ;;  %2460 = vmatprep.mubr.bf16.mxu1 %v2517_v33  ;;  %v1400_v32 = vmul.f32 %v2193_v25, %v2793_v9  ;;  %v2838_v33 = vadd.f32 %v2725_v44, %v246_v26  ;;  %v2919_v25 = vadd.f32 %v2788_v8, %v1071_v58 }
  0x4c   :  { %v249_v26 = vmul.f32 %v1885_v6, %v2719_v42 }
  0x4d   :  { %v2845_v40 = vadd.f32 %v2815_v19, %v1400_v32  ;;  %v2287_v32 = vld [vmem:[%s4535_s4 + $0x10] sm:$0xff]  }
  0x4e   :  { %v2943_v46 = vadd.f32 %v2725_v44, %v249_v26  ;;  %v2009_v2 = vunpack.c.l.bf16 %v2287_v32 }
  0x52   :  { %2429 = vmatmul.mubr.bf16.gmra.mrb[24].mxu0 %v2518_v34  ;;  %2461 = vmatmul.mubr.bf16.gmra.mrb[24].mxu1 %v2519_v35  ;;  %v1041_v34 = vmul.f32 %v2006_v27, %v2766_v60  ;;  %v1942_v35 = vunpack.c.h.bf16 %v2730_v45  ;;  %v1044_v27 = vmul.f32 %v2013_v7, %v2766_v60 }
  0x53   :  { %2432 = vmatprep.mubr.bf16.mxu0 %v2520_v36  ;;  %2464 = vmatprep.mubr.bf16.mxu1 %v2521_v37  ;;  %v1371_v36 = vmul.f32 %v2134_v31, %v2793_v9  ;;  %v2070_v37 = vunpack.c.h.bf16 %v2302_v51  ;;  %v1374_v31 = vmul.f32 %v2141_v10, %v2793_v9 }
  0x54   :  { %v2848_v41 = vadd.f32 %v2788_v8, %v1041_v34  ;;  %v278_v43 = vmul.f32 %v1942_v35, %v2719_v42  ;;  %v2928_v34 = vadd.f32 %v2815_v19, %v1401_v20  ;;  %v281_v35 = vmul.f32 %v1949_v22, %v2719_v42 }
  0x55   :  { %v2852_v50 = vadd.f32 %v2815_v19, %v1371_v36  ;;  %v1073_v45 = vmul.f32 %v2070_v37, %v2766_v60  ;;  %v2077_v36 = vunpack.c.l.bf16 %v2304_v12  ;;  %v2205_v37 = vunpack.c.l.bf16 %v2335_v13 }
  0x56   :  { %v2957_v54 = vadd.f32 %v2725_v44, %v281_v35  ;;  %v1042_v20 = vmul.f32 %v2009_v2, %v2766_v60  ;;  %v2201_v22 = vunpack.c.l.bf16 %v2954_v53 }
  0x57   :  { %v2873_v59 = vadd.f32 %v2788_v8, %v1073_v45  ;;  %v2946_v45 = vadd.f32 %v2788_v8, %v1044_v27  ;;  %v1076_v55 = vmul.f32 %v2077_v36, %v2766_v60  ;;  %v1406_v48 = vmul.f32 %v2205_v37, %v2793_v9 }
  0x58   :  { %v2978_v36 = vadd.f32 %v2788_v8, %v1042_v20  ;;  %v1404_v37 = vmul.f32 %v2201_v22, %v2793_v9  ;;  %v2078_v22 = vunpack.c.h.bf16 %v2304_v12 }
  0x59   :  { %v2964_v7 = vadd.f32 %v2788_v8, %v1076_v55  ;;  %v2967_v10 = vadd.f32 %v2815_v19, %v1406_v48  ;;  %v2014_v55 = vunpack.c.h.bf16 %v2870_v57  ;;  %v1950_v57 = vunpack.c.h.bf16 %v2890_v0 }
  0x5a   :  { %2433 = vmatmul.mubr.bf16.gmra.mrb[28].mxu0 %v2522_v38  ;;  %2465 = vmatmul.mubr.bf16.gmra.mrb[28].mxu1 %v2523_v39  ;;  %v2198_v38 = vunpack.c.h.bf16 %v2333_v62  ;;  %v1874_v39 = vunpack.c.h.bf16 %v2736_v47  ;;  %v2858_v47 = vadd.f32 %v2725_v44, %v278_v43  ;;  %v2940_v43 = vld [vmem:[%s4535_s4 + $0x90] sm:$0xff]   ;;  %4542 = vst [vmem:[#allocation4_spill] sm:$0xff] %v2978_v36 }
  0x5b   :  { %v2073_v6 = vunpack.c.l.bf16 %v2940_v43  ;;  %4541 = vst [vmem:[#allocation3_spill] sm:$0xff] %v2967_v10 }
  0x5c   :  { %v1403_v52 = vmul.f32 %v2198_v38, %v2793_v9  ;;  %v244_v51 = vmul.f32 %v1874_v39, %v2719_v42  ;;  %v2318_v38 = vld [vmem:[%s4537_s6 + $0x10] sm:$0xff]  }
  0x5d   :  { %v2272_v39 = vld [vmem:[%s4533_s2 + $0x90] sm:$0xff]   ;;  %v2137_v4 = vunpack.c.l.bf16 %v2318_v38  ;;  %v1074_v35 = vmul.f32 %v2073_v6, %v2766_v60 }
  0x5e   :  { %v2876_v61 = vadd.f32 %v2815_v19, %v1403_v52  ;;  %v2879_v62 = vadd.f32 %v2725_v44, %v244_v51  ;;  %v2949_v52 = vadd.f32 %v2815_v19, %v1374_v31  ;;  %v1881_v51 = vunpack.c.l.bf16 %v2256_v23 }
  0x5f   :  { %v1945_v58 = vunpack.c.l.bf16 %v2272_v39  ;;  %v1372_v27 = vmul.f32 %v2137_v4, %v2793_v9  ;;  %v2142_v4 = vunpack.c.h.bf16 %v2885_v63  ;;  %v282_v63 = vmul.f32 %v1950_v57, %v2719_v42  ;;  %v3030_v57 = vld [vmem:[%s4537_s6 + $0x28] sm:$0xff]  }
  0x60   :  { %4540 = vst [vmem:[#allocation2_spill] sm:$0xff] %v2949_v52  ;;  %v247_v3 = vmul.f32 %v1881_v51, %v2719_v42  ;;  %v1886_v51 = vunpack.c.h.bf16 %v2865_v56  ;;  %v1045_v56 = vmul.f32 %v2014_v55, %v2766_v60  ;;  %v1077_v55 = vmul.f32 %v2078_v22, %v2766_v60 }
  0x61   :  { %v279_v31 = vmul.f32 %v1945_v58, %v2719_v42  ;;  %v2984_v48 = vadd.f32 %v2815_v19, %v1372_v27  ;;  %v2994_v58 = vadd.f32 %v2815_v19, %v1404_v37  ;;  %v1375_v20 = vmul.f32 %v2142_v4, %v2793_v9 }
  0x62   :  { %v2972_v26 = vadd.f32 %v2725_v44, %v247_v3  ;;  %v2990_v3 = vadd.f32 %v2788_v8, %v1074_v35  ;;  %v250_v6 = vmul.f32 %v1886_v51, %v2719_v42  ;;  %v2206_v27 = vunpack.c.h.bf16 %v2335_v13 }
  0x63   :  { %4543 = vst [vmem:[#allocation5_spill] sm:$0xff] %v2984_v48  ;;  %v2987_v2 = vadd.f32 %v2725_v44, %v279_v31  ;;  %4545 = vst [vmem:[#allocation7_spill] sm:$0xff] %v2994_v58  ;;  %v1882_v31 = vunpack.c.h.bf16 %v2256_v23  ;;  %v3004_v35 = vadd.f32 %v2788_v8, %v1045_v56  ;;  %v2010_v37 = vunpack.c.h.bf16 %v2287_v32  ;;  %v3020_v32 = vld [vmem:[%s4533_s2 + $0x28] sm:$0xff]  }
  0x64   :  { %4544 = vst [vmem:[#allocation6_spill] sm:$0xff] %v2990_v3  ;;  %v3001_v48 = vadd.f32 %v2725_v44, %v250_v6  ;;  %v3008_v51 = vadd.f32 %v2815_v19, %v1375_v20  ;;  %v1407_v0 = vmul.f32 %v2206_v27, %v2793_v9  ;;  %v3014_v13 = vadd.f32 %v2725_v44, %v282_v63  ;;  %v3025_v56 = vld [vmem:[%s4535_s4 + $0x28] sm:$0xff]  }
  0x65   :  { %4547 = vst [vmem:[#allocation9_spill] sm:$0xff] %v3004_v35  ;;  %v248_v12 = vmul.f32 %v1882_v31, %v2719_v42  ;;  %v1043_v23 = vmul.f32 %v2010_v37, %v2766_v60  ;;  %v2138_v4 = vunpack.c.h.bf16 %v2318_v38  ;;  %v1946_v6 = vunpack.c.h.bf16 %v2272_v39  ;;  %v3045_v27 = vld [vmem:[%s4533_s2 + $0xa8] sm:$0xff]  }
  0x66   :  { %4546 = vst [vmem:[#allocation8_spill] sm:$0xff] %v3001_v48  ;;  %4548 = vst [vmem:[#allocation10_spill] sm:$0xff] %v3008_v51  ;;  %v3033_v20 = vadd.f32 %v2788_v8, %v1077_v55  ;;  %v3036_v38 = vadd.f32 %v2815_v19, %v1407_v0  ;;  %v2074_v22 = vunpack.c.h.bf16 %v2940_v43  ;;  %v2202_v55 = vunpack.c.h.bf16 %v2954_v53  ;;  %v2306_v51 = vld [vmem:[%s4535_s4 + $0xa8] sm:$0xff]  }
  0x67   :  { %4549 = vst [vmem:[#allocation11_spill] sm:$0xff] %v3014_v13  ;;  %v3039_v39 = vadd.f32 %v2725_v44, %v248_v12  ;;  %v3048_v31 = vadd.f32 %v2788_v8, %v1043_v23  ;;  %v1373_v63 = vmul.f32 %v2138_v4, %v2793_v9  ;;  %v280_v37 = vmul.f32 %v1946_v6, %v2719_v42  ;;  %v2337_v23 = vld [vmem:[%s4537_s6 + $0xa8] sm:$0xff]  }
  0x68   :  { %4550 = vst [vmem:[#allocation12_spill] sm:$0xff] %v3033_v20  ;;  %4551 = vst [vmem:[#allocation13_spill] sm:$0xff] %v3036_v38  ;;  %v1075_v0 = vmul.f32 %v2074_v22, %v2766_v60  ;;  %v1893_v12 = vunpack.c.l.bf16 %v3020_v32  ;;  %v2021_v43 = vunpack.c.l.bf16 %v3025_v56  ;;  %v2149_v38 = vunpack.c.l.bf16 %v3030_v57 }
  0x69   :  { %4552 = vst [vmem:[#allocation14_spill] sm:$0xff] %v3039_v39  ;;  %4553 = vst [vmem:[#allocation15_spill] sm:$0xff] %v3048_v31  ;;  %v3064_v4 = vadd.f32 %v2815_v19, %v1373_v63  ;;  %v3067_v53 = vadd.f32 %v2725_v44, %v280_v37  ;;  %v1405_v6 = vmul.f32 %v2202_v55, %v2793_v9  ;;  %v1957_v22 = vunpack.c.l.bf16 %v3045_v27  ;;  %v2258_v31 = vld [vmem:[%s4533_s2 + $0x20] sm:$0xff]  }
  0x6a   :  { %v3075_v58 = vadd.f32 %v2788_v8, %v1075_v0  ;;  %v253_v20 = vmul.f32 %v1893_v12, %v2719_v42  ;;  %v1048_v35 = vmul.f32 %v2021_v43, %v2766_v60  ;;  %v1378_v63 = vmul.f32 %v2149_v38, %v2793_v9  ;;  %v2289_v37 = vld [vmem:[%s4535_s4 + $0x20] sm:$0xff]  }
  0x6b   :  { %4554 = vst [vmem:[#allocation16_spill] sm:$0xff] %v3064_v4  ;;  %4555 = vst [vmem:[#allocation17_spill] sm:$0xff] %v3067_v53  ;;  %v3084_v55 = vadd.f32 %v2815_v19, %v1405_v6  ;;  %v285_v4 = vmul.f32 %v1957_v22, %v2719_v42  ;;  %v2085_v10 = vunpack.c.l.bf16 %v2306_v51  ;;  %v2213_v52 = vunpack.c.l.bf16 %v2337_v23  ;;  %v2320_v0 = vld [vmem:[%s4537_s6 + $0x20] sm:$0xff]  }
  0x6c   :  { %4556 = vst [vmem:[#allocation18_spill] sm:$0xff] %v3075_v58  ;;  %v2274_v12 = vld [vmem:[%s4533_s2 + $0xa0] sm:$0xff]   ;;  %v3099_v43 = vadd.f32 %v2725_v44, %v253_v20  ;;  %v3102_v6 = vadd.f32 %v2788_v8, %v1048_v35  ;;  %v3105_v22 = vadd.f32 %v2815_v19, %v1378_v63 }
  0x6d   :  { %4557 = vst [vmem:[#allocation19_spill] sm:$0xff] %v3084_v55  ;;  %v3096_v38 = vld [vmem:[%s4535_s4 + $0xa0] sm:$0xff]   ;;  %v1889_v55 = vunpack.c.l.bf16 %v2258_v31  ;;  %v3113_v53 = vadd.f32 %v2725_v44, %v285_v4  ;;  %v1080_v39 = vmul.f32 %v2085_v10, %v2766_v60  ;;  %v1410_v20 = vmul.f32 %v2213_v52, %v2793_v9 }
  0x6e   :  { %4558 = vst [vmem:[#allocation20_spill] sm:$0xff] %v3099_v43  ;;  %4559 = vst [vmem:[#allocation21_spill] sm:$0xff] %v3102_v6  ;;  %v3110_v58 = vld [vmem:[%s4537_s6 + $0xa0] sm:$0xff]   ;;  %v2017_v43 = vunpack.c.l.bf16 %v2289_v37  ;;  %v2145_v6 = vunpack.c.l.bf16 %v2320_v0  ;;  %v1953_v3 = vunpack.c.l.bf16 %v2274_v12  ;;  %v2081_v63 = vunpack.c.l.bf16 %v3096_v38 }
  0x6f   :  { %4560 = vst [vmem:[#allocation22_spill] sm:$0xff] %v3105_v22  ;;  %4561 = vst [vmem:[#allocation23_spill] sm:$0xff] %v3113_v53  ;;  %v251_v35 = vmul.f32 %v1889_v55, %v2719_v42  ;;  %v3120_v22 = vadd.f32 %v2788_v8, %v1080_v39  ;;  %v3123_v36 = vadd.f32 %v2815_v19, %v1410_v20  ;;  %v2209_v53 = vunpack.c.l.bf16 %v3110_v58 }
  0x70   :  { %v1046_v4 = vmul.f32 %v2017_v43, %v2766_v60  ;;  %v1376_v52 = vmul.f32 %v2145_v6, %v2793_v9  ;;  %v283_v55 = vmul.f32 %v1953_v3, %v2719_v42  ;;  %v1078_v13 = vmul.f32 %v2081_v63, %v2766_v60 }
  0x71   :  { %4562 = vst [vmem:[#allocation24_spill] sm:$0xff] %v3120_v22  ;;  %4563 = vst [vmem:[#allocation25_spill] sm:$0xff] %v3123_v36  ;;  %v3128_v10 = vadd.f32 %v2725_v44, %v251_v35  ;;  %v1408_v39 = vmul.f32 %v2209_v53, %v2793_v9  ;;  %v1894_v20 = vunpack.c.h.bf16 %v3020_v32  ;;  %v2022_v43 = vunpack.c.h.bf16 %v3025_v56 }
  0x72   :  { %v3134_v48 = vadd.f32 %v2788_v8, %v1046_v4  ;;  %v3140_v36 = vadd.f32 %v2815_v19, %v1376_v52  ;;  %v3143_v35 = vadd.f32 %v2725_v44, %v283_v55  ;;  %v3146_v6 = vadd.f32 %v2788_v8, %v1078_v13 }
  0x73   :  { %4564 = vst [vmem:[#allocation26_spill] sm:$0xff] %v3128_v10  ;;  %v2150_v3 = vunpack.c.h.bf16 %v3030_v57  ;;  %v3150_v63 = vadd.f32 %v2815_v19, %v1408_v39  ;;  %v254_v53 = vmul.f32 %v1894_v20, %v2719_v42  ;;  %v1049_v32 = vmul.f32 %v2022_v43, %v2766_v60 }
  0x74   :  { %4565 = vst [vmem:[#allocation27_spill] sm:$0xff] %v3134_v48  ;;  %4566 = vst [vmem:[#allocation28_spill] sm:$0xff] %v3140_v36  ;;  %v1958_v56 = vunpack.c.h.bf16 %v3045_v27  ;;  %v2086_v52 = vunpack.c.h.bf16 %v2306_v51  ;;  %v2214_v36 = vunpack.c.h.bf16 %v2337_v23  ;;  %v1890_v55 = vunpack.c.h.bf16 %v2258_v31 }
  0x75   :  { %4567 = vst [vmem:[#allocation29_spill] sm:$0xff] %v3143_v35  ;;  %4568 = vst [vmem:[#allocation30_spill] sm:$0xff] %v3146_v6  ;;  %v1379_v4 = vmul.f32 %v2150_v3, %v2793_v9  ;;  %v3157_v48 = vadd.f32 %v2725_v44, %v254_v53  ;;  %v3160_v13 = vadd.f32 %v2788_v8, %v1049_v32  ;;  %v2018_v39 = vunpack.c.h.bf16 %v2289_v37  ;;  %v3176_v37 = vld [vmem:[%s4533_s2 + $0x38] sm:$0xff]  }
  0x76   :  { %4569 = vst [vmem:[#allocation31_spill] sm:$0xff] %v3150_v63  ;;  %v286_v57 = vmul.f32 %v1958_v56, %v2719_v42  ;;  %v1081_v43 = vmul.f32 %v2086_v52, %v2766_v60  ;;  %v1411_v27 = vmul.f32 %v2214_v36, %v2793_v9  ;;  %v252_v51 = vmul.f32 %v1890_v55, %v2719_v42  ;;  %v3181_v32 = vld [vmem:[%s4535_s4 + $0x38] sm:$0xff]  }
  0x77   :  { %4570 = vst [vmem:[#allocation32_spill] sm:$0xff] %v3157_v48  ;;  %4571 = vst [vmem:[#allocation33_spill] sm:$0xff] %v3160_v13  ;;  %v3164_v20 = vadd.f32 %v2815_v19, %v1379_v4  ;;  %v1047_v23 = vmul.f32 %v2018_v39, %v2766_v60  ;;  %v2146_v3 = vunpack.c.h.bf16 %v2320_v0  ;;  %v1954_v53 = vunpack.c.h.bf16 %v2274_v12  ;;  %v3186_v36 = vld [vmem:[%s4537_s6 + $0x38] sm:$0xff]  }
  0x78   :  { %v3170_v31 = vadd.f32 %v2725_v44, %v286_v57  ;;  %v3189_v56 = vadd.f32 %v2788_v8, %v1081_v43  ;;  %v3192_v0 = vadd.f32 %v2815_v19, %v1411_v27  ;;  %v3195_v12 = vadd.f32 %v2725_v44, %v252_v51  ;;  %v3201_v52 = vld [vmem:[%s4533_s2 + $0xb8] sm:$0xff]  }
  0x79   :  { %4572 = vst [vmem:[#allocation34_spill] sm:$0xff] %v3164_v20  ;;  %v2082_v4 = vunpack.c.h.bf16 %v3096_v38  ;;  %v3204_v55 = vadd.f32 %v2788_v8, %v1047_v23  ;;  %v1377_v57 = vmul.f32 %v2146_v3, %v2793_v9  ;;  %v284_v39 = vmul.f32 %v1954_v53, %v2719_v42  ;;  %v2308_v20 = vld [vmem:[%s4535_s4 + $0xb8] sm:$0xff]  }
  0x7a   :  { %4573 = vst [vmem:[#allocation35_spill] sm:$0xff] %v3170_v31  ;;  %4574 = vst [vmem:[#allocation36_spill] sm:$0xff] %v3189_v56  ;;  %v2210_v43 = vunpack.c.h.bf16 %v3110_v58  ;;  %v1901_v51 = vunpack.c.l.bf16 %v3176_v37  ;;  %v2029_v38 = vunpack.c.l.bf16 %v3181_v32  ;;  %v2339_v23 = vld [vmem:[%s4537_s6 + $0xb8] sm:$0xff]  }
  0x7b   :  { %4575 = vst [vmem:[#allocation37_spill] sm:$0xff] %v3192_v0  ;;  %4576 = vst [vmem:[#allocation38_spill] sm:$0xff] %v3195_v12  ;;  %v1079_v27 = vmul.f32 %v2082_v4, %v2766_v60  ;;  %v2157_v0 = vunpack.c.l.bf16 %v3186_v36  ;;  %v3220_v3 = vadd.f32 %v2815_v19, %v1377_v57  ;;  %v3223_v58 = vadd.f32 %v2725_v44, %v284_v39  ;;  %v2291_v39 = vld [vmem:[%s4535_s4 + $0x30] sm:$0xff]  }
  0x7c   :  { %4577 = vst [vmem:[#allocation39_spill] sm:$0xff] %v3204_v55  ;;  %v1409_v53 = vmul.f32 %v2210_v43, %v2793_v9  ;;  %v1965_v4 = vunpack.c.l.bf16 %v3201_v52  ;;  %v2260_v55 = vld [vmem:[%s4533_s2 + $0x30] sm:$0xff]   ;;  %v257_v56 = vmul.f32 %v1901_v51, %v2719_v42  ;;  %v1052_v13 = vmul.f32 %v2029_v38, %v2766_v60 }
  0x7d   :  { %4578 = vst [vmem:[#allocation40_spill] sm:$0xff] %v3220_v3  ;;  %4579 = vst [vmem:[#allocation41_spill] sm:$0xff] %v3223_v58  ;;  %v3231_v63 = vadd.f32 %v2788_v8, %v1079_v27  ;;  %v1382_v57 = vmul.f32 %v2157_v0, %v2793_v9  ;;  %v2093_v58 = vunpack.c.l.bf16 %v2308_v20  ;;  %v2221_v12 = vunpack.c.l.bf16 %v2339_v23  ;;  %v2322_v27 = vld [vmem:[%s4537_s6 + $0x30] sm:$0xff]  }
  0x7e   :  { %v3240_v43 = vadd.f32 %v2815_v19, %v1409_v53  ;;  %v289_v3 = vmul.f32 %v1965_v4, %v2719_v42  ;;  %v2276_v51 = vld [vmem:[%s4533_s2 + $0xb0] sm:$0xff]   ;;  %v3255_v38 = vadd.f32 %v2725_v44, %v257_v56  ;;  %v3258_v53 = vadd.f32 %v2788_v8, %v1052_v13 }
  0x7f   :  { %4580 = vst [vmem:[#allocation42_spill] sm:$0xff] %v3231_v63  ;;  %v3252_v0 = vld [vmem:[%s4535_s4 + $0xb0] sm:$0xff]   ;;  %v3261_v4 = vadd.f32 %v2815_v19, %v1382_v57  ;;  %v1084_v31 = vmul.f32 %v2093_v58, %v2766_v60  ;;  %v1414_v56 = vmul.f32 %v2221_v12, %v2793_v9  ;;  %v1961_v48 = vunpack.c.l.bf16 %v2276_v51 }
  0x80   :  { %4581 = vst [vmem:[#allocation43_spill] sm:$0xff] %v3240_v43  ;;  %4582 = vst [vmem:[#allocation44_spill] sm:$0xff] %v3255_v38  ;;  %v1897_v43 = vunpack.c.l.bf16 %v2260_v55  ;;  %v3266_v63 = vld [vmem:[%s4537_s6 + $0xb0] sm:$0xff]   ;;  %v3269_v6 = vadd.f32 %v2725_v44, %v289_v3  ;;  %v2025_v38 = vunpack.c.l.bf16 %v2291_v39  ;;  %v2089_v57 = vunpack.c.l.bf16 %v3252_v0 }
  0x81   :  { %4583 = vst [vmem:[#allocation45_spill] sm:$0xff] %v3258_v53  ;;  %4584 = vst [vmem:[#allocation46_spill] sm:$0xff] %v3261_v4  ;;  %v2153_v53 = vunpack.c.l.bf16 %v2322_v27  ;;  %v3276_v4 = vadd.f32 %v2788_v8, %v1084_v31  ;;  %v3279_v22 = vadd.f32 %v2815_v19, %v1414_v56  ;;  %v1902_v56 = vunpack.c.h.bf16 %v3176_v37 }
  0x82   :  { %4585 = vst [vmem:[#allocation47_spill] sm:$0xff] %v3269_v6  ;;  %v255_v13 = vmul.f32 %v1897_v43, %v2719_v42  ;;  %v1050_v3 = vmul.f32 %v2025_v38, %v2766_v60  ;;  %v2217_v6 = vunpack.c.l.bf16 %v3266_v63  ;;  %v287_v43 = vmul.f32 %v1961_v48, %v2719_v42 }
  0x83   :  { %4586 = vst [vmem:[#allocation48_spill] sm:$0xff] %v3276_v4  ;;  %4587 = vst [vmem:[#allocation49_spill] sm:$0xff] %v3279_v22  ;;  %v1380_v12 = vmul.f32 %v2153_v53, %v2793_v9  ;;  %v1082_v35 = vmul.f32 %v2089_v57, %v2766_v60  ;;  %v2030_v38 = vunpack.c.h.bf16 %v3181_v32  ;;  %v2158_v48 = vunpack.c.h.bf16 %v3186_v36 }
  0x84   :  { %v3284_v58 = vadd.f32 %v2725_v44, %v255_v13  ;;  %v3290_v10 = vadd.f32 %v2788_v8, %v1050_v3  ;;  %v1412_v31 = vmul.f32 %v2217_v6, %v2793_v9  ;;  %v3299_v13 = vadd.f32 %v2725_v44, %v287_v43 }
  0x85   :  { %v3296_v22 = vadd.f32 %v2815_v19, %v1380_v12  ;;  %v3302_v53 = vadd.f32 %v2788_v8, %v1082_v35  ;;  %v258_v6 = vmul.f32 %v1902_v56, %v2719_v42  ;;  %v1053_v37 = vmul.f32 %v2030_v38, %v2766_v60 }
  0x86   :  { %4588 = vst [vmem:[#allocation50_spill] sm:$0xff] %v3284_v58  ;;  %4589 = vst [vmem:[#allocation51_spill] sm:$0xff] %v3290_v10  ;;  %v3306_v57 = vadd.f32 %v2815_v19, %v1412_v31  ;;  %v1966_v32 = vunpack.c.h.bf16 %v3201_v52  ;;  %v1383_v3 = vmul.f32 %v2158_v48, %v2793_v9  ;;  %v2094_v12 = vunpack.c.h.bf16 %v2308_v20 }
  0x87   :  { %4590 = vst [vmem:[#allocation52_spill] sm:$0xff] %v3296_v22  ;;  %4591 = vst [vmem:[#allocation53_spill] sm:$0xff] %v3299_v13  ;;  %v2222_v22 = vunpack.c.h.bf16 %v2339_v23  ;;  %v1898_v43 = vunpack.c.h.bf16 %v2260_v55  ;;  %v3313_v10 = vadd.f32 %v2725_v44, %v258_v6  ;;  %v3316_v35 = vadd.f32 %v2788_v8, %v1053_v37  ;;  %v3337_v37 = vld [vmem:[%s4535_s4 + $0x48] sm:$0xff]  }
  0x88   :  { %4592 = vst [vmem:[#allocation54_spill] sm:$0xff] %v3302_v53  ;;  %4593 = vst [vmem:[#allocation55_spill] sm:$0xff] %v3306_v57  ;;  %v290_v36 = vmul.f32 %v1966_v32, %v2719_v42  ;;  %v2026_v31 = vunpack.c.h.bf16 %v2291_v39  ;;  %v3320_v56 = vadd.f32 %v2815_v19, %v1383_v3  ;;  %v1085_v38 = vmul.f32 %v2094_v12, %v2766_v60  ;;  %v3332_v39 = vld [vmem:[%s4533_s2 + $0x48] sm:$0xff]  }
  0x89   :  { %4594 = vst [vmem:[#allocation56_spill] sm:$0xff] %v3313_v10  ;;  %4595 = vst [vmem:[#allocation57_spill] sm:$0xff] %v3316_v35  ;;  %v1415_v52 = vmul.f32 %v2222_v22, %v2793_v9  ;;  %v256_v20 = vmul.f32 %v1898_v43, %v2719_v42  ;;  %v2154_v48 = vunpack.c.h.bf16 %v2322_v27  ;;  %v1962_v6 = vunpack.c.h.bf16 %v2276_v51  ;;  %v3342_v22 = vld [vmem:[%s4537_s6 + $0x48] sm:$0xff]  }
  0x8a   :  { %4596 = vst [vmem:[#allocation58_spill] sm:$0xff] %v3320_v56  ;;  %v3326_v55 = vadd.f32 %v2725_v44, %v290_v36  ;;  %v1051_v23 = vmul.f32 %v2026_v31, %v2766_v60  ;;  %v3345_v32 = vadd.f32 %v2788_v8, %v1085_v38  ;;  %v2090_v3 = vunpack.c.h.bf16 %v3252_v0  ;;  %v3357_v12 = vld [vmem:[%s4533_s2 + $0xc8] sm:$0xff]  }
  0x8b   :  { %v3348_v27 = vadd.f32 %v2815_v19, %v1415_v52  ;;  %v3351_v51 = vadd.f32 %v2725_v44, %v256_v20  ;;  %v1381_v36 = vmul.f32 %v2154_v48, %v2793_v9  ;;  %v288_v31 = vmul.f32 %v1962_v6, %v2719_v42  ;;  %v2310_v56 = vld [vmem:[%s4535_s4 + $0xc8] sm:$0xff]  }
  0x8c   :  { %4597 = vst [vmem:[#allocation59_spill] sm:$0xff] %v3326_v55  ;;  %4598 = vst [vmem:[#allocation60_spill] sm:$0xff] %v3345_v32  ;;  %v3360_v43 = vadd.f32 %v2788_v8, %v1051_v23  ;;  %v2218_v38 = vunpack.c.h.bf16 %v3266_v63  ;;  %v1083_v52 = vmul.f32 %v2090_v3, %v2766_v60  ;;  %v1909_v20 = vunpack.c.l.bf16 %v3332_v39  ;;  %v2341_v23 = vld [vmem:[%s4537_s6 + $0xc8] sm:$0xff]  }
  0x8d   :  { %4599 = vst [vmem:[#allocation61_spill] sm:$0xff] %v3348_v27  ;;  %4600 = vst [vmem:[#allocation62_spill] sm:$0xff] %v3351_v51  ;;  %v2037_v0 = vunpack.c.l.bf16 %v3337_v37  ;;  %v2165_v27 = vunpack.c.l.bf16 %v3342_v22  ;;  %v3376_v48 = vadd.f32 %v2815_v19, %v1381_v36  ;;  %v3379_v63 = vadd.f32 %v2725_v44, %v288_v31  ;;  %v2293_v31 = vld [vmem:[%s4535_s4 + $0x40] sm:$0xff]  }
  0x8e   :  { %4601 = vst [vmem:[#allocation63_spill] sm:$0xff] %v3360_v43  ;;  %v1413_v6 = vmul.f32 %v2218_v38, %v2793_v9  ;;  %v1973_v3 = vunpack.c.l.bf16 %v3357_v12  ;;  %v2262_v43 = vld [vmem:[%s4533_s2 + $0x40] sm:$0xff]   ;;  %v3387_v57 = vadd.f32 %v2788_v8, %v1083_v52  ;;  %v261_v32 = vmul.f32 %v1909_v20, %v2719_v42 }
  0x8f   :  { %4602 = vst [vmem:[#allocation64_spill] sm:$0xff] %v3376_v48  ;;  %4603 = vst [vmem:[#allocation65_spill] sm:$0xff] %v3379_v63  ;;  %v1056_v35 = vmul.f32 %v2037_v0, %v2766_v60  ;;  %v1386_v36 = vmul.f32 %v2165_v27, %v2793_v9  ;;  %v2101_v63 = vunpack.c.l.bf16 %v2310_v56  ;;  %v2229_v51 = vunpack.c.l.bf16 %v2341_v23  ;;  %v2324_v52 = vld [vmem:[%s4537_s6 + $0x40] sm:$0xff]  }
  0x90   :  { %4604 = vst [vmem:[#allocation66_spill] sm:$0xff] %v3387_v57  ;;  %v3396_v38 = vadd.f32 %v2815_v19, %v1413_v6  ;;  %v293_v48 = vmul.f32 %v1973_v3, %v2719_v42  ;;  %v2278_v20 = vld [vmem:[%s4533_s2 + $0xc0] sm:$0xff]   ;;  %v3411_v0 = vadd.f32 %v2725_v44, %v261_v32 }
  0x91   :  { %v3408_v27 = vld [vmem:[%s4535_s4 + $0xc0] sm:$0xff]   ;;  %v3414_v6 = vadd.f32 %v2788_v8, %v1056_v35  ;;  %v3417_v3 = vadd.f32 %v2815_v19, %v1386_v36  ;;  %v1088_v55 = vmul.f32 %v2101_v63, %v2766_v60  ;;  %v1418_v32 = vmul.f32 %v2229_v51, %v2793_v9 }
  0x92   :  { %4605 = vst [vmem:[#allocation67_spill] sm:$0xff] %v3396_v38  ;;  %4606 = vst [vmem:[#allocation68_spill] sm:$0xff] %v3411_v0  ;;  %v1905_v38 = vunpack.c.l.bf16 %v2262_v43  ;;  %v3422_v57 = vld [vmem:[%s4537_s6 + $0xc0] sm:$0xff]   ;;  %v3425_v53 = vadd.f32 %v2725_v44, %v293_v48  ;;  %v2033_v0 = vunpack.c.l.bf16 %v2293_v31  ;;  %v1969_v10 = vunpack.c.l.bf16 %v2278_v20 }
  0x93   :  { %4607 = vst [vmem:[#allocation69_spill] sm:$0xff] %v3414_v6  ;;  %4608 = vst [vmem:[#allocation70_spill] sm:$0xff] %v3417_v3  ;;  %v2161_v6 = vunpack.c.l.bf16 %v2324_v52  ;;  %v2097_v36 = vunpack.c.l.bf16 %v3408_v27  ;;  %v3432_v3 = vadd.f32 %v2788_v8, %v1088_v55  ;;  %v3435_v4 = vadd.f32 %v2815_v19, %v1418_v32 }
  0x94   :  { %4609 = vst [vmem:[#allocation71_spill] sm:$0xff] %v3425_v53  ;;  %v259_v35 = vmul.f32 %v1905_v38, %v2719_v42  ;;  %v1054_v48 = vmul.f32 %v2033_v0, %v2766_v60  ;;  %v2225_v53 = vunpack.c.l.bf16 %v3422_v57  ;;  %v291_v38 = vmul.f32 %v1969_v10, %v2719_v42 }
  0x95   :  { %4610 = vst [vmem:[#allocation72_spill] sm:$0xff] %v3432_v3  ;;  %4611 = vst [vmem:[#allocation73_spill] sm:$0xff] %v3435_v4  ;;  %v1384_v51 = vmul.f32 %v2161_v6, %v2793_v9  ;;  %v1086_v13 = vmul.f32 %v2097_v36, %v2766_v60  ;;  %v1910_v32 = vunpack.c.h.bf16 %v3332_v39  ;;  %v2038_v0 = vunpack.c.h.bf16 %v3337_v37 }
  0x96   :  { %v3440_v63 = vadd.f32 %v2725_v44, %v259_v35  ;;  %v3446_v58 = vadd.f32 %v2788_v8, %v1054_v48  ;;  %v1416_v55 = vmul.f32 %v2225_v53, %v2793_v9  ;;  %v3455_v35 = vadd.f32 %v2725_v44, %v291_v38 }
  0x97   :  { %v3452_v4 = vadd.f32 %v2815_v19, %v1384_v51  ;;  %v3458_v6 = vadd.f32 %v2788_v8, %v1086_v13  ;;  %v2166_v10 = vunpack.c.h.bf16 %v3342_v22  ;;  %v262_v53 = vmul.f32 %v1910_v32, %v2719_v42 }
  0x98   :  { %4612 = vst [vmem:[#allocation74_spill] sm:$0xff] %v3440_v63  ;;  %4613 = vst [vmem:[#allocation75_spill] sm:$0xff] %v3446_v58  ;;  %v3462_v36 = vadd.f32 %v2815_v19, %v1416_v55  ;;  %v1057_v39 = vmul.f32 %v2038_v0, %v2766_v60  ;;  %v1974_v37 = vunpack.c.h.bf16 %v3357_v12  ;;  %v2102_v51 = vunpack.c.h.bf16 %v2310_v56 }
  0x99   :  { %4614 = vst [vmem:[#allocation76_spill] sm:$0xff] %v3452_v4  ;;  %4615 = vst [vmem:[#allocation77_spill] sm:$0xff] %v3455_v35  ;;  %v1387_v48 = vmul.f32 %v2166_v10, %v2793_v9  ;;  %v2230_v4 = vunpack.c.h.bf16 %v2341_v23  ;;  %v1906_v38 = vunpack.c.h.bf16 %v2262_v43  ;;  %v3469_v58 = vadd.f32 %v2725_v44, %v262_v53 }
  0x9a   :  { %4616 = vst [vmem:[#allocation78_spill] sm:$0xff] %v3458_v6  ;;  %4617 = vst [vmem:[#allocation79_spill] sm:$0xff] %v3462_v36  ;;  %v3472_v13 = vadd.f32 %v2788_v8, %v1057_v39  ;;  %v294_v22 = vmul.f32 %v1974_v37, %v2719_v42  ;;  %v2034_v55 = vunpack.c.h.bf16 %v2293_v31  ;;  %v1089_v0 = vmul.f32 %v2102_v51, %v2766_v60  ;;  %v3488_v31 = vld [vmem:[%s4533_s2 + $0x58] sm:$0xff]  }
  0x9b   :  { %4618 = vst [vmem:[#allocation80_spill] sm:$0xff] %v3469_v58  ;;  %v3476_v32 = vadd.f32 %v2815_v19, %v1387_v48  ;;  %v1419_v12 = vmul.f32 %v2230_v4, %v2793_v9  ;;  %v260_v56 = vmul.f32 %v1906_v38, %v2719_v42  ;;  %v2162_v10 = vunpack.c.h.bf16 %v2324_v52  ;;  %v3493_v39 = vld [vmem:[%s4535_s4 + $0x58] sm:$0xff]  }
  0x9c   :  { %4619 = vst [vmem:[#allocation81_spill] sm:$0xff] %v3472_v13  ;;  %v3482_v43 = vadd.f32 %v2725_v44, %v294_v22  ;;  %v1055_v23 = vmul.f32 %v2034_v55, %v2766_v60  ;;  %v1970_v53 = vunpack.c.h.bf16 %v2278_v20  ;;  %v3498_v4 = vld [vmem:[%s4537_s6 + $0x58] sm:$0xff]   ;;  %v3501_v37 = vadd.f32 %v2788_v8, %v1089_v0 }
  0x9d   :  { %4620 = vst [vmem:[#allocation82_spill] sm:$0xff] %v3476_v32  ;;  %v3504_v52 = vadd.f32 %v2815_v19, %v1419_v12  ;;  %v3507_v20 = vadd.f32 %v2725_v44, %v260_v56  ;;  %v2098_v48 = vunpack.c.h.bf16 %v3408_v27  ;;  %v3513_v51 = vld [vmem:[%s4533_s2 + $0xd8] sm:$0xff]   ;;  %v1385_v22 = vmul.f32 %v2162_v10, %v2793_v9 }
  0x9e   :  { %4621 = vst [vmem:[#allocation83_spill] sm:$0xff] %v3482_v43  ;;  %4622 = vst [vmem:[#allocation84_spill] sm:$0xff] %v3501_v37  ;;  %v3516_v38 = vadd.f32 %v2788_v8, %v1055_v23  ;;  %v292_v55 = vmul.f32 %v1970_v53, %v2719_v42  ;;  %v2226_v0 = vunpack.c.h.bf16 %v3422_v57  ;;  %v1917_v56 = vunpack.c.l.bf16 %v3488_v31  ;;  %v2312_v32 = vld [vmem:[%s4535_s4 + $0xd8] sm:$0xff]  }
  0x9f   :  { %4623 = vst [vmem:[#allocation85_spill] sm:$0xff] %v3504_v52  ;;  %4624 = vst [vmem:[#allocation86_spill] sm:$0xff] %v3507_v20  ;;  %v1087_v12 = vmul.f32 %v2098_v48, %v2766_v60  ;;  %v2045_v27 = vunpack.c.l.bf16 %v3493_v39  ;;  %v2173_v52 = vunpack.c.l.bf16 %v3498_v4  ;;  %v2343_v23 = vld [vmem:[%s4537_s6 + $0xd8] sm:$0xff]   ;;  %v3532_v10 = vadd.f32 %v2815_v19, %v1385_v22 }
  0xa0   :  { %4625 = vst [vmem:[#allocation87_spill] sm:$0xff] %v3516_v38  ;;  %v3535_v57 = vadd.f32 %v2725_v44, %v292_v55  ;;  %v1417_v53 = vmul.f32 %v2226_v0, %v2793_v9  ;;  %v1981_v48 = vunpack.c.l.bf16 %v3513_v51  ;;  %v2264_v38 = vld [vmem:[%s4533_s2 + $0x50] sm:$0xff]   ;;  %v265_v37 = vmul.f32 %v1917_v56, %v2719_v42 }
  0xa1   :  { %4626 = vst [vmem:[#allocation88_spill] sm:$0xff] %v3532_v10  ;;  %v3543_v36 = vadd.f32 %v2788_v8, %v1087_v12  ;;  %v1060_v13 = vmul.f32 %v2045_v27, %v2766_v60  ;;  %v1390_v22 = vmul.f32 %v2173_v52, %v2793_v9  ;;  %v2295_v55 = vld [vmem:[%s4535_s4 + $0x50] sm:$0xff]   ;;  %v2237_v20 = vunpack.c.l.bf16 %v2343_v23 }
  0xa2   :  { %4627 = vst [vmem:[#allocation89_spill] sm:$0xff] %v3535_v57  ;;  %v3552_v0 = vadd.f32 %v2815_v19, %v1417_v53  ;;  %v297_v10 = vmul.f32 %v1981_v48, %v2719_v42  ;;  %v2109_v57 = vunpack.c.l.bf16 %v2312_v32  ;;  %v2326_v12 = vld [vmem:[%s4537_s6 + $0x50] sm:$0xff]   ;;  %v3567_v27 = vadd.f32 %v2725_v44, %v265_v37 }
  0xa3   :  { %4628 = vst [vmem:[#allocation90_spill] sm:$0xff] %v3543_v36  ;;  %v2280_v56 = vld [vmem:[%s4533_s2 + $0xd0] sm:$0xff]   ;;  %v3570_v53 = vadd.f32 %v2788_v8, %v1060_v13  ;;  %v3573_v48 = vadd.f32 %v2815_v19, %v1390_v22  ;;  %v1422_v37 = vmul.f32 %v2237_v20, %v2793_v9 }
  0xa4   :  { %4629 = vst [vmem:[#allocation91_spill] sm:$0xff] %v3552_v0  ;;  %v3564_v52 = vld [vmem:[%s4535_s4 + $0xd0] sm:$0xff]   ;;  %4630 = vst [vmem:[#allocation92_spill] sm:$0xff] %v3567_v27  ;;  %v1913_v0 = vunpack.c.l.bf16 %v2264_v38  ;;  %v3581_v6 = vadd.f32 %v2725_v44, %v297_v10  ;;  %v1092_v43 = vmul.f32 %v2109_v57, %v2766_v60  ;;  %v2041_v27 = vunpack.c.l.bf16 %v2295_v55 }
  0xa5   :  { %4631 = vst [vmem:[#allocation93_spill] sm:$0xff] %v3570_v53  ;;  %4632 = vst [vmem:[#allocation94_spill] sm:$0xff] %v3573_v48  ;;  %v3578_v36 = vld [vmem:[%s4537_s6 + $0xd0] sm:$0xff]   ;;  %v2169_v53 = vunpack.c.l.bf16 %v2326_v12  ;;  %v1977_v58 = vunpack.c.l.bf16 %v2280_v56  ;;  %v2105_v22 = vunpack.c.l.bf16 %v3564_v52  ;;  %v3591_v3 = vadd.f32 %v2815_v19, %v1422_v37 }
  0xa6   :  { %4633 = vst [vmem:[#allocation95_spill] sm:$0xff] %v3581_v6  ;;  %v263_v13 = vmul.f32 %v1913_v0, %v2719_v42  ;;  %v3588_v48 = vadd.f32 %v2788_v8, %v1092_v43  ;;  %v1058_v10 = vmul.f32 %v2041_v27, %v2766_v60  ;;  %v2233_v6 = vunpack.c.l.bf16 %v3578_v36 }
  0xa7   :  { %4634 = vst [vmem:[#allocation96_spill] sm:$0xff] %v3591_v3  ;;  %v1388_v20 = vmul.f32 %v2169_v53, %v2793_v9  ;;  %v295_v0 = vmul.f32 %v1977_v58, %v2719_v42  ;;  %v1090_v35 = vmul.f32 %v2105_v22, %v2766_v60  ;;  %v1918_v37 = vunpack.c.h.bf16 %v3488_v31 }
  0xa8   :  { %v3596_v57 = vadd.f32 %v2725_v44, %v263_v13  ;;  %v3602_v63 = vadd.f32 %v2788_v8, %v1058_v10  ;;  %v1420_v43 = vmul.f32 %v2233_v6, %v2793_v9  ;;  %v2046_v27 = vunpack.c.h.bf16 %v3493_v39 }
  0xa9   :  { %v3608_v3 = vadd.f32 %v2815_v19, %v1388_v20  ;;  %v3611_v13 = vadd.f32 %v2725_v44, %v295_v0  ;;  %v3614_v53 = vadd.f32 %v2788_v8, %v1090_v35  ;;  %v2174_v58 = vunpack.c.h.bf16 %v3498_v4 }
  0xaa   :  { %4635 = vst [vmem:[#allocation97_spill] sm:$0xff] %v3602_v63  ;;  %v3618_v22 = vadd.f32 %v2815_v19, %v1420_v43  ;;  %v266_v6 = vmul.f32 %v1918_v37, %v2719_v42  ;;  %v1061_v31 = vmul.f32 %v2046_v27, %v2766_v60  ;;  %v1982_v39 = vunpack.c.h.bf16 %v3513_v51 }
  0xab   :  { %4636 = vst [vmem:[#allocation98_spill] sm:$0xff] %v3608_v3  ;;  %4637 = vst [vmem:[#allocation99_spill] sm:$0xff] %v3614_v53  ;;  %v1391_v10 = vmul.f32 %v2174_v58, %v2793_v9  ;;  %v2110_v20 = vunpack.c.h.bf16 %v2312_v32  ;;  %v2238_v3 = vunpack.c.h.bf16 %v2343_v23  ;;  %v1914_v0 = vunpack.c.h.bf16 %v2264_v38 }
  0xac   :  { %4638 = vst [vmem:[#allocation100_spill] sm:$0xff] %v3618_v22  ;;  %v3625_v63 = vadd.f32 %v2725_v44, %v266_v6  ;;  %v3628_v35 = vadd.f32 %v2788_v8, %v1061_v31  ;;  %v298_v4 = vmul.f32 %v1982_v39, %v2719_v42  ;;  %v2042_v43 = vunpack.c.h.bf16 %v2295_v55  ;;  %v3644_v55 = vld [vmem:[%s4533_s2 + $0x68] sm:$0xff]   ;;  %v2297_v22 = vld [vmem:[%s4535_s4 + $0x60] sm:$0xff]  }
  0xad   :  { %v3632_v37 = vadd.f32 %v2815_v19, %v1391_v10  ;;  %v1093_v27 = vmul.f32 %v2110_v20, %v2766_v60  ;;  %v1423_v51 = vmul.f32 %v2238_v3, %v2793_v9  ;;  %v264_v32 = vmul.f32 %v1914_v0, %v2719_v42  ;;  %v3649_v31 = vld [vmem:[%s4535_s4 + $0x68] sm:$0xff]  }
  0xae   :  { %4639 = vst [vmem:[#allocation101_spill] sm:$0xff] %v3625_v63  ;;  %4640 = vst [vmem:[#allocation102_spill] sm:$0xff] %v3628_v35  ;;  %v3638_v38 = vadd.f32 %v2725_v44, %v298_v4  ;;  %v1059_v23 = vmul.f32 %v2042_v43, %v2766_v60  ;;  %v2170_v58 = vunpack.c.h.bf16 %v2326_v12  ;;  %v1978_v6 = vunpack.c.h.bf16 %v2280_v56  ;;  %v3654_v3 = vld [vmem:[%s4537_s6 + $0x68] sm:$0xff]  }
  0xaf   :  { %4641 = vst [vmem:[#allocation103_spill] sm:$0xff] %v3632_v37  ;;  %v3657_v39 = vadd.f32 %v2788_v8, %v1093_v27  ;;  %v3660_v12 = vadd.f32 %v2815_v19, %v1423_v51  ;;  %v3663_v56 = vadd.f32 %v2725_v44, %v264_v32  ;;  %v2106_v10 = vunpack.c.h.bf16 %v3564_v52  ;;  %v3669_v20 = vld [vmem:[%s4533_s2 + $0xe8] sm:$0xff]   ;;  %v3707_v37 = vld [vmem:[%s4533_s2 + $0x60] sm:$0xff]  }
  0xb0   :  { %4642 = vst [vmem:[#allocation104_spill] sm:$0xff] %v3638_v38  ;;  %v3672_v0 = vadd.f32 %v2788_v8, %v1059_v23  ;;  %v1389_v4 = vmul.f32 %v2170_v58, %v2793_v9  ;;  %v296_v43 = vmul.f32 %v1978_v6, %v2719_v42  ;;  %v2234_v27 = vunpack.c.h.bf16 %v3578_v36  ;;  %v3689_v23 = vld [vmem:[%s4537_s6 + $0xe8] sm:$0xff]   ;;  %v3697_v36 = vld [vmem:[%s4534_s3 + $0x1] ss:$0 sm:$0xff]  ;;  %v3792_v38 = vld [vmem:[%s4538_s7] ss:$0 sm:$0xff] }
  0xb1   :  { %4643 = vst [vmem:[#allocation105_spill] sm:$0xff] %v3657_v39  ;;  %4644 = vst [vmem:[#allocation106_spill] sm:$0xff] %v3660_v12  ;;  %v1091_v51 = vmul.f32 %v2106_v10, %v2766_v60  ;;  %v1925_v44 = vunpack.c.l.bf16 %v3644_v55  ;;  %v2053_v52 = vunpack.c.l.bf16 %v3649_v31  ;;  %v2181_v32 = vunpack.c.l.bf16 %v3654_v3  ;;  %v3684_v12 = vld [vmem:[%s4535_s4 + $0xe8] sm:$0xff]  }
  0xb2   :  { %4645 = vst [vmem:[#allocation107_spill] sm:$0xff] %v3663_v56  ;;  %4646 = vst [vmem:[#allocation108_spill] sm:$0xff] %v3672_v0  ;;  %v3692_v42 = vadd.f32 %v2815_v19, %v1389_v4  ;;  %v3700_v58 = vadd.f32 %v3697_v36, %v296_v43  ;;  %v1421_v6 = vmul.f32 %v2234_v27, %v2793_v9  ;;  %v1989_v10 = vunpack.c.l.bf16 %v3669_v20 }
  0xb3   :  { %v3710_v4 = vadd.f32 %v2788_v8, %v1091_v51  ;;  %v1064_v0 = vmul.f32 %v2053_v52, %v2766_v60  ;;  %v1394_v27 = vmul.f32 %v2181_v32, %v2793_v9  ;;  %v2245_v35 = vunpack.c.l.bf16 %v3689_v23  ;;  %v3737_v60 = vld [vmem:[%s4533_s2 + $0xe0] sm:$0xff]  }
  0xb4   :  { %4647 = vst [vmem:[#allocation109_spill] sm:$0xff] %v3692_v42  ;;  %4648 = vst [vmem:[#allocation110_spill] sm:$0xff] %v3700_v58  ;;  %v3715_v42 = vld [vmem:[%s4534_s3] ss:$0 sm:$0xff]  ;;  %v3724_v39 = vadd.f32 %v2815_v19, %v1421_v6 }
  0xb5   :  { %4649 = vst [vmem:[#allocation111_spill] sm:$0xff] %v3710_v4  ;;  %v269_v43 = vmul.f32 %v3715_v42, %v1925_v44  ;;  %v301_v51 = vmul.f32 %v3715_v42, %v1989_v10  ;;  %v2117_v4 = vunpack.c.l.bf16 %v3684_v12  ;;  %v3732_v44 = vld [vmem:[%s4537_s6 + $0x60] sm:$0xff]   ;;  %v3748_v6 = vadd.f32 %v2788_v8, %v1064_v0 }
  0xb6   :  { %4650 = vst [vmem:[#allocation112_spill] sm:$0xff] %v3724_v39  ;;  %v3742_v52 = vld [vmem:[%s4535_s4 + $0xe0] sm:$0xff]   ;;  %v3751_v10 = vadd.f32 %v2815_v19, %v1394_v27  ;;  %v1921_v39 = vunpack.c.l.bf16 %v3707_v37  ;;  %v1426_v0 = vmul.f32 %v2245_v35, %v2793_v9  ;;  %v2049_v27 = vunpack.c.l.bf16 %v2297_v22 }
  0xb7   :  { %v3745_v32 = vadd.f32 %v3697_v36, %v269_v43  ;;  %4652 = vst [vmem:[#allocation114_spill] sm:$0xff] %v3748_v6  ;;  %v3757_v58 = vld [vmem:[%s4537_s6 + $0xe0] sm:$0xff]   ;;  %v3760_v56 = vadd.f32 %v3697_v36, %v301_v51  ;;  %v2177_v6 = vunpack.c.l.bf16 %v3732_v44  ;;  %v2113_v53 = vunpack.c.l.bf16 %v3742_v52 }
  0xb8   :  { %4653 = vst [vmem:[#allocation115_spill] sm:$0xff] %v3751_v10  ;;  %v3765_v43 = vld [vmem:[%s4536_s5] ss:$0 sm:$0xff]  ;;  %v267_v10 = vmul.f32 %v3715_v42, %v1921_v39  ;;  %v3776_v51 = vld [vmem:[%s4536_s5 + $0x1] ss:$0 sm:$0xff]  ;;  %v2241_v35 = vunpack.c.l.bf16 %v3757_v58 }
  0xb9   :  { %4651 = vst [vmem:[#allocation113_spill] sm:$0xff] %v3745_v32  ;;  %4654 = vst [vmem:[#allocation116_spill] sm:$0xff] %v3760_v56  ;;  %v1096_v8 = vmul.f32 %v3765_v43, %v2117_v4  ;;  %v1985_v32 = vunpack.c.l.bf16 %v3737_v60  ;;  %v3782_v4 = vadd.f32 %v2815_v19, %v1426_v0  ;;  %v1062_v9 = vmul.f32 %v3765_v43, %v2049_v27 }
  0xba   :  { %v3787_v39 = vadd.f32 %v3697_v36, %v267_v10  ;;  %v1392_v63 = vmul.f32 %v3792_v38, %v2177_v6  ;;  %v1424_v0 = vmul.f32 %v3792_v38, %v2241_v35  ;;  %v1926_v27 = vunpack.c.h.bf16 %v3644_v55 }
  0xbb   :  { %v3779_v56 = vadd.f32 %v3776_v51, %v1096_v8  ;;  %4656 = vst [vmem:[#allocation118_spill] sm:$0xff] %v3782_v4  ;;  %v299_v8 = vmul.f32 %v3715_v42, %v1985_v32  ;;  %v3798_v19 = vadd.f32 %v3776_v51, %v1062_v9  ;;  %v2054_v10 = vunpack.c.h.bf16 %v3649_v31  ;;  %v3806_v4 = vld [vmem:[%s4538_s7 + $0x1] ss:$0 sm:$0xff] }
  0xbc   :  { %v3809_v6 = vadd.f32 %v3806_v4, %v1392_v63  ;;  %v2182_v9 = vunpack.c.h.bf16 %v3654_v3  ;;  %v3819_v55 = vadd.f32 %v3806_v4, %v1424_v0  ;;  %v270_v31 = vmul.f32 %v3715_v42, %v1926_v27 }
  0xbd   :  { %4655 = vst [vmem:[#allocation117_spill] sm:$0xff] %v3779_v56  ;;  %v1094_v56 = vmul.f32 %v3765_v43, %v2113_v53  ;;  %4657 = vst [vmem:[#allocation119_spill] sm:$0xff] %v3798_v19  ;;  %v3812_v32 = vadd.f32 %v3697_v36, %v299_v8  ;;  %v1065_v35 = vmul.f32 %v3765_v43, %v2054_v10  ;;  %v1990_v19 = vunpack.c.h.bf16 %v3669_v20 }
  0xbe   :  { %4658 = vst [vmem:[#allocation120_spill] sm:$0xff] %v3809_v6  ;;  %4660 = vst [vmem:[#allocation122_spill] sm:$0xff] %v3819_v55  ;;  %v1395_v63 = vmul.f32 %v3792_v38, %v2182_v9  ;;  %v2118_v6 = vunpack.c.h.bf16 %v3684_v12  ;;  %v2246_v8 = vunpack.c.h.bf16 %v3689_v23  ;;  %v2050_v27 = vunpack.c.h.bf16 %v2297_v22  ;;  %v2269_v22 = vld [vmem:[%s4533_s2 + $0x78] sm:$0xff]  }
  0xbf   :  { %v3815_v53 = vadd.f32 %v3776_v51, %v1094_v56  ;;  %v1922_v56 = vunpack.c.h.bf16 %v3707_v37  ;;  %v3832_v3 = vadd.f32 %v3776_v51, %v1065_v35  ;;  %v302_v0 = vmul.f32 %v3715_v42, %v1990_v19  ;;  %v2300_v19 = vld [vmem:[%s4535_s4 + $0x78] sm:$0xff]  }
  0xc0   :  { %v3836_v10 = vadd.f32 %v3806_v4, %v1395_v63  ;;  %v1097_v20 = vmul.f32 %v3765_v43, %v2118_v6  ;;  %v1427_v12 = vmul.f32 %v3792_v38, %v2246_v8  ;;  %v1063_v9 = vmul.f32 %v3765_v43, %v2050_v27  ;;  %v2331_v6 = vld [vmem:[%s4537_s6 + $0x78] sm:$0xff]  }
  0xc1   :  { %4659 = vst [vmem:[#allocation121_spill] sm:$0xff] %v3815_v53  ;;  %v3829_v53 = vadd.f32 %v3697_v36, %v270_v31  ;;  %4661 = vst [vmem:[#allocation123_spill] sm:$0xff] %v3832_v3  ;;  %v268_v23 = vmul.f32 %v3715_v42, %v1922_v56  ;;  %v3842_v37 = vadd.f32 %v3697_v36, %v302_v0  ;;  %v2178_v31 = vunpack.c.h.bf16 %v3732_v44  ;;  %v2285_v56 = vld [vmem:[%s4533_s2 + $0xf8] sm:$0xff]  }
  0xc2   :  { %4662 = vst [vmem:[#allocation124_spill] sm:$0xff] %v3836_v10  ;;  %v1986_v35 = vunpack.c.h.bf16 %v3737_v60  ;;  %v3857_v63 = vadd.f32 %v3776_v51, %v1097_v20  ;;  %v3860_v8 = vadd.f32 %v3806_v4, %v1427_v12  ;;  %v2114_v60 = vunpack.c.h.bf16 %v3742_v52  ;;  %v2316_v52 = vld [vmem:[%s4535_s4 + $0xf8] sm:$0xff]  }
  0xc3   :  { %v3863_v44 = vadd.f32 %v3697_v36, %v268_v23  ;;  %v3870_v0 = vadd.f32 %v3776_v51, %v1063_v9  ;;  %v1393_v27 = vmul.f32 %v3792_v38, %v2178_v31  ;;  %v2242_v10 = vunpack.c.h.bf16 %v3757_v58  ;;  %v2347_v9 = vld [vmem:[%s4537_s6 + $0xf8] sm:$0xff]  }
  0xc4   :  { %4663 = vst [vmem:[#allocation125_spill] sm:$0xff] %v3857_v63  ;;  %4664 = vst [vmem:[#allocation126_spill] sm:$0xff] %v3860_v8  ;;  %v300_v20 = vmul.f32 %v3715_v42, %v1986_v35  ;;  %v1095_v12 = vmul.f32 %v3765_v43, %v2114_v60  ;;  %v1933_v8 = vunpack.c.l.bf16 %v2269_v22  ;;  %v2061_v23 = vunpack.c.l.bf16 %v2300_v19  ;;  %v2268_v22 = vld [vmem:[%s4533_s2 + $0x70] sm:$0xff]  }
  0xc5   :  { %4665 = vst [vmem:[#allocation127_spill] sm:$0xff] %v3863_v44  ;;  %4666 = vst [vmem:[#allocation128_spill] sm:$0xff] %v3870_v0  ;;  %v2189_v55 = vunpack.c.l.bf16 %v2331_v6  ;;  %v3883_v0 = vadd.f32 %v3806_v4, %v1393_v27  ;;  %v1425_v58 = vmul.f32 %v3792_v38, %v2242_v10  ;;  %v1997_v35 = vunpack.c.l.bf16 %v2285_v56 }
  0xc6   :  { %v3886_v31 = vadd.f32 %v3697_v36, %v300_v20  ;;  %v3893_v19 = vadd.f32 %v3776_v51, %v1095_v12  ;;  %v273_v6 = vmul.f32 %v3715_v42, %v1933_v8  ;;  %v1068_v60 = vmul.f32 %v3765_v43, %v2061_v23  ;;  %v2299_v20 = vld [vmem:[%s4535_s4 + $0x70] sm:$0xff]  }
  0xc7   :  { %4667 = vst [vmem:[#allocation129_spill] sm:$0xff] %v3883_v0  ;;  %v1398_v27 = vmul.f32 %v3792_v38, %v2189_v55  ;;  %v3902_v10 = vadd.f32 %v3806_v4, %v1425_v58  ;;  %v305_v56 = vmul.f32 %v3715_v42, %v1997_v35  ;;  %v2125_v0 = vunpack.c.l.bf16 %v2316_v52  ;;  %v2330_v12 = vld [vmem:[%s4537_s6 + $0x70] sm:$0xff]  }
  0xc8   :  { %4668 = vst [vmem:[#allocation130_spill] sm:$0xff] %v3886_v31  ;;  %4669 = vst [vmem:[#allocation131_spill] sm:$0xff] %v3893_v19  ;;  %v2253_v63 = vunpack.c.l.bf16 %v2347_v9  ;;  %v2284_v8 = vld [vmem:[%s4533_s2 + $0xf0] sm:$0xff]   ;;  %v3915_v23 = vadd.f32 %v3697_v36, %v273_v6  ;;  %v3918_v58 = vadd.f32 %v3776_v51, %v1068_v60  ;;  %v1929_v9 = vunpack.c.l.bf16 %v2268_v22 }
  0xc9   :  { %4670 = vst [vmem:[#allocation132_spill] sm:$0xff] %v3902_v10  ;;  %v2315_v55 = vld [vmem:[%s4535_s4 + $0xf0] sm:$0xff]   ;;  %v3921_v52 = vadd.f32 %v3806_v4, %v1398_v27  ;;  %v3927_v10 = vadd.f32 %v3697_v36, %v305_v56  ;;  %v1100_v19 = vmul.f32 %v3765_v43, %v2125_v0  ;;  %v2057_v6 = vunpack.c.l.bf16 %v2299_v20 }
  0xca   :  { %4671 = vst [vmem:[#allocation133_spill] sm:$0xff] %v3915_v23  ;;  %4672 = vst [vmem:[#allocation134_spill] sm:$0xff] %v3918_v58  ;;  %v2346_v35 = vld [vmem:[%s4537_s6 + $0xf0] sm:$0xff]   ;;  %v1430_v3 = vmul.f32 %v3792_v38, %v2253_v63  ;;  %v271_v23 = vmul.f32 %v3715_v42, %v1929_v9  ;;  %v2185_v60 = vunpack.c.l.bf16 %v2330_v12  ;;  %v1993_v58 = vunpack.c.l.bf16 %v2284_v8 }
  0xcb   :  { %4673 = vst [vmem:[#allocation135_spill] sm:$0xff] %v3921_v52  ;;  %4674 = vst [vmem:[#allocation136_spill] sm:$0xff] %v3927_v10  ;;  %v2121_v31 = vunpack.c.l.bf16 %v2315_v55  ;;  %v3933_v27 = vadd.f32 %v3776_v51, %v1100_v19  ;;  %v1066_v52 = vmul.f32 %v3765_v43, %v2057_v6  ;;  %v2249_v56 = vunpack.c.l.bf16 %v2346_v35 }
  0xcc   :  { %v3936_v22 = vadd.f32 %v3806_v4, %v1430_v3  ;;  %v3940_v0 = vadd.f32 %v3697_v36, %v271_v23  ;;  %v1396_v63 = vmul.f32 %v3792_v38, %v2185_v60  ;;  %v303_v20 = vmul.f32 %v3715_v42, %v1993_v58 }
  0xcd   :  { %v3945_v12 = vmul.f32 %v3765_v43, %v2121_v31  ;;  %v3950_v9 = vadd.f32 %v3776_v51, %v1066_v52  ;;  %v3953_v35 = vmul.f32 %v3792_v38, %v2249_v56 }
  0xce   :  { %v3958_v43 = vadd.f32 %v3806_v4, %v1396_v63 }
  0xf5   :  { %v2406_v10 = vpop.f32.mrb[0].mxu0  ;;  %v2438_v44 = vpop.f32.mrb[0].mxu1 }
  0xf6   :  { %v659_v19 = vadd.f32 %v2406_v10, %v2744_v49  ;;  %v787_v3 = vadd.f32 %v2438_v44, %v2779_v5  ;;  %v650_v8 = vpop.f32.mrb[1].mxu0  ;;  %v778_v55 = vpop.f32.mrb[1].mxu1  ;;  %v3961_v49 = vadd.f32 %v3697_v36, %v303_v20 }
  0xf7   :  { %v651_v23 = vadd.f32 %v650_v8, %v2796_v11  ;;  %v779_v6 = vadd.f32 %v778_v55, %v2810_v18  ;;  %v2407_v42 = vpop.f32.mrb[2].mxu0  ;;  %v2439_v58 = vpop.f32.mrb[2].mxu1 }
  0xf8   :  { %v1173_v5 = vadd.f32 %v2803_v15, %v659_v19  ;;  %v1205_v51 = vadd.f32 %v2807_v17, %v787_v3  ;;  %v662_v44 = vadd.f32 %v2407_v42, %v2838_v33  ;;  %v790_v38 = vadd.f32 %v2439_v58, %v2858_v47  ;;  %v653_v31 = vpop.f32.mrb[3].mxu0  ;;  %v781_v11 = vpop.f32.mrb[3].mxu1 }
  0xf9   :  { %v1171_v18 = vadd.f32 %v2819_v21, %v651_v23  ;;  %v1203_v10 = vadd.f32 %v2834_v30, %v779_v6  ;;  %v654_v4 = vadd.f32 %v653_v31, %v2879_v62  ;;  %v782_v52 = vadd.f32 %v781_v11, %v2911_v14 }
  0xfa   :  { %v1503_v36 = vadd.f32 %v2824_v24, %v1173_v5  ;;  %v1535_v15 = vadd.f32 %v2828_v28, %v1205_v51  ;;  %v1174_v17 = vadd.f32 %v2848_v41, %v662_v44  ;;  %v1206_v33 = vadd.f32 %v2873_v59, %v790_v38 }
  0xfb   :  { %v1501_v47 = vadd.f32 %v2831_v29, %v1171_v18  ;;  %v1533_v60 = vadd.f32 %v2845_v40, %v1203_v10  ;;  %v1172_v21 = vadd.f32 %v2893_v1, %v654_v4  ;;  %v1204_v30 = vadd.f32 %v2919_v25, %v782_v52  ;;  %v4675_v10 = vld [vmem:[#allocation8_spill] sm:$0xff]  ;;  %v4676_v52 = vld [vmem:[#allocation11_spill] sm:$0xff] }
  0xfc   :  { %vm1567_vm0 = vcmp.ge.f32.partialorder %v1503_v36, 0.0  ;;  %v1631_v62 = vmul.f32 0.01, %v1503_v36  ;;  %vm1599_vm1 = vcmp.ge.f32.partialorder %v1535_v15, 0.0  ;;  %v1663_v14 = vmul.f32 0.01, %v1535_v15 }
  0xfd   :  { %vm1565_vm2 = vcmp.ge.f32.partialorder %v1501_v47, 0.0  ;;  %v1629_v24 = vmul.f32 0.01, %v1501_v47  ;;  %vm1597_vm3 = vcmp.ge.f32.partialorder %v1533_v60, 0.0  ;;  %v1661_v28 = vmul.f32 0.01, %v1533_v60 }
  0xfe   :  { %v1695_v56 = vsel %vm1567_vm0, %v1503_v36, %v1631_v62  ;;  %v1727_v41 = vsel %vm1599_vm1, %v1535_v15, %v1663_v14  ;;  %v1504_v59 = vadd.f32 %v2852_v50, %v1174_v17  ;;  %v1536_v29 = vadd.f32 %v2876_v61, %v1206_v33  ;;  %v2410_v63 = vpop.f32.mrb[4].mxu0  ;;  %v2442_v40 = vpop.f32.mrb[4].mxu1  ;;  %v4677_v36 = vld [vmem:[#allocation4_spill] sm:$0xff]  ;;  %v4678_v15 = vld [vmem:[#allocation6_spill] sm:$0xff] }
  0xff   :  { %1759 = vst [vmem:[%s4539_s8 + $0x10] sm:$0xff] %v1695_v56  ;;  %1791 = vst [vmem:[%s4539_s8 + $0x110] sm:$0xff] %v1727_v41  ;;  %v1693_v1 = vsel %vm1565_vm2, %v1501_v47, %v1629_v24  ;;  %v1725_v25 = vsel %vm1597_vm3, %v1533_v60, %v1661_v28  ;;  %v1502_v20 = vadd.f32 %v2908_v16, %v1172_v21  ;;  %v666_v3 = vpop.f32.mrb[5].mxu0  ;;  %v794_v50 = vpop.f32.mrb[5].mxu1  ;;  %v4679_v33 = vld [vmem:[#allocation14_spill] sm:$0xff]  ;;  %v4680_v60 = vld [vmem:[#allocation17_spill] sm:$0xff] }
 0x100   :  { %v1534_v19 = vadd.f32 %v2928_v34, %v1204_v30  ;;  %1757 = vst [vmem:[%s4539_s8] sm:$0xff] %v1693_v1  ;;  %1789 = vst [vmem:[%s4539_s8 + $0x100] sm:$0xff] %v1725_v25  ;;  %vm1568_vm4 = vcmp.ge.f32.partialorder %v1504_v59, 0.0  ;;  %v1632_v61 = vmul.f32 0.01, %v1504_v59  ;;  %vm1600_vm5 = vcmp.ge.f32.partialorder %v1536_v29, 0.0  ;;  %v2411_v58 = vpop.f32.mrb[6].mxu0 }
 0x101   :  { %v1664_v8 = vmul.f32 0.01, %v1536_v29  ;;  %vm1566_vm6 = vcmp.ge.f32.partialorder %v1502_v20, 0.0  ;;  %v1630_v55 = vmul.f32 0.01, %v1502_v20  ;;  %v675_v6 = vadd.f32 %v2410_v63, %v2943_v46  ;;  %v2443_v5 = vpop.f32.mrb[6].mxu1 }
 0x102   :  { %vm1598_vm7 = vcmp.ge.f32.partialorder %v1534_v19, 0.0  ;;  %v1662_v16 = vmul.f32 0.01, %v1534_v19  ;;  %v1696_v23 = vsel %vm1568_vm4, %v1504_v59, %v1632_v61  ;;  %v803_v42 = vadd.f32 %v2442_v40, %v2957_v54  ;;  %v669_v11 = vpop.f32.mrb[7].mxu0  ;;  %v797_v46 = vpop.f32.mrb[7].mxu1  ;;  %v4681_v14 = vld [vmem:[#allocation2_spill] sm:$0xff] }
 0x103   :  { %v1728_v34 = vsel %vm1600_vm5, %v1536_v29, %v1664_v8  ;;  %1760 = vst [vmem:[%s4539_s8 + $0x18] sm:$0xff] %v1696_v23  ;;  %v1694_v51 = vsel %vm1566_vm6, %v1502_v20, %v1630_v55  ;;  %v667_v38 = vadd.f32 %v666_v3, %v2972_v26  ;;  %v795_v31 = vadd.f32 %v794_v50, %v2987_v2  ;;  %v4682_v28 = vld [vmem:[#allocation3_spill] sm:$0xff]  ;;  %v4683_v56 = vld [vmem:[#allocation9_spill] sm:$0xff]  ;;  %v4684_v41 = vld [vmem:[#allocation12_spill] sm:$0xff] }
 0x104   :  { %1792 = vst [vmem:[%s4539_s8 + $0x118] sm:$0xff] %v1728_v34  ;;  %v1726_v44 = vsel %vm1598_vm7, %v1534_v19, %v1662_v16  ;;  %1758 = vst [vmem:[%s4539_s8 + $0x8] sm:$0xff] %v1694_v51  ;;  %v1177_v54 = vadd.f32 %v2946_v45, %v675_v6  ;;  %v1209_v18 = vadd.f32 %v2964_v7, %v803_v42  ;;  %v4685_v40 = vld [vmem:[#allocation5_spill] sm:$0xff]  ;;  %v4686_v25 = vld [vmem:[#allocation7_spill] sm:$0xff] }
 0x105   :  { %1790 = vst [vmem:[%s4539_s8 + $0x108] sm:$0xff] %v1726_v44  ;;  %v678_v4 = vadd.f32 %v2411_v58, %v4675_v10  ;;  %v806_v26 = vadd.f32 %v2443_v5, %v4676_v52  ;;  %v1175_v2 = vadd.f32 %v4677_v36, %v667_v38  ;;  %v1207_v17 = vadd.f32 %v4678_v15, %v795_v31  ;;  %v2414_v30 = vpop.f32.mrb[8].mxu0  ;;  %v2446_v62 = vpop.f32.mrb[8].mxu1  ;;  %v4687_v19 = vld [vmem:[#allocation15_spill] sm:$0xff]  ;;  %v4688_v50 = vld [vmem:[#allocation18_spill] sm:$0xff]  ;;  %v4690_v44 = vld [vmem:[#allocation13_spill] sm:$0xff] }
 0x106   :  { %v670_v47 = vadd.f32 %v669_v11, %v4679_v33  ;;  %v798_v21 = vadd.f32 %v797_v46, %v4680_v60  ;;  %v1507_v24 = vadd.f32 %v4681_v14, %v1177_v54  ;;  %v1539_v45 = vadd.f32 %v4682_v28, %v1209_v18  ;;  %v682_v29 = vpop.f32.mrb[9].mxu0  ;;  %v810_v63 = vpop.f32.mrb[9].mxu1  ;;  %v4689_v5 = vld [vmem:[#allocation10_spill] sm:$0xff]  ;;  %v4691_v18 = vld [vmem:[#allocation16_spill] sm:$0xff] }
 0x107   :  { %v1178_v7 = vadd.f32 %v4683_v56, %v678_v4  ;;  %v1210_v59 = vadd.f32 %v4684_v41, %v806_v26  ;;  %v1505_v1 = vadd.f32 %v4685_v40, %v1175_v2  ;;  %v1537_v20 = vadd.f32 %v4686_v25, %v1207_v17  ;;  %v2415_v8 = vpop.f32.mrb[10].mxu0  ;;  %v2447_v55 = vpop.f32.mrb[10].mxu1  ;;  %v4692_v4 = vld [vmem:[#allocation19_spill] sm:$0xff] }
 0x108   :  { %v1176_v3 = vadd.f32 %v4687_v19, %v670_v47  ;;  %v1208_v61 = vadd.f32 %v4688_v50, %v798_v21  ;;  %vm1571_vm8 = vcmp.ge.f32.partialorder %v1507_v24, 0.0  ;;  %v1635_v16 = vmul.f32 0.01, %v1507_v24  ;;  %v685_v31 = vpop.f32.mrb[11].mxu0  ;;  %v813_v11 = vpop.f32.mrb[11].mxu1  ;;  %v4693_v47 = vld [vmem:[#allocation20_spill] sm:$0xff] }
 0x109   :  { %vm1603_vm9 = vcmp.ge.f32.partialorder %v1539_v45, 0.0  ;;  %v1667_v23 = vmul.f32 0.01, %v1539_v45  ;;  %vm1569_vm10 = vcmp.ge.f32.partialorder %v1505_v1, 0.0  ;;  %v1633_v34 = vmul.f32 0.01, %v1505_v1 }
 0x10a   :  { %vm1601_vm11 = vcmp.ge.f32.partialorder %v1537_v20, 0.0  ;;  %v1665_v6 = vmul.f32 0.01, %v1537_v20  ;;  %v1699_v42 = vsel %vm1571_vm8, %v1507_v24, %v1635_v16  ;;  %v1508_v51 = vadd.f32 %v4689_v5, %v1178_v7  ;;  %v4694_v21 = vld [vmem:[#allocation23_spill] sm:$0xff]  ;;  %v4695_v7 = vld [vmem:[#allocation26_spill] sm:$0xff] }
 0x10b   :  { %v1731_v58 = vsel %vm1603_vm9, %v1539_v45, %v1667_v23  ;;  %v1540_v38 = vadd.f32 %v4690_v44, %v1210_v59  ;;  %1763 = vst [vmem:[%s4539_s8 + $0x30] sm:$0xff] %v1699_v42  ;;  %v1697_v46 = vsel %vm1569_vm10, %v1505_v1, %v1633_v34  ;;  %v1506_v10 = vadd.f32 %v4691_v18, %v1176_v3  ;;  %v4696_v59 = vld [vmem:[#allocation29_spill] sm:$0xff]  ;;  %v4699_v3 = vld [vmem:[#allocation32_spill] sm:$0xff]  ;;  %v4700_v50 = vld [vmem:[#allocation35_spill] sm:$0xff] }
 0x10c   :  { %1795 = vst [vmem:[%s4539_s8 + $0x130] sm:$0xff] %v1731_v58  ;;  %v1729_v54 = vsel %vm1601_vm11, %v1537_v20, %v1665_v6  ;;  %v1538_v52 = vadd.f32 %v4692_v4, %v1208_v61  ;;  %1761 = vst [vmem:[%s4539_s8 + $0x20] sm:$0xff] %v1697_v46  ;;  %vm1572_vm12 = vcmp.ge.f32.partialorder %v1508_v51, 0.0  ;;  %v1636_v26 = vmul.f32 0.01, %v1508_v51  ;;  %v4697_v1 = vld [vmem:[#allocation21_spill] sm:$0xff] }
 0x10d   :  { %1793 = vst [vmem:[%s4539_s8 + $0x120] sm:$0xff] %v1729_v54  ;;  %vm1604_vm13 = vcmp.ge.f32.partialorder %v1540_v38, 0.0  ;;  %v1668_v36 = vmul.f32 0.01, %v1540_v38  ;;  %vm1570_vm14 = vcmp.ge.f32.partialorder %v1506_v10, 0.0  ;;  %v691_v60 = vadd.f32 %v2414_v30, %v4693_v47  ;;  %v4045_v24 = vpop.f32.mrb[12].mxu0 }
 0x10e   :  { %v1634_v2 = vmul.f32 0.01, %v1506_v10  ;;  %vm1602_vm15 = vcmp.ge.f32.partialorder %v1538_v52, 0.0  ;;  %v1666_v15 = vmul.f32 0.01, %v1538_v52  ;;  %v1700_v17 = vsel %vm1572_vm12, %v1508_v51, %v1636_v26  ;;  %v4047_v28 = vpop.f32.mrb[12].mxu1 }
 0x10f   :  { %v1732_v33 = vsel %vm1604_vm13, %v1540_v38, %v1668_v36  ;;  %v819_v14 = vadd.f32 %v2446_v62, %v4694_v21  ;;  %1764 = vst [vmem:[%s4539_s8 + $0x38] sm:$0xff] %v1700_v17  ;;  %v683_v41 = vadd.f32 %v682_v29, %v4695_v7  ;;  %v811_v30 = vadd.f32 %v810_v63, %v4696_v59  ;;  %v4057_v40 = vpop.f32.mrb[13].mxu0  ;;  %v4059_v62 = vpop.f32.mrb[13].mxu1  ;;  %v4698_v20 = vld [vmem:[#allocation24_spill] sm:$0xff]  ;;  %v4701_v23 = vld [vmem:[#allocation27_spill] sm:$0xff]  ;;  %v4702_v6 = vld [vmem:[#allocation30_spill] sm:$0xff] }
 0x110   :  { %1796 = vst [vmem:[%s4539_s8 + $0x138] sm:$0xff] %v1732_v33  ;;  %v1698_v45 = vsel %vm1570_vm14, %v1506_v10, %v1634_v2  ;;  %v1730_v56 = vsel %vm1602_vm15, %v1538_v52, %v1666_v15  ;;  %v1181_v25 = vadd.f32 %v4697_v1, %v691_v60  ;;  %v694_v29 = vadd.f32 %v2415_v8, %v4699_v3  ;;  %v4071_v61 = vpop.f32.mrb[14].mxu0  ;;  %v4073_v16 = vpop.f32.mrb[14].mxu1  ;;  %v4703_v58 = vld [vmem:[#allocation38_spill] sm:$0xff]  ;;  %v4704_v51 = vld [vmem:[#allocation41_spill] sm:$0xff]  ;;  %v4708_v52 = vld [vmem:[#allocation36_spill] sm:$0xff] }
 0x111   :  { %1762 = vst [vmem:[%s4539_s8 + $0x28] sm:$0xff] %v1698_v45  ;;  %1794 = vst [vmem:[%s4539_s8 + $0x128] sm:$0xff] %v1730_v56  ;;  %v1213_v19 = vadd.f32 %v4698_v20, %v819_v14  ;;  %v822_v63 = vadd.f32 %v2447_v55, %v4700_v50  ;;  %v1179_v34 = vadd.f32 %v4701_v23, %v683_v41  ;;  %v4079_v38 = vpop.f32.mrb[15].mxu0  ;;  %v4081_v46 = vpop.f32.mrb[15].mxu1  ;;  %v4705_v54 = vld [vmem:[#allocation22_spill] sm:$0xff]  ;;  %v4706_v18 = vld [vmem:[#allocation25_spill] sm:$0xff] }
 0x112   :  { %v1211_v42 = vadd.f32 %v4702_v6, %v811_v30  ;;  %v686_v5 = vadd.f32 %v685_v31, %v4703_v58  ;;  %v814_v44 = vadd.f32 %v813_v11, %v4704_v51  ;;  %v1511_v8 = vadd.f32 %v4705_v54, %v1181_v25  ;;  %v4707_v10 = vld [vmem:[#allocation33_spill] sm:$0xff]  ;;  %v4709_v36 = vld [vmem:[#allocation28_spill] sm:$0xff]  ;;  %v4710_v15 = vld [vmem:[#allocation31_spill] sm:$0xff] }
 0x113   :  { %v1543_v55 = vadd.f32 %v4706_v18, %v1213_v19  ;;  %v1182_v4 = vadd.f32 %v4707_v10, %v694_v29  ;;  %v1214_v26 = vadd.f32 %v4708_v52, %v822_v63  ;;  %v1509_v2 = vadd.f32 %v4709_v36, %v1179_v34  ;;  %v4711_v33 = vld [vmem:[#allocation39_spill] sm:$0xff]  ;;  %v4712_v47 = vld [vmem:[#allocation42_spill] sm:$0xff]  ;;  %v4714_v30 = vld [vmem:[#allocation37_spill] sm:$0xff] }
 0x114   :  { %v1541_v17 = vadd.f32 %v4710_v15, %v1211_v42  ;;  %v1180_v31 = vadd.f32 %v4711_v33, %v686_v5  ;;  %v1212_v11 = vadd.f32 %v4712_v47, %v814_v44  ;;  %vm1575_vm0 = vcmp.ge.f32.partialorder %v1511_v8, 0.0  ;;  %v4713_v41 = vld [vmem:[#allocation34_spill] sm:$0xff]  ;;  %v4715_v29 = vld [vmem:[#allocation40_spill] sm:$0xff]  ;;  %v4716_v63 = vld [vmem:[#allocation43_spill] sm:$0xff] }
 0x115   :  { %v1639_v60 = vmul.f32 0.01, %v1511_v8  ;;  %vm1607_vm1 = vcmp.ge.f32.partialorder %v1543_v55, 0.0  ;;  %v1671_v21 = vmul.f32 0.01, %v1543_v55  ;;  %vm1573_vm2 = vcmp.ge.f32.partialorder %v1509_v2, 0.0 }
 0x116   :  { %v1637_v14 = vmul.f32 0.01, %v1509_v2  ;;  %vm1605_vm3 = vcmp.ge.f32.partialorder %v1541_v17, 0.0  ;;  %v1669_v45 = vmul.f32 0.01, %v1541_v17  ;;  %v1512_v59 = vadd.f32 %v4713_v41, %v1182_v4  ;;  %v4093_v25 = vpop.f32.mrb[16].mxu0 }
 0x117   :  { %v1703_v56 = vsel %vm1575_vm0, %v1511_v8, %v1639_v60  ;;  %v1735_v7 = vsel %vm1607_vm1, %v1543_v55, %v1671_v21  ;;  %v1544_v1 = vadd.f32 %v4714_v30, %v1214_v26  ;;  %v4095_v20 = vpop.f32.mrb[16].mxu1  ;;  %v1510_v50 = vadd.f32 %v4715_v29, %v1180_v31  ;;  %v4105_v34 = vpop.f32.mrb[17].mxu0  ;;  %v4717_v8 = vld [vmem:[#allocation44_spill] sm:$0xff]  ;;  %v4718_v55 = vld [vmem:[#allocation47_spill] sm:$0xff]  ;;  %v4720_v15 = vld [vmem:[#allocation53_spill] sm:$0xff] }
 0x118   :  { %1767 = vst [vmem:[%s4539_s8 + $0x50] sm:$0xff] %v1703_v56  ;;  %1799 = vst [vmem:[%s4539_s8 + $0x150] sm:$0xff] %v1735_v7  ;;  %v1701_v19 = vsel %vm1573_vm2, %v1509_v2, %v1637_v14  ;;  %v1733_v3 = vsel %vm1605_vm3, %v1541_v17, %v1669_v45  ;;  %v1542_v23 = vadd.f32 %v4716_v63, %v1212_v11  ;;  %v4107_v6 = vpop.f32.mrb[17].mxu1  ;;  %vm1576_vm4 = vcmp.ge.f32.partialorder %v1512_v59, 0.0  ;;  %v4119_v4 = vpop.f32.mrb[18].mxu0  ;;  %v4719_v2 = vld [vmem:[#allocation50_spill] sm:$0xff] }
 0x119   :  { %1765 = vst [vmem:[%s4539_s8 + $0x40] sm:$0xff] %v1701_v19  ;;  %1797 = vst [vmem:[%s4539_s8 + $0x140] sm:$0xff] %v1733_v3  ;;  %v1640_v42 = vmul.f32 0.01, %v1512_v59  ;;  %vm1608_vm5 = vcmp.ge.f32.partialorder %v1544_v1, 0.0  ;;  %vm1574_vm6 = vcmp.ge.f32.partialorder %v1510_v50, 0.0  ;;  %v707_v18 = vadd.f32 %v4045_v24, %v4717_v8 }
 0x11a   :  { %v1672_v58 = vmul.f32 0.01, %v1544_v1  ;;  %v1638_v5 = vmul.f32 0.01, %v1510_v50  ;;  %vm1606_vm7 = vcmp.ge.f32.partialorder %v1542_v23, 0.0  ;;  %v835_v10 = vadd.f32 %v4047_v28, %v4718_v55  ;;  %v4121_v52 = vpop.f32.mrb[18].mxu1 }
 0x11b   :  { %v1670_v51 = vmul.f32 0.01, %v1542_v23  ;;  %v1704_v44 = vsel %vm1576_vm4, %v1512_v59, %v1640_v42  ;;  %v699_v24 = vadd.f32 %v4057_v40, %v4719_v2  ;;  %v827_v28 = vadd.f32 %v4059_v62, %v4720_v15  ;;  %v4133_v17 = vpop.f32.mrb[19].mxu0  ;;  %v4135_v33 = vpop.f32.mrb[19].mxu1  ;;  %v4721_v31 = vld [vmem:[#allocation45_spill] sm:$0xff]  ;;  %v4722_v11 = vld [vmem:[#allocation48_spill] sm:$0xff] }
 0x11c   :  { %v1736_v54 = vsel %vm1608_vm5, %v1544_v1, %v1672_v58  ;;  %1768 = vst [vmem:[%s4539_s8 + $0x58] sm:$0xff] %v1704_v44  ;;  %v1702_v26 = vsel %vm1574_vm6, %v1510_v50, %v1638_v5  ;;  %v1185_v47 = vadd.f32 %v4721_v31, %v707_v18  ;;  %v1217_v60 = vadd.f32 %v4722_v11, %v835_v10  ;;  %v4723_v40 = vld [vmem:[#allocation56_spill] sm:$0xff]  ;;  %v4724_v62 = vld [vmem:[#allocation59_spill] sm:$0xff]  ;;  %v4726_v7 = vld [vmem:[#allocation54_spill] sm:$0xff] }
 0x11d   :  { %1800 = vst [vmem:[%s4539_s8 + $0x158] sm:$0xff] %v1736_v54  ;;  %v1734_v36 = vsel %vm1606_vm7, %v1542_v23, %v1670_v51  ;;  %1766 = vst [vmem:[%s4539_s8 + $0x48] sm:$0xff] %v1702_v26  ;;  %v710_v21 = vadd.f32 %v4071_v61, %v4723_v40  ;;  %v838_v14 = vadd.f32 %v4073_v16, %v4724_v62  ;;  %v4725_v45 = vld [vmem:[#allocation51_spill] sm:$0xff]  ;;  %v4727_v59 = vld [vmem:[#allocation62_spill] sm:$0xff]  ;;  %v4155_v3 = vpop.f32.mrb[20].mxu0  ;;  %v4157_v29 = vpop.f32.mrb[20].mxu1 }
 0x11e   :  { %1798 = vst [vmem:[%s4539_s8 + $0x148] sm:$0xff] %v1734_v36  ;;  %v1183_v56 = vadd.f32 %v4725_v45, %v699_v24  ;;  %v1215_v41 = vadd.f32 %v4726_v7, %v827_v28  ;;  %v702_v30 = vadd.f32 %v4079_v38, %v4727_v59  ;;  %v4728_v1 = vld [vmem:[#allocation65_spill] sm:$0xff]  ;;  %v4729_v50 = vld [vmem:[#allocation46_spill] sm:$0xff]  ;;  %v4732_v58 = vld [vmem:[#allocation60_spill] sm:$0xff]  ;;  %v4163_v51 = vpop.f32.mrb[21].mxu0  ;;  %v4165_v44 = vpop.f32.mrb[21].mxu1 }
 0x11f   :  { %v830_v19 = vadd.f32 %v4081_v46, %v4728_v1  ;;  %v1515_v63 = vadd.f32 %v4729_v50, %v1185_v47  ;;  %v4730_v61 = vld [vmem:[#allocation49_spill] sm:$0xff]  ;;  %v1218_v5 = vadd.f32 %v4732_v58, %v838_v14  ;;  %v4733_v38 = vld [vmem:[#allocation52_spill] sm:$0xff]  ;;  %v4734_v8 = vld [vmem:[#allocation55_spill] sm:$0xff]  ;;  %v4171_v36 = vpop.f32.mrb[22].mxu0  ;;  %v4173_v2 = vpop.f32.mrb[22].mxu1 }
 0x120   :  { %v1547_v23 = vadd.f32 %v4730_v61, %v1217_v60  ;;  %v4731_v42 = vld [vmem:[#allocation57_spill] sm:$0xff]  ;;  %v1513_v54 = vadd.f32 %v4733_v38, %v1183_v56  ;;  %v1545_v46 = vadd.f32 %v4734_v8, %v1215_v41  ;;  %v4735_v18 = vld [vmem:[#allocation63_spill] sm:$0xff]  ;;  %v4736_v10 = vld [vmem:[#allocation66_spill] sm:$0xff]  ;;  %v4177_v14 = vpop.f32.mrb[23].mxu0  ;;  %v4179_v45 = vpop.f32.mrb[23].mxu1 }
 0x121   :  { %v1186_v16 = vadd.f32 %v4731_v42, %v710_v21  ;;  %v1184_v55 = vadd.f32 %v4735_v18, %v702_v30  ;;  %v1216_v26 = vadd.f32 %v4736_v10, %v830_v19  ;;  %vm1579_vm8 = vcmp.ge.f32.partialorder %v1515_v63, 0.0  ;;  %v4737_v60 = vld [vmem:[#allocation58_spill] sm:$0xff]  ;;  %v4738_v21 = vld [vmem:[#allocation61_spill] sm:$0xff]  ;;  %v4739_v41 = vld [vmem:[#allocation64_spill] sm:$0xff] }
 0x122   :  { %v1643_v24 = vmul.f32 0.01, %v1515_v63  ;;  %vm1611_vm9 = vcmp.ge.f32.partialorder %v1547_v23, 0.0  ;;  %v1675_v15 = vmul.f32 0.01, %v1547_v23  ;;  %vm1577_vm10 = vcmp.ge.f32.partialorder %v1513_v54, 0.0 }
 0x123   :  { %v1641_v28 = vmul.f32 0.01, %v1513_v54  ;;  %vm1609_vm11 = vcmp.ge.f32.partialorder %v1545_v46, 0.0  ;;  %v1673_v31 = vmul.f32 0.01, %v1545_v46  ;;  %v1516_v40 = vadd.f32 %v4737_v60, %v1186_v16  ;;  %v4740_v30 = vld [vmem:[#allocation67_spill] sm:$0xff] }
 0x124   :  { %v1707_v47 = vsel %vm1579_vm8, %v1515_v63, %v1643_v24  ;;  %v1739_v11 = vsel %vm1611_vm9, %v1547_v23, %v1675_v15  ;;  %v1548_v62 = vadd.f32 %v4738_v21, %v1218_v5  ;;  %v1514_v59 = vadd.f32 %v4739_v41, %v1184_v55  ;;  %v4741_v16 = vld [vmem:[#allocation68_spill] sm:$0xff]  ;;  %v4742_v5 = vld [vmem:[#allocation71_spill] sm:$0xff]  ;;  %v4743_v55 = vld [vmem:[#allocation74_spill] sm:$0xff] }
 0x125   :  { %1771 = vst [vmem:[%s4539_s8 + $0x70] sm:$0xff] %v1707_v47  ;;  %1803 = vst [vmem:[%s4539_s8 + $0x170] sm:$0xff] %v1739_v11  ;;  %v1705_v56 = vsel %vm1577_vm10, %v1513_v54, %v1641_v28  ;;  %v1737_v7 = vsel %vm1609_vm11, %v1545_v46, %v1673_v31  ;;  %v1546_v1 = vadd.f32 %v4740_v30, %v1216_v26  ;;  %vm1580_vm12 = vcmp.ge.f32.partialorder %v1516_v40, 0.0  ;;  %v4199_v54 = vpop.f32.mrb[24].mxu0  ;;  %v4201_v8 = vpop.f32.mrb[24].mxu1  ;;  %v4744_v10 = vld [vmem:[#allocation77_spill] sm:$0xff] }
 0x126   :  { %1769 = vst [vmem:[%s4539_s8 + $0x60] sm:$0xff] %v1705_v56  ;;  %1801 = vst [vmem:[%s4539_s8 + $0x160] sm:$0xff] %v1737_v7  ;;  %v1644_v19 = vmul.f32 0.01, %v1516_v40  ;;  %vm1612_vm13 = vcmp.ge.f32.partialorder %v1548_v62, 0.0  ;;  %vm1578_vm14 = vcmp.ge.f32.partialorder %v1514_v59, 0.0  ;;  %v723_v58 = vadd.f32 %v4093_v25, %v4741_v16 }
 0x127   :  { %v1676_v50 = vmul.f32 0.01, %v1548_v62  ;;  %v1642_v63 = vmul.f32 0.01, %v1514_v59  ;;  %vm1610_vm15 = vcmp.ge.f32.partialorder %v1546_v1, 0.0  ;;  %v851_v38 = vadd.f32 %v4095_v20, %v4742_v5  ;;  %v4213_v26 = vpop.f32.mrb[25].mxu0 }
 0x128   :  { %v1674_v61 = vmul.f32 0.01, %v1546_v1  ;;  %v1708_v23 = vsel %vm1580_vm12, %v1516_v40, %v1644_v19  ;;  %v715_v25 = vadd.f32 %v4105_v34, %v4743_v55  ;;  %v843_v20 = vadd.f32 %v4107_v6, %v4744_v10  ;;  %v4215_v24 = vpop.f32.mrb[25].mxu1  ;;  %v4745_v15 = vld [vmem:[#allocation69_spill] sm:$0xff]  ;;  %v4746_v31 = vld [vmem:[#allocation72_spill] sm:$0xff]  ;;  %v4748_v6 = vld [vmem:[#allocation83_spill] sm:$0xff] }
 0x129   :  { %v1740_v42 = vsel %vm1612_vm13, %v1548_v62, %v1676_v50  ;;  %1772 = vst [vmem:[%s4539_s8 + $0x78] sm:$0xff] %v1708_v23  ;;  %v1706_v46 = vsel %vm1578_vm14, %v1514_v59, %v1642_v63  ;;  %v1189_v28 = vadd.f32 %v4745_v15, %v723_v58  ;;  %v1221_v47 = vadd.f32 %v4746_v31, %v851_v38  ;;  %v4747_v34 = vld [vmem:[#allocation80_spill] sm:$0xff]  ;;  %v4229_v40 = vpop.f32.mrb[26].mxu0  ;;  %v4231_v21 = vpop.f32.mrb[26].mxu1  ;;  %v4749_v62 = vld [vmem:[#allocation75_spill] sm:$0xff]  ;;  %v4750_v7 = vld [vmem:[#allocation78_spill] sm:$0xff] }
 0x12a   :  { %1804 = vst [vmem:[%s4539_s8 + $0x178] sm:$0xff] %v1740_v42  ;;  %v1738_v18 = vsel %vm1610_vm15, %v1546_v1, %v1674_v61  ;;  %1770 = vst [vmem:[%s4539_s8 + $0x68] sm:$0xff] %v1706_v46  ;;  %v726_v11 = vadd.f32 %v4119_v4, %v4747_v34  ;;  %v854_v60 = vadd.f32 %v4121_v52, %v4748_v6  ;;  %v4751_v59 = vld [vmem:[#allocation86_spill] sm:$0xff]  ;;  %v4752_v1 = vld [vmem:[#allocation89_spill] sm:$0xff]  ;;  %v4239_v50 = vpop.f32.mrb[27].mxu0  ;;  %v4241_v4 = vpop.f32.mrb[27].mxu1 }
 0x12b   :  { %1802 = vst [vmem:[%s4539_s8 + $0x168] sm:$0xff] %v1738_v18  ;;  %v1187_v56 = vadd.f32 %v4749_v62, %v715_v25  ;;  %v1219_v41 = vadd.f32 %v4750_v7, %v843_v20  ;;  %v718_v30 = vadd.f32 %v4133_v17, %v4751_v59  ;;  %v846_v19 = vadd.f32 %v4135_v33, %v4752_v1  ;;  %v4753_v63 = vld [vmem:[#allocation70_spill] sm:$0xff]  ;;  %v4754_v61 = vld [vmem:[#allocation73_spill] sm:$0xff]  ;;  %v4756_v58 = vld [vmem:[#allocation84_spill] sm:$0xff] }
 0x12c   :  { %v1519_v52 = vadd.f32 %v4753_v63, %v1189_v28  ;;  %v1551_v23 = vadd.f32 %v4754_v61, %v1221_v47  ;;  %v4755_v42 = vld [vmem:[#allocation81_spill] sm:$0xff]  ;;  %v1222_v5 = vadd.f32 %v4756_v58, %v854_v60  ;;  %v4757_v38 = vld [vmem:[#allocation76_spill] sm:$0xff]  ;;  %v4758_v18 = vld [vmem:[#allocation79_spill] sm:$0xff] }
 0x12d   :  { %v1190_v16 = vadd.f32 %v4755_v42, %v726_v11  ;;  %v1517_v46 = vadd.f32 %v4757_v38, %v1187_v56  ;;  %v1549_v55 = vadd.f32 %v4758_v18, %v1219_v41  ;;  %v4759_v17 = vld [vmem:[#allocation87_spill] sm:$0xff]  ;;  %v4760_v10 = vld [vmem:[#allocation90_spill] sm:$0xff]  ;;  %v4762_v60 = vld [vmem:[#allocation85_spill] sm:$0xff]  ;;  %v4253_v56 = vpop.f32.mrb[28].mxu0  ;;  %v4255_v7 = vpop.f32.mrb[28].mxu1 }
 0x12e   :  { %v1188_v25 = vadd.f32 %v4759_v17, %v718_v30  ;;  %v1220_v33 = vadd.f32 %v4760_v10, %v846_v19  ;;  %vm1583_vm0 = vcmp.ge.f32.partialorder %v1519_v52, 0.0  ;;  %v1647_v20 = vmul.f32 0.01, %v1519_v52  ;;  %v4761_v11 = vld [vmem:[#allocation82_spill] sm:$0xff]  ;;  %v4763_v30 = vld [vmem:[#allocation88_spill] sm:$0xff]  ;;  %v4764_v19 = vld [vmem:[#allocation91_spill] sm:$0xff] }
 0x12f   :  { %vm1615_vm1 = vcmp.ge.f32.partialorder %v1551_v23, 0.0  ;;  %v1679_v15 = vmul.f32 0.01, %v1551_v23  ;;  %vm1581_vm2 = vcmp.ge.f32.partialorder %v1517_v46, 0.0  ;;  %v1645_v28 = vmul.f32 0.01, %v1517_v46 }
 0x130   :  { %vm1613_vm3 = vcmp.ge.f32.partialorder %v1549_v55, 0.0  ;;  %v1677_v31 = vmul.f32 0.01, %v1549_v55  ;;  %v1711_v47 = vsel %vm1583_vm0, %v1519_v52, %v1647_v20  ;;  %v1520_v6 = vadd.f32 %v4761_v11, %v1190_v16  ;;  %v4265_v52 = vpop.f32.mrb[29].mxu0  ;;  %v4267_v61 = vpop.f32.mrb[29].mxu1  ;;  %v4770_v11 = vld [vmem:[#allocation97_spill] sm:$0xff] }
 0x131   :  { %v1743_v34 = vsel %vm1615_vm1, %v1551_v23, %v1679_v15  ;;  %v1552_v62 = vadd.f32 %v4762_v60, %v1222_v5  ;;  %1775 = vst [vmem:[%s4539_s8 + $0x90] sm:$0xff] %v1711_v47  ;;  %v1709_v41 = vsel %vm1581_vm2, %v1517_v46, %v1645_v28  ;;  %v1518_v1 = vadd.f32 %v4763_v30, %v1188_v25  ;;  %v4765_v46 = vld [vmem:[#allocation92_spill] sm:$0xff]  ;;  %v4279_v25 = vpop.f32.mrb[30].mxu0  ;;  %v4281_v10 = vpop.f32.mrb[30].mxu1  ;;  %v4771_v60 = vld [vmem:[#allocation99_spill] sm:$0xff]  ;;  %v4773_v30 = vld [vmem:[#allocation110_spill] sm:$0xff] }
 0x132   :  { %1807 = vst [vmem:[%s4539_s8 + $0x190] sm:$0xff] %v1743_v34  ;;  %v1741_v59 = vsel %vm1613_vm3, %v1549_v55, %v1677_v31  ;;  %v1550_v63 = vadd.f32 %v4764_v19, %v1220_v33  ;;  %1773 = vst [vmem:[%s4539_s8 + $0x80] sm:$0xff] %v1709_v41  ;;  %vm1584_vm4 = vcmp.ge.f32.partialorder %v1520_v6, 0.0  ;;  %v1648_v23 = vmul.f32 0.01, %v1520_v6  ;;  %v4766_v55 = vld [vmem:[#allocation95_spill] sm:$0xff] }
 0x133   :  { %1805 = vst [vmem:[%s4539_s8 + $0x180] sm:$0xff] %v1741_v59  ;;  %vm1616_vm5 = vcmp.ge.f32.partialorder %v1552_v62, 0.0  ;;  %v1680_v42 = vmul.f32 0.01, %v1552_v62  ;;  %vm1582_vm6 = vcmp.ge.f32.partialorder %v1518_v1, 0.0  ;;  %v739_v18 = vadd.f32 %v4155_v3, %v4765_v46  ;;  %v4293_v15 = vpop.f32.mrb[31].mxu0 }
 0x134   :  { %v1646_v16 = vmul.f32 0.01, %v1518_v1  ;;  %vm1614_vm7 = vcmp.ge.f32.partialorder %v1550_v63, 0.0  ;;  %v1678_v58 = vmul.f32 0.01, %v1550_v63  ;;  %v1712_v5 = vsel %vm1584_vm4, %v1520_v6, %v1648_v23  ;;  %v4295_v28 = vpop.f32.mrb[31].mxu1 }
 0x135   :  { %v1744_v38 = vsel %vm1616_vm5, %v1552_v62, %v1680_v42  ;;  %v867_v17 = vadd.f32 %v4157_v29, %v4766_v55  ;;  %1776 = vst [vmem:[%s4539_s8 + $0x98] sm:$0xff] %v1712_v5  ;;  %v731_v3 = vadd.f32 %v4163_v51, %v3596_v57  ;;  %v859_v29 = vadd.f32 %v4165_v44, %v3611_v13  ;;  %v4767_v31 = vld [vmem:[#allocation93_spill] sm:$0xff]  ;;  %v4769_v13 = vld [vmem:[#allocation104_spill] sm:$0xff]  ;;  %v4772_v41 = vld [vmem:[#allocation107_spill] sm:$0xff] }
 0x136   :  { %1808 = vst [vmem:[%s4539_s8 + $0x198] sm:$0xff] %v1744_v38  ;;  %v1710_v33 = vsel %vm1582_vm6, %v1518_v1, %v1646_v16  ;;  %v1742_v20 = vsel %vm1614_vm7, %v1550_v63, %v1678_v58  ;;  %v1193_v47 = vadd.f32 %v4767_v31, %v739_v18  ;;  %v4768_v57 = vld [vmem:[#allocation101_spill] sm:$0xff]  ;;  %v870_v44 = vadd.f32 %v4173_v2, %v4769_v13  ;;  %v4774_v19 = vld [vmem:[#allocation94_spill] sm:$0xff]  ;;  %v4775_v23 = vld [vmem:[#allocation96_spill] sm:$0xff] }
 0x137   :  { %1774 = vst [vmem:[%s4539_s8 + $0x88] sm:$0xff] %v1710_v33  ;;  %1806 = vst [vmem:[%s4539_s8 + $0x188] sm:$0xff] %v1742_v20  ;;  %v1225_v34 = vadd.f32 %v3588_v48, %v867_v17  ;;  %v742_v51 = vadd.f32 %v4171_v36, %v4768_v57  ;;  %v1191_v6 = vadd.f32 %v4770_v11, %v731_v3  ;;  %v4776_v42 = vld [vmem:[#allocation102_spill] sm:$0xff]  ;;  %v4777_v36 = vld [vmem:[#allocation105_spill] sm:$0xff] }
 0x138   :  { %v1223_v62 = vadd.f32 %v4771_v60, %v859_v29  ;;  %v734_v59 = vadd.f32 %v4177_v14, %v4772_v41  ;;  %v862_v1 = vadd.f32 %v4179_v45, %v4773_v30  ;;  %v1523_v63 = vadd.f32 %v4774_v19, %v1193_v47  ;;  %v4778_v5 = vld [vmem:[#allocation98_spill] sm:$0xff]  ;;  %v4779_v38 = vld [vmem:[#allocation100_spill] sm:$0xff]  ;;  %v4781_v17 = vld [vmem:[#allocation111_spill] sm:$0xff] }
 0x139   :  { %v1555_v48 = vadd.f32 %v4775_v23, %v1225_v34  ;;  %v1194_v16 = vadd.f32 %v4776_v42, %v742_v51  ;;  %v1226_v58 = vadd.f32 %v4777_v36, %v870_v44  ;;  %v1521_v2 = vadd.f32 %v4778_v5, %v1191_v6  ;;  %v4780_v18 = vld [vmem:[#allocation108_spill] sm:$0xff]  ;;  %v4782_v47 = vld [vmem:[#allocation103_spill] sm:$0xff]  ;;  %v4783_v57 = vld [vmem:[#allocation106_spill] sm:$0xff] }
 0x13a   :  { %v1553_v46 = vadd.f32 %v4779_v38, %v1223_v62  ;;  %v1192_v55 = vadd.f32 %v4780_v18, %v734_v59  ;;  %v1224_v33 = vadd.f32 %v4781_v17, %v862_v1  ;;  %vm1587_vm8 = vcmp.ge.f32.partialorder %v1523_v63, 0.0  ;;  %v4784_v11 = vld [vmem:[#allocation109_spill] sm:$0xff]  ;;  %v4785_v60 = vld [vmem:[#allocation112_spill] sm:$0xff]  ;;  %v4792_v17 = vld [vmem:[#allocation127_spill] sm:$0xff] }
 0x13b   :  { %v1651_v14 = vmul.f32 0.01, %v1523_v63  ;;  %vm1619_vm9 = vcmp.ge.f32.partialorder %v1555_v48, 0.0  ;;  %v1683_v45 = vmul.f32 0.01, %v1555_v48  ;;  %vm1585_vm10 = vcmp.ge.f32.partialorder %v1521_v2, 0.0 }
 0x13c   :  { %v1649_v20 = vmul.f32 0.01, %v1521_v2  ;;  %vm1617_vm11 = vcmp.ge.f32.partialorder %v1553_v46, 0.0  ;;  %v1681_v3 = vmul.f32 0.01, %v1553_v46  ;;  %v1524_v34 = vadd.f32 %v4782_v47, %v1194_v16  ;;  %v4786_v23 = vld [vmem:[#allocation113_spill] sm:$0xff] }
 0x13d   :  { %v1715_v29 = vsel %vm1587_vm8, %v1523_v63, %v1651_v14  ;;  %v1747_v31 = vsel %vm1619_vm9, %v1555_v48, %v1683_v45  ;;  %v1556_v51 = vadd.f32 %v4783_v57, %v1226_v58  ;;  %v1522_v6 = vadd.f32 %v4784_v11, %v1192_v55  ;;  %v4787_v42 = vld [vmem:[#allocation116_spill] sm:$0xff]  ;;  %v4789_v38 = vld [vmem:[#allocation117_spill] sm:$0xff]  ;;  %v4793_v14 = vld [vmem:[#allocation130_spill] sm:$0xff] }
 0x13e   :  { %1779 = vst [vmem:[%s4539_s8 + $0xb0] sm:$0xff] %v1715_v29  ;;  %1811 = vst [vmem:[%s4539_s8 + $0x1b0] sm:$0xff] %v1747_v31  ;;  %v1713_v13 = vsel %vm1585_vm10, %v1521_v2, %v1649_v20  ;;  %v1745_v44 = vsel %vm1617_vm11, %v1553_v46, %v1681_v3  ;;  %v1554_v62 = vadd.f32 %v4785_v60, %v1224_v33  ;;  %vm1588_vm12 = vcmp.ge.f32.partialorder %v1524_v34, 0.0  ;;  %v4794_v20 = vld [vmem:[#allocation115_spill] sm:$0xff]  ;;  %v4795_v29 = vld [vmem:[#allocation118_spill] sm:$0xff] }
 0x13f   :  { %1777 = vst [vmem:[%s4539_s8 + $0xa0] sm:$0xff] %v1713_v13  ;;  %1809 = vst [vmem:[%s4539_s8 + $0x1a0] sm:$0xff] %v1745_v44  ;;  %v1652_v41 = vmul.f32 0.01, %v1524_v34  ;;  %vm1620_vm13 = vcmp.ge.f32.partialorder %v1556_v51, 0.0  ;;  %vm1586_vm14 = vcmp.ge.f32.partialorder %v1522_v6, 0.0  ;;  %v755_v48 = vadd.f32 %v4199_v54, %v4786_v23 }
 0x140   :  { %v1684_v59 = vmul.f32 0.01, %v1556_v51  ;;  %v1650_v30 = vmul.f32 0.01, %v1522_v6  ;;  %vm1618_vm15 = vcmp.ge.f32.partialorder %v1554_v62, 0.0  ;;  %v883_v16 = vadd.f32 %v4201_v8, %v4787_v42  ;;  %v4788_v54 = vld [vmem:[#allocation114_spill] sm:$0xff] }
 0x141   :  { %v1682_v1 = vmul.f32 0.01, %v1554_v62  ;;  %v1716_v19 = vsel %vm1588_vm12, %v1524_v34, %v1652_v41  ;;  %v747_v5 = vadd.f32 %v4213_v26, %v3787_v39  ;;  %v875_v2 = vadd.f32 %v4215_v24, %v3812_v32  ;;  %v4790_v26 = vld [vmem:[#allocation119_spill] sm:$0xff]  ;;  %v4791_v24 = vld [vmem:[#allocation121_spill] sm:$0xff]  ;;  %v4798_v57 = vld [vmem:[#allocation120_spill] sm:$0xff] }
 0x142   :  { %v1748_v63 = vsel %vm1620_vm13, %v1556_v51, %v1684_v59  ;;  %1780 = vst [vmem:[%s4539_s8 + $0xb8] sm:$0xff] %v1716_v19  ;;  %v1714_v36 = vsel %vm1586_vm14, %v1522_v6, %v1650_v30  ;;  %v1197_v8 = vadd.f32 %v4788_v54, %v755_v48  ;;  %v1229_v46 = vadd.f32 %v4789_v38, %v883_v16  ;;  %v4796_v47 = vld [vmem:[#allocation123_spill] sm:$0xff]  ;;  %v4800_v13 = vld [vmem:[#allocation128_spill] sm:$0xff]  ;;  %v4803_v19 = vld [vmem:[#allocation126_spill] sm:$0xff] }
 0x143   :  { %1812 = vst [vmem:[%s4539_s8 + $0x1b8] sm:$0xff] %v1748_v63  ;;  %v1746_v58 = vsel %vm1618_vm15, %v1554_v62, %v1682_v1  ;;  %1778 = vst [vmem:[%s4539_s8 + $0xa8] sm:$0xff] %v1714_v36  ;;  %v758_v18 = vadd.f32 %v4229_v40, %v3829_v53  ;;  %v886_v39 = vadd.f32 %v4231_v21, %v3842_v37  ;;  %v4797_v53 = vld [vmem:[#allocation125_spill] sm:$0xff]  ;;  %v4799_v21 = vld [vmem:[#allocation122_spill] sm:$0xff] }
 0x144   :  { %1810 = vst [vmem:[%s4539_s8 + $0x1a8] sm:$0xff] %v1746_v58  ;;  %v1195_v32 = vadd.f32 %v4790_v26, %v747_v5  ;;  %v1227_v55 = vadd.f32 %v4791_v24, %v875_v2  ;;  %v750_v33 = vadd.f32 %v4239_v50, %v4792_v17  ;;  %v878_v45 = vadd.f32 %v4241_v4, %v4793_v14  ;;  %v4801_v11 = vld [vmem:[#allocation131_spill] sm:$0xff]  ;;  %v4802_v30 = vld [vmem:[#allocation124_spill] sm:$0xff]  ;;  %v4804_v42 = vld [vmem:[#allocation129_spill] sm:$0xff] }
 0x145   :  { %v1527_v3 = vadd.f32 %v4794_v20, %v1197_v8  ;;  %v1559_v31 = vadd.f32 %v4795_v29, %v1229_v46  ;;  %v1198_v34 = vadd.f32 %v4796_v47, %v758_v18  ;;  %v1230_v40 = vadd.f32 %v4797_v53, %v886_v39  ;;  %v4805_v36 = vld [vmem:[#allocation132_spill] sm:$0xff]  ;;  %v4806_v18 = vld [vmem:[#allocation133_spill] sm:$0xff]  ;;  %v4809_v47 = vld [vmem:[#allocation135_spill] sm:$0xff] }
 0x146   :  { %v1525_v37 = vadd.f32 %v4798_v57, %v1195_v32  ;;  %v1557_v51 = vadd.f32 %v4799_v21, %v1227_v55  ;;  %v1196_v44 = vadd.f32 %v4800_v13, %v750_v33  ;;  %v1228_v6 = vadd.f32 %v4801_v11, %v878_v45  ;;  %v4807_v26 = vld [vmem:[#allocation136_spill] sm:$0xff]  ;;  %v4420_v45 = vld [vmem:[%s4536_s5 + $0x1] ss:$0 sm:$0xff]  ;;  %v2534_v29 = vld [vmem:[%s4537_s6 + $0x78] sm:$0xff]  }
 0x147   :  { %vm1591_vm0 = vcmp.ge.f32.partialorder %v1527_v3, 0.0  ;;  %v1655_v50 = vmul.f32 0.01, %v1527_v3  ;;  %vm1623_vm1 = vcmp.ge.f32.partialorder %v1559_v31, 0.0  ;;  %v1687_v4 = vmul.f32 0.01, %v1559_v31 }
 0x148   :  { %vm1589_vm2 = vcmp.ge.f32.partialorder %v1525_v37, 0.0  ;;  %v1653_v60 = vmul.f32 0.01, %v1525_v37  ;;  %vm1621_vm3 = vcmp.ge.f32.partialorder %v1557_v51, 0.0  ;;  %v1685_v62 = vmul.f32 0.01, %v1557_v51 }
 0x149   :  { %v1719_v41 = vsel %vm1591_vm0, %v1527_v3, %v1655_v50  ;;  %v1751_v59 = vsel %vm1623_vm1, %v1559_v31, %v1687_v4  ;;  %v1528_v1 = vadd.f32 %v4802_v30, %v1198_v34  ;;  %v1560_v63 = vadd.f32 %v4803_v19, %v1230_v40  ;;  %v2533_v3 = vld [vmem:[%s4535_s4 + $0x78] sm:$0xff]   ;;  %v4459_v13 = vld [vmem:[%s4538_s7] ss:$0 sm:$0xff]  ;;  %v2539_v4 = vld [vmem:[%s4534_s3 + $0x1] ss:$0 sm:$0xff] }
 0x14a   :  { %1783 = vst [vmem:[%s4539_s8 + $0xd0] sm:$0xff] %v1719_v41  ;;  %1815 = vst [vmem:[%s4539_s8 + $0x1d0] sm:$0xff] %v1751_v59  ;;  %v1717_v23 = vsel %vm1589_vm2, %v1525_v37, %v1653_v60  ;;  %v1749_v48 = vsel %vm1621_vm3, %v1557_v51, %v1685_v62  ;;  %v1526_v16 = vadd.f32 %v4804_v42, %v1196_v44  ;;  %v2190_v31 = vunpack.c.h.bf16 %v2534_v29  ;;  %v2535_v53 = vld [vmem:[%s4533_s2 + $0xf8] sm:$0xff]   ;;  %v2536_v37 = vld [vmem:[%s4534_s3] ss:$0 sm:$0xff] }
 0x14b   :  { %v1558_v58 = vadd.f32 %v4805_v36, %v1228_v6  ;;  %1781 = vst [vmem:[%s4539_s8 + $0xc0] sm:$0xff] %v1717_v23  ;;  %1813 = vst [vmem:[%s4539_s8 + $0x1c0] sm:$0xff] %v1749_v48  ;;  %vm1592_vm4 = vcmp.ge.f32.partialorder %v1528_v1, 0.0  ;;  %v1656_v5 = vmul.f32 0.01, %v1528_v1  ;;  %vm1624_vm5 = vcmp.ge.f32.partialorder %v1560_v63, 0.0 }
 0x14c   :  { %v1688_v2 = vmul.f32 0.01, %v1560_v63  ;;  %vm1590_vm6 = vcmp.ge.f32.partialorder %v1526_v16, 0.0  ;;  %v1654_v54 = vmul.f32 0.01, %v1526_v16  ;;  %v771_v39 = vadd.f32 %v4253_v56, %v4806_v18  ;;  %v4808_v56 = vld [vmem:[#allocation134_spill] sm:$0xff] }
 0x14d   :  { %vm1622_vm7 = vcmp.ge.f32.partialorder %v1558_v58, 0.0  ;;  %v1686_v8 = vmul.f32 0.01, %v1558_v58  ;;  %v1720_v38 = vsel %vm1592_vm4, %v1528_v1, %v1656_v5  ;;  %v899_v32 = vadd.f32 %v4255_v7, %v4807_v26  ;;  %v4453_v51 = vld [vmem:[%s4536_s5] ss:$0 sm:$0xff]  ;;  %v2540_v48 = vld [vmem:[%s4535_s4 + $0xf8] sm:$0xff]  }
 0x14e   :  { %v1752_v46 = vsel %vm1624_vm5, %v1560_v63, %v1688_v2  ;;  %1784 = vst [vmem:[%s4539_s8 + $0xd8] sm:$0xff] %v1720_v38  ;;  %v1718_v24 = vsel %vm1590_vm6, %v1526_v16, %v1654_v54  ;;  %v763_v17 = vadd.f32 %v4265_v52, %v3940_v0  ;;  %v891_v33 = vadd.f32 %v4267_v61, %v3961_v49  ;;  %v4427_v49 = vld [vmem:[%s4538_s7 + $0x1] ss:$0 sm:$0xff]  ;;  %v2541_v16 = vld [vmem:[%s4537_s6 + $0xf8] sm:$0xff]   ;;  %v2543_v54 = vld [vmem:[%s4535_s4 + $0x70] sm:$0xff]  }
 0x14f   :  { %1816 = vst [vmem:[%s4539_s8 + $0x1d8] sm:$0xff] %v1752_v46  ;;  %v1750_v55 = vsel %vm1622_vm7, %v1558_v58, %v1686_v8  ;;  %1782 = vst [vmem:[%s4539_s8 + $0xc8] sm:$0xff] %v1718_v24  ;;  %v1201_v7 = vadd.f32 %v4808_v56, %v771_v39  ;;  %v1233_v14 = vadd.f32 %v3933_v27, %v899_v32  ;;  %v2532_v27 = vld [vmem:[%s4533_s2 + $0x78] sm:$0xff]   ;;  %v1998_v40 = vunpack.c.h.bf16 %v2535_v53  ;;  %v2542_v58 = vld [vmem:[%s4533_s2 + $0x70] sm:$0xff]  }
 0x150   :  { %1814 = vst [vmem:[%s4539_s8 + $0x1c8] sm:$0xff] %v1750_v55  ;;  %v1167_v0 = vadd.f32 %v4420_v45, %v3945_v12  ;;  %v1497_v52 = vadd.f32 %v4427_v49, %v3953_v35  ;;  %v1199_v61 = vadd.f32 %v3950_v9, %v763_v17  ;;  %v1934_v20 = vunpack.c.h.bf16 %v2532_v27  ;;  %v2544_v38 = vld [vmem:[%s4537_s6 + $0x70] sm:$0xff]  }
 0x151   :  { %v2062_v12 = vunpack.c.h.bf16 %v2533_v3  ;;  %v1531_v34 = vadd.f32 %v4809_v47, %v1201_v7  ;;  %v1563_v35 = vadd.f32 %v3936_v22, %v1233_v14  ;;  %v1399_v44 = vmul.f32 %v4459_v13, %v2190_v31  ;;  %v2546_v31 = vld [vmem:[%s4535_s4 + $0xf0] sm:$0xff]  }
 0x152   :  { %v1231_v9 = vadd.f32 %v1167_v0, %v891_v33  ;;  %v1529_v57 = vadd.f32 %v3958_v43, %v1199_v61  ;;  %v274_v21 = vmul.f32 %v2536_v37, %v1934_v20  ;;  %v306_v23 = vmul.f32 %v2536_v37, %v1998_v40  ;;  %v2545_v33 = vld [vmem:[%s4533_s2 + $0xf0] sm:$0xff]  }
 0x153   :  { %v1069_v22 = vmul.f32 %v4453_v51, %v2062_v12  ;;  %vm1595_vm8 = vcmp.ge.f32.partialorder %v1531_v34, 0.0  ;;  %v1659_v43 = vmul.f32 0.01, %v1531_v34  ;;  %vm1627_vm9 = vcmp.ge.f32.partialorder %v1563_v35, 0.0 }
 0x154   :  { %v1691_v11 = vmul.f32 0.01, %v1563_v35  ;;  %vm1593_vm10 = vcmp.ge.f32.partialorder %v1529_v57, 0.0  ;;  %v1657_v6 = vmul.f32 0.01, %v1529_v57  ;;  %v1561_v50 = vadd.f32 %v1497_v52, %v1231_v9 }
 0x155   :  { %v343_v60 = vadd.f32 %v2539_v4, %v274_v21  ;;  %v1723_v62 = vsel %vm1595_vm8, %v1531_v34, %v1659_v43  ;;  %v1138_v59 = vadd.f32 %v4420_v45, %v1069_v22  ;;  %v1468_v30 = vadd.f32 %v4427_v49, %v1399_v44  ;;  %v2547_v34 = vld [vmem:[%s4537_s6 + $0xf0] sm:$0xff]  }
 0x156   :  { %v1755_v41 = vsel %vm1627_vm9, %v1563_v35, %v1691_v11  ;;  %1787 = vst [vmem:[%s4539_s8 + $0xf0] sm:$0xff] %v1723_v62  ;;  %v1721_v1 = vsel %vm1593_vm10, %v1529_v57, %v1657_v6  ;;  %vm1625_vm11 = vcmp.ge.f32.partialorder %v1561_v50, 0.0  ;;  %v1689_v19 = vmul.f32 0.01, %v1561_v50 }
 0x157   :  { %1819 = vst [vmem:[%s4539_s8 + $0x1f0] sm:$0xff] %v1755_v41  ;;  %v774_v63 = vadd.f32 %v4279_v25, %v343_v60  ;;  %1785 = vst [vmem:[%s4539_s8 + $0xe0] sm:$0xff] %v1721_v1  ;;  %v2126_v42 = vunpack.c.h.bf16 %v2540_v48  ;;  %v2254_v36 = vunpack.c.h.bf16 %v2541_v16  ;;  %v1930_v25 = vunpack.c.h.bf16 %v2542_v58 }
 0x158   :  { %v1753_v5 = vsel %vm1625_vm11, %v1561_v50, %v1689_v19  ;;  %v2058_v8 = vunpack.c.h.bf16 %v2543_v54  ;;  %v2186_v46 = vunpack.c.h.bf16 %v2544_v38  ;;  %v375_v18 = vadd.f32 %v2539_v4, %v306_v23 }
 0x159   :  { %v1202_v2 = vadd.f32 %v1138_v59, %v774_v63  ;;  %1817 = vst [vmem:[%s4539_s8 + $0x1e0] sm:$0xff] %v1753_v5  ;;  %v1101_v39 = vmul.f32 %v4453_v51, %v2126_v42  ;;  %v1431_v26 = vmul.f32 %v4459_v13, %v2254_v36  ;;  %v272_v32 = vmul.f32 %v2536_v37, %v1930_v25 }
 0x15a   :  { %v1067_v55 = vmul.f32 %v4453_v51, %v2058_v8  ;;  %v1397_v17 = vmul.f32 %v4459_v13, %v2186_v46  ;;  %v1994_v56 = vunpack.c.h.bf16 %v2545_v33  ;;  %v902_v7 = vadd.f32 %v4281_v10, %v375_v18 }
 0x15b   :  { %v1532_v24 = vadd.f32 %v1468_v30, %v1202_v2  ;;  %v1170_v14 = vadd.f32 %v4420_v45, %v1101_v39  ;;  %v1500_v0 = vadd.f32 %v4427_v49, %v1431_v26  ;;  %v341_v52 = vadd.f32 %v2539_v4, %v272_v32 }
 0x15c   :  { %v1136_v27 = vadd.f32 %v4420_v45, %v1067_v55  ;;  %v1466_v20 = vadd.f32 %v4427_v49, %v1397_v17  ;;  %v304_v29 = vmul.f32 %v2536_v37, %v1994_v56  ;;  %v2122_v10 = vunpack.c.h.bf16 %v2546_v31 }
 0x15d   :  { %vm1596_vm12 = vcmp.ge.f32.partialorder %v1532_v24, 0.0  ;;  %v1660_v61 = vmul.f32 0.01, %v1532_v24  ;;  %v1234_v3 = vadd.f32 %v1170_v14, %v902_v7  ;;  %v766_v12 = vadd.f32 %v4293_v15, %v341_v52 }
 0x15e   :  { %v2250_v35 = vunpack.c.h.bf16 %v2547_v34  ;;  %v373_v40 = vadd.f32 %v2539_v4, %v304_v29  ;;  %v1099_v15 = vmul.f32 %v4453_v51, %v2122_v10 }
 0x15f   :  { %v1724_v47 = vsel %vm1596_vm12, %v1532_v24, %v1660_v61  ;;  %v1564_v9 = vadd.f32 %v1500_v0, %v1234_v3  ;;  %v1200_v53 = vadd.f32 %v1136_v27, %v766_v12 }
 0x160   :  { %1788 = vst [vmem:[%s4539_s8 + $0xf8] sm:$0xff] %v1724_v47  ;;  %v1429_v57 = vmul.f32 %v4459_v13, %v2250_v35  ;;  %v894_v22 = vadd.f32 %v4295_v28, %v373_v40  ;;  %v1168_v44 = vadd.f32 %v4420_v45, %v1099_v15 }
 0x161   :  { %vm1628_vm13 = vcmp.ge.f32.partialorder %v1564_v9, 0.0  ;;  %v1692_v37 = vmul.f32 0.01, %v1564_v9  ;;  %v1530_v21 = vadd.f32 %v1466_v20, %v1200_v53 }
 0x162   :  { %v1498_v43 = vadd.f32 %v4427_v49, %v1429_v57  ;;  %v1232_v50 = vadd.f32 %v1168_v44, %v894_v22 }
 0x163   :  { %v1756_v11 = vsel %vm1628_vm13, %v1564_v9, %v1692_v37  ;;  %vm1594_vm14 = vcmp.ge.f32.partialorder %v1530_v21, 0.0  ;;  %v1658_v6 = vmul.f32 0.01, %v1530_v21 }
 0x164   :  { %1820 = vst [vmem:[%s4539_s8 + $0x1f8] sm:$0xff] %v1756_v11  ;;  %v1562_v13 = vadd.f32 %v1498_v43, %v1232_v50 }
 0x165   :  { %v1722_v51 = vsel %vm1594_vm14, %v1530_v21, %v1658_v6 }
 0x166   :  { %1786 = vst [vmem:[%s4539_s8 + $0xe8] sm:$0xff] %v1722_v51  ;;  %vm1626_vm15 = vcmp.ge.f32.partialorder %v1562_v13, 0.0  ;;  %v1690_v28 = vmul.f32 0.01, %v1562_v13 }
 0x168   :  { %v1754_v4 = vsel %vm1626_vm15, %v1562_v13, %v1690_v28 }
 0x169   :  { %1818 = vst [vmem:[%s4539_s8 + $0x1e8] sm:$0xff] %v1754_v4 }

</bundles_post_ra>
